<compile_context>
chip_gen: v6e
topology: v6e:2x2x1
jax: 0.10.0
libtpu: 0.0.40
codegen_flags: <defaults>
</compile_context>

<pallas_src>
import functools
import math

import jax
import jax.numpy as jnp
from jax.experimental import pallas as pl
from jax.experimental.pallas import tpu as pltpu


N_CONV_PARAMS = 8    # per conv: w1pc, b1, w2f, b2f, w3f, b3f, s3, t3
N_HEAD_PARAMS = 6    # wl1, bl1, wl2, bl2, wl3(pad128), bl3(pad128)


# ----------------------------------------------------------------------------
# Single fused kernel: gather + 3x EdgeConv + global max pool + head + log_softmax
# (one grid step == G graphs; everything stays in VMEM)
# ----------------------------------------------------------------------------
def fused_net_kernel(*refs):
    x_ref, pos_ref, nbr_ref, w1b_all_ref = refs[:4]
    params = refs[4:-1]
    out_ref = refs[-1]

    conv_params = [params[i * N_CONV_PARAMS:(i + 1) * N_CONV_PARAMS] for i in range(3)]
    wl1, bl1, wl2, bl2, wl3, bl3 = params[3 * N_CONV_PARAMS:3 * N_CONV_PARAMS + N_HEAD_PARAMS]

    def dotf(a, b):
        return jnp.dot(a, b, preferred_element_type=jnp.float32)

    pos = pos_ref[...]                                   # (GNp, 3)   float32
    feat = x_ref[...]                                    # (GNp, F)   float32
    idx = nbr_ref[0]                                     # (GNp*K, 1) int32, block-local node ids
    GNp = pos.shape[0]
    KM = idx.shape[0]
    K = KM // GNp
    G = out_ref.shape[1]                                 # graphs handled by this grid step
    Np = GNp // G

    # ---- neighbor gather fused into the MXU (exact: 0/1 coefficients, f32 accumulation) ----
    # pe_all[e, :] = pos_j(e) @ [W1b_conv1 | W1b_conv2 | W1b_conv3]
    pw_all = dotf(pos, w1b_all_ref[...])                                        # (GNp, 160)
    lanes = jax.lax.broadcasted_iota(jnp.int32, (KM, GNp), 1)
    onehot = (idx == lanes).astype(jnp.float32)                                 # (KM, GNp)
    pe_all = dotf(onehot, pw_all)                                               # (KM, 160)

    off = 0
    for (w1pc, b1, w2, b2, w3, b3, s3, t3) in conv_params:
        H1 = w1pc.shape[-1]
        # ---- layer 1 (Linear, split by linearity) ----
        # per-node part: concat([pos_i, feat_i]) @ [W1a - W1b ; W1c] + b1
        a = dotf(jnp.concatenate([pos, feat], axis=-1), w1pc[...]) + b1[...]    # (GNp, H1)
        # per-edge part: slice of the hoisted gather matmul
        pe = pe_all[:, off:off + H1]                                            # (KM, H1)
        off += H1
        h = jnp.maximum(pe.reshape(GNp, K, H1) + a[:, None, :], 0.0)            # ReLU(lin1), node-major edges
        h = h.reshape(KM, H1)
        # ---- layer 2 (BN1 folded into w2/b2) ----
        h = jnp.maximum(dotf(h, w2[...]) + b2[...], 0.0)
        # ---- layer 3 (BN2 folded into w3/b3) ----
        h = jnp.maximum(dotf(h, w3[...]) + b3[...], 0.0)
        # last BN of the MLP (eval-mode affine) applied per edge, BEFORE the max
        h = h * s3[...] + t3[...]
        # aggr='max' over the K neighbors of each node
        feat = jnp.max(h.reshape(GNp, K, -1), axis=1)                           # (GNp, Hout)

    # ---- global max pool per graph + MLP head (dropout p=0.5 is identity in eval mode) ----
    pooled = jnp.max(feat.reshape(G, Np, -1), axis=1)                           # (G, 128)
    h = jnp.maximum(dotf(pooled, wl1[...]) + bl1[...], 0.0)
    h = jnp.maximum(dotf(h, wl2[...]) + bl2[...], 0.0)
    logits = dotf(h, wl3[...]) + bl3[...]                                       # (G, 128) lane-padded
    z = logits - jnp.max(logits, axis=-1, keepdims=True)
    logp = z - jnp.log(jnp.sum(jnp.exp(z), axis=-1, keepdims=True))             # log_softmax (padded lanes ~ -inf)
    out_ref[...] = logp.reshape(out_ref.shape)


def net_forward(flat_params, x, pos, nbr, *, batch_size, num_classes, num_steps=1):
    """Full forward pass of `Net` as a single fused Pallas call.

    num_steps=1 is best on v5e/v6e (single TensorCore: the grid is a serial loop);
    on v7x use num_steps=2 so each TensorCore gets half the batch.
    """
    N, F = x.shape
    K = nbr.shape[1]
    assert N % batch_size == 0, "nodes must be sorted with equal-size graphs"
    Np = N // batch_size
    assert batch_size % num_steps == 0
    G = batch_size // num_steps          # graphs folded into each grid step's matmul M dim
    GNp = G * Np
    assert Np % 8 == 0 and GNp % 8 == 0, "node counts must keep (8,128) sublane tiling clean"

    # Block-local neighbor indices (graph edges never cross grid-step blocks).  These are
    # tiny int32 ops on the static graph structure and could be precomputed once per batch.
    node_step = (jnp.arange(N, dtype=jnp.int32) // GNp)[:, None]
    nbr_local = nbr.astype(jnp.int32) - node_step * GNp
    nbr_col = nbr_local.reshape(num_steps, GNp * K, 1)           # node-major edge ordering

    def const_spec(arr):
        nd = arr.ndim
        return pl.BlockSpec(arr.shape, lambda s, n=nd: (0,) * n)  # resident across the grid

    in_specs = [
        pl.BlockSpec((GNp, F), lambda s: (s, 0)),
        pl.BlockSpec((GNp, 3), lambda s: (s, 0)),
        pl.BlockSpec((1, GNp * K, 1), lambda s: (s, 0, 0)),
    ] + [const_spec(p) for p in flat_params]

    out = pl.pallas_call(
        fused_net_kernel,
        out_shape=jax.ShapeDtypeStruct((num_steps, G, 128), jnp.float32),   # lane-dense output
        grid_spec=pltpu.PrefetchScalarGridSpec(
            num_scalar_prefetch=0,
            grid=(num_steps,),
            in_specs=in_specs,
            out_specs=pl.BlockSpec((1, G, 128), lambda s: (s, 0, 0)),
        ),
        compiler_params=pltpu.CompilerParams(
            dimension_semantics=("parallel",)),
    )(x, pos, nbr_col, *flat_params)
    return out.reshape(batch_size, 128)[:, :num_classes]


# ----------------------------------------------------------------------------
# Deterministic parameter construction (matches shapes of the PyTorch module)
# ----------------------------------------------------------------------------
def init_linear(key, din, dout):
    k1, k2 = jax.random.split(key)
    bound = 1.0 / math.sqrt(din)
    w = jax.random.uniform(k1, (din, dout), jnp.float32, -bound, bound)
    b = jax.random.uniform(k2, (1, dout), jnp.float32, -bound, bound)
    return w, b


def init_mlp(key, channels, eps=1e-5):
    """MLP([c0, c1, ...]) = Seq(Lin, ReLU, BN) per layer; BN at init:
    gamma=1, beta=0, running_mean=0, running_var=1 -> folded eval-mode scale/shift."""
    layers = []
    for i in range(1, len(channels)):
        key, sub = jax.random.split(key)
        w, b = init_linear(sub, channels[i - 1], channels[i])
        gamma = jnp.ones((1, channels[i]), jnp.float32)
        beta = jnp.zeros((1, channels[i]), jnp.float32)
        rmean = jnp.zeros((1, channels[i]), jnp.float32)
        rvar = jnp.ones((1, channels[i]), jnp.float32)
        scale = gamma / jnp.sqrt(rvar + eps)
        shift = beta - rmean * scale
        layers.append((w, b, scale, shift))
    return key, tuple(layers)


def build_params(key, num_features, num_classes):
    key, conv1 = init_mlp(key, [2 * 3 + num_features, 32, 32, 32])
    key, conv2 = init_mlp(key, [2 * 3 + 32, 64, 64, 64])
    key, conv3 = init_mlp(key, [2 * 3 + 64, 64, 128, 128])
    key, k1 = jax.random.split(key)
    key, k2 = jax.random.split(key)
    key, k3 = jax.random.split(key)
    lin1 = init_linear(k1, 128, 64)
    lin2 = init_linear(k2, 64, 32)
    lin3 = init_linear(k3, 32, num_classes)
    return dict(conv1=conv1, conv2=conv2, conv3=conv3, head=(lin1, lin2, lin3))


def prepare_params(raw):
    """Fold eval-mode BN of MLP layers 1 & 2 into the next Linear (exact), split the first
    Linear by the message structure (merging the per-node matmuls), pre-concatenate the three
    per-edge position weights into one (3, 160) matrix, and pad the classifier to 128 lanes
    (padded classes get bias -1e30 -> exp underflows to exactly 0)."""

    def prep_conv(layers):
        (w1, b1, s1, t1), (w2, b2, s2, t2), (w3, b3, s3, t3) = layers
        w1a, w1b, w1c = w1[0:3], w1[3:6], w1[6:]
        w1pc = jnp.concatenate([w1a - w1b, w1c], axis=0)   # applied to concat([pos_i, feat_i])
        w2f = s1.reshape(-1, 1) * w2                       # fold BN1 into Linear2: diag(s1) @ W2
        b2f = b2 + t1 @ w2                                 #                        t1 @ W2 + b2
        w3f = s2.reshape(-1, 1) * w3                       # fold BN2 into Linear3
        b3f = b3 + t2 @ w3
        return w1b, (w1pc, b1, w2f, b2f, w3f, b3f, s3, t3)

    w1b_list, conv_flat = [], []
    for name in ("conv1", "conv2", "conv3"):
        w1b, p = prep_conv(raw[name])
        w1b_list.append(w1b)
        conv_flat.extend(p)
    w1b_all = jnp.concatenate(w1b_list, axis=1)            # (3, 32 + 64 + 64)

    (wl1, bl1), (wl2, bl2), (wl3, bl3) = raw["head"]
    pad = 128 - wl3.shape[1]
    wl3p = jnp.pad(wl3, ((0, 0), (0, pad)))
    bl3p = jnp.pad(bl3, ((0, 0), (0, pad)), constant_values=-1e30)
    return (w1b_all,) + tuple(conv_flat) + (wl1, bl1, wl2, bl2, wl3p, bl3p)


# ----------------------------------------------------------------------------
# Pure-JAX float32 reference of the original module (for a correctness check)
# ----------------------------------------------------------------------------
def reference_forward(raw, x, pos, nbr, batch_size):
    N = x.shape[0]
    Np = N // batch_size

    def mlp(h, layers):
        for (w, b, s, t) in layers:
            h = jnp.maximum(h @ w + b, 0.0)    # Linear -> ReLU
            h = h * s + t                      # BatchNorm1d (eval)
        return h

    feat = x
    for name in ("conv1", "conv2", "conv3"):
        pos_j = pos[nbr]                                               # (N, K, 3)
        pos_i = jnp.broadcast_to(pos[:, None, :], pos_j.shape)
        feat_i = jnp.broadcast_to(feat[:, None, :], (N, nbr.shape[1], feat.shape[-1]))
        msg = jnp.concatenate([pos_i, pos_j - pos_i, feat_i], axis=-1)
        msg = mlp(msg.reshape(N * nbr.shape[1], -1), raw[name])
        feat = jnp.max(msg.reshape(N, nbr.shape[1], -1), axis=1)       # aggr='max'
    pooled = jnp.max(feat.reshape(batch_size, Np, -1), axis=1)         # global_max_pool
    (w1, b1), (w2, b2), (w3, b3) = raw["head"]
    h = jnp.maximum(pooled @ w1 + b1, 0.0)
    h = jnp.maximum(h @ w2 + b2, 0.0)
    logits = h @ w3 + b3                                               # dropout = identity (eval)
    return jax.nn.log_softmax(logits, axis=-1)


# ----------------------------------------------------------------------------
if __name__ == "__main__":
    num_features = 5
    num_classes = 10
    B = 2              # graphs in the batch (all folded into the matmul M dim, grid=(1,))
    N_PER = 32         # nodes per graph (multiple of 8 -> clean sublane tiling)
    N = B * N_PER      # total nodes
    K = 8              # neighbors per node (every node has K in-edges, so PyG's
                       # zero-fill for isolated targets never triggers)

    key = jax.random.PRNGKey(0)
    key, kx, kp = jax.random.split(key, 3)
    x = jax.random.normal(kx, (N, num_features), jnp.float32)
    pos = jax.random.normal(kp, (N, 3), jnp.float32)

    # Synthetic per-graph ring kNN graph: neighbors of node i are (i+1..i+K) mod N_PER
    local = jnp.arange(N_PER)
    offs = jnp.arange(1, K + 1)
    nbr_local = (local[:, None] + offs[None, :]) % N_PER               # (N_PER, K)
    nbr = jnp.concatenate([nbr_local + g * N_PER for g in range(B)], axis=0)
    nbr = nbr.astype(jnp.int32)                                        # (N, K)

    raw = build_params(key, num_features, num_classes)
    flat = prepare_params(raw)

    fwd = jax.jit(functools.partial(net_forward,
                                    batch_size=B,
                                    num_classes=num_classes,
                                    num_steps=1))                      # use num_steps=2 on v7x
    out = jax.block_until_ready(fwd(flat, x, pos, nbr))

    assert out.shape == (B, num_classes)
    assert bool(jnp.all(jnp.isfinite(out)))
    # log_softmax rows must sum to 1 in probability space
    assert bool(jnp.allclose(jnp.sum(jnp.exp(out), axis=-1), 1.0, atol=1e-4))
    # cross-check against a pure-JAX float32 reference (everything is f32 now -> tight tol)
    ref = reference_forward(raw, x, pos, nbr, B)
    assert bool(jnp.allclose(out, ref, atol=2e-3)), "fused kernel mismatch vs reference"

    print("KERNEL_OK")
</pallas_src>

<mosaic_0001>
module attributes {stable_mosaic.version = 11 : i64} {
  func.func @fused_net_kernel(%arg0: i32, %arg1: memref<64x5xf32, #tpu.memory_space<vmem>>, %arg2: memref<64x3xf32, #tpu.memory_space<vmem>>, %arg3: memref<1x512x1xi32, #tpu.memory_space<vmem>>, %arg4: memref<3x160xf32, #tpu.memory_space<vmem>>, %arg5: memref<8x32xf32, #tpu.memory_space<vmem>>, %arg6: memref<1x32xf32, #tpu.memory_space<vmem>>, %arg7: memref<32x32xf32, #tpu.memory_space<vmem>>, %arg8: memref<1x32xf32, #tpu.memory_space<vmem>>, %arg9: memref<32x32xf32, #tpu.memory_space<vmem>>, %arg10: memref<1x32xf32, #tpu.memory_space<vmem>>, %arg11: memref<1x32xf32, #tpu.memory_space<vmem>>, %arg12: memref<1x32xf32, #tpu.memory_space<vmem>>, %arg13: memref<35x64xf32, #tpu.memory_space<vmem>>, %arg14: memref<1x64xf32, #tpu.memory_space<vmem>>, %arg15: memref<64x64xf32, #tpu.memory_space<vmem>>, %arg16: memref<1x64xf32, #tpu.memory_space<vmem>>, %arg17: memref<64x64xf32, #tpu.memory_space<vmem>>, %arg18: memref<1x64xf32, #tpu.memory_space<vmem>>, %arg19: memref<1x64xf32, #tpu.memory_space<vmem>>, %arg20: memref<1x64xf32, #tpu.memory_space<vmem>>, %arg21: memref<67x64xf32, #tpu.memory_space<vmem>>, %arg22: memref<1x64xf32, #tpu.memory_space<vmem>>, %arg23: memref<64x128xf32, #tpu.memory_space<vmem>>, %arg24: memref<1x128xf32, #tpu.memory_space<vmem>>, %arg25: memref<128x128xf32, #tpu.memory_space<vmem>>, %arg26: memref<1x128xf32, #tpu.memory_space<vmem>>, %arg27: memref<1x128xf32, #tpu.memory_space<vmem>>, %arg28: memref<1x128xf32, #tpu.memory_space<vmem>>, %arg29: memref<128x64xf32, #tpu.memory_space<vmem>>, %arg30: memref<1x64xf32, #tpu.memory_space<vmem>>, %arg31: memref<64x32xf32, #tpu.memory_space<vmem>>, %arg32: memref<1x32xf32, #tpu.memory_space<vmem>>, %arg33: memref<32x128xf32, #tpu.memory_space<vmem>>, %arg34: memref<1x128xf32, #tpu.memory_space<vmem>>, %arg35: memref<1x2x128xf32, #tpu.memory_space<vmem>>) attributes {dimension_semantics = [#tpu.dimension_semantics<parallel>], iteration_bounds = array<i64: 1>, scalar_prefetch = 0 : i64, scratch_operands = 0 : i64, tpu.core_type = #tpu.core_type<tc>, window_params = [{transform_indices = @transform_0, window_bounds = array<i64: 64, 5>}, {transform_indices = @transform_1, window_bounds = array<i64: 64, 3>}, {transform_indices = @transform_2, window_bounds = array<i64: 1, 512, 1>}, {pipeline_mode = #tpu.pipeline_mode<synchronous>, transform_indices = @transform_3, window_bounds = array<i64: 3, 160>}, {pipeline_mode = #tpu.pipeline_mode<synchronous>, transform_indices = @transform_4, window_bounds = array<i64: 8, 32>}, {pipeline_mode = #tpu.pipeline_mode<synchronous>, transform_indices = @transform_5, window_bounds = array<i64: 1, 32>}, {pipeline_mode = #tpu.pipeline_mode<synchronous>, transform_indices = @transform_6, window_bounds = array<i64: 32, 32>}, {pipeline_mode = #tpu.pipeline_mode<synchronous>, transform_indices = @transform_7, window_bounds = array<i64: 1, 32>}, {pipeline_mode = #tpu.pipeline_mode<synchronous>, transform_indices = @transform_8, window_bounds = array<i64: 32, 32>}, {pipeline_mode = #tpu.pipeline_mode<synchronous>, transform_indices = @transform_9, window_bounds = array<i64: 1, 32>}, {pipeline_mode = #tpu.pipeline_mode<synchronous>, transform_indices = @transform_10, window_bounds = array<i64: 1, 32>}, {pipeline_mode = #tpu.pipeline_mode<synchronous>, transform_indices = @transform_11, window_bounds = array<i64: 1, 32>}, {pipeline_mode = #tpu.pipeline_mode<synchronous>, transform_indices = @transform_12, window_bounds = array<i64: 35, 64>}, {pipeline_mode = #tpu.pipeline_mode<synchronous>, transform_indices = @transform_13, window_bounds = array<i64: 1, 64>}, {pipeline_mode = #tpu.pipeline_mode<synchronous>, transform_indices = @transform_14, window_bounds = array<i64: 64, 64>}, {pipeline_mode = #tpu.pipeline_mode<synchronous>, transform_indices = @transform_15, window_bounds = array<i64: 1, 64>}, {pipeline_mode = #tpu.pipeline_mode<synchronous>, transform_indices = @transform_16, window_bounds = array<i64: 64, 64>}, {pipeline_mode = #tpu.pipeline_mode<synchronous>, transform_indices = @transform_17, window_bounds = array<i64: 1, 64>}, {pipeline_mode = #tpu.pipeline_mode<synchronous>, transform_indices = @transform_18, window_bounds = array<i64: 1, 64>}, {pipeline_mode = #tpu.pipeline_mode<synchronous>, transform_indices = @transform_19, window_bounds = array<i64: 1, 64>}, {pipeline_mode = #tpu.pipeline_mode<synchronous>, transform_indices = @transform_20, window_bounds = array<i64: 67, 64>}, {pipeline_mode = #tpu.pipeline_mode<synchronous>, transform_indices = @transform_21, window_bounds = array<i64: 1, 64>}, {pipeline_mode = #tpu.pipeline_mode<synchronous>, transform_indices = @transform_22, window_bounds = array<i64: 64, 128>}, {pipeline_mode = #tpu.pipeline_mode<synchronous>, transform_indices = @transform_23, window_bounds = array<i64: 1, 128>}, {pipeline_mode = #tpu.pipeline_mode<synchronous>, transform_indices = @transform_24, window_bounds = array<i64: 128, 128>}, {pipeline_mode = #tpu.pipeline_mode<synchronous>, transform_indices = @transform_25, window_bounds = array<i64: 1, 128>}, {pipeline_mode = #tpu.pipeline_mode<synchronous>, transform_indices = @transform_26, window_bounds = array<i64: 1, 128>}, {pipeline_mode = #tpu.pipeline_mode<synchronous>, transform_indices = @transform_27, window_bounds = array<i64: 1, 128>}, {pipeline_mode = #tpu.pipeline_mode<synchronous>, transform_indices = @transform_28, window_bounds = array<i64: 128, 64>}, {pipeline_mode = #tpu.pipeline_mode<synchronous>, transform_indices = @transform_29, window_bounds = array<i64: 1, 64>}, {pipeline_mode = #tpu.pipeline_mode<synchronous>, transform_indices = @transform_30, window_bounds = array<i64: 64, 32>}, {pipeline_mode = #tpu.pipeline_mode<synchronous>, transform_indices = @transform_31, window_bounds = array<i64: 1, 32>}, {pipeline_mode = #tpu.pipeline_mode<synchronous>, transform_indices = @transform_32, window_bounds = array<i64: 32, 128>}, {pipeline_mode = #tpu.pipeline_mode<synchronous>, transform_indices = @transform_33, window_bounds = array<i64: 1, 128>}, {transform_indices = @transform_34, window_bounds = array<i64: 1, 2, 128>}]} {
    %c0 = arith.constant 0 : index
    %c0_0 = arith.constant 0 : index
    %0 = vector.load %arg2[%c0, %c0_0] : memref<64x3xf32, #tpu.memory_space<vmem>>, vector<64x3xf32>
    %c0_1 = arith.constant 0 : index
    %c0_2 = arith.constant 0 : index
    %1 = vector.load %arg1[%c0_1, %c0_2] : memref<64x5xf32, #tpu.memory_space<vmem>>, vector<64x5xf32>
    %c0_3 = arith.constant 0 : index
    %c0_4 = arith.constant 0 : index
    %c0_5 = arith.constant 0 : index
    %2 = vector.load %arg3[%c0_3, %c0_4, %c0_5] : memref<1x512x1xi32, #tpu.memory_space<vmem>>, vector<1x512x1xi32>
    %3 = vector.shape_cast %2 : vector<1x512x1xi32> to vector<512x1xi32>
    %c0_6 = arith.constant 0 : index
    %c0_7 = arith.constant 0 : index
    %4 = vector.load %arg4[%c0_6, %c0_7] : memref<3x160xf32, #tpu.memory_space<vmem>>, vector<3x160xf32>
    %cst = arith.constant dense<0.000000e+00> : vector<64x160xf32>
    %5 = tpu.matmul %0, %4, %cst {dimension_numbers = #tpu.dot_dimension_numbers<[1], [0], [0], [1], [0, 0, 1, 1], [], []>} : vector<64x3xf32>, vector<3x160xf32>, vector<64x160xf32> -> vector<64x160xf32>
    %6 = tpu.iota {dimensions = array<i32: 1>} : vector<512x64xi32>
    %7 = vector.broadcast %3 : vector<512x1xi32> to vector<512x64xi32>
    %8 = arith.cmpi eq, %7, %6 : vector<512x64xi32>
    %9 = arith.extui %8 : vector<512x64xi1> to vector<512x64xi32>
    %10 = arith.sitofp %9 : vector<512x64xi32> to vector<512x64xf32>
    %cst_8 = arith.constant dense<0.000000e+00> : vector<512x160xf32>
    %11 = tpu.matmul %10, %5, %cst_8 {dimension_numbers = #tpu.dot_dimension_numbers<[1], [0], [0], [1], [0, 0, 1, 1], [], []>} : vector<512x64xf32>, vector<64x160xf32>, vector<512x160xf32> -> vector<512x160xf32>
    %12 = tpu.concatenate %0, %1 in 1 : vector<64x3xf32>, vector<64x5xf32> -> vector<64x8xf32>
    %c0_9 = arith.constant 0 : index
    %c0_10 = arith.constant 0 : index
    %13 = vector.load %arg5[%c0_9, %c0_10] : memref<8x32xf32, #tpu.memory_space<vmem>>, vector<8x32xf32>
    %cst_11 = arith.constant dense<0.000000e+00> : vector<64x32xf32>
    %14 = tpu.matmul %12, %13, %cst_11 {dimension_numbers = #tpu.dot_dimension_numbers<[1], [0], [0], [1], [0, 0, 1, 1], [], []>} : vector<64x8xf32>, vector<8x32xf32>, vector<64x32xf32> -> vector<64x32xf32>
    %c0_12 = arith.constant 0 : index
    %c0_13 = arith.constant 0 : index
    %15 = vector.load %arg6[%c0_12, %c0_13] : memref<1x32xf32, #tpu.memory_space<vmem>>, vector<1x32xf32>
    %16 = vector.broadcast %15 : vector<1x32xf32> to vector<64x32xf32>
    %17 = arith.addf %14, %16 : vector<64x32xf32>
    %18 = vector.extract_strided_slice %11 {offsets = [0, 0], sizes = [512, 32], strides = [1, 1]} : vector<512x160xf32> to vector<512x32xf32>
    %19 = vector.shape_cast %18 : vector<512x32xf32> to vector<64x8x32xf32>
    %20 = vector.shape_cast %17 : vector<64x32xf32> to vector<64x1x32xf32>
    %21 = vector.broadcast %20 : vector<64x1x32xf32> to vector<64x8x32xf32>
    %22 = arith.addf %19, %21 : vector<64x8x32xf32>
    %cst_14 = arith.constant 0.000000e+00 : f32
    %23 = vector.broadcast %cst_14 : f32 to vector<64x8x32xf32>
    %24 = arith.maximumf %22, %23 : vector<64x8x32xf32>
    %25 = vector.shape_cast %24 : vector<64x8x32xf32> to vector<512x32xf32>
    %c0_15 = arith.constant 0 : index
    %c0_16 = arith.constant 0 : index
    %26 = vector.load %arg7[%c0_15, %c0_16] : memref<32x32xf32, #tpu.memory_space<vmem>>, vector<32x32xf32>
    %cst_17 = arith.constant dense<0.000000e+00> : vector<512x32xf32>
    %27 = tpu.matmul %25, %26, %cst_17 {dimension_numbers = #tpu.dot_dimension_numbers<[1], [0], [0], [1], [0, 0, 1, 1], [], []>} : vector<512x32xf32>, vector<32x32xf32>, vector<512x32xf32> -> vector<512x32xf32>
    %c0_18 = arith.constant 0 : index
    %c0_19 = arith.constant 0 : index
    %28 = vector.load %arg8[%c0_18, %c0_19] : memref<1x32xf32, #tpu.memory_space<vmem>>, vector<1x32xf32>
    %29 = vector.broadcast %28 : vector<1x32xf32> to vector<512x32xf32>
    %30 = arith.addf %27, %29 : vector<512x32xf32>
    %cst_20 = arith.constant 0.000000e+00 : f32
    %31 = vector.broadcast %cst_20 : f32 to vector<512x32xf32>
    %32 = arith.maximumf %30, %31 : vector<512x32xf32>
    %c0_21 = arith.constant 0 : index
    %c0_22 = arith.constant 0 : index
    %33 = vector.load %arg9[%c0_21, %c0_22] : memref<32x32xf32, #tpu.memory_space<vmem>>, vector<32x32xf32>
    %cst_23 = arith.constant dense<0.000000e+00> : vector<512x32xf32>
    %34 = tpu.matmul %32, %33, %cst_23 {dimension_numbers = #tpu.dot_dimension_numbers<[1], [0], [0], [1], [0, 0, 1, 1], [], []>} : vector<512x32xf32>, vector<32x32xf32>, vector<512x32xf32> -> vector<512x32xf32>
    %c0_24 = arith.constant 0 : index
    %c0_25 = arith.constant 0 : index
    %35 = vector.load %arg10[%c0_24, %c0_25] : memref<1x32xf32, #tpu.memory_space<vmem>>, vector<1x32xf32>
    %36 = vector.broadcast %35 : vector<1x32xf32> to vector<512x32xf32>
    %37 = arith.addf %34, %36 : vector<512x32xf32>
    %cst_26 = arith.constant 0.000000e+00 : f32
    %38 = vector.broadcast %cst_26 : f32 to vector<512x32xf32>
    %39 = arith.maximumf %37, %38 : vector<512x32xf32>
    %c0_27 = arith.constant 0 : index
    %c0_28 = arith.constant 0 : index
    %40 = vector.load %arg11[%c0_27, %c0_28] : memref<1x32xf32, #tpu.memory_space<vmem>>, vector<1x32xf32>
    %41 = vector.broadcast %40 : vector<1x32xf32> to vector<512x32xf32>
    %42 = arith.mulf %39, %41 : vector<512x32xf32>
    %c0_29 = arith.constant 0 : index
    %c0_30 = arith.constant 0 : index
    %43 = vector.load %arg12[%c0_29, %c0_30] : memref<1x32xf32, #tpu.memory_space<vmem>>, vector<1x32xf32>
    %44 = vector.broadcast %43 : vector<1x32xf32> to vector<512x32xf32>
    %45 = arith.addf %42, %44 : vector<512x32xf32>
    %46 = vector.shape_cast %45 : vector<512x32xf32> to vector<64x8x32xf32>
    %cst_31 = arith.constant dense<0xFF800000> : vector<64x32xf32>
    %47 = vector.multi_reduction <maximumf>, %46, %cst_31 [1] : vector<64x8x32xf32> to vector<64x32xf32>
    %48 = tpu.concatenate %0, %47 in 1 : vector<64x3xf32>, vector<64x32xf32> -> vector<64x35xf32>
    %c0_32 = arith.constant 0 : index
    %c0_33 = arith.constant 0 : index
    %49 = vector.load %arg13[%c0_32, %c0_33] : memref<35x64xf32, #tpu.memory_space<vmem>>, vector<35x64xf32>
    %cst_34 = arith.constant dense<0.000000e+00> : vector<64x64xf32>
    %50 = tpu.matmul %48, %49, %cst_34 {dimension_numbers = #tpu.dot_dimension_numbers<[1], [0], [0], [1], [0, 0, 1, 1], [], []>} : vector<64x35xf32>, vector<35x64xf32>, vector<64x64xf32> -> vector<64x64xf32>
    %c0_35 = arith.constant 0 : index
    %c0_36 = arith.constant 0 : index
    %51 = vector.load %arg14[%c0_35, %c0_36] : memref<1x64xf32, #tpu.memory_space<vmem>>, vector<1x64xf32>
    %52 = vector.broadcast %51 : vector<1x64xf32> to vector<64x64xf32>
    %53 = arith.addf %50, %52 : vector<64x64xf32>
    %54 = vector.extract_strided_slice %11 {offsets = [0, 32], sizes = [512, 64], strides = [1, 1]} : vector<512x160xf32> to vector<512x64xf32>
    %55 = vector.shape_cast %54 : vector<512x64xf32> to vector<64x8x64xf32>
    %56 = vector.shape_cast %53 : vector<64x64xf32> to vector<64x1x64xf32>
    %57 = vector.broadcast %56 : vector<64x1x64xf32> to vector<64x8x64xf32>
    %58 = arith.addf %55, %57 : vector<64x8x64xf32>
    %cst_37 = arith.constant 0.000000e+00 : f32
    %59 = vector.broadcast %cst_37 : f32 to vector<64x8x64xf32>
    %60 = arith.maximumf %58, %59 : vector<64x8x64xf32>
    %61 = vector.shape_cast %60 : vector<64x8x64xf32> to vector<512x64xf32>
    %c0_38 = arith.constant 0 : index
    %c0_39 = arith.constant 0 : index
    %62 = vector.load %arg15[%c0_38, %c0_39] : memref<64x64xf32, #tpu.memory_space<vmem>>, vector<64x64xf32>
    %cst_40 = arith.constant dense<0.000000e+00> : vector<512x64xf32>
    %63 = tpu.matmul %61, %62, %cst_40 {dimension_numbers = #tpu.dot_dimension_numbers<[1], [0], [0], [1], [0, 0, 1, 1], [], []>} : vector<512x64xf32>, vector<64x64xf32>, vector<512x64xf32> -> vector<512x64xf32>
    %c0_41 = arith.constant 0 : index
    %c0_42 = arith.constant 0 : index
    %64 = vector.load %arg16[%c0_41, %c0_42] : memref<1x64xf32, #tpu.memory_space<vmem>>, vector<1x64xf32>
    %65 = vector.broadcast %64 : vector<1x64xf32> to vector<512x64xf32>
    %66 = arith.addf %63, %65 : vector<512x64xf32>
    %cst_43 = arith.constant 0.000000e+00 : f32
    %67 = vector.broadcast %cst_43 : f32 to vector<512x64xf32>
    %68 = arith.maximumf %66, %67 : vector<512x64xf32>
    %c0_44 = arith.constant 0 : index
    %c0_45 = arith.constant 0 : index
    %69 = vector.load %arg17[%c0_44, %c0_45] : memref<64x64xf32, #tpu.memory_space<vmem>>, vector<64x64xf32>
    %cst_46 = arith.constant dense<0.000000e+00> : vector<512x64xf32>
    %70 = tpu.matmul %68, %69, %cst_46 {dimension_numbers = #tpu.dot_dimension_numbers<[1], [0], [0], [1], [0, 0, 1, 1], [], []>} : vector<512x64xf32>, vector<64x64xf32>, vector<512x64xf32> -> vector<512x64xf32>
    %c0_47 = arith.constant 0 : index
    %c0_48 = arith.constant 0 : index
    %71 = vector.load %arg18[%c0_47, %c0_48] : memref<1x64xf32, #tpu.memory_space<vmem>>, vector<1x64xf32>
    %72 = vector.broadcast %71 : vector<1x64xf32> to vector<512x64xf32>
    %73 = arith.addf %70, %72 : vector<512x64xf32>
    %cst_49 = arith.constant 0.000000e+00 : f32
    %74 = vector.broadcast %cst_49 : f32 to vector<512x64xf32>
    %75 = arith.maximumf %73, %74 : vector<512x64xf32>
    %c0_50 = arith.constant 0 : index
    %c0_51 = arith.constant 0 : index
    %76 = vector.load %arg19[%c0_50, %c0_51] : memref<1x64xf32, #tpu.memory_space<vmem>>, vector<1x64xf32>
    %77 = vector.broadcast %76 : vector<1x64xf32> to vector<512x64xf32>
    %78 = arith.mulf %75, %77 : vector<512x64xf32>
    %c0_52 = arith.constant 0 : index
    %c0_53 = arith.constant 0 : index
    %79 = vector.load %arg20[%c0_52, %c0_53] : memref<1x64xf32, #tpu.memory_space<vmem>>, vector<1x64xf32>
    %80 = vector.broadcast %79 : vector<1x64xf32> to vector<512x64xf32>
    %81 = arith.addf %78, %80 : vector<512x64xf32>
    %82 = vector.shape_cast %81 : vector<512x64xf32> to vector<64x8x64xf32>
    %cst_54 = arith.constant dense<0xFF800000> : vector<64x64xf32>
    %83 = vector.multi_reduction <maximumf>, %82, %cst_54 [1] : vector<64x8x64xf32> to vector<64x64xf32>
    %84 = tpu.concatenate %0, %83 in 1 : vector<64x3xf32>, vector<64x64xf32> -> vector<64x67xf32>
    %c0_55 = arith.constant 0 : index
    %c0_56 = arith.constant 0 : index
    %85 = vector.load %arg21[%c0_55, %c0_56] : memref<67x64xf32, #tpu.memory_space<vmem>>, vector<67x64xf32>
    %cst_57 = arith.constant dense<0.000000e+00> : vector<64x64xf32>
    %86 = tpu.matmul %84, %85, %cst_57 {dimension_numbers = #tpu.dot_dimension_numbers<[1], [0], [0], [1], [0, 0, 1, 1], [], []>} : vector<64x67xf32>, vector<67x64xf32>, vector<64x64xf32> -> vector<64x64xf32>
    %c0_58 = arith.constant 0 : index
    %c0_59 = arith.constant 0 : index
    %87 = vector.load %arg22[%c0_58, %c0_59] : memref<1x64xf32, #tpu.memory_space<vmem>>, vector<1x64xf32>
    %88 = vector.broadcast %87 : vector<1x64xf32> to vector<64x64xf32>
    %89 = arith.addf %86, %88 : vector<64x64xf32>
    %90 = vector.extract_strided_slice %11 {offsets = [0, 96], sizes = [512, 64], strides = [1, 1]} : vector<512x160xf32> to vector<512x64xf32>
    %91 = vector.shape_cast %90 : vector<512x64xf32> to vector<64x8x64xf32>
    %92 = vector.shape_cast %89 : vector<64x64xf32> to vector<64x1x64xf32>
    %93 = vector.broadcast %92 : vector<64x1x64xf32> to vector<64x8x64xf32>
    %94 = arith.addf %91, %93 : vector<64x8x64xf32>
    %cst_60 = arith.constant 0.000000e+00 : f32
    %95 = vector.broadcast %cst_60 : f32 to vector<64x8x64xf32>
    %96 = arith.maximumf %94, %95 : vector<64x8x64xf32>
    %97 = vector.shape_cast %96 : vector<64x8x64xf32> to vector<512x64xf32>
    %c0_61 = arith.constant 0 : index
    %c0_62 = arith.constant 0 : index
    %98 = vector.load %arg23[%c0_61, %c0_62] : memref<64x128xf32, #tpu.memory_space<vmem>>, vector<64x128xf32>
    %cst_63 = arith.constant dense<0.000000e+00> : vector<512x128xf32>
    %99 = tpu.matmul %97, %98, %cst_63 {dimension_numbers = #tpu.dot_dimension_numbers<[1], [0], [0], [1], [0, 0, 1, 1], [], []>} : vector<512x64xf32>, vector<64x128xf32>, vector<512x128xf32> -> vector<512x128xf32>
    %c0_64 = arith.constant 0 : index
    %c0_65 = arith.constant 0 : index
    %100 = vector.load %arg24[%c0_64, %c0_65] : memref<1x128xf32, #tpu.memory_space<vmem>>, vector<1x128xf32>
    %101 = vector.broadcast %100 : vector<1x128xf32> to vector<512x128xf32>
    %102 = arith.addf %99, %101 : vector<512x128xf32>
    %cst_66 = arith.constant 0.000000e+00 : f32
    %103 = vector.broadcast %cst_66 : f32 to vector<512x128xf32>
    %104 = arith.maximumf %102, %103 : vector<512x128xf32>
    %c0_67 = arith.constant 0 : index
    %c0_68 = arith.constant 0 : index
    %105 = vector.load %arg25[%c0_67, %c0_68] : memref<128x128xf32, #tpu.memory_space<vmem>>, vector<128x128xf32>
    %cst_69 = arith.constant dense<0.000000e+00> : vector<512x128xf32>
    %106 = tpu.matmul %104, %105, %cst_69 {dimension_numbers = #tpu.dot_dimension_numbers<[1], [0], [0], [1], [0, 0, 1, 1], [], []>} : vector<512x128xf32>, vector<128x128xf32>, vector<512x128xf32> -> vector<512x128xf32>
    %c0_70 = arith.constant 0 : index
    %c0_71 = arith.constant 0 : index
    %107 = vector.load %arg26[%c0_70, %c0_71] : memref<1x128xf32, #tpu.memory_space<vmem>>, vector<1x128xf32>
    %108 = vector.broadcast %107 : vector<1x128xf32> to vector<512x128xf32>
    %109 = arith.addf %106, %108 : vector<512x128xf32>
    %cst_72 = arith.constant 0.000000e+00 : f32
    %110 = vector.broadcast %cst_72 : f32 to vector<512x128xf32>
    %111 = arith.maximumf %109, %110 : vector<512x128xf32>
    %c0_73 = arith.constant 0 : index
    %c0_74 = arith.constant 0 : index
    %112 = vector.load %arg27[%c0_73, %c0_74] : memref<1x128xf32, #tpu.memory_space<vmem>>, vector<1x128xf32>
    %113 = vector.broadcast %112 : vector<1x128xf32> to vector<512x128xf32>
    %114 = arith.mulf %111, %113 : vector<512x128xf32>
    %c0_75 = arith.constant 0 : index
    %c0_76 = arith.constant 0 : index
    %115 = vector.load %arg28[%c0_75, %c0_76] : memref<1x128xf32, #tpu.memory_space<vmem>>, vector<1x128xf32>
    %116 = vector.broadcast %115 : vector<1x128xf32> to vector<512x128xf32>
    %117 = arith.addf %114, %116 : vector<512x128xf32>
    %118 = vector.shape_cast %117 : vector<512x128xf32> to vector<64x8x128xf32>
    %cst_77 = arith.constant dense<0xFF800000> : vector<64x128xf32>
    %119 = vector.multi_reduction <maximumf>, %118, %cst_77 [1] : vector<64x8x128xf32> to vector<64x128xf32>
    %120 = vector.shape_cast %119 : vector<64x128xf32> to vector<2x32x128xf32>
    %cst_78 = arith.constant dense<0xFF800000> : vector<2x128xf32>
    %121 = vector.multi_reduction <maximumf>, %120, %cst_78 [1] : vector<2x32x128xf32> to vector<2x128xf32>
    %c0_79 = arith.constant 0 : index
    %c0_80 = arith.constant 0 : index
    %122 = vector.load %arg29[%c0_79, %c0_80] : memref<128x64xf32, #tpu.memory_space<vmem>>, vector<128x64xf32>
    %cst_81 = arith.constant dense<0.000000e+00> : vector<2x64xf32>
    %123 = tpu.matmul %121, %122, %cst_81 {dimension_numbers = #tpu.dot_dimension_numbers<[1], [0], [0], [1], [0, 0, 1, 1], [], []>} : vector<2x128xf32>, vector<128x64xf32>, vector<2x64xf32> -> vector<2x64xf32>
    %c0_82 = arith.constant 0 : index
    %c0_83 = arith.constant 0 : index
    %124 = vector.load %arg30[%c0_82, %c0_83] : memref<1x64xf32, #tpu.memory_space<vmem>>, vector<1x64xf32>
    %125 = vector.broadcast %124 : vector<1x64xf32> to vector<2x64xf32>
    %126 = arith.addf %123, %125 : vector<2x64xf32>
    %cst_84 = arith.constant 0.000000e+00 : f32
    %127 = vector.broadcast %cst_84 : f32 to vector<2x64xf32>
    %128 = arith.maximumf %126, %127 : vector<2x64xf32>
    %c0_85 = arith.constant 0 : index
    %c0_86 = arith.constant 0 : index
    %129 = vector.load %arg31[%c0_85, %c0_86] : memref<64x32xf32, #tpu.memory_space<vmem>>, vector<64x32xf32>
    %cst_87 = arith.constant dense<0.000000e+00> : vector<2x32xf32>
    %130 = tpu.matmul %128, %129, %cst_87 {dimension_numbers = #tpu.dot_dimension_numbers<[1], [0], [0], [1], [0, 0, 1, 1], [], []>} : vector<2x64xf32>, vector<64x32xf32>, vector<2x32xf32> -> vector<2x32xf32>
    %c0_88 = arith.constant 0 : index
    %c0_89 = arith.constant 0 : index
    %131 = vector.load %arg32[%c0_88, %c0_89] : memref<1x32xf32, #tpu.memory_space<vmem>>, vector<1x32xf32>
    %132 = vector.broadcast %131 : vector<1x32xf32> to vector<2x32xf32>
    %133 = arith.addf %130, %132 : vector<2x32xf32>
    %cst_90 = arith.constant 0.000000e+00 : f32
    %134 = vector.broadcast %cst_90 : f32 to vector<2x32xf32>
    %135 = arith.maximumf %133, %134 : vector<2x32xf32>
    %c0_91 = arith.constant 0 : index
    %c0_92 = arith.constant 0 : index
    %136 = vector.load %arg33[%c0_91, %c0_92] : memref<32x128xf32, #tpu.memory_space<vmem>>, vector<32x128xf32>
    %cst_93 = arith.constant dense<0.000000e+00> : vector<2x128xf32>
    %137 = tpu.matmul %135, %136, %cst_93 {dimension_numbers = #tpu.dot_dimension_numbers<[1], [0], [0], [1], [0, 0, 1, 1], [], []>} : vector<2x32xf32>, vector<32x128xf32>, vector<2x128xf32> -> vector<2x128xf32>
    %c0_94 = arith.constant 0 : index
    %c0_95 = arith.constant 0 : index
    %138 = vector.load %arg34[%c0_94, %c0_95] : memref<1x128xf32, #tpu.memory_space<vmem>>, vector<1x128xf32>
    %139 = vector.broadcast %138 : vector<1x128xf32> to vector<2x128xf32>
    %140 = arith.addf %137, %139 : vector<2x128xf32>
    %cst_96 = arith.constant dense<0xFF800000> : vector<2xf32>
    %141 = vector.multi_reduction <maximumf>, %140, %cst_96 [1] : vector<2x128xf32> to vector<2xf32>
    %142 = vector.shape_cast %141 : vector<2xf32> to vector<2x1xf32>
    %143 = vector.broadcast %142 : vector<2x1xf32> to vector<2x128xf32>
    %144 = arith.subf %140, %143 : vector<2x128xf32>
    %145 = math.exp %144 : vector<2x128xf32>
    %cst_97 = arith.constant dense<0.000000e+00> : vector<2xf32>
    %146 = vector.multi_reduction <add>, %145, %cst_97 [1] : vector<2x128xf32> to vector<2xf32>
    %147 = vector.shape_cast %146 : vector<2xf32> to vector<2x1xf32>
    %148 = math.log %147 : vector<2x1xf32>
    %149 = vector.broadcast %148 : vector<2x1xf32> to vector<2x128xf32>
    %150 = arith.subf %144, %149 : vector<2x128xf32>
    %151 = vector.shape_cast %150 : vector<2x128xf32> to vector<1x2x128xf32>
    %c0_98 = arith.constant 0 : index
    %c0_99 = arith.constant 0 : index
    %c0_100 = arith.constant 0 : index
    %152 = vector.load %arg35[%c0_98, %c0_99, %c0_100] : memref<1x2x128xf32, #tpu.memory_space<vmem>>, vector<1x2x128xf32>
    tpu.vector_store %arg35[%c0_98, %c0_99, %c0_100], %151 {strides = array<i32>} : memref<1x2x128xf32, #tpu.memory_space<vmem>>, vector<1x2x128xf32>,
    return
  }
  func.func @transform_0(%arg0: i32) -> (i32, i32) {
    %c0_i32 = arith.constant 0 : i32
    %c0_i32_0 = arith.constant 0 : i32
    return %arg0, %c0_i32 : i32, i32
  }
  func.func @transform_1(%arg0: i32) -> (i32, i32) {
    %c0_i32 = arith.constant 0 : i32
    %c0_i32_0 = arith.constant 0 : i32
    return %arg0, %c0_i32 : i32, i32
  }
  func.func @transform_2(%arg0: i32) -> (i32, i32, i32) {
    %c0_i32 = arith.constant 0 : i32
    %c0_i32_0 = arith.constant 0 : i32
    %c0_i32_1 = arith.constant 0 : i32
    return %arg0, %c0_i32, %c0_i32_0 : i32, i32, i32
  }
  func.func @transform_3(%arg0: i32) -> (i32, i32) {
    %c0_i32 = arith.constant 0 : i32
    %c0_i32_0 = arith.constant 0 : i32
    %c0_i32_1 = arith.constant 0 : i32
    return %c0_i32, %c0_i32_0 : i32, i32
  }
  func.func @transform_4(%arg0: i32) -> (i32, i32) {
    %c0_i32 = arith.constant 0 : i32
    %c0_i32_0 = arith.constant 0 : i32
    %c0_i32_1 = arith.constant 0 : i32
    return %c0_i32, %c0_i32_0 : i32, i32
  }
  func.func @transform_5(%arg0: i32) -> (i32, i32) {
    %c0_i32 = arith.constant 0 : i32
    %c0_i32_0 = arith.constant 0 : i32
    %c0_i32_1 = arith.constant 0 : i32
    return %c0_i32, %c0_i32_0 : i32, i32
  }
  func.func @transform_6(%arg0: i32) -> (i32, i32) {
    %c0_i32 = arith.constant 0 : i32
    %c0_i32_0 = arith.constant 0 : i32
    %c0_i32_1 = arith.constant 0 : i32
    return %c0_i32, %c0_i32_0 : i32, i32
  }
  func.func @transform_7(%arg0: i32) -> (i32, i32) {
    %c0_i32 = arith.constant 0 : i32
    %c0_i32_0 = arith.constant 0 : i32
    %c0_i32_1 = arith.constant 0 : i32
    return %c0_i32, %c0_i32_0 : i32, i32
  }
  func.func @transform_8(%arg0: i32) -> (i32, i32) {
    %c0_i32 = arith.constant 0 : i32
    %c0_i32_0 = arith.constant 0 : i32
    %c0_i32_1 = arith.constant 0 : i32
    return %c0_i32, %c0_i32_0 : i32, i32
  }
  func.func @transform_9(%arg0: i32) -> (i32, i32) {
    %c0_i32 = arith.constant 0 : i32
    %c0_i32_0 = arith.constant 0 : i32
    %c0_i32_1 = arith.constant 0 : i32
    return %c0_i32, %c0_i32_0 : i32, i32
  }
  func.func @transform_10(%arg0: i32) -> (i32, i32) {
    %c0_i32 = arith.constant 0 : i32
    %c0_i32_0 = arith.constant 0 : i32
    %c0_i32_1 = arith.constant 0 : i32
    return %c0_i32, %c0_i32_0 : i32, i32
  }
  func.func @transform_11(%arg0: i32) -> (i32, i32) {
    %c0_i32 = arith.constant 0 : i32
    %c0_i32_0 = arith.constant 0 : i32
    %c0_i32_1 = arith.constant 0 : i32
    return %c0_i32, %c0_i32_0 : i32, i32
  }
  func.func @transform_12(%arg0: i32) -> (i32, i32) {
    %c0_i32 = arith.constant 0 : i32
    %c0_i32_0 = arith.constant 0 : i32
    %c0_i32_1 = arith.constant 0 : i32
    return %c0_i32, %c0_i32_0 : i32, i32
  }
  func.func @transform_13(%arg0: i32) -> (i32, i32) {
    %c0_i32 = arith.constant 0 : i32
    %c0_i32_0 = arith.constant 0 : i32
    %c0_i32_1 = arith.constant 0 : i32
    return %c0_i32, %c0_i32_0 : i32, i32
  }
  func.func @transform_14(%arg0: i32) -> (i32, i32) {
    %c0_i32 = arith.constant 0 : i32
    %c0_i32_0 = arith.constant 0 : i32
    %c0_i32_1 = arith.constant 0 : i32
    return %c0_i32, %c0_i32_0 : i32, i32
  }
  func.func @transform_15(%arg0: i32) -> (i32, i32) {
    %c0_i32 = arith.constant 0 : i32
    %c0_i32_0 = arith.constant 0 : i32
    %c0_i32_1 = arith.constant 0 : i32
    return %c0_i32, %c0_i32_0 : i32, i32
  }
  func.func @transform_16(%arg0: i32) -> (i32, i32) {
    %c0_i32 = arith.constant 0 : i32
    %c0_i32_0 = arith.constant 0 : i32
    %c0_i32_1 = arith.constant 0 : i32
    return %c0_i32, %c0_i32_0 : i32, i32
  }
  func.func @transform_17(%arg0: i32) -> (i32, i32) {
    %c0_i32 = arith.constant 0 : i32
    %c0_i32_0 = arith.constant 0 : i32
    %c0_i32_1 = arith.constant 0 : i32
    return %c0_i32, %c0_i32_0 : i32, i32
  }
  func.func @transform_18(%arg0: i32) -> (i32, i32) {
    %c0_i32 = arith.constant 0 : i32
    %c0_i32_0 = arith.constant 0 : i32
    %c0_i32_1 = arith.constant 0 : i32
    return %c0_i32, %c0_i32_0 : i32, i32
  }
  func.func @transform_19(%arg0: i32) -> (i32, i32) {
    %c0_i32 = arith.constant 0 : i32
    %c0_i32_0 = arith.constant 0 : i32
    %c0_i32_1 = arith.constant 0 : i32
    return %c0_i32, %c0_i32_0 : i32, i32
  }
  func.func @transform_20(%arg0: i32) -> (i32, i32) {
    %c0_i32 = arith.constant 0 : i32
    %c0_i32_0 = arith.constant 0 : i32
    %c0_i32_1 = arith.constant 0 : i32
    return %c0_i32, %c0_i32_0 : i32, i32
  }
  func.func @transform_21(%arg0: i32) -> (i32, i32) {
    %c0_i32 = arith.constant 0 : i32
    %c0_i32_0 = arith.constant 0 : i32
    %c0_i32_1 = arith.constant 0 : i32
    return %c0_i32, %c0_i32_0 : i32, i32
  }
  func.func @transform_22(%arg0: i32) -> (i32, i32) {
    %c0_i32 = arith.constant 0 : i32
    %c0_i32_0 = arith.constant 0 : i32
    %c0_i32_1 = arith.constant 0 : i32
    return %c0_i32, %c0_i32_0 : i32, i32
  }
  func.func @transform_23(%arg0: i32) -> (i32, i32) {
    %c0_i32 = arith.constant 0 : i32
    %c0_i32_0 = arith.constant 0 : i32
    %c0_i32_1 = arith.constant 0 : i32
    return %c0_i32, %c0_i32_0 : i32, i32
  }
  func.func @transform_24(%arg0: i32) -> (i32, i32) {
    %c0_i32 = arith.constant 0 : i32
    %c0_i32_0 = arith.constant 0 : i32
    %c0_i32_1 = arith.constant 0 : i32
    return %c0_i32, %c0_i32_0 : i32, i32
  }
  func.func @transform_25(%arg0: i32) -> (i32, i32) {
    %c0_i32 = arith.constant 0 : i32
    %c0_i32_0 = arith.constant 0 : i32
    %c0_i32_1 = arith.constant 0 : i32
    return %c0_i32, %c0_i32_0 : i32, i32
  }
  func.func @transform_26(%arg0: i32) -> (i32, i32) {
    %c0_i32 = arith.constant 0 : i32
    %c0_i32_0 = arith.constant 0 : i32
    %c0_i32_1 = arith.constant 0 : i32
    return %c0_i32, %c0_i32_0 : i32, i32
  }
  func.func @transform_27(%arg0: i32) -> (i32, i32) {
    %c0_i32 = arith.constant 0 : i32
    %c0_i32_0 = arith.constant 0 : i32
    %c0_i32_1 = arith.constant 0 : i32
    return %c0_i32, %c0_i32_0 : i32, i32
  }
  func.func @transform_28(%arg0: i32) -> (i32, i32) {
    %c0_i32 = arith.constant 0 : i32
    %c0_i32_0 = arith.constant 0 : i32
    %c0_i32_1 = arith.constant 0 : i32
    return %c0_i32, %c0_i32_0 : i32, i32
  }
  func.func @transform_29(%arg0: i32) -> (i32, i32) {
    %c0_i32 = arith.constant 0 : i32
    %c0_i32_0 = arith.constant 0 : i32
    %c0_i32_1 = arith.constant 0 : i32
    return %c0_i32, %c0_i32_0 : i32, i32
  }
  func.func @transform_30(%arg0: i32) -> (i32, i32) {
    %c0_i32 = arith.constant 0 : i32
    %c0_i32_0 = arith.constant 0 : i32
    %c0_i32_1 = arith.constant 0 : i32
    return %c0_i32, %c0_i32_0 : i32, i32
  }
  func.func @transform_31(%arg0: i32) -> (i32, i32) {
    %c0_i32 = arith.constant 0 : i32
    %c0_i32_0 = arith.constant 0 : i32
    %c0_i32_1 = arith.constant 0 : i32
    return %c0_i32, %c0_i32_0 : i32, i32
  }
  func.func @transform_32(%arg0: i32) -> (i32, i32) {
    %c0_i32 = arith.constant 0 : i32
    %c0_i32_0 = arith.constant 0 : i32
    %c0_i32_1 = arith.constant 0 : i32
    return %c0_i32, %c0_i32_0 : i32, i32
  }
  func.func @transform_33(%arg0: i32) -> (i32, i32) {
    %c0_i32 = arith.constant 0 : i32
    %c0_i32_0 = arith.constant 0 : i32
    %c0_i32_1 = arith.constant 0 : i32
    return %c0_i32, %c0_i32_0 : i32, i32
  }
  func.func @transform_34(%arg0: i32) -> (i32, i32, i32) {
    %c0_i32 = arith.constant 0 : i32
    %c0_i32_0 = arith.constant 0 : i32
    %c0_i32_1 = arith.constant 0 : i32
    return %arg0, %c0_i32, %c0_i32_0 : i32, i32, i32
  }
}

</mosaic_0001>

<bundles_post_ra>
// kernel: net_forward.1
= control target key start
LH: loop header
LB: loop body
LE: loop exit
PB: predicated region body
PF: predicated region fallthrough
CT: control target
= control target key end

     0   :  { %s13373_s6 = smov 1   ;;  %s13374_s10 = smov 2   ;;  %s17640_s0 = inlined_call_operand.smem [shape: u32[35], index: -1, kind: input, shape index: {}] }
   0x1   :  { %s13423_s5 = sld [smem:[%s17640_s0]]   ;;  %s13375_s14 = smov 3  }
   0x2   :  { %s13428_s9 = sld [smem:[%s17640_s0 + %s13373_s6]]   ;;  %s13376_s18 = smov 4  }
   0x3   :  { %s13433_s13 = sld [smem:[%s17640_s0 + %s13374_s10]]   ;;  %s13377_s22 = smov 5  }
   0x4   :  { %s13438_s17 = sld [smem:[%s17640_s0 + %s13375_s14]]   ;;  %s13378_s26 = smov 6  }
   0x5   :  { %s13443_s21 = sld [smem:[%s17640_s0 + %s13376_s18]]   ;;  %s13379_s30 = smov 7  }
   0x6   :  { %s13448_s25 = sld [smem:[%s17640_s0 + %s13377_s22]]   ;;  %s13380_s4 = smov 8  }
   0x7   :  { %s13453_s29 = sld [smem:[%s17640_s0 + %s13378_s26]]   ;;  %s13381_s10 = smov 9  }
   0x8   :  { %s13458_s3 = sld [smem:[%s17640_s0 + %s13379_s30]]   ;;  %s13382_s15 = smov 10  }
   0x9   :  { %s13463_s8 = sld [smem:[%s17640_s0 + %s13380_s4]]   ;;  %s13383_s20 = smov 11  }
   0xa   :  { %s13468_s14 = sld [smem:[%s17640_s0 + %s13381_s10]]   ;;  %s13384_s26 = smov 12  }
   0xb   :  { %s13473_s19 = sld [smem:[%s17640_s0 + %s13382_s15]]   ;;  %s13385_s1 = smov 13  }
   0xc   :  { %s13478_s24 = sld [smem:[%s17640_s0 + %s13383_s20]]   ;;  %s13386_s7 = smov 14  }
   0xd   :  { %s13483_s30 = sld [smem:[%s17640_s0 + %s13384_s26]]   ;;  %s13387_s15 = smov 15  }
   0xe   :  { %s13488_s6 = sld [smem:[%s17640_s0 + %s13385_s1]]   ;;  %s13388_s22 = smov 16  }
   0xf   :  { %s13493_s12 = sld [smem:[%s17640_s0 + %s13386_s7]]   ;;  %s13389_s28 = smov 17  }
  0x10   :  { %s13498_s20 = sld [smem:[%s17640_s0 + %s13387_s15]]   ;;  %s13390_s7 = smov 18  }
  0x11   :  { %s13503_s27 = sld [smem:[%s17640_s0 + %s13388_s22]]   ;;  %s13391_s15 = smov 19  }
  0x12   :  { %s13508_s4 = sld [smem:[%s17640_s0 + %s13389_s28]]   ;;  %s13392_s22 = smov 20  }
  0x13   :  { %s13393_s28 = smov 21  }
  0x15   :  { %17751 = sst [smem:[#allocation5_spill]] %s13493_s12 }
  0x16   :  { %17752 = sst [smem:[#allocation6_spill]] %s13498_s20 }
  0x17   :  { %17753 = sst [smem:[#allocation7_spill]] %s13503_s27 }
  0x18   :  { %17754 = sst [smem:[#allocation8_spill]] %s13508_s4 }
  0x19   :  { %s13513_s12 = sld [smem:[%s17640_s0 + %s13390_s7]]   ;;  %s13394_s7 = smov 22  }
  0x1a   :  { %s13518_s20 = sld [smem:[%s17640_s0 + %s13391_s15]]   ;;  %s13395_s15 = smov 23  }
  0x1b   :  { %s13523_s27 = sld [smem:[%s17640_s0 + %s13392_s22]]   ;;  %s13396_s22 = smov 24  }
  0x1c   :  { %s13528_s4 = sld [smem:[%s17640_s0 + %s13393_s28]]   ;;  %s13397_s28 = smov 25  }
  0x1f   :  { %17755 = sst [smem:[#allocation9_spill]] %s13513_s12 }
  0x20   :  { %17756 = sst [smem:[#allocation10_spill]] %s13518_s20 }
  0x21   :  { %17757 = sst [smem:[#allocation11_spill]] %s13523_s27 }
  0x22   :  { %17758 = sst [smem:[#allocation12_spill]] %s13528_s4 }
  0x23   :  { %s13533_s12 = sld [smem:[%s17640_s0 + %s13394_s7]]   ;;  %s13398_s7 = smov 26  }
  0x24   :  { %s13538_s20 = sld [smem:[%s17640_s0 + %s13395_s15]]   ;;  %s13399_s15 = smov 27  }
  0x25   :  { %s13543_s27 = sld [smem:[%s17640_s0 + %s13396_s22]]   ;;  %s13400_s22 = smov 28  }
  0x26   :  { %s13548_s4 = sld [smem:[%s17640_s0 + %s13397_s28]]   ;;  %s13401_s28 = smov 29  }
  0x29   :  { %17759 = sst [smem:[#allocation13_spill]] %s13533_s12 }
  0x2a   :  { %17760 = sst [smem:[#allocation14_spill]] %s13538_s20 }
  0x2b   :  { %17761 = sst [smem:[#allocation15_spill]] %s13543_s27 }
  0x2c   :  { %17762 = sst [smem:[#allocation16_spill]] %s13548_s4 }
  0x2d   :  { %s13553_s12 = sld [smem:[%s17640_s0 + %s13398_s7]]   ;;  %s13402_s7 = smov 30  }
  0x2e   :  { %s13558_s20 = sld [smem:[%s17640_s0 + %s13399_s15]]   ;;  %s13403_s15 = smov 31  }
  0x2f   :  { %s13563_s27 = sld [smem:[%s17640_s0 + %s13400_s22]]   ;;  %s13404_s22 = smov 32  }
  0x30   :  { %s13568_s4 = sld [smem:[%s17640_s0 + %s13401_s28]]   ;;  %s13405_s28 = smov 33  }
  0x33   :  { %17763 = sst [smem:[#allocation17_spill]] %s13553_s12 }
  0x34   :  { %17764 = sst [smem:[#allocation18_spill]] %s13558_s20 }
  0x35   :  { %17765 = sst [smem:[#allocation19_spill]] %s13563_s27 }
  0x36   :  { %17766 = sst [smem:[#allocation20_spill]] %s13568_s4 }
  0x37   :  { %s13573_s12 = sld [smem:[%s17640_s0 + %s13402_s7]]   ;;  %s13406_s7 = smov 34  }
  0x38   :  { %s13578_s20 = sld [smem:[%s17640_s0 + %s13403_s15]]  }
  0x39   :  { %s13583_s27 = sld [smem:[%s17640_s0 + %s13404_s22]]  }
  0x3a   :  { %s13588_s4 = sld [smem:[%s17640_s0 + %s13405_s28]]  }
  0x3d   :  { %17767 = sst [smem:[#allocation21_spill]] %s13573_s12 }
  0x3e   :  { %s13593_s12 = sld [smem:[%s17640_s0 + %s13406_s7]]  }
  0x3f   :  { %v161_v0 = vld [vmem:[%s13433_s13 + $0x10] sm:$0xff]  ;;  %v159_v1 = vld [vmem:[%s13433_s13] sm:$0xff]  ;;  %vm251_vm0 = vcmask 1042432   ;;  %v13407_v3 = vmov 0   ;;  %vm226_vm1 = vcmask 23552   ;;  %v17655_v6 = vmov 0.0  }
  0x40   :  { %v223_v2 = vld [vmem:[%s13438_s17] sm:$0x77]  ;;  %13318 = vset.pattern.permute.xlu1 %v13407_v3  ;;  %13317 = vset.pattern.permute.xlu0 %v13407_v3  ;;  %v162_v7 = vld [vmem:[%s13433_s13 + $0x18] sm:$0xff]  ;;  %v160_v8 = vld [vmem:[%s13433_s13 + $0x8] sm:$0xff] }
  0x41   :  { %v225_v4 = vcombine.high %v223_v2, %v223_v2  ;;  %378 = vperm.xlu1 %13318, %v161_v0   ;;  %372 = vperm.xlu0 %13317, %v159_v1   ;;  %v13599_v5 = vld [vmem:[%s13428_s9] sm:$0xff]  ;;  %v13610_v9 = vld [vmem:[%s13428_s9 + $0x8] sm:$0xff]  ;;  %v13618_v12 = vld [vmem:[%s13428_s9 + $0x10] sm:$0xff] }
  0x42   :  { %320 = vmatprep.mubr.f32.mxu0 %v17655_v6  ;;  %1012 = vmatprep.mubr.f32.mxu1 %v17655_v6  ;;  %v164_v10 = vld [vmem:[%s13433_s13 + $0x28] sm:$0xff]  ;;  %v163_v11 = vld [vmem:[%s13433_s13 + $0x20] sm:$0xff]  ;;  %v166_v13 = vld [vmem:[%s13433_s13 + $0x38] sm:$0xff] }
  0x43   :  { %11466 = vmatprep.subr.msk.mxu0 %vm251_vm0, %v225_v4  ;;  %v165_v14 = vld [vmem:[%s13433_s13 + $0x30] sm:$0xff]  ;;  %v13626_v15 = vld [vmem:[%s13428_s9 + $0x18] sm:$0xff]  ;;  %v168_v16 = vld [vmem:[%s13433_s13 + $0x48] sm:$0xff] }
  0x44   :  { %11467 = vmatpush1.msk.msra.mxu0 %vm251_vm0, %v223_v2  ;;  %v167_v17 = vld [vmem:[%s13433_s13 + $0x40] sm:$0xff]  ;;  %v170_v19 = vld [vmem:[%s13433_s13 + $0x58] sm:$0xff]  ;;  %v169_v20 = vld [vmem:[%s13433_s13 + $0x50] sm:$0xff] }
  0x45   :  { %11468 = vmatmul.mubr.msk.f32.vlgmr.msra.gmra.mxu0 %vm226_vm1, %v13599_v5  ;;  %381 = vperm.xlu1 %13318, %v162_v7   ;;  %v13634_v18 = vld [vmem:[%s13428_s9 + $0x20] sm:$0xff]  ;;  %v13642_v21 = vld [vmem:[%s13428_s9 + $0x28] sm:$0xff]  ;;  %v13650_v24 = vld [vmem:[%s13428_s9 + $0x30] sm:$0xff] }
  0x46   :  { %375 = vperm.xlu0 %13317, %v160_v8   ;;  %326 = vmatprep.mubr.f32.mxu0 %v17655_v6  ;;  %v172_v22 = vld [vmem:[%s13433_s13 + $0x68] sm:$0xff]  ;;  %v171_v23 = vld [vmem:[%s13433_s13 + $0x60] sm:$0xff]  ;;  %v174_v25 = vld [vmem:[%s13433_s13 + $0x78] sm:$0xff] }
  0x47   :  { %v173_v26 = vld [vmem:[%s13433_s13 + $0x70] sm:$0xff] }
  0x49   :  { %11469 = vmatmul.mubr.msk.f32.gmra.mxu0 %vm226_vm1, %v13610_v9  ;;  %387 = vperm.xlu1 %13318, %v164_v10  }
  0x4a   :  { %384 = vperm.xlu0 %13317, %v163_v11   ;;  %332 = vmatprep.mubr.f32.mxu0 %v17655_v6 }
  0x4d   :  { %11470 = vmatmul.mubr.msk.f32.gmra.mxu0 %vm226_vm1, %v13618_v12  ;;  %393 = vperm.xlu1 %13318, %v166_v13  }
  0x4e   :  { %390 = vperm.xlu0 %13317, %v165_v14   ;;  %338 = vmatprep.mubr.f32.mxu0 %v17655_v6 }
  0x51   :  { %11471 = vmatmul.mubr.msk.f32.gmra.mxu0 %vm226_vm1, %v13626_v15  ;;  %399 = vperm.xlu1 %13318, %v168_v16  }
  0x52   :  { %396 = vperm.xlu0 %13317, %v167_v17   ;;  %344 = vmatprep.mubr.f32.mxu0 %v17655_v6 }
  0x55   :  { %11472 = vmatmul.mubr.msk.f32.gmra.mxu0 %vm226_vm1, %v13634_v18  ;;  %405 = vperm.xlu1 %13318, %v170_v19  }
  0x56   :  { %402 = vperm.xlu0 %13317, %v169_v20   ;;  %350 = vmatprep.mubr.f32.mxu0 %v17655_v6 }
  0x59   :  { %11473 = vmatmul.mubr.msk.f32.gmra.mxu0 %vm226_vm1, %v13642_v21  ;;  %411 = vperm.xlu1 %13318, %v172_v22  }
  0x5a   :  { %408 = vperm.xlu0 %13317, %v171_v23   ;;  %356 = vmatprep.mubr.f32.mxu0 %v17655_v6 }
  0x5b   :  { %74 = vsyncpa [#allocation3], 0  ;;  %v13658_v27 = vld [vmem:[%s13428_s9 + $0x38] sm:$0xff]  ;;  %v176_v28 = vld [vmem:[%s13433_s13 + $0x88] sm:$0xff]  ;;  %s13409_s0 = smov 3   ;;  %vm1445_vm2 = vcmask 64512  }
  0x5c   :  { %v175_v29 = vld [vmem:[%s13433_s13 + $0x80] sm:$0xff]  ;;  %v178_v30 = vld [vmem:[%s13433_s13 + $0x98] sm:$0xff]  ;;  %v177_v31 = vld [vmem:[%s13433_s13 + $0x90] sm:$0xff]  ;;  %vm755_vm4 = vcmask 523264   ;;  %s13412_s17 = smov 96   ;;  %s18074_s15 = sld [smem:[#allocation17_spill]] }
  0x5d   :  { %11474 = vmatmul.mubr.msk.f32.gmra.mxu0 %vm226_vm1, %v13650_v24  ;;  %417 = vperm.xlu1 %13318, %v174_v25   ;;  %v180_v32 = vld [vmem:[%s13433_s13 + $0xa8] sm:$0xff]  ;;  %v179_v33 = vld [vmem:[%s13433_s13 + $0xa0] sm:$0xff]  ;;  %v182_v34 = vld [vmem:[%s13433_s13 + $0xb8] sm:$0xff]  ;;  %s18075_s16 = sld [smem:[#allocation18_spill]] }
  0x5e   :  { %414 = vperm.xlu0 %13317, %v173_v26   ;;  %362 = vmatprep.mubr.f32.mxu0 %v17655_v6  ;;  %v181_v35 = vld [vmem:[%s13433_s13 + $0xb0] sm:$0xff]  ;;  %v184_v36 = vld [vmem:[%s13433_s13 + $0xc8] sm:$0xff]  ;;  %v183_v37 = vld [vmem:[%s13433_s13 + $0xc0] sm:$0xff]  ;;  %s18076_s18 = sld [smem:[#allocation19_spill]] }
  0x5f   :  { %v186_v38 = vld [vmem:[%s13433_s13 + $0xd8] sm:$0xff]  ;;  %v185_v39 = vld [vmem:[%s13433_s13 + $0xd0] sm:$0xff]  ;;  %v188_v40 = vld [vmem:[%s13433_s13 + $0xe8] sm:$0xff]  ;;  %s18077_s22 = sld [smem:[#allocation21_spill]] }
  0x60   :  { %v187_v41 = vld [vmem:[%s13433_s13 + $0xe0] sm:$0xff]  ;;  %v189_v42 = vld [vmem:[%s13433_s13 + $0xf0] sm:$0xff]  ;;  %v152_v44 = vld [vmem:[%s13423_s5 + $0x8] sm:$0xff]  ;;  %s18078_s23 = sld [smem:[#allocation20_spill]] }
  0x61   :  { %11475 = vmatmul.mubr.msk.f32.gmra.mxu0 %vm226_vm1, %v13658_v27  ;;  %423 = vperm.xlu1 %13318, %v176_v28   ;;  %v151_v43 = vld [vmem:[%s13423_s5] sm:$0xff]  ;;  %v190_v45 = vld [vmem:[%s13433_s13 + $0xf8] sm:$0xff]  ;;  %v192_v47 = vld [vmem:[%s13433_s13 + $0x108] sm:$0xff] }
  0x62   :  { %420 = vperm.xlu0 %13317, %v175_v29   ;;  %v191_v46 = vld [vmem:[%s13433_s13 + $0x100] sm:$0xff]  ;;  %v193_v48 = vld [vmem:[%s13433_s13 + $0x110] sm:$0xff]  ;;  %v194_v49 = vld [vmem:[%s13433_s13 + $0x118] sm:$0xff] }
  0x63   :  { %v195_v50 = vld [vmem:[%s13433_s13 + $0x120] sm:$0xff]  ;;  %v196_v51 = vld [vmem:[%s13433_s13 + $0x128] sm:$0xff]  ;;  %v197_v52 = vld [vmem:[%s13433_s13 + $0x130] sm:$0xff] }
  0x64   :  { %v153_v53 = vld [vmem:[%s13423_s5 + $0x10] sm:$0xff]  ;;  %v154_v54 = vld [vmem:[%s13423_s5 + $0x18] sm:$0xff]  ;;  %v199_v56 = vld [vmem:[%s13433_s13 + $0x140] sm:$0xff] }
  0x65   :  { %429 = vperm.xlu1 %13318, %v178_v30   ;;  %v198_v55 = vld [vmem:[%s13433_s13 + $0x138] sm:$0xff]  ;;  %v200_v57 = vld [vmem:[%s13433_s13 + $0x148] sm:$0xff]  ;;  %v201_v58 = vld [vmem:[%s13433_s13 + $0x150] sm:$0xff] }
  0x66   :  { %426 = vperm.xlu0 %13317, %v177_v31   ;;  %v202_v59 = vld [vmem:[%s13433_s13 + $0x158] sm:$0xff]  ;;  %v203_v60 = vld [vmem:[%s13433_s13 + $0x160] sm:$0xff]  ;;  %v204_v61 = vld [vmem:[%s13433_s13 + $0x168] sm:$0xff] }
  0x67   :  { %v205_v62 = vld [vmem:[%s13433_s13 + $0x170] sm:$0xff]  ;;  %v155_v63 = vld [vmem:[%s13423_s5 + $0x20] sm:$0xff]  ;;  %v156_v0 = vld [vmem:[%s13423_s5 + $0x28] sm:$0xff] }
  0x68   :  { %v206_v1 = vld [vmem:[%s13433_s13 + $0x178] sm:$0xff]  ;;  %v1437_v2 = vld [vmem:[%s13443_s21] sm:$0xff]  ;;  %v208_v4 = vld [vmem:[%s13433_s13 + $0x188] sm:$0xff]  ;;  %s17916_s21 = sld [smem:[#allocation7_spill]] }
  0x69   :  { %435 = vperm.xlu1 %13318, %v180_v32   ;;  %12472 = vmatprep.subr.mxu0 %v1437_v2  ;;  %v207_v3 = vld [vmem:[%s13433_s13 + $0x180] sm:$0xff]  ;;  %v209_v7 = vld [vmem:[%s13433_s13 + $0x190] sm:$0xff]  ;;  %v210_v8 = vld [vmem:[%s13433_s13 + $0x198] sm:$0xff] }
  0x6a   :  { %432 = vperm.xlu0 %13317, %v179_v33   ;;  %12473 = vmatpush3.msra.mxu0 %v1437_v2  ;;  %v211_v10 = vld [vmem:[%s13433_s13 + $0x1a0] sm:$0xff]  ;;  %v212_v11 = vld [vmem:[%s13433_s13 + $0x1a8] sm:$0xff]  ;;  %v213_v13 = vld [vmem:[%s13433_s13 + $0x1b0] sm:$0xff] }
  0x6b   :  { %v157_v14 = vld [vmem:[%s13423_s5 + $0x30] sm:$0xff]  ;;  %v158_v16 = vld [vmem:[%s13423_s5 + $0x38] sm:$0xff]  ;;  %v215_v22 = vld [vmem:[%s13433_s13 + $0x1c0] sm:$0xff]  ;;  %s13411_s5 = smov 32  }
  0x6c   :  { %v214_v17 = vld [vmem:[%s13433_s13 + $0x1b8] sm:$0xff]  ;;  %v216_v23 = vld [vmem:[%s13433_s13 + $0x1c8] sm:$0xff]  ;;  %v217_v28 = vld [vmem:[%s13433_s13 + $0x1d0] sm:$0xff] }
  0x6d   :  { %441 = vperm.xlu1 %13318, %v182_v34   ;;  %v218_v29 = vld [vmem:[%s13433_s13 + $0x1d8] sm:$0xff]  ;;  %v219_v32 = vld [vmem:[%s13433_s13 + $0x1e0] sm:$0xff]  ;;  %v220_v33 = vld [vmem:[%s13433_s13 + $0x1e8] sm:$0xff] }
  0x6e   :  { %438 = vperm.xlu0 %13317, %v181_v35  }
  0x71   :  { %447 = vperm.xlu1 %13318, %v184_v36   ;;  %v221_v36 = vld [vmem:[%s13433_s13 + $0x1f0] sm:$0xff] }
  0x72   :  { %444 = vperm.xlu0 %13317, %v183_v37   ;;  %v222_v37 = vld [vmem:[%s13433_s13 + $0x1f8] sm:$0xff]  ;;  %s17905_s13 = sld [smem:[#allocation5_spill]] }
  0x75   :  { %453 = vperm.xlu1 %13318, %v186_v38  }
  0x76   :  { %450 = vperm.xlu0 %13317, %v185_v39  }
  0x79   :  { %459 = vperm.xlu1 %13318, %v188_v40  }
  0x7a   :  { %456 = vperm.xlu0 %13317, %v187_v41  }
  0x7d   :  { %1405 = vrot.lane.b32.xlu1 %v151_v43, %s13409_s0 }
  0x7e   :  { %462 = vperm.xlu0 %13317, %v189_v42  }
  0x81   :  { %465 = vperm.xlu1 %13318, %v190_v45  }
  0x82   :  { %1407 = vrot.lane.b32.xlu0 %v152_v44, %s13409_s0 }
  0x85   :  { %471 = vperm.xlu1 %13318, %v192_v47  }
  0x86   :  { %468 = vperm.xlu0 %13317, %v191_v46  }
  0x89   :  { %477 = vperm.xlu1 %13318, %v194_v49  }
  0x8a   :  { %474 = vperm.xlu0 %13317, %v193_v48  }
  0x8d   :  { %483 = vperm.xlu1 %13318, %v196_v51  }
  0x8e   :  { %480 = vperm.xlu0 %13317, %v195_v50  }
  0x91   :  { %1409 = vrot.lane.b32.xlu1 %v153_v53, %s13409_s0 }
  0x92   :  { %486 = vperm.xlu0 %13317, %v197_v52  }
  0x95   :  { %489 = vperm.xlu1 %13318, %v198_v55  }
  0x96   :  { %1411 = vrot.lane.b32.xlu0 %v154_v54, %s13409_s0 }
  0x99   :  { %495 = vperm.xlu1 %13318, %v200_v57  }
  0x9a   :  { %492 = vperm.xlu0 %13317, %v199_v56  }
  0x9d   :  { %501 = vperm.xlu1 %13318, %v202_v59  }
  0x9e   :  { %498 = vperm.xlu0 %13317, %v201_v58  }
  0xa1   :  { %507 = vperm.xlu1 %13318, %v204_v61  }
  0xa2   :  { %504 = vperm.xlu0 %13317, %v203_v60  }
  0xa5   :  { %1413 = vrot.lane.b32.xlu1 %v155_v63, %s13409_s0 }
  0xa6   :  { %510 = vperm.xlu0 %13317, %v205_v62  }
  0xa9   :  { %513 = vperm.xlu1 %13318, %v206_v1  }
  0xaa   :  { %1415 = vrot.lane.b32.xlu0 %v156_v0, %s13409_s0 }
  0xad   :  { %519 = vperm.xlu1 %13318, %v208_v4  }
  0xae   :  { %516 = vperm.xlu0 %13317, %v207_v3  }
  0xb1   :  { %525 = vperm.xlu1 %13318, %v210_v8  }
  0xb2   :  { %522 = vperm.xlu0 %13317, %v209_v7  }
  0xb5   :  { %531 = vperm.xlu1 %13318, %v212_v11  }
  0xb6   :  { %528 = vperm.xlu0 %13317, %v211_v10  }
  0xb9   :  { %1417 = vrot.lane.b32.xlu1 %v157_v14, %s13409_s0 }
  0xba   :  { %534 = vperm.xlu0 %13317, %v213_v13  }
  0xbc   :  { %v13719_v19 = vpop.permute.xlu1 %378  ;;  %v13721_v20 = vpop.permute.xlu0 %372 }
  0xbd   :  { %537 = vperm.xlu1 %13318, %v214_v17  }
  0xbe   :  { %1419 = vrot.lane.b32.xlu0 %v158_v16, %s13409_s0 }
  0xc0   :  { %v13726_v25 = vpop.permute.xlu1 %381 }
  0xc1   :  { %v13728_v26 = vpop.permute.xlu0 %375  ;;  %543 = vperm.xlu1 %13318, %v216_v23  }
  0xc2   :  { %540 = vperm.xlu0 %13317, %v215_v22  }
  0xc4   :  { %v13732_v30 = vpop.permute.xlu1 %387 }
  0xc5   :  { %v13734_v31 = vpop.permute.xlu0 %384  ;;  %549 = vperm.xlu1 %13318, %v218_v29  }
  0xc6   :  { %546 = vperm.xlu0 %13317, %v217_v28  }
  0xc8   :  { %v13738_v34 = vpop.permute.xlu1 %393 }
  0xc9   :  { %v13740_v35 = vpop.permute.xlu0 %390  ;;  %555 = vperm.xlu1 %13318, %v220_v33  }
  0xca   :  { %552 = vperm.xlu0 %13317, %v219_v32  }
  0xcc   :  { %v13744_v38 = vpop.permute.xlu1 %399 }
  0xcd   :  { %v13746_v39 = vpop.permute.xlu0 %396  ;;  %561 = vperm.xlu1 %13318, %v222_v37  }
  0xce   :  { %558 = vperm.xlu0 %13317, %v221_v36  }
  0xd0   :  { %v13748_v40 = vpop.permute.xlu1 %405 }
  0xd1   :  { %v13750_v41 = vpop.permute.xlu0 %402 }
  0xd4   :  { %v13752_v42 = vpop.permute.xlu1 %411 }
  0xd5   :  { %v13754_v43 = vpop.permute.xlu0 %408 }
  0xd8   :  { %v13756_v44 = vpop.permute.xlu1 %417 }
  0xd9   :  { %v13758_v45 = vpop.permute.xlu0 %414 }
  0xdc   :  { %v13760_v46 = vpop.permute.xlu1 %423 }
  0xdd   :  { %v13762_v47 = vpop.permute.xlu0 %420 }
  0xe0   :  { %v13764_v48 = vpop.permute.xlu1 %429 }
  0xe1   :  { %v13766_v49 = vpop.permute.xlu0 %426 }
  0xe4   :  { %v13768_v50 = vpop.permute.xlu1 %435 }
  0xe5   :  { %v13770_v51 = vpop.permute.xlu0 %432 }
  0xe8   :  { %v13772_v52 = vpop.permute.xlu1 %441 }
  0xe9   :  { %v13774_v53 = vpop.permute.xlu0 %438 }
  0xec   :  { %v13776_v54 = vpop.permute.xlu1 %447 }
  0xed   :  { %v13778_v55 = vpop.permute.xlu0 %444 }
  0xf0   :  { %v13780_v56 = vpop.permute.xlu1 %453 }
  0xf1   :  { %v13782_v57 = vpop.permute.xlu0 %450 }
  0xf4   :  { %v13784_v58 = vpop.permute.xlu1 %459 }
  0xf5   :  { %v13786_v59 = vpop.permute.xlu0 %456 }
  0xf8   :  { %v1406_v61 = vpop.permute.xlu1 %1405 }
  0xf9   :  { %v13788_v60 = vpop.permute.xlu0 %462  ;;  %v1429_v62 = vsel %vm226_vm1, %v13599_v5, %v1406_v61 }
  0xfa   :  { %12474 = vmatprep.mubr.msk.f32.mxu0 %vm1445_vm2, %v1429_v62 }
  0xfc   :  { %v13793_v0 = vpop.permute.xlu1 %465 }
  0xfd   :  { %v1408_v63 = vpop.permute.xlu0 %1407 }
  0xfe   :  { %v1430_v1 = vsel %vm226_vm1, %v13610_v9, %v1408_v63 }
  0xff   :  { %12475 = vmatmul.mubr.msk.f32.vlgmr.msra.gmra.mxu0 %vm1445_vm2, %v1430_v1 }
 0x100   :  { %v13800_v3 = vpop.permute.xlu1 %471 }
 0x101   :  { %v13798_v2 = vpop.permute.xlu0 %468 }
 0x104   :  { %v13804_v7 = vpop.permute.xlu1 %477 }
 0x105   :  { %v13802_v4 = vpop.permute.xlu0 %474  ;;  %v13806_v8 = vpop.f32.mrf.mxu0 }
 0x107   :  { %v324_v5 = vpop.f32.mrf.mxu0 }
 0x108   :  { %v13810_v11 = vpop.permute.xlu1 %483 }
 0x109   :  { %v13808_v10 = vpop.permute.xlu0 %480  ;;  %17768 = vst [vmem:[#allocation22_spill] sm:$0xff] %v13810_v11  ;;  %v328_v13 = vpop.f32.mrf.mxu0 }
 0x10b   :  { %v330_v14 = vpop.f32.mrf.mxu0 }
 0x10c   :  { %v1410_v16 = vpop.permute.xlu1 %1409 }
 0x10d   :  { %v13812_v9 = vpop.permute.xlu0 %486  ;;  %v1431_v17 = vsel %vm226_vm1, %v13618_v12, %v1410_v16  ;;  %v334_v22 = vpop.f32.mrf.mxu0 }
 0x10e   :  { %17769 = vst [vmem:[#allocation23_spill] sm:$0xff] %v13812_v9  ;;  %12477 = vmatprep.mubr.msk.f32.mxu0 %vm1445_vm2, %v1431_v17 }
 0x10f   :  { %v336_v23 = vpop.f32.mrf.mxu0 }
 0x110   :  { %v13817_v29 = vpop.permute.xlu1 %489 }
 0x111   :  { %v1412_v28 = vpop.permute.xlu0 %1411  ;;  %17770 = vst [vmem:[#allocation24_spill] sm:$0xff] %v13817_v29  ;;  %v340_v33 = vpop.f32.mrf.mxu0 }
 0x112   :  { %v1432_v32 = vsel %vm226_vm1, %v13626_v15, %v1412_v28 }
 0x113   :  { %12478 = vmatmul.mubr.msk.f32.gmra.mxu0 %vm1445_vm2, %v1432_v32  ;;  %v342_v36 = vpop.f32.mrf.mxu0 }
 0x114   :  { %v13824_v61 = vpop.permute.xlu1 %495 }
 0x115   :  { %v13822_v37 = vpop.permute.xlu0 %492  ;;  %17772 = vst [vmem:[#allocation26_spill] sm:$0xff] %v13824_v61  ;;  %v346_v62 = vpop.f32.mrf.mxu0 }
 0x116   :  { %17771 = vst [vmem:[#allocation25_spill] sm:$0xff] %v13822_v37 }
 0x117   :  { %v348_v12 = vpop.f32.mrf.mxu0 }
 0x118   :  { %v13828_v1 = vpop.permute.xlu1 %501 }
 0x119   :  { %v13826_v63 = vpop.permute.xlu0 %498  ;;  %17774 = vst [vmem:[#allocation28_spill] sm:$0xff] %v13828_v1  ;;  %v352_v16 = vpop.f32.mrf.mxu0 }
 0x11a   :  { %17773 = vst [vmem:[#allocation27_spill] sm:$0xff] %v13826_v63 }
 0x11b   :  { %v354_v17 = vpop.f32.mrf.mxu0 }
 0x11c   :  { %v13832_v29 = vpop.permute.xlu1 %507 }
 0x11d   :  { %v13830_v6 = vpop.permute.xlu0 %504  ;;  %17776 = vst [vmem:[#allocation30_spill] sm:$0xff] %v13832_v29  ;;  %v358_v15 = vpop.f32.mrf.mxu0 }
 0x11e   :  { %17775 = vst [vmem:[#allocation29_spill] sm:$0xff] %v13830_v6 }
 0x11f   :  { %v360_v28 = vpop.f32.mrf.mxu0 }
 0x120   :  { %v1414_v9 = vpop.permute.xlu1 %1413 }
 0x121   :  { %v13834_v32 = vpop.permute.xlu0 %510  ;;  %v1433_v61 = vsel %vm226_vm1, %v13634_v18, %v1414_v9  ;;  %v364_v37 = vpop.f32.mrf.mxu0 }
 0x122   :  { %17777 = vst [vmem:[#allocation31_spill] sm:$0xff] %v13834_v32  ;;  %12480 = vmatprep.mubr.msk.f32.mxu0 %vm1445_vm2, %v1433_v61  ;;  %v369_v32 = vlaneseq }
 0x123   :  { %v366_v63 = vpop.f32.mrf.mxu0 }
 0x124   :  { %964 = vmatprep.subr.mxu1 %v366_v63  ;;  %v13839_v11 = vpop.permute.xlu1 %513  ;;  %v13849_v9 = vand.u32 127, %v369_v32  ;;  %v17779_v63 = vld [vmem:[#allocation22_spill] sm:$0xff] }
 0x125   :  { %v1416_v1 = vpop.permute.xlu0 %1415  ;;  %965 = vmatpush1.msra.mxu1 %v364_v37 }
 0x126   :  { %v1434_v6 = vsel %vm226_vm1, %v13642_v21, %v1416_v1  ;;  %966 = vmatprep.subr.mxu1 %v360_v28  ;;  %vm563_vm3 = vcmp.eq.s32.totalorder %v13721_v20, %v13849_v9  ;;  %vm564_vm5 = vcmp.eq.s32.totalorder %v13728_v26, %v13849_v9  ;;  %vm565_vm6 = vcmp.eq.s32.totalorder %v13719_v19, %v13849_v9  ;;  %v17780_v1 = vld [vmem:[#allocation23_spill] sm:$0xff] }
 0x127   :  { %12481 = vmatmul.mubr.msk.f32.gmra.mxu0 %vm1445_vm2, %v1434_v6  ;;  %967 = vmatpush1.msra.mxu1 %v358_v15  ;;  %vm566_vm7 = vcmp.eq.s32.totalorder %v13726_v25, %v13849_v9  ;;  %vm567_vm8 = vcmp.eq.s32.totalorder %v13734_v31, %v13849_v9  ;;  %vm568_vm9 = vcmp.eq.s32.totalorder %v13732_v30, %v13849_v9  ;;  %v17782_v15 = vld [vmem:[#allocation25_spill] sm:$0xff] }
 0x128   :  { %968 = vmatprep.subr.mxu1 %v354_v17  ;;  %v13846_v18 = vpop.permute.xlu1 %519  ;;  %vm569_vm10 = vcmp.eq.s32.totalorder %v13740_v35, %v13849_v9  ;;  %vm570_vm11 = vcmp.eq.s32.totalorder %v13738_v34, %v13849_v9  ;;  %vm571_vm12 = vcmp.eq.s32.totalorder %v13746_v39, %v13849_v9  ;;  %vm572_vm13 = vcmp.eq.s32.totalorder %v13744_v38, %v13849_v9 }
 0x129   :  { %v13844_v29 = vpop.permute.xlu0 %516  ;;  %969 = vmatpush1.msra.mxu1 %v352_v16  ;;  %vm573_vm14 = vcmp.eq.s32.totalorder %v13750_v41, %v13849_v9  ;;  %vm574_vm15 = vcmp.eq.s32.totalorder %v13748_v40, %v13849_v9  ;;  %v17781_v16 = vld [vmem:[#allocation24_spill] sm:$0xff] }
 0x12a   :  { %970 = vmatprep.subr.mxu1 %v348_v12 }
 0x12b   :  { %971 = vmatpush1.msra.mxu1 %v346_v62  ;;  %v17778_v62 = vmov 0.0  }
 0x12c   :  { %972 = vmatprep.subr.mxu1 %v342_v36  ;;  %v13853_v21 = vpop.permute.xlu1 %525  ;;  %v11476_v36 = vsel %vm563_vm3, 1.0, %v17778_v62  ;;  %v11479_v19 = vsel %vm566_vm7, 1.0, %v17778_v62  ;;  %v11481_v25 = vsel %vm568_vm9, 1.0, %v17778_v62  ;;  %v11482_v31 = vsel %vm569_vm10, 1.0, %v17778_v62 }
 0x12d   :  { %v13851_v61 = vpop.permute.xlu0 %522  ;;  %973 = vmatpush1.msra.mxu1 %v340_v33  ;;  %v11483_v30 = vsel %vm570_vm11, 1.0, %v17778_v62  ;;  %v11484_v35 = vsel %vm571_vm12, 1.0, %v17778_v62  ;;  %v11485_v34 = vsel %vm572_vm13, 1.0, %v17778_v62  ;;  %v11486_v39 = vsel %vm573_vm14, 1.0, %v17778_v62 }
 0x12e   :  { %974 = vmatprep.subr.mxu1 %v336_v23  ;;  %v11487_v38 = vsel %vm574_vm15, 1.0, %v17778_v62  ;;  %vm576_vm3 = vcmp.eq.s32.totalorder %v13752_v42, %v13849_v9  ;;  %vm579_vm7 = vcmp.eq.s32.totalorder %v13762_v47, %v13849_v9  ;;  %vm581_vm9 = vcmp.eq.s32.totalorder %v13766_v49, %v13849_v9  ;;  %v2424_v23 = vld [vmem:[%s13453_s29 + $0x8] sm:$0xff] }
 0x12f   :  { %975 = vmatpush1.msra.mxu1 %v334_v22  ;;  %v11489_v40 = vsel %vm576_vm3, 1.0, %v17778_v62  ;;  %v11494_v33 = vsel %vm581_vm9, 1.0, %v17778_v62  ;;  %vm582_vm10 = vcmp.eq.s32.totalorder %v13764_v48, %v13849_v9  ;;  %vm583_vm11 = vcmp.eq.s32.totalorder %v13770_v51, %v13849_v9 }
 0x130   :  { %976 = vmatprep.subr.mxu1 %v330_v14  ;;  %v13859_v37 = vpop.permute.xlu1 %531  ;;  %v11495_v49 = vsel %vm582_vm10, 1.0, %v17778_v62  ;;  %v11496_v12 = vsel %vm583_vm11, 1.0, %v17778_v62  ;;  %vm584_vm12 = vcmp.eq.s32.totalorder %v13768_v50, %v13849_v9  ;;  %vm585_vm13 = vcmp.eq.s32.totalorder %v13774_v53, %v13849_v9 }
 0x131   :  { %v13857_v6 = vpop.permute.xlu0 %528  ;;  %977 = vmatpush1.msra.mxu1 %v328_v13  ;;  %v2425_v13 = vld [vmem:[%s13453_s29 + $0x10] sm:$0xff]  ;;  %v11497_v48 = vsel %vm584_vm12, 1.0, %v17778_v62  ;;  %v11498_v51 = vsel %vm585_vm13, 1.0, %v17778_v62  ;;  %vm586_vm14 = vcmp.eq.s32.totalorder %v13772_v52, %v13849_v9  ;;  %vm587_vm15 = vcmp.eq.s32.totalorder %v13778_v55, %v13849_v9 }
 0x132   :  { %978 = vmatprep.subr.mxu1 %v324_v5  ;;  %v11477_v5 = vsel %vm564_vm5, 1.0, %v17778_v62  ;;  %vm577_vm5 = vcmp.eq.s32.totalorder %v13758_v45, %v13849_v9  ;;  %v11492_v45 = vsel %vm579_vm7, 1.0, %v17778_v62  ;;  %v11499_v50 = vsel %vm586_vm14, 1.0, %v17778_v62 }
 0x133   :  { %979 = vmatpush1.msra.mxu1 %v13806_v8  ;;  %v11500_v53 = vsel %vm587_vm15, 1.0, %v17778_v62  ;;  %vm589_vm3 = vcmp.eq.s32.totalorder %v13782_v57, %v13849_v9  ;;  %vm592_vm7 = vcmp.eq.s32.totalorder %v13784_v58, %v13849_v9  ;;  %vm594_vm9 = vcmp.eq.s32.totalorder %v13793_v0, %v13849_v9 }
 0x134   :  { %11540 = vmatmul.mubr.msk.f32.vlgmr.msra.gmra.mxu1 %vm755_vm4, %v11476_v36  ;;  %v1418_v20 = vpop.permute.xlu1 %1417  ;;  %v11502_v55 = vsel %vm589_vm3, 1.0, %v17778_v62  ;;  %v11507_v58 = vsel %vm594_vm9, 1.0, %v17778_v62  ;;  %vm595_vm10 = vcmp.eq.s32.totalorder %v13798_v2, %v13849_v9  ;;  %vm596_vm11 = vcmp.eq.s32.totalorder %v13800_v3, %v13849_v9  ;;  %v17783_v36 = vld [vmem:[#allocation26_spill] sm:$0xff] }
 0x135   :  { %v13866_v22 = vpop.permute.xlu0 %534  ;;  %v1435_v14 = vsel %vm226_vm1, %v13650_v24, %v1418_v20  ;;  %1018 = vmatprep.mubr.f32.mxu1 %v17778_v62  ;;  %v11478_v24 = vsel %vm565_vm6, 1.0, %v17778_v62  ;;  %vm578_vm6 = vcmp.eq.s32.totalorder %v13756_v44, %v13849_v9  ;;  %v2426_v44 = vld [vmem:[%s13453_s29 + $0x18] sm:$0xff]  ;;  %v11509_v0 = vsel %vm596_vm11, 1.0, %v17778_v62 }
 0x136   :  { %12483 = vmatprep.mubr.msk.f32.mxu0 %vm1445_vm2, %v1435_v14  ;;  %v11491_v42 = vsel %vm578_vm6, 1.0, %v17778_v62  ;;  %12486 = vmatprep.subr.mxu0 %v2426_v44  ;;  %vm591_vm6 = vcmp.eq.s32.totalorder %v13786_v59, %v13849_v9  ;;  %vm597_vm12 = vcmp.eq.s32.totalorder %v13802_v4, %v13849_v9  ;;  %vm598_vm13 = vcmp.eq.s32.totalorder %v13804_v7, %v13849_v9  ;;  %v17784_v14 = vld [vmem:[#allocation27_spill] sm:$0xff] }
 0x137   :  { %12487 = vmatpush3.msra.mxu0 %v2426_v44  ;;  %v11504_v57 = vsel %vm591_vm6, 1.0, %v17778_v62  ;;  %v11510_v2 = vsel %vm597_vm12, 1.0, %v17778_v62  ;;  %v11511_v3 = vsel %vm598_vm13, 1.0, %v17778_v62  ;;  %vm599_vm14 = vcmp.eq.s32.totalorder %v13808_v10, %v13849_v9 }
 0x138   :  { %11541 = vmatmul.mubr.msk.f32.gmra.mxu1 %vm755_vm4, %v11477_v5  ;;  %12488 = vmatprep.subr.mxu0 %v2425_v13  ;;  %v11512_v4 = vsel %vm599_vm14, 1.0, %v17778_v62  ;;  %vm600_vm15 = vcmp.eq.s32.totalorder %v17779_v63, %v13849_v9  ;;  %vm602_vm3 = vcmp.eq.s32.totalorder %v17781_v16, %v13849_v9  ;;  %vm604_vm6 = vcmp.eq.s32.totalorder %v17783_v36, %v13849_v9 }
 0x139   :  { %v1420_v26 = vpop.permute.xlu0 %1419  ;;  %1024 = vmatprep.mubr.f32.mxu1 %v17778_v62  ;;  %12489 = vmatpush3.msra.mxu0 %v2425_v13  ;;  %v11513_v7 = vsel %vm600_vm15, 1.0, %v17778_v62  ;;  %v11515_v17 = vsel %vm602_vm3, 1.0, %v17778_v62  ;;  %v11517_v20 = vsel %vm604_vm6, 1.0, %v17778_v62  ;;  %vm610_vm12 = vcmp.eq.s32.totalorder %v13839_v11, %v13849_v9 }
 0x13a   :  { %v1436_v8 = vsel %vm226_vm1, %v13658_v27, %v1420_v26  ;;  %v11480_v27 = vsel %vm567_vm8, 1.0, %v17778_v62  ;;  %vm580_vm8 = vcmp.eq.s32.totalorder %v13760_v46, %v13849_v9  ;;  %12490 = vmatprep.subr.mxu0 %v2424_v23  ;;  %v2423_v46 = vld [vmem:[%s13453_s29] sm:$0xff]  ;;  %v17785_v26 = vld [vmem:[#allocation28_spill] sm:$0xff]  ;;  %vm611_vm13 = vcmp.eq.s32.totalorder %v13844_v29, %v13849_v9  ;;  %s17954_s29 = sld [smem:[#allocation11_spill]] }
 0x13b   :  { %12484 = vmatmul.mubr.msk.f32.gmra.mxu0 %vm1445_vm2, %v1436_v8  ;;  %vm575_vm2 = vcmp.eq.s32.totalorder %v13754_v43, %v13849_v9  ;;  %v11490_v43 = vsel %vm577_vm5, 1.0, %v17778_v62  ;;  %v11493_v47 = vsel %vm580_vm8, 1.0, %v17778_v62  ;;  %vm590_vm5 = vcmp.eq.s32.totalorder %v13780_v56, %v13849_v9 }
 0x13c   :  { %11542 = vmatmul.mubr.msk.f32.gmra.mxu1 %vm755_vm4, %v11478_v24  ;;  %v11488_v41 = vsel %vm575_vm2, 1.0, %v17778_v62  ;;  %12491 = vmatpush3.msra.mxu0 %v2424_v23  ;;  %vm588_vm2 = vcmp.eq.s32.totalorder %v13776_v54, %v13849_v9  ;;  %v11503_v54 = vsel %vm590_vm5, 1.0, %v17778_v62  ;;  %v11505_v56 = vsel %vm592_vm7, 1.0, %v17778_v62 }
 0x13d   :  { %1030 = vmatprep.mubr.f32.mxu1 %v17778_v62  ;;  %12492 = vmatprep.subr.mxu0 %v2423_v46  ;;  %v11501_v52 = vsel %vm588_vm2, 1.0, %v17778_v62  ;;  %vm593_vm8 = vcmp.eq.s32.totalorder %v13788_v60, %v13849_v9  ;;  %v11508_v60 = vsel %vm595_vm10, 1.0, %v17778_v62  ;;  %vm601_vm2 = vcmp.eq.s32.totalorder %v17780_v1, %v13849_v9 }
 0x13e   :  { %12493 = vmatpush3.msra.mxu0 %v2423_v46  ;;  %v11506_v59 = vsel %vm593_vm8, 1.0, %v17778_v62  ;;  %v11514_v10 = vsel %vm601_vm2, 1.0, %v17778_v62  ;;  %vm603_vm5 = vcmp.eq.s32.totalorder %v17782_v15, %v13849_v9  ;;  %vm605_vm7 = vcmp.eq.s32.totalorder %v17784_v14, %v13849_v9 }
 0x13f   :  { %v11516_v28 = vsel %vm603_vm5, 1.0, %v17778_v62  ;;  %v11518_v5 = vsel %vm605_vm7, 1.0, %v17778_v62  ;;  %vm606_vm8 = vcmp.eq.s32.totalorder %v17785_v26, %v13849_v9  ;;  %v13410_v8 = vmov 1966171168  }
 0x140   :  { %11543 = vmatmul.mubr.msk.f32.gmra.mxu1 %vm755_vm4, %v11479_v19  ;;  %v1585_v24 = vunpack.c.l.s4 %v13410_v8  ;;  %v11523_v23 = vsel %vm610_vm12, 1.0, %v17778_v62  ;;  %vm612_vm14 = vcmp.eq.s32.totalorder %v13846_v18, %v13849_v9  ;;  %vm2434_vm15 = vcmask 261120  }
 0x141   :  { %1036 = vmatprep.mubr.f32.mxu1 %v17778_v62  ;;  %vm613_vm2 = vcmp.eq.s32.totalorder %v13851_v61, %v13849_v9  ;;  %vm614_vm3 = vcmp.eq.s32.totalorder %v13853_v21, %v13849_v9  ;;  %vm615_vm5 = vcmp.eq.s32.totalorder %v13857_v6, %v13849_v9  ;;  %vm616_vm6 = vcmp.eq.s32.totalorder %v13859_v37, %v13849_v9 }
 0x142   :  { %v11529_v37 = vsel %vm616_vm6, 1.0, %v17778_v62  ;;  %vm617_vm7 = vcmp.eq.s32.totalorder %v13866_v22, %v13849_v9  ;;  %vm4384_vm6 = vcmask 1042434  }
 0x143   :  { %v11530_v22 = vsel %vm617_vm7, 1.0, %v17778_v62  ;;  %vm4386_vm7 = vcmask 1043459  }
 0x144   :  { %11544 = vmatmul.mubr.msk.f32.gmra.mxu1 %vm755_vm4, %v11480_v27  ;;  %v11519_v27 = vsel %vm606_vm8, 1.0, %v17778_v62 }
 0x145   :  { %1042 = vmatprep.mubr.f32.mxu1 %v17778_v62 }
 0x148   :  { %11545 = vmatmul.mubr.msk.f32.gmra.mxu1 %vm755_vm4, %v11481_v25  ;;  %v17786_v25 = vld [vmem:[#allocation29_spill] sm:$0xff] }
 0x149   :  { %1048 = vmatprep.mubr.f32.mxu1 %v17778_v62  ;;  %vm607_vm9 = vcmp.eq.s32.totalorder %v17786_v25, %v13849_v9  ;;  %v538_v25 = vpop.permute.xlu1 %537 }
 0x14a   :  { %vm618_vm8 = vcmp.eq.s32.totalorder %v538_v25, %v13849_v9 }
 0x14c   :  { %11546 = vmatmul.mubr.msk.f32.gmra.mxu1 %vm755_vm4, %v11482_v31  ;;  %v1586_v31 = vunpack.c.0.s8 %v1585_v24 }
 0x14d   :  { %1054 = vmatprep.mubr.f32.mxu1 %v17778_v62 }
 0x150   :  { %11547 = vmatmul.mubr.msk.f32.gmra.mxu1 %vm755_vm4, %v11483_v30  ;;  %v1588_v30 = vshrl.u32 %v369_v32, 7 }
 0x151   :  { %1060 = vmatprep.mubr.f32.mxu1 %v17778_v62 }
 0x152   :  { %v14118_v44 = vsub.s32 0, %v1588_v30 }
 0x154   :  { %11548 = vmatmul.mubr.msk.f32.gmra.mxu1 %vm755_vm4, %v11484_v35  ;;  %v14098_v35 = vld [vmem:[%s13448_s25] ss:$0 sm:$0xff] }
 0x155   :  { %1066 = vmatprep.mubr.f32.mxu1 %v17778_v62 }
 0x158   :  { %11549 = vmatmul.mubr.msk.f32.gmra.mxu1 %vm755_vm4, %v11485_v34 }
 0x159   :  { %1072 = vmatprep.mubr.f32.mxu1 %v17778_v62 }
 0x15c   :  { %11550 = vmatmul.mubr.msk.f32.gmra.mxu1 %vm755_vm4, %v11486_v39  ;;  %v11520_v39 = vsel %vm607_vm9, 1.0, %v17778_v62 }
 0x15d   :  { %1078 = vmatprep.mubr.f32.mxu1 %v17778_v62 }
 0x160   :  { %11551 = vmatmul.mubr.msk.f32.gmra.mxu1 %vm755_vm4, %v11487_v38  ;;  %v17787_v38 = vld [vmem:[#allocation30_spill] sm:$0xff] }
 0x161   :  { %1084 = vmatprep.mubr.f32.mxu1 %v17778_v62  ;;  %vm608_vm10 = vcmp.eq.s32.totalorder %v17787_v38, %v13849_v9 }
 0x162   :  { %v11521_v32 = vsel %vm608_vm10, 1.0, %v17778_v62 }
 0x164   :  { %11552 = vmatmul.mubr.msk.f32.gmra.mxu1 %vm755_vm4, %v11488_v41  ;;  %v14104_v41 = vsub.s32 %v1586_v31, %v1588_v30 }
 0x165   :  { %1090 = vmatprep.mubr.f32.mxu1 %v17778_v62 }
 0x168   :  { %11553 = vmatmul.mubr.msk.f32.gmra.mxu1 %vm755_vm4, %v11489_v40 }
 0x169   :  { %1096 = vmatprep.mubr.f32.mxu1 %v17778_v62 }
 0x16c   :  { %11554 = vmatmul.mubr.msk.f32.gmra.mxu1 %vm755_vm4, %v11490_v43  ;;  %v17788_v43 = vld [vmem:[#allocation31_spill] sm:$0xff] }
 0x16d   :  { %1102 = vmatprep.mubr.f32.mxu1 %v17778_v62  ;;  %vm609_vm11 = vcmp.eq.s32.totalorder %v17788_v43, %v13849_v9 }
 0x170   :  { %11555 = vmatmul.mubr.msk.f32.gmra.mxu1 %vm755_vm4, %v11491_v42 }
 0x171   :  { %1108 = vmatprep.mubr.f32.mxu1 %v17778_v62 }
 0x174   :  { %11556 = vmatmul.mubr.msk.f32.gmra.mxu1 %vm755_vm4, %v11492_v45  ;;  %v11522_v45 = vsel %vm609_vm11, 1.0, %v17778_v62 }
 0x175   :  { %1114 = vmatprep.mubr.f32.mxu1 %v17778_v62 }
 0x178   :  { %11557 = vmatmul.mubr.msk.f32.gmra.mxu1 %vm755_vm4, %v11493_v47 }
 0x179   :  { %1120 = vmatprep.mubr.f32.mxu1 %v17778_v62 }
 0x17c   :  { %11558 = vmatmul.mubr.msk.f32.gmra.mxu1 %vm755_vm4, %v11494_v33  ;;  %v11524_v33 = vsel %vm611_vm13, 1.0, %v17778_v62 }
 0x17d   :  { %1126 = vmatprep.mubr.f32.mxu1 %v17778_v62 }
 0x180   :  { %11559 = vmatmul.mubr.msk.f32.gmra.mxu1 %vm755_vm4, %v11495_v49 }
 0x181   :  { %1132 = vmatprep.mubr.f32.mxu1 %v17778_v62 }
 0x184   :  { %11560 = vmatmul.mubr.msk.f32.gmra.mxu1 %vm755_vm4, %v11496_v12 }
 0x185   :  { %1138 = vmatprep.mubr.f32.mxu1 %v17778_v62 }
 0x188   :  { %11561 = vmatmul.mubr.msk.f32.gmra.mxu1 %vm755_vm4, %v11497_v48 }
 0x189   :  { %1144 = vmatprep.mubr.f32.mxu1 %v17778_v62 }
 0x18c   :  { %11562 = vmatmul.mubr.msk.f32.gmra.mxu1 %vm755_vm4, %v11498_v51 }
 0x18d   :  { %1150 = vmatprep.mubr.f32.mxu1 %v17778_v62 }
 0x190   :  { %11563 = vmatmul.mubr.msk.f32.gmra.mxu1 %vm755_vm4, %v11499_v50 }
 0x191   :  { %1156 = vmatprep.mubr.f32.mxu1 %v17778_v62 }
 0x194   :  { %11564 = vmatmul.mubr.msk.f32.gmra.mxu1 %vm755_vm4, %v11500_v53  ;;  %v11525_v53 = vsel %vm612_vm14, 1.0, %v17778_v62 }
 0x195   :  { %1162 = vmatprep.mubr.f32.mxu1 %v17778_v62 }
 0x198   :  { %11565 = vmatmul.mubr.msk.f32.gmra.mxu1 %vm755_vm4, %v11501_v52 }
 0x199   :  { %1168 = vmatprep.mubr.f32.mxu1 %v17778_v62 }
 0x19c   :  { %11566 = vmatmul.mubr.msk.f32.gmra.mxu1 %vm755_vm4, %v11502_v55 }
 0x19d   :  { %1174 = vmatprep.mubr.f32.mxu1 %v17778_v62 }
 0x1a0   :  { %11567 = vmatmul.mubr.msk.f32.gmra.mxu1 %vm755_vm4, %v11503_v54 }
 0x1a1   :  { %1180 = vmatprep.mubr.f32.mxu1 %v17778_v62 }
 0x1a4   :  { %11568 = vmatmul.mubr.msk.f32.gmra.mxu1 %vm755_vm4, %v11504_v57 }
 0x1a5   :  { %1186 = vmatprep.mubr.f32.mxu1 %v17778_v62 }
 0x1a8   :  { %11569 = vmatmul.mubr.msk.f32.gmra.mxu1 %vm755_vm4, %v11505_v56 }
 0x1a9   :  { %1192 = vmatprep.mubr.f32.mxu1 %v17778_v62 }
 0x1ac   :  { %11570 = vmatmul.mubr.msk.f32.gmra.mxu1 %vm755_vm4, %v11506_v59 }
 0x1ad   :  { %1198 = vmatprep.mubr.f32.mxu1 %v17778_v62 }
 0x1b0   :  { %11571 = vmatmul.mubr.msk.f32.gmra.mxu1 %vm755_vm4, %v11507_v58  ;;  %v11526_v58 = vsel %vm613_vm2, 1.0, %v17778_v62 }
 0x1b1   :  { %1204 = vmatprep.mubr.f32.mxu1 %v17778_v62 }
 0x1b4   :  { %11572 = vmatmul.mubr.msk.f32.gmra.mxu1 %vm755_vm4, %v11508_v60 }
 0x1b5   :  { %1210 = vmatprep.mubr.f32.mxu1 %v17778_v62 }
 0x1b8   :  { %11573 = vmatmul.mubr.msk.f32.gmra.mxu1 %vm755_vm4, %v11509_v0 }
 0x1b9   :  { %1216 = vmatprep.mubr.f32.mxu1 %v17778_v62 }
 0x1bc   :  { %11574 = vmatmul.mubr.msk.f32.gmra.mxu1 %vm755_vm4, %v11510_v2 }
 0x1bd   :  { %1222 = vmatprep.mubr.f32.mxu1 %v17778_v62 }
 0x1bf   :  { %v14089_v19 = vpop.f32.mrf.mxu0 }
 0x1c0   :  { %11575 = vmatmul.mubr.msk.f32.gmra.mxu1 %vm755_vm4, %v11511_v3  ;;  %v14184_v6 = vadd.f32 %v14089_v19, %v14098_v35 }
 0x1c1   :  { %1228 = vmatprep.mubr.f32.mxu1 %v17778_v62  ;;  %v1536_v34 = vpop.f32.mrf.mxu0 }
 0x1c2   :  { %v1537_v40 = vadd.f32 %v14098_v35, %v1536_v34  ;;  %v1639_v19 = vrot.slane %v14184_v6, %v14104_v41 }
 0x1c4   :  { %11576 = vmatmul.mubr.msk.f32.gmra.mxu1 %vm755_vm4, %v11512_v4  ;;  %v1590_v42 = vrot.slane %v1537_v40, %v14104_v41  ;;  %v1583_v49 = vcombine.high %v1537_v40, %v1537_v40  ;;  %v3079_v40 = vld [vmem:[%s13463_s8 + $0x18] sm:$0xff] }
 0x1c5   :  { %1234 = vmatprep.mubr.f32.mxu1 %v17778_v62  ;;  %12590 = vmatprep.subr.mxu0 %v3079_v40 }
 0x1c6   :  { %v1598_v13 = vcombine.high %v1590_v42, %v1590_v42  ;;  %v1606_v47 = vrot.slane %v1590_v42, %v14104_v41  ;;  %v1597_v18 = vrot.slane %v1583_v49, %v14104_v41  ;;  %v541_v42 = vpop.permute.xlu0 %540  ;;  %v544_v49 = vpop.permute.xlu1 %543 }
 0x1c7   :  { %vm619_vm9 = vcmp.eq.s32.totalorder %v541_v42, %v13849_v9  ;;  %vm620_vm10 = vcmp.eq.s32.totalorder %v544_v49, %v13849_v9 }
 0x1c8   :  { %11577 = vmatmul.mubr.msk.f32.gmra.mxu1 %vm755_vm4, %v11513_v7  ;;  %v1978_v11 = vrot.slane %v1606_v47, %v14118_v44  ;;  %v1620_v46 = vrot.slane %v1598_v13, %v14104_v41  ;;  %v1628_v51 = vcombine.high %v1606_v47, %v1606_v47  ;;  %v1599_v60 = vcombine.high %v1597_v18, %v1597_v18 }
 0x1c9   :  { %1240 = vmatprep.mubr.f32.mxu1 %v17778_v62  ;;  %v1613_v4 = vrot.slane %v1597_v18, %v14104_v41  ;;  %v11527_v7 = vsel %vm614_vm3, 1.0, %v17778_v62 }
 0x1ca   :  { %v1982_v48 = vrot.slane %v1620_v46, %v14118_v44  ;;  %v1986_v57 = vrot.slane %v1628_v51, %v14118_v44  ;;  %v1630_v56 = vcombine.high %v1620_v46, %v1620_v46 }
 0x1cb   :  { %v1994_v16 = vrot.slane %v1613_v4, %v14118_v44  ;;  %v1629_v26 = vcombine.high %v1613_v4, %v1613_v4 }
 0x1cc   :  { %11578 = vmatmul.mubr.msk.f32.gmra.mxu1 %vm755_vm4, %v11514_v10  ;;  %v1990_v3 = vrot.slane %v1630_v56, %v14118_v44  ;;  %v547_v56 = vpop.permute.xlu0 %546 }
 0x1cd   :  { %1246 = vmatprep.mubr.f32.mxu1 %v17778_v62  ;;  %v2002_v30 = vrot.slane %v1629_v26, %v14118_v44  ;;  %vm621_vm11 = vcmp.eq.s32.totalorder %v547_v56, %v13849_v9 }
 0x1d0   :  { %11579 = vmatmul.mubr.msk.f32.gmra.mxu1 %vm755_vm4, %v11515_v17  ;;  %v1627_v17 = vrot.slane %v1599_v60, %v14104_v41 }
 0x1d1   :  { %1252 = vmatprep.mubr.f32.mxu1 %v17778_v62 }
 0x1d2   :  { %v1631_v34 = vcombine.high %v1627_v17, %v1627_v17 }
 0x1d4   :  { %11580 = vmatmul.mubr.msk.f32.gmra.mxu1 %vm755_vm4, %v11516_v28  ;;  %v11528_v28 = vsel %vm615_vm5, 1.0, %v17778_v62  ;;  %v2006_v47 = vrot.slane %v1631_v34, %v14118_v44  ;;  %vm4382_vm5 = vcmask 1041409  }
 0x1d5   :  { %1258 = vmatprep.mubr.f32.mxu1 %v17778_v62 }
 0x1d8   :  { %11581 = vmatmul.mubr.msk.f32.gmra.mxu1 %vm755_vm4, %v11517_v20 }
 0x1d9   :  { %1264 = vmatprep.mubr.f32.mxu1 %v17778_v62 }
 0x1dc   :  { %11582 = vmatmul.mubr.msk.f32.gmra.mxu1 %vm755_vm4, %v11518_v5  ;;  %v1998_v5 = vrot.slane %v1627_v17, %v14118_v44 }
 0x1dd   :  { %1270 = vmatprep.mubr.f32.mxu1 %v17778_v62 }
 0x1e0   :  { %11583 = vmatmul.mubr.msk.f32.gmra.mxu1 %vm755_vm4, %v11519_v27 }
 0x1e1   :  { %1276 = vmatprep.mubr.f32.mxu1 %v17778_v62 }
 0x1e4   :  { %11584 = vmatmul.mubr.msk.f32.gmra.mxu1 %vm755_vm4, %v11520_v39 }
 0x1e5   :  { %1282 = vmatprep.mubr.f32.mxu1 %v17778_v62 }
 0x1e8   :  { %11585 = vmatmul.mubr.msk.f32.gmra.mxu1 %vm755_vm4, %v11521_v32  ;;  %v1647_v32 = vcombine.high %v1639_v19, %v1639_v19 }
 0x1e9   :  { %1288 = vmatprep.mubr.f32.mxu1 %v17778_v62 }
 0x1ec   :  { %11586 = vmatmul.mubr.msk.f32.gmra.mxu1 %vm755_vm4, %v11522_v45  ;;  %v1655_v45 = vrot.slane %v1639_v19, %v14104_v41 }
 0x1ed   :  { %1294 = vmatprep.mubr.f32.mxu1 %v17778_v62 }
 0x1ee   :  { %v2010_v51 = vrot.slane %v1655_v45, %v14118_v44 }
 0x1f0   :  { %11587 = vmatmul.mubr.msk.f32.gmra.mxu1 %vm755_vm4, %v11523_v23 }
 0x1f1   :  { %1300 = vmatprep.mubr.f32.mxu1 %v17778_v62 }
 0x1f4   :  { %v14132_v12 = vpop.f32.mrf.mxu1  ;;  %11588 = vmatmul.mubr.msk.f32.gmra.mxu1 %vm755_vm4, %v11524_v33 }
 0x1f5   :  { %v2295_v29 = vadd.f32 %v1978_v11, %v14132_v12  ;;  %1306 = vmatprep.mubr.f32.mxu1 %v17778_v62  ;;  %v11531_v11 = vsel %vm618_vm8, 1.0, %v17778_v62  ;;  %vm4388_vm8 = vcmask 1044484  }
 0x1f6   :  { %v14138_v50 = vpop.f32.mrf.mxu1 }
 0x1f7   :  { %17789 = vst [vmem:[#allocation22_spill] sm:$0xff] %v14138_v50  ;;  %v2359_v52 = vmax.f32 %v2295_v29, 0.0  ;;  %v1669_v29 = vrot.slane %v1647_v32, %v14104_v41 }
 0x1f8   :  { %v14144_v55 = vpop.f32.mrf.mxu1  ;;  %11589 = vmatmul.mubr.msk.f32.gmra.mxu1 %vm755_vm4, %v11525_v53 }
 0x1f9   :  { %v2296_v54 = vadd.f32 %v1982_v48, %v14144_v55  ;;  %12494 = vmatprep.mubr.msk.f32.mxu0 %vm2434_vm15, %v2359_v52  ;;  %1312 = vmatprep.mubr.f32.mxu1 %v17778_v62  ;;  %v11532_v52 = vsel %vm619_vm9, 1.0, %v17778_v62  ;;  %v2014_v60 = vrot.slane %v1669_v29, %v14118_v44  ;;  %vm4390_vm9 = vcmask 1045509  }
 0x1fa   :  { %v14151_v59 = vpop.f32.mrf.mxu1 }
 0x1fb   :  { %17790 = vst [vmem:[#allocation23_spill] sm:$0xff] %v14151_v59  ;;  %v2360_v61 = vmax.f32 %v2296_v54, 0.0  ;;  %v1632_v54 = vcombine.high %v14184_v6, %v14184_v6  ;;  %v11534_v6 = vsel %vm621_vm11, 1.0, %v17778_v62  ;;  %vm4394_vm11 = vcmask 1047559  }
 0x1fc   :  { %v14156_v0 = vpop.f32.mrf.mxu1  ;;  %11590 = vmatmul.mubr.msk.f32.gmra.mxu1 %vm755_vm4, %v11526_v58  ;;  %v1677_v58 = vcombine.high %v1655_v45, %v1655_v45 }
 0x1fd   :  { %v2297_v2 = vadd.f32 %v1986_v57, %v14156_v0  ;;  %12495 = vmatmul.mubr.msk.f32.vlgmr.msra.gmra.mxu0 %vm2434_vm15, %v2360_v61  ;;  %1318 = vmatprep.mubr.f32.mxu1 %v17778_v62 }
 0x1fe   :  { %v14164_v63 = vpop.f32.mrf.mxu1  ;;  %12591 = vmatpush3.msra.mxu0 %v3079_v40  ;;  %v2018_v17 = vrot.slane %v1677_v58, %v14118_v44 }
 0x1ff   :  { %17791 = vst [vmem:[#allocation24_spill] sm:$0xff] %v14164_v63  ;;  %v2361_v21 = vmax.f32 %v2297_v2, 0.0 }
 0x200   :  { %v14169_v1 = vpop.f32.mrf.mxu1  ;;  %11591 = vmatmul.mubr.msk.f32.gmra.mxu1 %vm755_vm4, %v11527_v7  ;;  %v1646_v7 = vrot.slane %v1632_v54, %v14104_v41 }
 0x201   :  { %v2298_v10 = vadd.f32 %v1990_v3, %v14169_v1  ;;  %12497 = vmatprep.mubr.msk.f32.mxu0 %vm2434_vm15, %v2361_v21  ;;  %1324 = vmatprep.mubr.f32.mxu1 %v17778_v62  ;;  %v11533_v3 = vsel %vm620_vm10, 1.0, %v17778_v62  ;;  %vm4392_vm10 = vcmask 1046534  }
 0x202   :  { %v14177_v15 = vpop.f32.mrf.mxu1 }
 0x203   :  { %17792 = vst [vmem:[#allocation25_spill] sm:$0xff] %v14177_v15  ;;  %v2362_v36 = vmax.f32 %v2298_v10, 0.0  ;;  %v550_v10 = vpop.permute.xlu1 %549 }
 0x204   :  { %v14186_v20 = vpop.f32.mrf.mxu1  ;;  %11592 = vmatmul.mubr.msk.f32.gmra.mxu1 %vm755_vm4, %v11528_v28  ;;  %v1679_v28 = vcombine.high %v1669_v29, %v1669_v29  ;;  %vm622_vm12 = vcmp.eq.s32.totalorder %v550_v10, %v13849_v9 }
 0x205   :  { %v2299_v14 = vadd.f32 %v1994_v16, %v14186_v20  ;;  %12498 = vmatmul.mubr.msk.f32.gmra.mxu0 %vm2434_vm15, %v2362_v36  ;;  %1330 = vmatprep.mubr.f32.mxu1 %v17778_v62  ;;  %v11535_v34 = vsel %vm622_vm12, 1.0, %v17778_v62  ;;  %vm4489_vm12 = vcmask 285696  }
 0x206   :  { %v14193_v8 = vpop.f32.mrf.mxu1  ;;  %v2022_v25 = vrot.slane %v1679_v28, %v14118_v44 }
 0x207   :  { %17793 = vst [vmem:[#allocation26_spill] sm:$0xff] %v14193_v8  ;;  %v2363_v24 = vmax.f32 %v2299_v14, 0.0  ;;  %v556_v40 = vpop.permute.xlu1 %555 }
 0x208   :  { %v14200_v27 = vpop.f32.mrf.mxu1  ;;  %11593 = vmatmul.mubr.msk.f32.gmra.mxu1 %vm755_vm4, %v11529_v37  ;;  %v553_v37 = vpop.permute.xlu0 %552  ;;  %vm624_vm14 = vcmp.eq.s32.totalorder %v556_v40, %v13849_v9 }
 0x209   :  { %v2300_v31 = vadd.f32 %v1998_v5, %v14200_v27  ;;  %12500 = vmatprep.mubr.msk.f32.mxu0 %vm2434_vm15, %v2363_v24  ;;  %1336 = vmatprep.mubr.f32.mxu1 %v17778_v62  ;;  %v1648_v5 = vcombine.high %v1646_v7, %v1646_v7  ;;  %v1662_v24 = vrot.slane %v1646_v7, %v14104_v41  ;;  %v11537_v56 = vsel %vm624_vm14, 1.0, %v17778_v62 }
 0x20a   :  { %v14207_v39 = vpop.f32.mrf.mxu1  ;;  %vm623_vm13 = vcmp.eq.s32.totalorder %v553_v37, %v13849_v9 }
 0x20b   :  { %17794 = vst [vmem:[#allocation27_spill] sm:$0xff] %v14207_v39  ;;  %v2364_v38 = vmax.f32 %v2300_v31, 0.0  ;;  %v2026_v42 = vrot.slane %v1662_v24, %v14118_v44  ;;  %v1676_v45 = vrot.slane %v1648_v5, %v14104_v41  ;;  %v1678_v29 = vcombine.high %v1662_v24, %v1662_v24 }
 0x20c   :  { %v14212_v43 = vpop.f32.mrf.mxu1  ;;  %11594 = vmatmul.mubr.msk.f32.gmra.mxu1 %vm755_vm4, %v11530_v22 }
 0x20d   :  { %v2301_v13 = vadd.f32 %v2002_v30, %v14212_v43  ;;  %12501 = vmatmul.mubr.msk.f32.gmra.mxu0 %vm2434_vm15, %v2364_v38  ;;  %1342 = vmatprep.mubr.f32.mxu1 %v17778_v62  ;;  %v14271_v30 = vpop.f32.mrf.mxu0  ;;  %v2034_v7 = vrot.slane %v1678_v29, %v14118_v44 }
 0x20e   :  { %v14220_v23 = vpop.f32.mrf.mxu1 }
 0x20f   :  { %17795 = vst [vmem:[#allocation28_spill] sm:$0xff] %v14220_v23  ;;  %v2365_v46 = vmax.f32 %v2301_v13, 0.0 }
 0x210   :  { %v14224_v33 = vpop.f32.mrf.mxu1  ;;  %11595 = vmatmul.mubr.msk.f32.gmra.mxu1 %vm755_vm4, %v11531_v11  ;;  %v11536_v11 = vsel %vm623_vm13, 1.0, %v17778_v62 }
 0x211   :  { %v2302_v48 = vadd.f32 %v2006_v47, %v14224_v33  ;;  %12503 = vmatprep.mubr.msk.f32.mxu0 %vm2434_vm15, %v2365_v46  ;;  %1348 = vmatprep.mubr.f32.mxu1 %v17778_v62  ;;  %v1546_v47 = vpop.f32.mrf.mxu0 }
 0x212   :  { %v14232_v53 = vpop.f32.mrf.mxu1 }
 0x213   :  { %17796 = vst [vmem:[#allocation29_spill] sm:$0xff] %v14232_v53  ;;  %v2366_v18 = vmax.f32 %v2302_v48, 0.0  ;;  %v559_v48 = vpop.permute.xlu0 %558 }
 0x214   :  { %v14238_v57 = vpop.f32.mrf.mxu1  ;;  %11596 = vmatmul.mubr.msk.f32.gmra.mxu1 %vm755_vm4, %v11532_v52  ;;  %v2030_v52 = vrot.slane %v1676_v45, %v14118_v44  ;;  %vm625_vm2 = vcmp.eq.s32.totalorder %v559_v48, %v13849_v9 }
 0x215   :  { %v2303_v61 = vadd.f32 %v2010_v51, %v14238_v57  ;;  %12504 = vmatmul.mubr.msk.f32.gmra.mxu0 %vm2434_vm15, %v2366_v18  ;;  %1354 = vmatprep.mubr.f32.mxu1 %v17778_v62  ;;  %v1547_v18 = vadd.f32 %v14098_v35, %v1546_v47 }
 0x216   :  { %v14245_v2 = vpop.f32.mrf.mxu1 }
 0x217   :  { %17797 = vst [vmem:[#allocation30_spill] sm:$0xff] %v14245_v2  ;;  %v2367_v4 = vmax.f32 %v2303_v61, 0.0  ;;  %v1688_v10 = vrot.slane %v1547_v18, %v14104_v41 }
 0x218   :  { %v14250_v21 = vpop.f32.mrf.mxu1  ;;  %11597 = vmatmul.mubr.msk.f32.gmra.mxu1 %vm755_vm4, %v11533_v3  ;;  %v562_v3 = vpop.permute.xlu1 %561 }
 0x219   :  { %v2304_v16 = vadd.f32 %v2014_v60, %v14250_v21  ;;  %12506 = vmatprep.mubr.msk.f32.mxu0 %vm2434_vm15, %v2367_v4  ;;  %1360 = vmatprep.mubr.f32.mxu1 %v17778_v62  ;;  %v1680_v60 = vcombine.high %v1676_v45, %v1676_v45  ;;  %vm626_vm3 = vcmp.eq.s32.totalorder %v562_v3, %v13849_v9 }
 0x21a   :  { %v14257_v36 = vpop.f32.mrf.mxu1  ;;  %v1696_v24 = vcombine.high %v1688_v10, %v1688_v10  ;;  %v11539_v9 = vsel %vm626_vm3, 1.0, %v17778_v62 }
 0x21b   :  { %17798 = vst [vmem:[#allocation31_spill] sm:$0xff] %v14257_v36  ;;  %v2368_v14 = vmax.f32 %v2304_v16, 0.0  ;;  %v2038_v5 = vrot.slane %v1680_v60, %v14118_v44 }
 0x21c   :  { %v14261_v26 = vpop.f32.mrf.mxu1  ;;  %11598 = vmatmul.mubr.msk.f32.gmra.mxu1 %vm755_vm4, %v11534_v6  ;;  %v3078_v6 = vld [vmem:[%s13463_s8 + $0x10] sm:$0xff] }
 0x21d   :  { %v2305_v19 = vadd.f32 %v2018_v17, %v14261_v26  ;;  %12507 = vmatmul.mubr.msk.f32.gmra.mxu0 %vm2434_vm15, %v2368_v14  ;;  %1366 = vmatprep.mubr.f32.mxu1 %v17778_v62  ;;  %v11538_v17 = vsel %vm625_vm2, 1.0, %v17778_v62 }
 0x21e   :  { %v14269_v31 = vpop.f32.mrf.mxu1  ;;  %12592 = vmatprep.subr.mxu0 %v3078_v6 }
 0x21f   :  { %17799 = vst [vmem:[#allocation32_spill] sm:$0xff] %v14269_v31  ;;  %v2369_v22 = vmax.f32 %v2305_v19, 0.0  ;;  %v1704_v19 = vrot.slane %v1688_v10, %v14104_v41  ;;  %12593 = vmatpush3.msra.mxu0 %v3078_v6 }
 0x220   :  { %v14275_v38 = vpop.f32.mrf.mxu1  ;;  %11599 = vmatmul.mubr.msk.f32.gmra.mxu1 %vm755_vm4, %v11535_v34 }
 0x221   :  { %v2306_v32 = vadd.f32 %v2022_v25, %v14275_v38  ;;  %12509 = vmatprep.mubr.msk.f32.mxu0 %vm2434_vm15, %v2369_v22  ;;  %1372 = vmatprep.mubr.f32.mxu1 %v17778_v62 }
 0x222   :  { %v14283_v13 = vpop.f32.mrf.mxu1 }
 0x223   :  { %17800 = vst [vmem:[#allocation33_spill] sm:$0xff] %v14283_v13  ;;  %v2370_v46 = vmax.f32 %v2306_v32, 0.0  ;;  %v2042_v32 = vrot.slane %v1704_v19, %v14118_v44 }
 0x224   :  { %v14287_v49 = vpop.f32.mrf.mxu1  ;;  %11600 = vmatmul.mubr.msk.f32.gmra.mxu1 %vm755_vm4, %v11536_v11 }
 0x225   :  { %v2307_v51 = vadd.f32 %v2026_v42, %v14287_v49  ;;  %12510 = vmatmul.mubr.msk.f32.gmra.mxu0 %vm2434_vm15, %v2370_v46  ;;  %1378 = vmatprep.mubr.f32.mxu1 %v17778_v62  ;;  %v1718_v42 = vrot.slane %v1696_v24, %v14104_v41  ;;  %v1681_v46 = vcombine.high %v1547_v18, %v1547_v18 }
 0x226   :  { %v14295_v54 = vpop.f32.mrf.mxu1 }
 0x227   :  { %17801 = vst [vmem:[#allocation34_spill] sm:$0xff] %v14295_v54  ;;  %v2371_v58 = vmax.f32 %v2307_v51, 0.0  ;;  %v2046_v48 = vrot.slane %v1718_v42, %v14118_v44  ;;  %v1726_v51 = vcombine.high %v1704_v19, %v1704_v19  ;;  %v1695_v60 = vrot.slane %v1681_v46, %v14104_v41 }
 0x228   :  { %v14299_v61 = vpop.f32.mrf.mxu1  ;;  %11601 = vmatmul.mubr.msk.f32.gmra.mxu1 %vm755_vm4, %v11537_v56 }
 0x229   :  { %v2308_v4 = vadd.f32 %v2030_v52, %v14299_v61  ;;  %12512 = vmatprep.mubr.msk.f32.mxu0 %vm2434_vm15, %v2371_v58  ;;  %1384 = vmatprep.mubr.f32.mxu1 %v17778_v62  ;;  %v2050_v18 = vrot.slane %v1726_v51, %v14118_v44 }
 0x22a   :  { %v14307_v16 = vpop.f32.mrf.mxu1 }
 0x22b   :  { %17802 = vst [vmem:[#allocation35_spill] sm:$0xff] %v14307_v16  ;;  %v2372_v28 = vmax.f32 %v2308_v4, 0.0  ;;  %v1728_v4 = vcombine.high %v1718_v42, %v1718_v42 }
 0x22c   :  { %v14312_v14 = vpop.f32.mrf.mxu1  ;;  %11602 = vmatmul.mubr.msk.f32.gmra.mxu1 %vm755_vm4, %v11538_v17 }
 0x22d   :  { %v2309_v37 = vadd.f32 %v2034_v7, %v14312_v14  ;;  %12513 = vmatmul.mubr.msk.f32.gmra.mxu0 %vm2434_vm15, %v2372_v28  ;;  %1390 = vmatprep.mubr.f32.mxu1 %v17778_v62  ;;  %v1697_v28 = vcombine.high %v1695_v60, %v1695_v60 }
 0x22e   :  { %v14320_v25 = vpop.f32.mrf.mxu1 }
 0x22f   :  { %17803 = vst [vmem:[#allocation36_spill] sm:$0xff] %v14320_v25  ;;  %v2373_v34 = vmax.f32 %v2309_v37, 0.0  ;;  %v1711_v37 = vrot.slane %v1695_v60, %v14104_v41 }
 0x230   :  { %v14323_v22 = vpop.f32.mrf.mxu1  ;;  %11603 = vmatmul.mubr.msk.f32.gmra.mxu1 %vm755_vm4, %v11539_v9 }
 0x231   :  { %v2310_v40 = vadd.f32 %v2038_v5, %v14323_v22  ;;  %12515 = vmatprep.mubr.msk.f32.mxu0 %vm2434_vm15, %v2373_v34  ;;  %v2054_v5 = vrot.slane %v1728_v4, %v14118_v44 }
 0x232   :  { %v14330_v45 = vpop.f32.mrf.mxu1 }
 0x233   :  { %17804 = vst [vmem:[#allocation37_spill] sm:$0xff] %v14330_v45  ;;  %v2374_v47 = vmax.f32 %v2310_v40, 0.0  ;;  %v2058_v40 = vrot.slane %v1711_v37, %v14118_v44  ;;  %v3076_v45 = vld [vmem:[%s13463_s8] sm:$0xff] }
 0x234   :  { %v14332_v11 = vpop.f32.mrf.mxu1 }
 0x235   :  { %17805 = vst [vmem:[#allocation38_spill] sm:$0xff] %v14332_v11  ;;  %v2311_v29 = vadd.f32 %v2042_v32, %v14332_v11  ;;  %12516 = vmatmul.mubr.msk.f32.gmra.mxu0 %vm2434_vm15, %v2374_v47  ;;  %v1725_v32 = vrot.slane %v1697_v28, %v14104_v41 }
 0x236   :  { %v14337_v52 = vpop.f32.mrf.mxu1 }
 0x237   :  { %17806 = vst [vmem:[#allocation39_spill] sm:$0xff] %v14337_v52  ;;  %v2375_v56 = vmax.f32 %v2311_v29, 0.0  ;;  %v1552_v29 = vadd.f32 %v14271_v30, %v14098_v35  ;;  %v2062_v51 = vrot.slane %v1725_v32, %v14118_v44  ;;  %v1729_v28 = vcombine.high %v1725_v32, %v1725_v32 }
 0x238   :  { %v14339_v58 = vpop.f32.mrf.mxu1 }
 0x239   :  { %17807 = vst [vmem:[#allocation40_spill] sm:$0xff] %v14339_v58  ;;  %v2312_v3 = vadd.f32 %v2046_v48, %v14339_v58  ;;  %12518 = vmatprep.mubr.msk.f32.mxu0 %vm2434_vm15, %v2375_v56  ;;  %v1727_v56 = vcombine.high %v1711_v37, %v1711_v37  ;;  %v1737_v4 = vrot.slane %v1552_v29, %v14104_v41 }
 0x23a   :  { %v14345_v7 = vpop.f32.mrf.mxu1 }
 0x23b   :  { %17808 = vst [vmem:[#allocation41_spill] sm:$0xff] %v14345_v7  ;;  %v2376_v10 = vmax.f32 %v2312_v3, 0.0  ;;  %v2066_v30 = vrot.slane %v1727_v56, %v14118_v44  ;;  %v1745_v37 = vcombine.high %v1737_v4, %v1737_v4 }
 0x23c   :  { %v14347_v17 = vpop.f32.mrf.mxu1 }
 0x23d   :  { %17809 = vst [vmem:[#allocation42_spill] sm:$0xff] %v14347_v17  ;;  %v2313_v6 = vadd.f32 %v2050_v18, %v14347_v17  ;;  %12519 = vmatmul.mubr.msk.f32.gmra.mxu0 %vm2434_vm15, %v2376_v10 }
 0x23e   :  { %v14353_v24 = vpop.f32.mrf.mxu1 }
 0x23f   :  { %17810 = vst [vmem:[#allocation43_spill] sm:$0xff] %v14353_v24  ;;  %v2377_v19 = vmax.f32 %v2313_v6, 0.0 }
 0x240   :  { %v14355_v9 = vpop.f32.mrf.mxu1 }
 0x241   :  { %17811 = vst [vmem:[#allocation44_spill] sm:$0xff] %v14355_v9  ;;  %v2314_v34 = vadd.f32 %v2054_v5, %v14355_v9  ;;  %12521 = vmatprep.mubr.msk.f32.mxu0 %vm2434_vm15, %v2377_v19  ;;  %v3077_v19 = vld [vmem:[%s13463_s8 + $0x8] sm:$0xff]  ;;  %s17956_s8 = sld [smem:[#allocation9_spill]] }
 0x242   :  { %v14361_v42 = vpop.f32.mrf.mxu1  ;;  %12594 = vmatprep.subr.mxu0 %v3077_v19 }
 0x243   :  { %17812 = vst [vmem:[#allocation45_spill] sm:$0xff] %v14361_v42  ;;  %v2378_v47 = vmax.f32 %v2314_v34, 0.0  ;;  %12595 = vmatpush3.msra.mxu0 %v3077_v19 }
 0x244   :  { %v14363_v46 = vpop.f32.mrf.mxu1  ;;  %12596 = vmatprep.subr.mxu0 %v3076_v45 }
 0x245   :  { %17813 = vst [vmem:[#allocation46_spill] sm:$0xff] %v14363_v46  ;;  %v2315_v48 = vadd.f32 %v2058_v40, %v14363_v46  ;;  %12522 = vmatmul.mubr.msk.f32.gmra.mxu0 %vm2434_vm15, %v2378_v47  ;;  %v1753_v40 = vrot.slane %v1737_v4, %v14104_v41 }
 0x246   :  { %v14370_v60 = vpop.f32.mrf.mxu1  ;;  %12597 = vmatpush3.msra.mxu0 %v3076_v45 }
 0x247   :  { %17814 = vst [vmem:[#allocation47_spill] sm:$0xff] %v14370_v60  ;;  %v2379_v3 = vmax.f32 %v2315_v48, 0.0  ;;  %v2070_v48 = vrot.slane %v1729_v28, %v14118_v44  ;;  %v2074_v4 = vrot.slane %v1753_v40, %v14118_v44 }
 0x248   :  { %v14372_v18 = vpop.f32.mrf.mxu1 }
 0x249   :  { %17815 = vst [vmem:[#allocation48_spill] sm:$0xff] %v14372_v18  ;;  %v2316_v10 = vadd.f32 %v2062_v51, %v14372_v18  ;;  %12524 = vmatprep.mubr.msk.f32.mxu0 %vm2434_vm15, %v2379_v3  ;;  %v1767_v3 = vrot.slane %v1745_v37, %v14104_v41  ;;  %v1730_v37 = vcombine.high %v1552_v29, %v1552_v29 }
 0x24a   :  { %v14378_v6 = vpop.f32.mrf.mxu1 }
 0x24b   :  { %17816 = vst [vmem:[#allocation49_spill] sm:$0xff] %v14378_v6  ;;  %v2380_v5 = vmax.f32 %v2316_v10, 0.0  ;;  %v2078_v19 = vrot.slane %v1767_v3, %v14118_v44  ;;  %v1777_v60 = vcombine.high %v1767_v3, %v1767_v3 }
 0x24c   :  { %v14381_v34 = vpop.f32.mrf.mxu1 }
 0x24d   :  { %17817 = vst [vmem:[#allocation50_spill] sm:$0xff] %v14381_v34  ;;  %v2317_v47 = vadd.f32 %v2066_v30, %v14381_v34  ;;  %12525 = vmatmul.mubr.msk.f32.gmra.mxu0 %vm2434_vm15, %v2380_v5 }
 0x24e   :  { %v14387_v51 = vpop.f32.mrf.mxu1 }
 0x24f   :  { %17818 = vst [vmem:[#allocation51_spill] sm:$0xff] %v14387_v51  ;;  %v2381_v32 = vmax.f32 %v2317_v47, 0.0  ;;  %v1775_v51 = vcombine.high %v1753_v40, %v1753_v40 }
 0x250   :  { %v14389_v56 = vpop.f32.mrf.mxu1 }
 0x251   :  { %17819 = vst [vmem:[#allocation52_spill] sm:$0xff] %v14389_v56  ;;  %v2318_v10 = vadd.f32 %v2070_v48, %v14389_v56  ;;  %12527 = vmatprep.mubr.msk.f32.mxu0 %vm2434_vm15, %v2381_v32  ;;  %v4477_v56 = vld [vmem:[%s13483_s30] sm:$0xff] }
 0x252   :  { %v14395_v6 = vpop.f32.mrf.mxu1 }
 0x253   :  { %17820 = vst [vmem:[#allocation53_spill] sm:$0xff] %v14395_v6  ;;  %v2382_v30 = vmax.f32 %v2318_v10, 0.0  ;;  %v1744_v6 = vrot.slane %v1730_v37, %v14104_v41  ;;  %v2086_v37 = vrot.slane %v1777_v60, %v14118_v44 }
 0x254   :  { %v14397_v5 = vpop.f32.mrf.mxu1 }
 0x255   :  { %v2319_v28 = vadd.f32 %v2074_v4, %v14397_v5  ;;  %12528 = vmatmul.mubr.msk.f32.gmra.mxu0 %vm2434_vm15, %v2382_v30  ;;  %v2082_v30 = vrot.slane %v1775_v51, %v14118_v44 }
 0x256   :  { %v14402_v47 = vpop.f32.mrf.mxu1 }
 0x257   :  { %17821 = vst [vmem:[#allocation54_spill] sm:$0xff] %v14402_v47  ;;  %v2383_v48 = vmax.f32 %v2319_v28, 0.0  ;;  %v14418_v28 = vpop.f32.mrf.mxu0 }
 0x258   :  { %v14404_v42 = vpop.f32.mrf.mxu1 }
 0x259   :  { %17822 = vst [vmem:[#allocation55_spill] sm:$0xff] %v14404_v42  ;;  %v2320_v32 = vadd.f32 %v2078_v19, %v14404_v42  ;;  %12530 = vmatprep.mubr.msk.f32.mxu0 %vm2434_vm15, %v2383_v48  ;;  %v1746_v19 = vcombine.high %v1744_v6, %v1744_v6  ;;  %v1760_v48 = vrot.slane %v1744_v6, %v14104_v41 }
 0x25a   :  { %v14408_v10 = vpop.f32.mrf.mxu1 }
 0x25b   :  { %17823 = vst [vmem:[#allocation56_spill] sm:$0xff] %v14408_v10  ;;  %v2384_v4 = vmax.f32 %v2320_v32, 0.0  ;;  %v1774_v10 = vrot.slane %v1746_v19, %v14104_v41 }
 0x25c   :  { %v14412_v24 = vpop.f32.mrf.mxu1 }
 0x25d   :  { %17824 = vst [vmem:[#allocation57_spill] sm:$0xff] %v14412_v24  ;;  %v2321_v29 = vadd.f32 %v2082_v30, %v14412_v24  ;;  %12531 = vmatmul.mubr.msk.f32.gmra.mxu0 %vm2434_vm15, %v2384_v4  ;;  %v1556_v30 = vpop.f32.mrf.mxu0 }
 0x25e   :  { %v14416_v40 = vpop.f32.mrf.mxu1  ;;  %v1557_v60 = vadd.f32 %v14098_v35, %v1556_v30  ;;  %v1778_v30 = vcombine.high %v1774_v10, %v1774_v10 }
 0x25f   :  { %17825 = vst [vmem:[#allocation58_spill] sm:$0xff] %v14416_v40  ;;  %v2385_v7 = vmax.f32 %v2321_v29, 0.0  ;;  %v2090_v40 = vrot.slane %v1760_v48, %v14118_v44 }
 0x260   :  { %v14422_v32 = vpop.f32.mrf.mxu1  ;;  %v1786_v19 = vrot.slane %v1557_v60, %v14104_v41 }
 0x261   :  { %17826 = vst [vmem:[#allocation59_spill] sm:$0xff] %v14422_v32  ;;  %v2322_v51 = vadd.f32 %v2086_v37, %v14422_v32  ;;  %12533 = vmatprep.mubr.msk.f32.mxu0 %vm2434_vm15, %v2385_v7  ;;  %v2094_v37 = vrot.slane %v1774_v10, %v14118_v44 }
 0x262   :  { %v14426_v3 = vpop.f32.mrf.mxu1  ;;  %v1802_v23 = vrot.slane %v1786_v19, %v14104_v41 }
 0x263   :  { %17827 = vst [vmem:[#allocation60_spill] sm:$0xff] %v14426_v3  ;;  %v2386_v4 = vmax.f32 %v2322_v51, 0.0  ;;  %v1776_v3 = vcombine.high %v1760_v48, %v1760_v48 }
 0x264   :  { %v14430_v52 = vpop.f32.mrf.mxu1 }
 0x265   :  { %17828 = vst [vmem:[#allocation61_spill] sm:$0xff] %v14430_v52  ;;  %v2323_v6 = vadd.f32 %v2090_v40, %v14430_v52  ;;  %12534 = vmatmul.mubr.msk.f32.gmra.mxu0 %vm2434_vm15, %v2386_v4  ;;  %v2098_v4 = vrot.slane %v1776_v3, %v14118_v44  ;;  %v2106_v3 = vrot.slane %v1802_v23, %v14118_v44 }
 0x266   :  { %v14435_v29 = vpop.f32.mrf.mxu1 }
 0x267   :  { %17829 = vst [vmem:[#allocation62_spill] sm:$0xff] %v14435_v29  ;;  %v2387_v7 = vmax.f32 %v2323_v6, 0.0  ;;  %v1794_v6 = vcombine.high %v1786_v19, %v1786_v19 }
 0x268   :  { %v14438_v51 = vpop.f32.mrf.mxu1 }
 0x269   :  { %17830 = vst [vmem:[#allocation63_spill] sm:$0xff] %v14438_v51  ;;  %v2324_v47 = vadd.f32 %v2094_v37, %v14438_v51  ;;  %12536 = vmatprep.mubr.msk.f32.mxu0 %vm2434_vm15, %v2387_v7 }
 0x26a   :  { %v14443_v53 = vpop.f32.mrf.mxu1 }
 0x26b   :  { %17831 = vst [vmem:[#allocation64_spill] sm:$0xff] %v14443_v53  ;;  %v2388_v40 = vmax.f32 %v2324_v47, 0.0  ;;  %v2102_v47 = vrot.slane %v1778_v30, %v14118_v44 }
 0x26c   :  { %v14447_v29 = vpop.f32.mrf.mxu1 }
 0x26d   :  { %17832 = vst [vmem:[#allocation65_spill] sm:$0xff] %v14447_v29  ;;  %v2325_v48 = vadd.f32 %v2098_v4, %v14447_v29  ;;  %12537 = vmatmul.mubr.msk.f32.gmra.mxu0 %vm2434_vm15, %v2388_v40  ;;  %v1816_v4 = vrot.slane %v1794_v6, %v14104_v41 }
 0x26e   :  { %v14452_v7 = vpop.f32.mrf.mxu1 }
 0x26f   :  { %17833 = vst [vmem:[#allocation66_spill] sm:$0xff] %v14452_v7  ;;  %v2389_v37 = vmax.f32 %v2325_v48, 0.0  ;;  %v1779_v7 = vcombine.high %v1557_v60, %v1557_v60  ;;  %v2110_v30 = vrot.slane %v1816_v4, %v14118_v44  ;;  %v1824_v48 = vcombine.high %v1802_v23, %v1802_v23 }
 0x270   :  { %v14455_v53 = vpop.f32.mrf.mxu1 }
 0x271   :  { %17834 = vst [vmem:[#allocation67_spill] sm:$0xff] %v14455_v53  ;;  %v2326_v10 = vadd.f32 %v2102_v47, %v14455_v53  ;;  %12539 = vmatprep.mubr.msk.f32.mxu0 %vm2434_vm15, %v2389_v37  ;;  %v1793_v6 = vrot.slane %v1779_v7, %v14104_v41  ;;  %v2114_v60 = vrot.slane %v1824_v48, %v14118_v44 }
 0x272   :  { %v14461_v39 = vpop.f32.mrf.mxu1 }
 0x273   :  { %17835 = vst [vmem:[#allocation68_spill] sm:$0xff] %v14461_v39  ;;  %v2390_v19 = vmax.f32 %v2326_v10, 0.0  ;;  %v1826_v10 = vcombine.high %v1816_v4, %v1816_v4  ;;  %v1795_v23 = vcombine.high %v1793_v6, %v1793_v6  ;;  %v1809_v7 = vrot.slane %v1793_v6, %v14104_v41 }
 0x274   :  { %v14463_v40 = vpop.f32.mrf.mxu1 }
 0x275   :  { %17836 = vst [vmem:[#allocation69_spill] sm:$0xff] %v14463_v40  ;;  %v2327_v45 = vadd.f32 %v2106_v3, %v14463_v40  ;;  %12540 = vmatmul.mubr.msk.f32.gmra.mxu0 %vm2434_vm15, %v2390_v19  ;;  %v1823_v48 = vrot.slane %v1795_v23, %v14104_v41 }
 0x276   :  { %v14468_v47 = vpop.f32.mrf.mxu1 }
 0x277   :  { %17837 = vst [vmem:[#allocation70_spill] sm:$0xff] %v14468_v47  ;;  %v2391_v37 = vmax.f32 %v2327_v45, 0.0  ;;  %v2118_v45 = vrot.slane %v1826_v10, %v14118_v44  ;;  %v1825_v10 = vcombine.high %v1809_v7, %v1809_v7 }
 0x278   :  { %v14470_v15 = vpop.f32.mrf.mxu1 }
 0x279   :  { %17838 = vst [vmem:[#allocation71_spill] sm:$0xff] %v14470_v15  ;;  %v2328_v39 = vadd.f32 %v2110_v30, %v14470_v15  ;;  %12542 = vmatprep.mubr.msk.f32.mxu0 %vm2434_vm15, %v2391_v37 }
 0x27a   :  { %v14476_v3 = vpop.f32.mrf.mxu1 }
 0x27b   :  { %17839 = vst [vmem:[#allocation72_spill] sm:$0xff] %v14476_v3  ;;  %v2392_v19 = vmax.f32 %v2328_v39, 0.0  ;;  %v2122_v39 = vrot.slane %v1809_v7, %v14118_v44 }
 0x27c   :  { %v14478_v25 = vpop.f32.mrf.mxu1 }
 0x27d   :  { %17840 = vst [vmem:[#allocation73_spill] sm:$0xff] %v14478_v25  ;;  %v2329_v47 = vadd.f32 %v2114_v60, %v14478_v25  ;;  %12543 = vmatmul.mubr.msk.f32.gmra.mxu0 %vm2434_vm15, %v2392_v19 }
 0x27e   :  { %v14484_v30 = vpop.f32.mrf.mxu1 }
 0x27f   :  { %17841 = vst [vmem:[#allocation74_spill] sm:$0xff] %v14484_v30  ;;  %v2393_v37 = vmax.f32 %v2329_v47, 0.0  ;;  %v2126_v47 = vrot.slane %v1823_v48, %v14118_v44 }
 0x280   :  { %v14486_v16 = vpop.f32.mrf.mxu1 }
 0x281   :  { %17842 = vst [vmem:[#allocation75_spill] sm:$0xff] %v14486_v16  ;;  %v2330_v4 = vadd.f32 %v2118_v45, %v14486_v16  ;;  %12545 = vmatprep.mubr.msk.f32.mxu0 %vm2434_vm15, %v2393_v37  ;;  %v1562_v45 = vadd.f32 %v14418_v28, %v14098_v35 }
 0x282   :  { %v14492_v60 = vpop.f32.mrf.mxu1 }
 0x283   :  { %17843 = vst [vmem:[#allocation76_spill] sm:$0xff] %v14492_v60  ;;  %v2394_v19 = vmax.f32 %v2330_v4, 0.0  ;;  %v2130_v4 = vrot.slane %v1825_v10, %v14118_v44 }
 0x284   :  { %v14494_v3 = vpop.f32.mrf.mxu1 }
 0x285   :  { %17844 = vst [vmem:[#allocation77_spill] sm:$0xff] %v14494_v3  ;;  %v2331_v6 = vadd.f32 %v2122_v39, %v14494_v3  ;;  %12546 = vmatmul.mubr.msk.f32.gmra.mxu0 %vm2434_vm15, %v2394_v19  ;;  %v1827_v39 = vcombine.high %v1823_v48, %v1823_v48  ;;  %v1835_v19 = vrot.slane %v1562_v45, %v14104_v41 }
 0x286   :  { %v14499_v30 = vpop.f32.mrf.mxu1 }
 0x287   :  { %17845 = vst [vmem:[#allocation78_spill] sm:$0xff] %v14499_v30  ;;  %v2395_v37 = vmax.f32 %v2331_v6, 0.0  ;;  %v2134_v28 = vrot.slane %v1827_v39, %v14118_v44 }
 0x288   :  { %v14503_v13 = vpop.f32.mrf.mxu1 }
 0x289   :  { %17846 = vst [vmem:[#allocation79_spill] sm:$0xff] %v14503_v13  ;;  %v2332_v23 = vadd.f32 %v2126_v47, %v14503_v13  ;;  %12548 = vmatprep.mubr.msk.f32.mxu0 %vm2434_vm15, %v2395_v37  ;;  %v1843_v47 = vcombine.high %v1835_v19, %v1835_v19  ;;  %v1851_v37 = vrot.slane %v1835_v19, %v14104_v41 }
 0x28a   :  { %v14508_v60 = vpop.f32.mrf.mxu1  ;;  %v1828_v19 = vcombine.high %v1562_v45, %v1562_v45 }
 0x28b   :  { %17847 = vst [vmem:[#allocation80_spill] sm:$0xff] %v14508_v60  ;;  %v2396_v7 = vmax.f32 %v2332_v23, 0.0  ;;  %v1873_v59 = vcombine.high %v1851_v37, %v1851_v37 }
 0x28c   :  { %v14511_v8 = vpop.f32.mrf.mxu1 }
 0x28d   :  { %17848 = vst [vmem:[#allocation81_spill] sm:$0xff] %v14511_v8  ;;  %v2333_v30 = vadd.f32 %v2130_v4, %v14511_v8  ;;  %12549 = vmatmul.mubr.msk.f32.gmra.mxu0 %vm2434_vm15, %v2396_v7  ;;  %v1865_v4 = vrot.slane %v1843_v47, %v14104_v41  ;;  %v2138_v7 = vrot.slane %v1851_v37, %v14118_v44  ;;  %v14548_v37 = vpop.f32.mrf.mxu0 }
 0x28e   :  { %v14516_v6 = vpop.f32.mrf.mxu1 }
 0x28f   :  { %17849 = vst [vmem:[#allocation82_spill] sm:$0xff] %v14516_v6  ;;  %v2397_v10 = vmax.f32 %v2333_v30, 0.0  ;;  %v1875_v54 = vcombine.high %v1865_v4, %v1865_v4 }
 0x290   :  { %v14519_v48 = vpop.f32.mrf.mxu1 }
 0x291   :  { %17850 = vst [vmem:[#allocation83_spill] sm:$0xff] %v14519_v48  ;;  %v2334_v60 = vadd.f32 %v2134_v28, %v14519_v48  ;;  %12551 = vmatprep.mubr.msk.f32.mxu0 %vm2434_vm15, %v2397_v10  ;;  %v2142_v10 = vrot.slane %v1865_v4, %v14118_v44  ;;  %v14712_v48 = vld [vmem:[%s13458_s3] ss:$0 sm:$0xff]  ;;  %s17955_s3 = sld [smem:[#allocation8_spill]] }
 0x292   :  { %v14523_v23 = vpop.f32.mrf.mxu1 }
 0x293   :  { %17851 = vst [vmem:[#allocation84_spill] sm:$0xff] %v14523_v23  ;;  %v2398_v63 = vmax.f32 %v2334_v60, 0.0  ;;  %v1842_v23 = vrot.slane %v1828_v19, %v14104_v41  ;;  %v2150_v19 = vrot.slane %v1875_v54, %v14118_v44 }
 0x294   :  { %v14527_v39 = vpop.f32.mrf.mxu1 }
 0x295   :  { %17852 = vst [vmem:[#allocation85_spill] sm:$0xff] %v14527_v39  ;;  %v2335_v6 = vadd.f32 %v2138_v7, %v14527_v39  ;;  %12552 = vmatmul.mubr.msk.f32.gmra.mxu0 %vm2434_vm15, %v2398_v63  ;;  %v2146_v63 = vrot.slane %v1873_v59, %v14118_v44 }
 0x296   :  { %v14531_v30 = vpop.f32.mrf.mxu1 }
 0x297   :  { %17853 = vst [vmem:[#allocation86_spill] sm:$0xff] %v14531_v30  ;;  %v2399_v28 = vmax.f32 %v2335_v6, 0.0 }
 0x298   :  { %v14534_v62 = vpop.f32.mrf.mxu1 }
 0x299   :  { %17854 = vst [vmem:[#allocation87_spill] sm:$0xff] %v14534_v62  ;;  %v2336_v47 = vadd.f32 %v2142_v10, %v14534_v62  ;;  %12554 = vmatprep.mubr.msk.f32.mxu0 %vm2434_vm15, %v2399_v28  ;;  %v1844_v10 = vcombine.high %v1842_v23, %v1842_v23  ;;  %v1858_v28 = vrot.slane %v1842_v23, %v14104_v41 }
 0x29a   :  { %v14538_v60 = vpop.f32.mrf.mxu1 }
 0x29b   :  { %17855 = vst [vmem:[#allocation88_spill] sm:$0xff] %v14538_v60  ;;  %v2400_v7 = vmax.f32 %v2336_v47, 0.0  ;;  %v1872_v31 = vrot.slane %v1844_v10, %v14104_v41 }
 0x29c   :  { %v14542_v30 = vpop.f32.mrf.mxu1 }
 0x29d   :  { %17856 = vst [vmem:[#allocation89_spill] sm:$0xff] %v14542_v30  ;;  %v2337_v45 = vadd.f32 %v2146_v63, %v14542_v30  ;;  %12555 = vmatmul.mubr.msk.f32.gmra.mxu0 %vm2434_vm15, %v2400_v7  ;;  %v1566_v63 = vpop.f32.mrf.mxu0 }
 0x29e   :  { %v14546_v6 = vpop.f32.mrf.mxu1  ;;  %v1567_v54 = vadd.f32 %v14098_v35, %v1566_v63  ;;  %v1876_v35 = vcombine.high %v1872_v31, %v1872_v31 }
 0x29f   :  { %17857 = vst [vmem:[#allocation90_spill] sm:$0xff] %v14546_v6  ;;  %v2401_v60 = vmax.f32 %v2337_v45, 0.0  ;;  %v2154_v6 = vrot.slane %v1858_v28, %v14118_v44 }
 0x2a0   :  { %v14552_v47 = vpop.f32.mrf.mxu1  ;;  %v1884_v10 = vrot.slane %v1567_v54, %v14104_v41 }
 0x2a1   :  { %17858 = vst [vmem:[#allocation91_spill] sm:$0xff] %v14552_v47  ;;  %v2338_v59 = vadd.f32 %v2150_v19, %v14552_v47  ;;  %12557 = vmatprep.mubr.msk.f32.mxu0 %vm2434_vm15, %v2401_v60  ;;  %v2158_v60 = vrot.slane %v1872_v31, %v14118_v44 }
 0x2a2   :  { %v14556_v4 = vpop.f32.mrf.mxu1 }
 0x2a3   :  { %17859 = vst [vmem:[#allocation92_spill] sm:$0xff] %v14556_v4  ;;  %v2402_v7 = vmax.f32 %v2338_v59, 0.0  ;;  %v1874_v4 = vcombine.high %v1858_v28, %v1858_v28  ;;  %v1900_v28 = vrot.slane %v1884_v10, %v14104_v41 }
 0x2a4   :  { %v14560_v36 = vpop.f32.mrf.mxu1 }
 0x2a5   :  { %17860 = vst [vmem:[#allocation93_spill] sm:$0xff] %v14560_v36  ;;  %v2339_v23 = vadd.f32 %v2154_v6, %v14560_v36  ;;  %12558 = vmatmul.mubr.msk.f32.gmra.mxu0 %vm2434_vm15, %v2402_v7  ;;  %v2162_v7 = vrot.slane %v1874_v4, %v14118_v44  ;;  %v2170_v31 = vrot.slane %v1900_v28, %v14118_v44 }
 0x2a6   :  { %v14565_v45 = vpop.f32.mrf.mxu1 }
 0x2a7   :  { %17861 = vst [vmem:[#allocation94_spill] sm:$0xff] %v14565_v45  ;;  %v2403_v19 = vmax.f32 %v2339_v23, 0.0  ;;  %v1892_v45 = vcombine.high %v1884_v10, %v1884_v10 }
 0x2a8   :  { %v14568_v50 = vpop.f32.mrf.mxu1 }
 0x2a9   :  { %17862 = vst [vmem:[#allocation95_spill] sm:$0xff] %v14568_v50  ;;  %v2340_v59 = vadd.f32 %v2158_v60, %v14568_v50  ;;  %12560 = vmatprep.mubr.msk.f32.mxu0 %vm2434_vm15, %v2403_v19  ;;  %v2166_v50 = vrot.slane %v1876_v35, %v14118_v44  ;;  %v1914_v4 = vrot.slane %v1892_v45, %v14104_v41 }
 0x2aa   :  { %v14573_v2 = vpop.f32.mrf.mxu1 }
 0x2ab   :  { %17863 = vst [vmem:[#allocation96_spill] sm:$0xff] %v14573_v2  ;;  %v2404_v6 = vmax.f32 %v2340_v59, 0.0  ;;  %v2174_v35 = vrot.slane %v1914_v4, %v14118_v44 }
 0x2ac   :  { %v14576_v63 = vpop.f32.mrf.mxu1 }
 0x2ad   :  { %17864 = vst [vmem:[#allocation97_spill] sm:$0xff] %v14576_v63  ;;  %v2341_v23 = vadd.f32 %v2162_v7, %v14576_v63  ;;  %12561 = vmatmul.mubr.msk.f32.gmra.mxu0 %vm2434_vm15, %v2404_v6  ;;  %v1877_v6 = vcombine.high %v1567_v54, %v1567_v54 }
 0x2ae   :  { %v14581_v60 = vpop.f32.mrf.mxu1 }
 0x2af   :  { %17865 = vst [vmem:[#allocation98_spill] sm:$0xff] %v14581_v60  ;;  %v2405_v19 = vmax.f32 %v2341_v23, 0.0  ;;  %v1922_v60 = vcombine.high %v1900_v28, %v1900_v28  ;;  %v1891_v45 = vrot.slane %v1877_v6, %v14104_v41 }
 0x2b0   :  { %v14584_v36 = vpop.f32.mrf.mxu1 }
 0x2b1   :  { %17866 = vst [vmem:[#allocation99_spill] sm:$0xff] %v14584_v36  ;;  %v2342_v59 = vadd.f32 %v2166_v50, %v14584_v36  ;;  %12563 = vmatprep.mubr.msk.f32.mxu0 %vm2434_vm15, %v2405_v19  ;;  %v2178_v54 = vrot.slane %v1922_v60, %v14118_v44  ;;  %v1893_v28 = vcombine.high %v1891_v45, %v1891_v45 }
 0x2b2   :  { %v14590_v7 = vpop.f32.mrf.mxu1 }
 0x2b3   :  { %17867 = vst [vmem:[#allocation100_spill] sm:$0xff] %v14590_v7  ;;  %v2406_v10 = vmax.f32 %v2342_v59, 0.0  ;;  %v1924_v59 = vcombine.high %v1914_v4, %v1914_v4 }
 0x2b4   :  { %v14592_v2 = vpop.f32.mrf.mxu1 }
 0x2b5   :  { %17868 = vst [vmem:[#allocation101_spill] sm:$0xff] %v14592_v2  ;;  %v2343_v23 = vadd.f32 %v2170_v31, %v14592_v2  ;;  %12564 = vmatmul.mubr.msk.f32.gmra.mxu0 %vm2434_vm15, %v2406_v10  ;;  %v2182_v6 = vrot.slane %v1924_v59, %v14118_v44  ;;  %v13324_v59 = vld [vmem:[%s13448_s25] ss:$0 sm:$0xff]  ;;  %s17953_s25 = sld [smem:[#allocation6_spill]] }
 0x2b6   :  { %v14597_v50 = vpop.f32.mrf.mxu1 }
 0x2b7   :  { %17869 = vst [vmem:[#allocation102_spill] sm:$0xff] %v14597_v50  ;;  %v2407_v19 = vmax.f32 %v2343_v23, 0.0 }
 0x2b8   :  { %v14599_v36 = vpop.f32.mrf.mxu1 }
 0x2b9   :  { %17870 = vst [vmem:[#allocation103_spill] sm:$0xff] %v14599_v36  ;;  %v2344_v7 = vadd.f32 %v2174_v35, %v14599_v36  ;;  %12566 = vmatprep.mubr.msk.f32.mxu0 %vm2434_vm15, %v2407_v19  ;;  %v1907_v35 = vrot.slane %v1891_v45, %v14104_v41  ;;  %v1572_v45 = vadd.f32 %v13324_v59, %v14548_v37 }
 0x2ba   :  { %v14605_v31 = vpop.f32.mrf.mxu1 }
 0x2bb   :  { %17871 = vst [vmem:[#allocation104_spill] sm:$0xff] %v14605_v31  ;;  %v2408_v10 = vmax.f32 %v2344_v7, 0.0  ;;  %v2186_v7 = vrot.slane %v1907_v35, %v14118_v44  ;;  %v1921_v31 = vrot.slane %v1893_v28, %v14104_v41  ;;  %v1933_v28 = vrot.slane %v1572_v45, %v14104_v41 }
 0x2bc   :  { %v14607_v2 = vpop.f32.mrf.mxu1 }
 0x2bd   :  { %17872 = vst [vmem:[#allocation105_spill] sm:$0xff] %v14607_v2  ;;  %v2345_v23 = vadd.f32 %v2178_v54, %v14607_v2  ;;  %12567 = vmatmul.mubr.msk.f32.gmra.mxu0 %vm2434_vm15, %v2408_v10  ;;  %v1925_v59 = vcombine.high %v1921_v31, %v1921_v31 }
 0x2be   :  { %v14613_v50 = vpop.f32.mrf.mxu1 }
 0x2bf   :  { %17873 = vst [vmem:[#allocation106_spill] sm:$0xff] %v14613_v50  ;;  %v2409_v19 = vmax.f32 %v2345_v23, 0.0  ;;  %v1923_v50 = vcombine.high %v1907_v35, %v1907_v35  ;;  %v1941_v35 = vcombine.high %v1933_v28, %v1933_v28 }
 0x2c0   :  { %v14615_v60 = vpop.f32.mrf.mxu1 }
 0x2c1   :  { %17874 = vst [vmem:[#allocation107_spill] sm:$0xff] %v14615_v60  ;;  %v2346_v4 = vadd.f32 %v2182_v6, %v14615_v60  ;;  %12569 = vmatprep.mubr.msk.f32.mxu0 %vm2434_vm15, %v2409_v19  ;;  %v2190_v6 = vrot.slane %v1921_v31, %v14118_v44  ;;  %v2194_v37 = vrot.slane %v1923_v50, %v14118_v44 }
 0x2c2   :  { %v14621_v54 = vpop.f32.mrf.mxu1  ;;  %v1963_v50 = vrot.slane %v1941_v35, %v14104_v41 }
 0x2c3   :  { %17875 = vst [vmem:[#allocation108_spill] sm:$0xff] %v14621_v54  ;;  %v2410_v10 = vmax.f32 %v2346_v4, 0.0 }
 0x2c4   :  { %v14623_v2 = vpop.f32.mrf.mxu1  ;;  %v2206_v35 = vrot.slane %v1963_v50, %v14118_v44 }
 0x2c5   :  { %17876 = vst [vmem:[#allocation109_spill] sm:$0xff] %v14623_v2  ;;  %v2347_v23 = vadd.f32 %v2186_v7, %v14623_v2  ;;  %12570 = vmatmul.mubr.msk.f32.gmra.mxu0 %vm2434_vm15, %v2410_v10  ;;  %v2198_v2 = vrot.slane %v1925_v59, %v14118_v44 }
 0x2c6   :  { %v14630_v19 = vpop.f32.mrf.mxu1 }
 0x2c7   :  { %17877 = vst [vmem:[#allocation110_spill] sm:$0xff] %v14630_v19  ;;  %v2411_v60 = vmax.f32 %v2347_v23, 0.0  ;;  %v1949_v19 = vrot.slane %v1933_v28, %v14104_v41 }
 0x2c8   :  { %v14632_v36 = vpop.f32.mrf.mxu1 }
 0x2c9   :  { %17878 = vst [vmem:[#allocation111_spill] sm:$0xff] %v14632_v36  ;;  %v2348_v4 = vadd.f32 %v2190_v6, %v14632_v36  ;;  %12572 = vmatprep.mubr.msk.f32.mxu0 %vm2434_vm15, %v2411_v60  ;;  %v1971_v59 = vcombine.high %v1949_v19, %v1949_v19 }
 0x2ca   :  { %v14638_v7 = vpop.f32.mrf.mxu1 }
 0x2cb   :  { %17879 = vst [vmem:[#allocation112_spill] sm:$0xff] %v14638_v7  ;;  %v2412_v10 = vmax.f32 %v2348_v4, 0.0  ;;  %v2202_v4 = vrot.slane %v1949_v19, %v14118_v44  ;;  %v2210_v19 = vrot.slane %v1971_v59, %v14118_v44 }
 0x2cc   :  { %v14640_v54 = vpop.f32.mrf.mxu1 }
 0x2cd   :  { %17880 = vst [vmem:[#allocation113_spill] sm:$0xff] %v14640_v54  ;;  %v2349_v23 = vadd.f32 %v2194_v37, %v14640_v54  ;;  %12573 = vmatmul.mubr.msk.f32.gmra.mxu0 %vm2434_vm15, %v2412_v10  ;;  %v14656_v37 = vpop.f32.mrf.mxu0 }
 0x2ce   :  { %v14646_v6 = vpop.f32.mrf.mxu1 }
 0x2cf   :  { %17881 = vst [vmem:[#allocation114_spill] sm:$0xff] %v14646_v6  ;;  %v2413_v60 = vmax.f32 %v2349_v23, 0.0 }
 0x2d0   :  { %v14648_v36 = vpop.f32.mrf.mxu1 }
 0x2d1   :  { %17882 = vst [vmem:[#allocation115_spill] sm:$0xff] %v14648_v36  ;;  %v2350_v31 = vadd.f32 %v2198_v2, %v14648_v36  ;;  %12575 = vmatprep.mubr.msk.f32.mxu0 %vm2434_vm15, %v2413_v60  ;;  %v1926_v2 = vcombine.high %v1572_v45, %v1572_v45  ;;  %v2693_v60 = vpop.f32.mrf.mxu0 }
 0x2d2   :  { %v14654_v28 = vpop.f32.mrf.mxu1 }
 0x2d3   :  { %17883 = vst [vmem:[#allocation116_spill] sm:$0xff] %v14654_v28  ;;  %v2414_v10 = vmax.f32 %v2350_v31, 0.0  ;;  %v14667_v28 = vpop.f32.mrf.mxu0 }
 0x2d4   :  { %v14658_v7 = vpop.f32.mrf.mxu1 }
 0x2d5   :  { %17884 = vst [vmem:[#allocation117_spill] sm:$0xff] %v14658_v7  ;;  %v2351_v23 = vadd.f32 %v2202_v4, %v14658_v7  ;;  %12576 = vmatmul.mubr.msk.f32.gmra.mxu0 %vm2434_vm15, %v2414_v10  ;;  %v1973_v4 = vcombine.high %v1963_v50, %v1963_v50  ;;  %v1940_v10 = vrot.slane %v1926_v2, %v14104_v41  ;;  %v2703_v45 = vpop.f32.mrf.mxu0 }
 0x2d6   :  { %v14663_v6 = vpop.f32.mrf.mxu1 }
 0x2d7   :  { %17885 = vst [vmem:[#allocation118_spill] sm:$0xff] %v14663_v6  ;;  %v2415_v36 = vmax.f32 %v2351_v23, 0.0  ;;  %v2214_v47 = vrot.slane %v1973_v4, %v14118_v44  ;;  %v1956_v59 = vrot.slane %v1940_v10, %v14104_v41  ;;  %v12502_v50 = vpop.f32.mrf.mxu0 }
 0x2d8   :  { %v14665_v54 = vpop.f32.mrf.mxu1 }
 0x2d9   :  { %17886 = vst [vmem:[#allocation119_spill] sm:$0xff] %v14665_v54  ;;  %v2352_v31 = vadd.f32 %v2206_v35, %v14665_v54  ;;  %12578 = vmatprep.mubr.msk.f32.mxu0 %vm2434_vm15, %v2415_v36  ;;  %v1942_v36 = vcombine.high %v1940_v10, %v1940_v10 }
 0x2da   :  { %v14672_v7 = vpop.f32.mrf.mxu1 }
 0x2db   :  { %17887 = vst [vmem:[#allocation120_spill] sm:$0xff] %v14672_v7  ;;  %v2416_v63 = vmax.f32 %v2352_v31, 0.0  ;;  %v1970_v4 = vrot.slane %v1942_v36, %v14104_v41 }
 0x2dc   :  { %v14675_v6 = vpop.f32.mrf.mxu1 }
 0x2dd   :  { %17888 = vst [vmem:[#allocation121_spill] sm:$0xff] %v14675_v6  ;;  %v2353_v23 = vadd.f32 %v2210_v19, %v14675_v6  ;;  %12579 = vmatmul.mubr.msk.f32.gmra.mxu0 %vm2434_vm15, %v2416_v63  ;;  %v2713_v19 = vpop.f32.mrf.mxu0  ;;  %v2218_v63 = vrot.slane %v1956_v59, %v14118_v44 }
 0x2de   :  { %v14680_v35 = vpop.f32.mrf.mxu1 }
 0x2df   :  { %17889 = vst [vmem:[#allocation122_spill] sm:$0xff] %v14680_v35  ;;  %v2417_v54 = vmax.f32 %v2353_v23, 0.0  ;;  %v12505_v30 = vpop.f32.mrf.mxu0 }
 0x2e0   :  { %v14683_v7 = vpop.f32.mrf.mxu1 }
 0x2e1   :  { %17890 = vst [vmem:[#allocation123_spill] sm:$0xff] %v14683_v7  ;;  %v2354_v2 = vadd.f32 %v2214_v47, %v14683_v7  ;;  %12581 = vmatprep.mubr.msk.f32.mxu0 %vm2434_vm15, %v2417_v54  ;;  %v2222_v54 = vrot.slane %v1970_v4, %v14118_v44 }
 0x2e2   :  { %v14687_v31 = vpop.f32.mrf.mxu1 }
 0x2e3   :  { %17891 = vst [vmem:[#allocation124_spill] sm:$0xff] %v14687_v31  ;;  %v2418_v6 = vmax.f32 %v2354_v2, 0.0  ;;  %v1972_v31 = vcombine.high %v1956_v59, %v1956_v59  ;;  %v2723_v2 = vpop.f32.mrf.mxu0 }
 0x2e4   :  { %v14691_v35 = vpop.f32.mrf.mxu1 }
 0x2e5   :  { %17892 = vst [vmem:[#allocation125_spill] sm:$0xff] %v14691_v35  ;;  %v2355_v10 = vadd.f32 %v2218_v63, %v14691_v35  ;;  %12582 = vmatmul.mubr.msk.f32.gmra.mxu0 %vm2434_vm15, %v2418_v6  ;;  %v12508_v39 = vpop.f32.mrf.mxu0  ;;  %v2226_v6 = vrot.slane %v1972_v31, %v14118_v44 }
 0x2e6   :  { %v14695_v23 = vpop.f32.mrf.mxu1 }
 0x2e7   :  { %17893 = vst [vmem:[#allocation126_spill] sm:$0xff] %v14695_v23  ;;  %v2419_v47 = vmax.f32 %v2355_v10, 0.0  ;;  %v1974_v23 = vcombine.high %v1970_v4, %v1970_v4 }
 0x2e8   :  { %v14698_v7 = vpop.f32.mrf.mxu1 }
 0x2e9   :  { %17894 = vst [vmem:[#allocation127_spill] sm:$0xff] %v14698_v7  ;;  %v2356_v62 = vadd.f32 %v2222_v54, %v14698_v7  ;;  %12584 = vmatprep.mubr.msk.f32.mxu0 %vm2434_vm15, %v2419_v47  ;;  %v2733_v54 = vpop.f32.mrf.mxu0 }
 0x2ea   :  { %v14702_v36 = vpop.f32.mrf.mxu1 }
 0x2eb   :  { %17895 = vst [vmem:[#allocation128_spill] sm:$0xff] %v14702_v36  ;;  %v2420_v63 = vmax.f32 %v2356_v62, 0.0  ;;  %v2230_v36 = vrot.slane %v1974_v23, %v14118_v44  ;;  %v2694_v62 = vadd.f32 %v14712_v48, %v2693_v60  ;;  %v12511_v31 = vpop.f32.mrf.mxu0 }
 0x2ec   :  { %v14705_v10 = vpop.f32.mrf.mxu1 }
 0x2ed   :  { %17896 = vst [vmem:[#allocation129_spill] sm:$0xff] %v14705_v10  ;;  %v2357_v35 = vadd.f32 %v2226_v6, %v14705_v10  ;;  %12585 = vmatmul.mubr.msk.f32.gmra.mxu0 %vm2434_vm15, %v2420_v63  ;;  %v4481_v6 = vld [vmem:[%s13483_s30 + $0x20] sm:$0x7]  ;;  %v2699_v63 = vadd.f32 %v14656_v37, %v14712_v48  ;;  %v3012_v10 = vmax.f32 %v2694_v62, 0.0  ;;  %v2743_v60 = vpop.f32.mrf.mxu0  ;;  %v2714_v37 = vadd.f32 %v14712_v48, %v2713_v19 }
 0x2ee   :  { %v14709_v59 = vpop.f32.mrf.mxu1  ;;  %12694 = vmatprep.subr.msk.mxu1 %vm251_vm0, %v4481_v6  ;;  %v2719_v62 = vadd.f32 %v12502_v50, %v14712_v48  ;;  %v2739_v50 = vadd.f32 %v12508_v39, %v14712_v48 }
 0x2ef   :  { %17897 = vst [vmem:[#allocation130_spill] sm:$0xff] %v14709_v59  ;;  %v2421_v47 = vmax.f32 %v2357_v35, 0.0  ;;  %v2704_v35 = vadd.f32 %v14712_v48, %v2703_v45  ;;  %12695 = vmatpush3.msk.msra.mxu1 %vm251_vm0, %v4481_v6  ;;  %v3013_v23 = vmax.f32 %v2699_v63, 0.0  ;;  %v3016_v6 = vmax.f32 %v2714_v37, 0.0 }
 0x2f0   :  { %v14716_v7 = vpop.f32.mrf.mxu1  ;;  %v2729_v63 = vadd.f32 %v12505_v30, %v14712_v48  ;;  %v2744_v37 = vadd.f32 %v14712_v48, %v2743_v60  ;;  %v3021_v30 = vmax.f32 %v2739_v50, 0.0 }
 0x2f1   :  { %17898 = vst [vmem:[#allocation131_spill] sm:$0xff] %v14716_v7  ;;  %v2358_v4 = vadd.f32 %v2230_v36, %v14716_v7  ;;  %12587 = vmatprep.mubr.msk.f32.mxu0 %vm2434_vm15, %v2421_v47  ;;  %v2709_v36 = vadd.f32 %v14667_v28, %v14712_v48  ;;  %v12514_v47 = vpop.f32.mrf.mxu0  ;;  %v3014_v7 = vmax.f32 %v2704_v35, 0.0  ;;  %v3017_v28 = vmax.f32 %v2719_v62, 0.0 }
 0x2f2   :  { %v2734_v35 = vadd.f32 %v14712_v48, %v2733_v54  ;;  %v3022_v62 = vmax.f32 %v2744_v37, 0.0 }
 0x2f3   :  { %v2422_v59 = vmax.f32 %v2358_v4, 0.0  ;;  %v3015_v45 = vmax.f32 %v2709_v36, 0.0  ;;  %v2753_v4 = vpop.f32.mrf.mxu0 }
 0x2f4   :  { %v3020_v36 = vmax.f32 %v2734_v35, 0.0 }
 0x2f5   :  { %12588 = vmatmul.mubr.msk.f32.gmra.mxu0 %vm2434_vm15, %v2422_v59  ;;  %v2724_v59 = vadd.f32 %v14712_v48, %v2723_v2 }
 0x2f6   :  { %12598 = vmatprep.mubr.msk.f32.mxu0 %vm2434_vm15, %v3012_v10  ;;  %v12517_v10 = vpop.f32.mrf.mxu0 }
 0x2f7   :  { %v3018_v19 = vmax.f32 %v2724_v59, 0.0  ;;  %v2769_v35 = vadd.f32 %v12517_v10, %v14712_v48 }
 0x2f9   :  { %12599 = vmatmul.mubr.msk.f32.vlgmr.msra.gmra.mxu0 %vm2434_vm15, %v3013_v23  ;;  %v2763_v23 = vpop.f32.mrf.mxu0 }
 0x2fa   :  { %12601 = vmatprep.mubr.msk.f32.mxu0 %vm2434_vm15, %v3014_v7  ;;  %v3019_v7 = vmax.f32 %v2729_v63, 0.0  ;;  %v2764_v63 = vadd.f32 %v14712_v48, %v2763_v23 }
 0x2fd   :  { %12602 = vmatmul.mubr.msk.f32.gmra.mxu0 %vm2434_vm15, %v3015_v45  ;;  %v12520_v2 = vpop.f32.mrf.mxu0  ;;  %v2749_v45 = vadd.f32 %v12511_v31, %v14712_v48 }
 0x2fe   :  { %12604 = vmatprep.mubr.msk.f32.mxu0 %vm2434_vm15, %v3016_v6  ;;  %v2754_v6 = vadd.f32 %v14712_v48, %v2753_v4 }
 0x2ff   :  { %v2773_v54 = vpop.f32.mrf.mxu0  ;;  %v3023_v39 = vmax.f32 %v2749_v45, 0.0 }
 0x300   :  { %v3024_v60 = vmax.f32 %v2754_v6, 0.0  ;;  %v2774_v50 = vadd.f32 %v14712_v48, %v2773_v54 }
 0x301   :  { %12605 = vmatmul.mubr.msk.f32.gmra.mxu0 %vm2434_vm15, %v3017_v28  ;;  %v2759_v28 = vadd.f32 %v12514_v47, %v14712_v48  ;;  %v3027_v47 = vmax.f32 %v2769_v35, 0.0 }
 0x302   :  { %12607 = vmatprep.mubr.msk.f32.mxu0 %vm2434_vm15, %v3018_v19  ;;  %v3028_v37 = vmax.f32 %v2774_v50, 0.0 }
 0x303   :  { %v3025_v31 = vmax.f32 %v2759_v28, 0.0 }
 0x305   :  { %12608 = vmatmul.mubr.msk.f32.gmra.mxu0 %vm2434_vm15, %v3019_v7  ;;  %v12523_v59 = vpop.f32.mrf.mxu0  ;;  %v3026_v7 = vmax.f32 %v2764_v63, 0.0 }
 0x306   :  { %12610 = vmatprep.mubr.msk.f32.mxu0 %vm2434_vm15, %v3020_v36  ;;  %v2779_v36 = vadd.f32 %v12520_v2, %v14712_v48 }
 0x307   :  { %v2783_v19 = vpop.f32.mrf.mxu0 }
 0x308   :  { %v3029_v10 = vmax.f32 %v2779_v36, 0.0 }
 0x309   :  { %12611 = vmatmul.mubr.msk.f32.gmra.mxu0 %vm2434_vm15, %v3021_v30  ;;  %v2784_v30 = vadd.f32 %v14712_v48, %v2783_v19 }
 0x30a   :  { %12613 = vmatprep.mubr.msk.f32.mxu0 %vm2434_vm15, %v3022_v62  ;;  %v2789_v62 = vadd.f32 %v12523_v59, %v14712_v48 }
 0x30b   :  { %v3030_v54 = vmax.f32 %v2784_v30, 0.0 }
 0x30c   :  { %v3031_v2 = vmax.f32 %v2789_v62, 0.0  ;;  %v4480_v62 = vld [vmem:[%s13483_s30 + $0x18] sm:$0xff] }
 0x30d   :  { %12614 = vmatmul.mubr.msk.f32.gmra.mxu0 %vm2434_vm15, %v3023_v39  ;;  %v12526_v4 = vpop.f32.mrf.mxu0  ;;  %12696 = vmatprep.subr.mxu1 %v4480_v62 }
 0x30e   :  { %12616 = vmatprep.mubr.msk.f32.mxu0 %vm2434_vm15, %v3024_v60  ;;  %v2799_v28 = vadd.f32 %v12526_v4, %v14712_v48  ;;  %12697 = vmatpush3.msra.mxu1 %v4480_v62 }
 0x30f   :  { %v2793_v23 = vpop.f32.mrf.mxu0 }
 0x310   :  { %v2794_v6 = vadd.f32 %v14712_v48, %v2793_v23  ;;  %v3033_v59 = vmax.f32 %v2799_v28, 0.0 }
 0x311   :  { %12617 = vmatmul.mubr.msk.f32.gmra.mxu0 %vm2434_vm15, %v3025_v31 }
 0x312   :  { %12619 = vmatprep.mubr.msk.f32.mxu0 %vm2434_vm15, %v3026_v7  ;;  %v3032_v60 = vmax.f32 %v2794_v6, 0.0 }
 0x315   :  { %v12529_v45 = vpop.f32.mrf.mxu0  ;;  %12620 = vmatmul.mubr.msk.f32.gmra.mxu0 %vm2434_vm15, %v3027_v47 }
 0x316   :  { %12622 = vmatprep.mubr.msk.f32.mxu0 %vm2434_vm15, %v3028_v37  ;;  %v2809_v31 = vadd.f32 %v12529_v45, %v14712_v48 }
 0x317   :  { %v2803_v39 = vpop.f32.mrf.mxu0 }
 0x318   :  { %v2804_v63 = vadd.f32 %v14712_v48, %v2803_v39  ;;  %v3035_v4 = vmax.f32 %v2809_v31, 0.0 }
 0x319   :  { %12623 = vmatmul.mubr.msk.f32.gmra.mxu0 %vm2434_vm15, %v3029_v10 }
 0x31a   :  { %12625 = vmatprep.mubr.msk.f32.mxu0 %vm2434_vm15, %v3030_v54  ;;  %v3034_v7 = vmax.f32 %v2804_v63, 0.0 }
 0x31d   :  { %v12532_v19 = vpop.f32.mrf.mxu0  ;;  %12626 = vmatmul.mubr.msk.f32.gmra.mxu0 %vm2434_vm15, %v3031_v2 }
 0x31e   :  { %12628 = vmatprep.mubr.msk.f32.mxu0 %vm2434_vm15, %v3032_v60  ;;  %v2819_v47 = vadd.f32 %v12532_v19, %v14712_v48 }
 0x31f   :  { %v2813_v35 = vpop.f32.mrf.mxu0 }
 0x320   :  { %v2814_v50 = vadd.f32 %v14712_v48, %v2813_v35  ;;  %v3037_v37 = vmax.f32 %v2819_v47, 0.0 }
 0x321   :  { %12629 = vmatmul.mubr.msk.f32.gmra.mxu0 %vm2434_vm15, %v3033_v59 }
 0x322   :  { %12631 = vmatprep.mubr.msk.f32.mxu0 %vm2434_vm15, %v3034_v7  ;;  %v3036_v36 = vmax.f32 %v2814_v50, 0.0 }
 0x325   :  { %v12535_v23 = vpop.f32.mrf.mxu0  ;;  %12632 = vmatmul.mubr.msk.f32.gmra.mxu0 %vm2434_vm15, %v3035_v4 }
 0x326   :  { %12634 = vmatprep.mubr.msk.f32.mxu0 %vm2434_vm15, %v3036_v36  ;;  %v2829_v30 = vadd.f32 %v12535_v23, %v14712_v48 }
 0x327   :  { %v2823_v45 = vpop.f32.mrf.mxu0 }
 0x328   :  { %v2824_v10 = vadd.f32 %v14712_v48, %v2823_v45  ;;  %v3039_v6 = vmax.f32 %v2829_v30, 0.0 }
 0x329   :  { %12635 = vmatmul.mubr.msk.f32.gmra.mxu0 %vm2434_vm15, %v3037_v37 }
 0x32a   :  { %v3038_v54 = vmax.f32 %v2824_v10, 0.0 }
 0x32c   :  { %12637 = vmatprep.mubr.msk.f32.mxu0 %vm2434_vm15, %v3038_v54 }
 0x32d   :  { %v12538_v39 = vpop.f32.mrf.mxu0  ;;  %12638 = vmatmul.mubr.msk.f32.gmra.mxu0 %vm2434_vm15, %v3039_v6 }
 0x32e   :  { %v2839_v2 = vadd.f32 %v12538_v39, %v14712_v48 }
 0x32f   :  { %v2833_v28 = vpop.f32.mrf.mxu0 }
 0x330   :  { %v2834_v60 = vadd.f32 %v14712_v48, %v2833_v28  ;;  %v3041_v19 = vmax.f32 %v2839_v2, 0.0 }
 0x332   :  { %v3040_v63 = vmax.f32 %v2834_v60, 0.0 }
 0x334   :  { %12640 = vmatprep.mubr.msk.f32.mxu0 %vm2434_vm15, %v3040_v63 }
 0x335   :  { %v12541_v59 = vpop.f32.mrf.mxu0  ;;  %12641 = vmatmul.mubr.msk.f32.gmra.mxu0 %vm2434_vm15, %v3041_v19 }
 0x336   :  { %v2849_v31 = vadd.f32 %v12541_v59, %v14712_v48 }
 0x337   :  { %v2843_v35 = vpop.f32.mrf.mxu0 }
 0x338   :  { %v2844_v7 = vadd.f32 %v14712_v48, %v2843_v35  ;;  %v3043_v4 = vmax.f32 %v2849_v31, 0.0 }
 0x33a   :  { %v3042_v50 = vmax.f32 %v2844_v7, 0.0 }
 0x33c   :  { %12643 = vmatprep.mubr.msk.f32.mxu0 %vm2434_vm15, %v3042_v50 }
 0x33d   :  { %v12544_v47 = vpop.f32.mrf.mxu0  ;;  %12644 = vmatmul.mubr.msk.f32.gmra.mxu0 %vm2434_vm15, %v3043_v4 }
 0x33e   :  { %v2859_v36 = vadd.f32 %v12544_v47, %v14712_v48 }
 0x33f   :  { %v2853_v23 = vpop.f32.mrf.mxu0 }
 0x340   :  { %v2854_v37 = vadd.f32 %v14712_v48, %v2853_v23  ;;  %v3045_v45 = vmax.f32 %v2859_v36, 0.0 }
 0x342   :  { %v3044_v30 = vmax.f32 %v2854_v37, 0.0 }
 0x344   :  { %12646 = vmatprep.mubr.msk.f32.mxu0 %vm2434_vm15, %v3044_v30 }
 0x345   :  { %v12547_v10 = vpop.f32.mrf.mxu0  ;;  %12647 = vmatmul.mubr.msk.f32.gmra.mxu0 %vm2434_vm15, %v3045_v45 }
 0x346   :  { %v2869_v62 = vadd.f32 %v12547_v10, %v14712_v48 }
 0x347   :  { %v2863_v54 = vpop.f32.mrf.mxu0 }
 0x348   :  { %v2864_v6 = vadd.f32 %v14712_v48, %v2863_v54  ;;  %v3047_v2 = vmax.f32 %v2869_v62, 0.0 }
 0x34a   :  { %v3046_v39 = vmax.f32 %v2864_v6, 0.0 }
 0x34c   :  { %12649 = vmatprep.mubr.msk.f32.mxu0 %vm2434_vm15, %v3046_v39 }
 0x34d   :  { %v12550_v28 = vpop.f32.mrf.mxu0  ;;  %12650 = vmatmul.mubr.msk.f32.gmra.mxu0 %vm2434_vm15, %v3047_v2 }
 0x34e   :  { %v2879_v60 = vadd.f32 %v12550_v28, %v14712_v48 }
 0x34f   :  { %v2873_v63 = vpop.f32.mrf.mxu0 }
 0x350   :  { %v2874_v19 = vadd.f32 %v14712_v48, %v2873_v63  ;;  %v3049_v31 = vmax.f32 %v2879_v60, 0.0 }
 0x352   :  { %v3048_v59 = vmax.f32 %v2874_v19, 0.0 }
 0x354   :  { %12652 = vmatprep.mubr.msk.f32.mxu0 %vm2434_vm15, %v3048_v59 }
 0x355   :  { %v12553_v35 = vpop.f32.mrf.mxu0  ;;  %12653 = vmatmul.mubr.msk.f32.gmra.mxu0 %vm2434_vm15, %v3049_v31 }
 0x356   :  { %v2889_v7 = vadd.f32 %v12553_v35, %v14712_v48 }
 0x357   :  { %v2883_v50 = vpop.f32.mrf.mxu0 }
 0x358   :  { %v2884_v4 = vadd.f32 %v14712_v48, %v2883_v50  ;;  %v3051_v36 = vmax.f32 %v2889_v7, 0.0 }
 0x35a   :  { %v3050_v47 = vmax.f32 %v2884_v4, 0.0 }
 0x35c   :  { %12655 = vmatprep.mubr.msk.f32.mxu0 %vm2434_vm15, %v3050_v47 }
 0x35d   :  { %v12556_v23 = vpop.f32.mrf.mxu0  ;;  %12656 = vmatmul.mubr.msk.f32.gmra.mxu0 %vm2434_vm15, %v3051_v36 }
 0x35e   :  { %v2899_v37 = vadd.f32 %v12556_v23, %v14712_v48  ;;  %v4479_v23 = vld [vmem:[%s13483_s30 + $0x10] sm:$0xff] }
 0x35f   :  { %v2893_v30 = vpop.f32.mrf.mxu0  ;;  %12698 = vmatprep.subr.mxu1 %v4479_v23 }
 0x360   :  { %v2894_v45 = vadd.f32 %v14712_v48, %v2893_v30  ;;  %v3053_v62 = vmax.f32 %v2899_v37, 0.0  ;;  %12699 = vmatpush3.msra.mxu1 %v4479_v23 }
 0x362   :  { %v3052_v10 = vmax.f32 %v2894_v45, 0.0 }
 0x364   :  { %12658 = vmatprep.mubr.msk.f32.mxu0 %vm2434_vm15, %v3052_v10 }
 0x365   :  { %v12559_v54 = vpop.f32.mrf.mxu0  ;;  %12659 = vmatmul.mubr.msk.f32.gmra.mxu0 %vm2434_vm15, %v3053_v62 }
 0x366   :  { %v2909_v6 = vadd.f32 %v12559_v54, %v14712_v48 }
 0x367   :  { %v2903_v39 = vpop.f32.mrf.mxu0 }
 0x368   :  { %v2904_v2 = vadd.f32 %v14712_v48, %v2903_v39  ;;  %v3055_v60 = vmax.f32 %v2909_v6, 0.0 }
 0x36a   :  { %v3054_v28 = vmax.f32 %v2904_v2, 0.0 }
 0x36c   :  { %12661 = vmatprep.mubr.msk.f32.mxu0 %vm2434_vm15, %v3054_v28 }
 0x36d   :  { %v12562_v63 = vpop.f32.mrf.mxu0  ;;  %12662 = vmatmul.mubr.msk.f32.gmra.mxu0 %vm2434_vm15, %v3055_v60 }
 0x36e   :  { %v2919_v19 = vadd.f32 %v12562_v63, %v14712_v48 }
 0x36f   :  { %v2913_v59 = vpop.f32.mrf.mxu0 }
 0x370   :  { %v2914_v31 = vadd.f32 %v14712_v48, %v2913_v59  ;;  %v3057_v7 = vmax.f32 %v2919_v19, 0.0 }
 0x372   :  { %v3056_v35 = vmax.f32 %v2914_v31, 0.0 }
 0x374   :  { %12664 = vmatprep.mubr.msk.f32.mxu0 %vm2434_vm15, %v3056_v35 }
 0x375   :  { %v12565_v50 = vpop.f32.mrf.mxu0  ;;  %12665 = vmatmul.mubr.msk.f32.gmra.mxu0 %vm2434_vm15, %v3057_v7 }
 0x376   :  { %v2929_v4 = vadd.f32 %v12565_v50, %v14712_v48 }
 0x377   :  { %v2923_v47 = vpop.f32.mrf.mxu0 }
 0x378   :  { %v2924_v36 = vadd.f32 %v14712_v48, %v2923_v47  ;;  %v3059_v30 = vmax.f32 %v2929_v4, 0.0 }
 0x37a   :  { %v3058_v37 = vmax.f32 %v2924_v36, 0.0 }
 0x37c   :  { %12667 = vmatprep.mubr.msk.f32.mxu0 %vm2434_vm15, %v3058_v37 }
 0x37d   :  { %v12568_v45 = vpop.f32.mrf.mxu0  ;;  %12668 = vmatmul.mubr.msk.f32.gmra.mxu0 %vm2434_vm15, %v3059_v30 }
 0x37e   :  { %v2939_v10 = vadd.f32 %v12568_v45, %v14712_v48 }
 0x37f   :  { %v2933_v62 = vpop.f32.mrf.mxu0 }
 0x380   :  { %v2934_v54 = vadd.f32 %v14712_v48, %v2933_v62  ;;  %v3061_v39 = vmax.f32 %v2939_v10, 0.0 }
 0x382   :  { %v3060_v6 = vmax.f32 %v2934_v54, 0.0 }
 0x384   :  { %12670 = vmatprep.mubr.msk.f32.mxu0 %vm2434_vm15, %v3060_v6 }
 0x385   :  { %v12571_v2 = vpop.f32.mrf.mxu0  ;;  %12671 = vmatmul.mubr.msk.f32.gmra.mxu0 %vm2434_vm15, %v3061_v39 }
 0x386   :  { %v2949_v28 = vadd.f32 %v12571_v2, %v14712_v48 }
 0x387   :  { %v2943_v60 = vpop.f32.mrf.mxu0 }
 0x388   :  { %v2944_v63 = vadd.f32 %v14712_v48, %v2943_v60  ;;  %v3063_v59 = vmax.f32 %v2949_v28, 0.0 }
 0x38a   :  { %v3062_v19 = vmax.f32 %v2944_v63, 0.0 }
 0x38c   :  { %12673 = vmatprep.mubr.msk.f32.mxu0 %vm2434_vm15, %v3062_v19 }
 0x38d   :  { %v12574_v31 = vpop.f32.mrf.mxu0  ;;  %12674 = vmatmul.mubr.msk.f32.gmra.mxu0 %vm2434_vm15, %v3063_v59 }
 0x38e   :  { %v2959_v35 = vadd.f32 %v12574_v31, %v14712_v48 }
 0x38f   :  { %v2953_v7 = vpop.f32.mrf.mxu0 }
 0x390   :  { %v2954_v50 = vadd.f32 %v14712_v48, %v2953_v7  ;;  %v3065_v47 = vmax.f32 %v2959_v35, 0.0  ;;  %v4478_v7 = vld [vmem:[%s13483_s30 + $0x8] sm:$0xff]  ;;  %s18072_s30 = sld [smem:[#allocation14_spill]] }
 0x391   :  { %12700 = vmatprep.subr.mxu1 %v4478_v7 }
 0x392   :  { %v3064_v4 = vmax.f32 %v2954_v50, 0.0  ;;  %12701 = vmatpush3.msra.mxu1 %v4478_v7 }
 0x393   :  { %12702 = vmatprep.subr.mxu1 %v4477_v56 }
 0x394   :  { %12676 = vmatprep.mubr.msk.f32.mxu0 %vm2434_vm15, %v3064_v4  ;;  %12703 = vmatpush3.msra.mxu1 %v4477_v56 }
 0x395   :  { %v12577_v36 = vpop.f32.mrf.mxu0  ;;  %12677 = vmatmul.mubr.msk.f32.gmra.mxu0 %vm2434_vm15, %v3065_v47 }
 0x396   :  { %v2969_v23 = vadd.f32 %v12577_v36, %v14712_v48 }
 0x397   :  { %v2963_v37 = vpop.f32.mrf.mxu0 }
 0x398   :  { %v2964_v30 = vadd.f32 %v14712_v48, %v2963_v37  ;;  %v3067_v10 = vmax.f32 %v2969_v23, 0.0 }
 0x39a   :  { %v3066_v45 = vmax.f32 %v2964_v30, 0.0 }
 0x39c   :  { %12679 = vmatprep.mubr.msk.f32.mxu0 %vm2434_vm15, %v3066_v45 }
 0x39d   :  { %v12580_v62 = vpop.f32.mrf.mxu0  ;;  %12680 = vmatmul.mubr.msk.f32.gmra.mxu0 %vm2434_vm15, %v3067_v10 }
 0x39e   :  { %v2979_v54 = vadd.f32 %v12580_v62, %v14712_v48  ;;  %v14854_v62 = vld [vmem:[%s13468_s14] ss:$0 sm:$0xff] }
 0x39f   :  { %v2973_v6 = vpop.f32.mrf.mxu0 }
 0x3a0   :  { %v2974_v39 = vadd.f32 %v14712_v48, %v2973_v6  ;;  %v3069_v28 = vmax.f32 %v2979_v54, 0.0 }
 0x3a2   :  { %v3068_v2 = vmax.f32 %v2974_v39, 0.0 }
 0x3a4   :  { %12682 = vmatprep.mubr.msk.f32.mxu0 %vm2434_vm15, %v3068_v2 }
 0x3a5   :  { %v12583_v60 = vpop.f32.mrf.mxu0  ;;  %12683 = vmatmul.mubr.msk.f32.gmra.mxu0 %vm2434_vm15, %v3069_v28 }
 0x3a6   :  { %v2989_v63 = vadd.f32 %v12583_v60, %v14712_v48  ;;  %v14859_v60 = vld [vmem:[%s13473_s19] ss:$0 sm:$0xff] }
 0x3a7   :  { %v2983_v19 = vpop.f32.mrf.mxu0 }
 0x3a8   :  { %v2984_v59 = vadd.f32 %v14712_v48, %v2983_v19  ;;  %v3071_v35 = vmax.f32 %v2989_v63, 0.0 }
 0x3aa   :  { %v3070_v31 = vmax.f32 %v2984_v59, 0.0 }
 0x3ac   :  { %12685 = vmatprep.mubr.msk.f32.mxu0 %vm2434_vm15, %v3070_v31  ;;  %v14864_v31 = vld [vmem:[%s13478_s24] ss:$0 sm:$0xff] }
 0x3ad   :  { %v12586_v50 = vpop.f32.mrf.mxu0  ;;  %12686 = vmatmul.mubr.msk.f32.gmra.mxu0 %vm2434_vm15, %v3071_v35 }
 0x3ae   :  { %v2999_v4 = vadd.f32 %v12586_v50, %v14712_v48 }
 0x3af   :  { %v2993_v47 = vpop.f32.mrf.mxu0 }
 0x3b0   :  { %v2994_v36 = vadd.f32 %v14712_v48, %v2993_v47  ;;  %v3073_v37 = vmax.f32 %v2999_v4, 0.0 }
 0x3b2   :  { %v3072_v23 = vmax.f32 %v2994_v36, 0.0 }
 0x3b4   :  { %12688 = vmatprep.mubr.msk.f32.mxu0 %vm2434_vm15, %v3072_v23 }
 0x3b5   :  { %v12589_v30 = vpop.f32.mrf.mxu0  ;;  %12689 = vmatmul.mubr.msk.f32.gmra.mxu0 %vm2434_vm15, %v3073_v37 }
 0x3b6   :  { %v3009_v45 = vadd.f32 %v12589_v30, %v14712_v48 }
 0x3b7   :  { %v3003_v10 = vpop.f32.mrf.mxu0 }
 0x3b8   :  { %v3004_v54 = vadd.f32 %v14712_v48, %v3003_v10  ;;  %v3075_v28 = vmax.f32 %v3009_v45, 0.0 }
 0x3b9   :  { %v12600_v6 = vpop.f32.mrf.mxu0 }
 0x3ba   :  { %v3074_v39 = vmax.f32 %v3004_v54, 0.0  ;;  %v3351_v2 = vadd.f32 %v12600_v6, %v14854_v62 }
 0x3bb   :  { %v3345_v63 = vpop.f32.mrf.mxu0 }
 0x3bc   :  { %v3665_v19 = vmax.f32 %v3351_v2, 0.0  ;;  %v3346_v59 = vadd.f32 %v14854_v62, %v3345_v63  ;;  %12691 = vmatprep.mubr.msk.f32.mxu0 %vm2434_vm15, %v3074_v39 }
 0x3bd   :  { %v12603_v35 = vpop.f32.mrf.mxu0  ;;  %12692 = vmatmul.mubr.msk.f32.gmra.mxu0 %vm2434_vm15, %v3075_v28 }
 0x3be   :  { %v3736_v48 = vmul.f32 %v14859_v60, %v3665_v19  ;;  %v3664_v7 = vmax.f32 %v3346_v59, 0.0  ;;  %v3361_v50 = vadd.f32 %v12603_v35, %v14854_v62 }
 0x3bf   :  { %v3355_v4 = vpop.f32.mrf.mxu0 }
 0x3c0   :  { %v3807_v47 = vadd.f32 %v14864_v31, %v3736_v48  ;;  %v3735_v36 = vmul.f32 %v14859_v60, %v3664_v7  ;;  %v3667_v23 = vmax.f32 %v3361_v50, 0.0  ;;  %v3356_v37 = vadd.f32 %v14854_v62, %v3355_v4 }
 0x3c1   :  { %v12606_v30 = vpop.f32.mrf.mxu0 }
 0x3c2   :  { %v3877_v45 = vsel %vm2434_vm15, %v3807_v47, -inf  ;;  %v3806_v10 = vadd.f32 %v14864_v31, %v3735_v36  ;;  %v3738_v54 = vmul.f32 %v14859_v60, %v3667_v23  ;;  %v3666_v6 = vmax.f32 %v3356_v37, 0.0 }
 0x3c3   :  { %v3878_v39 = vrot.slane %v3877_v45, 4  ;;  %v3371_v2 = vadd.f32 %v12606_v30, %v14854_v62  ;;  %v3365_v28 = vpop.f32.mrf.mxu0 }
 0x3c4   :  { %v3870_v63 = vsel %vm2434_vm15, %v3806_v10, -inf  ;;  %v3809_v19 = vadd.f32 %v14864_v31, %v3738_v54  ;;  %v3737_v59 = vmul.f32 %v14859_v60, %v3666_v6  ;;  %v3366_v35 = vadd.f32 %v14854_v62, %v3365_v28 }
 0x3c5   :  { %v3879_v48 = vmax.f32 %v3877_v45, %v3878_v39  ;;  %v3871_v7 = vrot.slane %v3870_v63, 4  ;;  %v3669_v50 = vmax.f32 %v3371_v2, 0.0  ;;  %v12609_v4 = vpop.f32.mrf.mxu0 }
 0x3c6   :  { %v3891_v47 = vsel %vm2434_vm15, %v3809_v19, -inf  ;;  %v3808_v36 = vadd.f32 %v14864_v31, %v3737_v59  ;;  %v3668_v23 = vmax.f32 %v3366_v35, 0.0  ;;  %v3381_v37 = vadd.f32 %v12609_v4, %v14854_v62 }
 0x3c7   :  { %v3880_v30 = vrot.slane %v3879_v48, 2  ;;  %v3872_v8 = vmax.f32 %v3870_v63, %v3871_v7  ;;  %v3892_v10 = vrot.slane %v3891_v47, 4  ;;  %v3740_v54 = vmul.f32 %v14859_v60, %v3669_v50  ;;  %v3375_v13 = vpop.f32.mrf.mxu0 }
 0x3c8   :  { %v3884_v6 = vsel %vm2434_vm15, %v3808_v36, -inf  ;;  %v3739_v45 = vmul.f32 %v14859_v60, %v3668_v23  ;;  %v3671_v39 = vmax.f32 %v3381_v37, 0.0  ;;  %v3376_v2 = vadd.f32 %v14854_v62, %v3375_v13 }
 0x3c9   :  { %v3881_v28 = vmax.f32 %v3879_v48, %v3880_v30  ;;  %v3873_v19 = vrot.slane %v3872_v8, 2  ;;  %v3893_v3 = vmax.f32 %v3891_v47, %v3892_v10  ;;  %v3885_v59 = vrot.slane %v3884_v6, 4  ;;  %v12612_v35 = vpop.f32.mrf.mxu0 }
 0x3ca   :  { %v3811_v4 = vadd.f32 %v14864_v31, %v3740_v54  ;;  %v3810_v63 = vadd.f32 %v14864_v31, %v3739_v45  ;;  %v3742_v7 = vmul.f32 %v14859_v60, %v3671_v39  ;;  %v3670_v50 = vmax.f32 %v3376_v2, 0.0 }
 0x3cb   :  { %v3874_v16 = vmax.f32 %v3872_v8, %v3873_v19  ;;  %v3894_v25 = vrot.slane %v3893_v3, 2  ;;  %v3886_v36 = vmax.f32 %v3884_v6, %v3885_v59  ;;  %v3385_v15 = vpop.f32.mrf.mxu0  ;;  %v3882_v37 = vrot.slane %v3881_v28, 1 }
 0x3cc   :  { %v3905_v23 = vsel %vm2434_vm15, %v3811_v4, -inf  ;;  %v3898_v13 = vsel %vm2434_vm15, %v3810_v63, -inf  ;;  %v3813_v48 = vadd.f32 %v14864_v31, %v3742_v7  ;;  %v3741_v47 = vmul.f32 %v14859_v60, %v3670_v50 }
 0x3cd   :  { %v3887_v30 = vrot.slane %v3886_v36, 2  ;;  %v12615_v10 = vpop.f32.mrf.mxu0  ;;  %v3906_v54 = vrot.slane %v3905_v23, 4  ;;  %v3899_v45 = vrot.slane %v3898_v13, 4  ;;  %v3875_v6 = vrot.slane %v3874_v16, 1 }
 0x3ce   :  { %v3919_v39 = vsel %vm2434_vm15, %v3813_v48, -inf  ;;  %v3812_v8 = vadd.f32 %v14864_v31, %v3741_v47  ;;  %v14896_v2 = vmax.f32 %v3893_v3, %v3894_v25  ;;  %v3391_v40 = vadd.f32 %v12612_v35, %v14854_v62 }
 0x3cf   :  { %v14898_v19 = vmax.f32 %v3886_v36, %v3887_v30  ;;  %v3920_v59 = vrot.slane %v3919_v39, 4  ;;  %v3395_v4 = vpop.f32.mrf.mxu0  ;;  %v3907_v63 = vmax.f32 %v3905_v23, %v3906_v54  ;;  %v3900_v7 = vmax.f32 %v3898_v13, %v3899_v45 }
 0x3d0   :  { %v3912_v50 = vsel %vm2434_vm15, %v3812_v8, -inf  ;;  %v3673_v52 = vmax.f32 %v3391_v40, 0.0  ;;  %v3386_v47 = vadd.f32 %v14854_v62, %v3385_v15  ;;  %v14904_v25 = vmax.f32 %v3881_v28, %v3882_v37 }
 0x3d1   :  { %v3913_v53 = vrot.slane %v3912_v50, 4  ;;  %v12618_v29 = vpop.f32.mrf.mxu0  ;;  %v3908_v51 = vrot.slane %v3907_v63, 2  ;;  %v3901_v48 = vrot.slane %v3900_v7, 2  ;;  %v14906_v3 = vmax.f32 %v3874_v16, %v3875_v6 }
 0x3d2   :  { %v3401_v23 = vadd.f32 %v12615_v10, %v14854_v62  ;;  %v14911_v30 = vmax.f32 %v3919_v39, %v3920_v59  ;;  %v3744_v54 = vmul.f32 %v14859_v60, %v3673_v52  ;;  %v3672_v40 = vmax.f32 %v3386_v47, 0.0 }
 0x3d3   :  { %v3405_v13 = vpop.f32.mrf.mxu0  ;;  %v14914_v15 = vmax.f32 %v3912_v50, %v3913_v53  ;;  %v3396_v16 = vadd.f32 %v14854_v62, %v3395_v4  ;;  %v3411_v37 = vadd.f32 %v12618_v29, %v14854_v62  ;;  %v14918_v8 = vmax.f32 %v3907_v63, %v3908_v51 }
 0x3d4   :  { %v3675_v28 = vmax.f32 %v3401_v23, 0.0  ;;  %v14920_v10 = vmax.f32 %v3900_v7, %v3901_v48  ;;  %v3815_v6 = vadd.f32 %v14864_v31, %v3744_v54  ;;  %v3743_v39 = vmul.f32 %v14859_v60, %v3672_v40 }
 0x3d5   :  { %v12621_v45 = vpop.f32.mrf.mxu0  ;;  %v3674_v59 = vmax.f32 %v3396_v16, 0.0  ;;  %v3677_v56 = vmax.f32 %v3411_v37, 0.0  ;;  %v3406_v53 = vadd.f32 %v14854_v62, %v3405_v13 }
 0x3d6   :  { %v3746_v52 = vmul.f32 %v14859_v60, %v3675_v28  ;;  %v3933_v4 = vsel %vm2434_vm15, %v3815_v6, -inf  ;;  %v3814_v29 = vadd.f32 %v14864_v31, %v3743_v39  ;;  %v3421_v51 = vadd.f32 %v12621_v45, %v14854_v62 }
 0x3d7   :  { %v3415_v50 = vpop.f32.mrf.mxu0  ;;  %v3934_v7 = vrot.slane %v3933_v4, 4  ;;  %v3745_v47 = vmul.f32 %v14859_v60, %v3674_v59  ;;  %v3748_v23 = vmul.f32 %v14859_v60, %v3677_v56  ;;  %v3676_v13 = vmax.f32 %v3406_v53, 0.0 }
 0x3d8   :  { %v3416_v63 = vadd.f32 %v14854_v62, %v3415_v50  ;;  %v3817_v48 = vadd.f32 %v14864_v31, %v3746_v52  ;;  %v3926_v40 = vsel %vm2434_vm15, %v3814_v29, -inf  ;;  %v3679_v28 = vmax.f32 %v3421_v51, 0.0 }
 0x3d9   :  { %v12624_v54 = vpop.f32.mrf.mxu0  ;;  %v3935_v37 = vmax.f32 %v3933_v4, %v3934_v7  ;;  %v3927_v6 = vrot.slane %v3926_v40, 4  ;;  %v3816_v45 = vadd.f32 %v14864_v31, %v3745_v47  ;;  %v3819_v52 = vadd.f32 %v14864_v31, %v3748_v23 }
 0x3da   :  { %v3678_v16 = vmax.f32 %v3416_v63, 0.0  ;;  %v3947_v39 = vsel %vm2434_vm15, %v3817_v48, -inf  ;;  %v3747_v59 = vmul.f32 %v14859_v60, %v3676_v13  ;;  %v3750_v56 = vmul.f32 %v14859_v60, %v3679_v28 }
 0x3db   :  { %v3425_v50 = vpop.f32.mrf.mxu0  ;;  %v3948_v35 = vrot.slane %v3947_v39, 4  ;;  %v3936_v36 = vrot.slane %v3935_v37, 2  ;;  %v3928_v34 = vmax.f32 %v3926_v40, %v3927_v6  ;;  %v3940_v53 = vsel %vm2434_vm15, %v3816_v45, -inf }
 0x3dc   :  { %v3749_v29 = vmul.f32 %v14859_v60, %v3678_v16  ;;  %v3941_v63 = vrot.slane %v3940_v53, 4  ;;  %v3961_v7 = vsel %vm2434_vm15, %v3819_v52, -inf  ;;  %v3818_v48 = vadd.f32 %v14864_v31, %v3747_v59 }
 0x3dd   :  { %v12627_v4 = vpop.f32.mrf.mxu0  ;;  %v3949_v51 = vmax.f32 %v3947_v39, %v3948_v35  ;;  %v3937_v47 = vmax.f32 %v3935_v37, %v3936_v36  ;;  %v3929_v18 = vrot.slane %v3928_v34, 2  ;;  %v3962_v23 = vrot.slane %v3961_v7, 4 }
 0x3de   :  { %v3821_v13 = vadd.f32 %v14864_v31, %v3750_v56  ;;  %v3942_v9 = vmax.f32 %v3940_v53, %v3941_v63  ;;  %v3954_v40 = vsel %vm2434_vm15, %v3818_v48, -inf  ;;  %v3820_v6 = vadd.f32 %v14864_v31, %v3749_v29 }
 0x3df   :  { %v3435_v46 = vpop.f32.mrf.mxu0  ;;  %v3950_v28 = vrot.slane %v3949_v51, 2  ;;  %v3938_v16 = vrot.slane %v3937_v47, 1  ;;  %v3930_v45 = vmax.f32 %v3928_v34, %v3929_v18  ;;  %v3963_v35 = vmax.f32 %v3961_v7, %v3962_v23 }
 0x3e0   :  { %v3955_v39 = vrot.slane %v3954_v40, 4  ;;  %v3943_v59 = vrot.slane %v3942_v9, 2  ;;  %v3975_v36 = vsel %vm2434_vm15, %v3821_v13, -inf  ;;  %v3968_v37 = vsel %vm2434_vm15, %v3820_v6, -inf }
 0x3e1   :  { %v12630_v52 = vpop.f32.mrf.mxu0  ;;  %v3951_v17 = vmax.f32 %v3949_v51, %v3950_v28  ;;  %v17899_v56 = vrot.slane %v14896_v2, 1  ;;  %v3931_v63 = vrot.slane %v3930_v45, 1  ;;  %v3964_v48 = vrot.slane %v3963_v35, 2 }
 0x3e2   :  { %v14951_v32 = vmax.f32 %v3954_v40, %v3955_v39  ;;  %v17900_v18 = vrot.slane %v14898_v19, 1  ;;  %v14956_v51 = vmax.f32 %v3942_v9, %v3943_v59  ;;  %v3976_v7 = vrot.slane %v3975_v36, 4 }
 0x3e3   :  { %v3897_v53 = vmax.f32 %v14896_v2, %v17899_v56  ;;  %v3952_v29 = vrot.slane %v3951_v17, 1  ;;  %v14958_v23 = vpop.f32.mrf.mxu0  ;;  %v3922_v13 = vrot.slane %v14911_v30, 2  ;;  %v3915_v2 = vrot.slane %v14914_v15, 2 }
 0x3e4   :  { %v3890_v34 = vmax.f32 %v14898_v19, %v17900_v18  ;;  %v3969_v28 = vrot.slane %v3968_v37, 4  ;;  %v3431_v40 = vadd.f32 %v12624_v54, %v14854_v62  ;;  %v3910_v6 = vrot.slane %v14918_v8, 1 }
 0x3e5   :  { %v3903_v39 = vrot.slane %v14920_v10, 1  ;;  %v14965_v19 = vmax.f32 %v3937_v47, %v3938_v16  ;;  %v14967_v9 = vmax.f32 %v3930_v45, %v3931_v63  ;;  %v14969_v59 = vmax.f32 %v3963_v35, %v3964_v48  ;;  %v12633_v16 = vpop.f32.mrf.mxu0 }
 0x3e6   :  { %v3957_v56 = vrot.slane %v14951_v32, 2  ;;  %v3681_v18 = vmax.f32 %v3431_v40, 0.0  ;;  %v3426_v24 = vadd.f32 %v14854_v62, %v3425_v50  ;;  %v14973_v58 = vmax.f32 %v3951_v17, %v3952_v29 }
 0x3e7   :  { %v3945_v54 = vrot.slane %v14956_v51, 1  ;;  %v14976_v11 = vmax.f32 %v3975_v36, %v3976_v7  ;;  %v3441_v47 = vadd.f32 %v12627_v4, %v14854_v62  ;;  %v14979_v45 = vmax.f32 %v3968_v37, %v3969_v28 }
 0x3e8   :  { %v3752_v35 = vmul.f32 %v14859_v60, %v3681_v18  ;;  %v3680_v63 = vmax.f32 %v3426_v24, 0.0  ;;  %v3436_v48 = vadd.f32 %v14854_v62, %v3435_v46  ;;  %v3904_v50 = vmax.f32 %v14920_v10, %v3903_v39  ;;  %v3455_v10 = vpop.f32.mrf.mxu0 }
 0x3e9   :  { %v3683_v40 = vmax.f32 %v3441_v47, 0.0  ;;  %v3911_v17 = vmax.f32 %v14918_v8, %v3910_v6  ;;  %v3916_v29 = vmax.f32 %v14914_v15, %v3915_v2  ;;  %v3923_v37 = vmax.f32 %v14911_v30, %v3922_v13 }
 0x3ea   :  { %v3823_v36 = vadd.f32 %v14864_v31, %v3752_v35  ;;  %v3751_v4 = vmul.f32 %v14859_v60, %v3680_v63  ;;  %v3682_v7 = vmax.f32 %v3436_v48, 0.0  ;;  %v4383_v24 = vsel %vm4382_vm5, %v14904_v25, %v14906_v3 }
 0x3eb   :  { %v3754_v28 = vmul.f32 %v14859_v60, %v3683_v40  ;;  %v3917_v18 = vrot.slane %v3916_v29, 1  ;;  %v3451_v46 = vadd.f32 %v12630_v52, %v14854_v62  ;;  %v3924_v6 = vrot.slane %v3923_v37, 1 }
 0x3ec   :  { %v3989_v8 = vsel %vm2434_vm15, %v3823_v36, -inf  ;;  %v3822_v15 = vadd.f32 %v14864_v31, %v3751_v4  ;;  %v3753_v2 = vmul.f32 %v14859_v60, %v3682_v7  ;;  %v4385_v47 = vsel %vm4384_vm6, %v3890_v34, %v4383_v24  ;;  %v12636_v4 = vpop.f32.mrf.mxu0 }
 0x3ed   :  { %v3990_v39 = vrot.slane %v3989_v8, 4  ;;  %v3825_v30 = vadd.f32 %v14864_v31, %v3754_v28  ;;  %v3918_v13 = vmax.f32 %v3916_v29, %v3917_v18  ;;  %v3925_v3 = vmax.f32 %v3923_v37, %v3924_v6 }
 0x3ee   :  { %v3982_v35 = vsel %vm2434_vm15, %v3822_v15, -inf  ;;  %v3824_v25 = vadd.f32 %v14864_v31, %v3753_v2  ;;  %v4387_v52 = vsel %vm4386_vm7, %v3897_v53, %v4385_v47  ;;  %v3685_v34 = vmax.f32 %v3451_v46, 0.0  ;;  %v3465_v46 = vpop.f32.mrf.mxu0 }
 0x3ef   :  { %v3991_v63 = vmax.f32 %v3989_v8, %v3990_v39  ;;  %v3983_v48 = vrot.slane %v3982_v35, 4  ;;  %v4003_v40 = vsel %vm2434_vm15, %v3825_v30, -inf  ;;  %v4389_v36 = vsel %vm4388_vm8, %v3904_v50, %v4387_v52 }
 0x3f0   :  { %v4004_v7 = vrot.slane %v4003_v40, 4  ;;  %v3996_v28 = vsel %vm2434_vm15, %v3824_v25, -inf  ;;  %v4391_v29 = vsel %vm4390_vm9, %v3911_v17, %v4389_v36  ;;  %v3756_v8 = vmul.f32 %v14859_v60, %v3685_v34  ;;  %v12639_v34 = vpop.f32.mrf.mxu0 }
 0x3f1   :  { %v3992_v18 = vrot.slane %v3991_v63, 2  ;;  %v3984_v24 = vmax.f32 %v3982_v35, %v3983_v48  ;;  %v3997_v15 = vrot.slane %v3996_v28, 4  ;;  %v4393_v37 = vsel %vm4392_vm10, %v3918_v13, %v4391_v29 }
 0x3f2   :  { %v4005_v2 = vmax.f32 %v4003_v40, %v4004_v7  ;;  %v4395_v53 = vsel %vm4394_vm11, %v3925_v3, %v4393_v37  ;;  %v3446_v50 = vadd.f32 %v14854_v62, %v14958_v23  ;;  %v3461_v17 = vadd.f32 %v12633_v16, %v14854_v62 }
 0x3f3   :  { %v3985_v39 = vrot.slane %v3984_v24, 2  ;;  %v3998_v30 = vmax.f32 %v3996_v28, %v3997_v15  ;;  %4445 = vrot.lane.b32.xlu0 %v4395_v53, %s13409_s0  ;;  %v15015_v47 = vmax.f32 %v14951_v32, %v3957_v56  ;;  %v3827_v13 = vadd.f32 %v14864_v31, %v3756_v8 }
 0x3f4   :  { %v3684_v35 = vmax.f32 %v3446_v50, 0.0  ;;  %v3456_v25 = vadd.f32 %v14854_v62, %v3455_v10  ;;  %v15020_v3 = vmax.f32 %v14956_v51, %v3945_v54  ;;  %v4006_v23 = vrot.slane %v4005_v2, 2 }
 0x3f5   :  { %v3999_v52 = vrot.slane %v3998_v30, 2  ;;  %v3687_v48 = vmax.f32 %v3461_v17, 0.0  ;;  %v3993_v40 = vmax.f32 %v3991_v63, %v3992_v18  ;;  %v4017_v36 = vsel %vm2434_vm15, %v3827_v13, -inf }
 0x3f6   :  { %v3755_v16 = vmul.f32 %v14859_v60, %v3684_v35  ;;  %v3686_v7 = vmax.f32 %v3456_v25, 0.0  ;;  %v3978_v32 = vrot.slane %v14976_v11, 2  ;;  %v3971_v56 = vrot.slane %v14979_v45, 2 }
 0x3f7   :  { %v3986_v28 = vmax.f32 %v3984_v24, %v3985_v39  ;;  %v4018_v29 = vrot.slane %v4017_v36, 4  ;;  %v3758_v54 = vmul.f32 %v14859_v60, %v3687_v48  ;;  %v4007_v18 = vmax.f32 %v4005_v2, %v4006_v23 }
 0x3f8   :  { %v3826_v51 = vadd.f32 %v14864_v31, %v3755_v16  ;;  %v3757_v63 = vmul.f32 %v14859_v60, %v3686_v7  ;;  %v4000_v15 = vmax.f32 %v3998_v30, %v3999_v52  ;;  %v3471_v53 = vadd.f32 %v12636_v4, %v14854_v62  ;;  %v3475_v16 = vpop.f32.mrf.mxu0 }
 0x3f9   :  { %v4019_v37 = vmax.f32 %v4017_v36, %v4018_v29  ;;  %v3994_v8 = vrot.slane %v3993_v40, 1  ;;  %v3829_v24 = vadd.f32 %v14864_v31, %v3758_v54  ;;  %v3987_v17 = vrot.slane %v3986_v28, 1 }
 0x3fa   :  { %v4010_v50 = vsel %vm2434_vm15, %v3826_v51, -inf  ;;  %v3828_v39 = vadd.f32 %v14864_v31, %v3757_v63  ;;  %v3689_v25 = vmax.f32 %v3471_v53, 0.0  ;;  %v3466_v30 = vadd.f32 %v14854_v62, %v3465_v46  ;;  %v12642_v46 = vpop.f32.mrf.mxu0 }
 0x3fb   :  { %v4020_v13 = vrot.slane %v4019_v37, 2  ;;  %v4011_v35 = vrot.slane %v4010_v50, 4  ;;  %v4031_v48 = vsel %vm2434_vm15, %v3829_v24, -inf  ;;  %v3481_v4 = vadd.f32 %v12639_v34, %v14854_v62 }
 0x3fc   :  { %v4024_v2 = vsel %vm2434_vm15, %v3828_v39, -inf  ;;  %v4008_v23 = vrot.slane %v4007_v18, 1  ;;  %v4001_v52 = vrot.slane %v4000_v15, 1  ;;  %v3760_v29 = vmul.f32 %v14859_v60, %v3689_v25 }
 0x3fd   :  { %v15038_v36 = vmax.f32 %v4019_v37, %v4020_v13  ;;  %v4012_v7 = vmax.f32 %v4010_v50, %v4011_v35  ;;  %v3688_v51 = vmax.f32 %v3466_v30, 0.0  ;;  %v3691_v54 = vmax.f32 %v3481_v4, 0.0 }
 0x3fe   :  { %v3476_v63 = vadd.f32 %v14854_v62, %v3475_v16  ;;  %v15042_v53 = vmax.f32 %v3993_v40, %v3994_v8  ;;  %v15044_v24 = vmax.f32 %v3986_v28, %v3987_v17  ;;  %v4032_v39 = vrot.slane %v4031_v48, 4 }
 0x3ff   :  { %v4025_v6 = vrot.slane %v4024_v2, 4  ;;  %v3831_v34 = vadd.f32 %v14864_v31, %v3760_v29  ;;  %v3759_v10 = vmul.f32 %v14859_v60, %v3688_v51  ;;  %v3762_v37 = vmul.f32 %v14859_v60, %v3691_v54 }
 0x400   :  { %v3690_v50 = vmax.f32 %v3476_v63, 0.0  ;;  %v15049_v13 = vmax.f32 %v4007_v18, %v4008_v23  ;;  %v15051_v35 = vmax.f32 %v4000_v15, %v4001_v52  ;;  %v4013_v40 = vrot.slane %v4012_v7, 2  ;;  %v3485_v15 = vpop.f32.mrf.mxu0 }
 0x401   :  { %v4045_v28 = vsel %vm2434_vm15, %v3831_v34, -inf  ;;  %v3830_v8 = vadd.f32 %v14864_v31, %v3759_v10  ;;  %v3833_v17 = vadd.f32 %v14864_v31, %v3762_v37  ;;  %v15058_v30 = vmax.f32 %v4031_v48, %v4032_v39 }
 0x402   :  { %v3761_v16 = vmul.f32 %v14859_v60, %v3690_v50  ;;  %v15060_v4 = vmax.f32 %v4024_v2, %v4025_v6  ;;  %v4046_v29 = vrot.slane %v4045_v28, 4  ;;  %v3972_v18 = vmax.f32 %v14979_v45, %v3971_v56  ;;  %v12645_v39 = vpop.f32.mrf.mxu0 }
 0x403   :  { %v4038_v23 = vsel %vm2434_vm15, %v3830_v8, -inf  ;;  %v4059_v52 = vsel %vm2434_vm15, %v3833_v17, -inf  ;;  %v3979_v10 = vmax.f32 %v14976_v11, %v3978_v32  ;;  %v15067_v54 = vmax.f32 %v4012_v7, %v4013_v40 }
 0x404   :  { %v3832_v51 = vadd.f32 %v14864_v31, %v3761_v16  ;;  %v4047_v63 = vmax.f32 %v4045_v28, %v4046_v29  ;;  %v4039_v34 = vrot.slane %v4038_v23, 4  ;;  %v4060_v48 = vrot.slane %v4059_v52, 4 }
 0x405   :  { %v3973_v2 = vrot.slane %v3972_v18, 1  ;;  %v4396_v45 = vsel %vm4382_vm5, %v14965_v19, %v14967_v9  ;;  %v3491_v56 = vadd.f32 %v12642_v46, %v14854_v62  ;;  %v17901_v11 = vrot.slane %v15015_v47, 1  ;;  %v3495_v19 = vpop.f32.mrf.mxu0 }
 0x406   :  { %v4052_v6 = vsel %vm2434_vm15, %v3832_v51, -inf  ;;  %v4048_v37 = vrot.slane %v4047_v63, 2  ;;  %v4040_v50 = vmax.f32 %v4038_v23, %v4039_v34  ;;  %v4061_v8 = vmax.f32 %v4059_v52, %v4060_v48 }
 0x407   :  { %v4053_v17 = vrot.slane %v4052_v6, 4  ;;  %v3960_v32 = vmax.f32 %v15015_v47, %v17901_v11  ;;  %v3980_v7 = vrot.slane %v3979_v10, 1  ;;  %v4397_v40 = vsel %vm4384_vm6, %v15020_v3, %v4396_v45  ;;  %v12648_v45 = vpop.f32.mrf.mxu0 }
 0x408   :  { %v3693_v28 = vmax.f32 %v3491_v56, 0.0  ;;  %v4049_v16 = vmax.f32 %v4047_v63, %v4048_v37  ;;  %v4041_v29 = vrot.slane %v4040_v50, 2  ;;  %v4062_v51 = vrot.slane %v4061_v8, 2 }
 0x409   :  { %v4054_v25 = vmax.f32 %v4052_v6, %v4053_v17  ;;  %v4027_v9 = vrot.slane %v15060_v4, 2  ;;  %v3486_v23 = vadd.f32 %v14854_v62, %v3485_v15  ;;  %v3501_v52 = vadd.f32 %v12645_v39, %v14854_v62 }
 0x40a   :  { %v3764_v46 = vmul.f32 %v14859_v60, %v3693_v28  ;;  %v4042_v34 = vmax.f32 %v4040_v50, %v4041_v29  ;;  %v17902_v47 = vrot.slane %v14969_v59, 1  ;;  %v3974_v3 = vmax.f32 %v3972_v18, %v3973_v2 }
 0x40b   :  { %v4398_v63 = vsel %vm4386_vm7, %v14973_v58, %v4397_v40  ;;  %v3692_v37 = vmax.f32 %v3486_v23, 0.0  ;;  %v3695_v17 = vmax.f32 %v3501_v52, 0.0  ;;  %v4050_v11 = vrot.slane %v4049_v16, 1 }
 0x40c   :  { %v3967_v48 = vmax.f32 %v14969_v59, %v17902_v47  ;;  %v4399_v6 = vsel %vm4388_vm8, %v3960_v32, %v4398_v63  ;;  %v3835_v56 = vadd.f32 %v14864_v31, %v3764_v46  ;;  %v15090_v15 = vmax.f32 %v4061_v8, %v4062_v51  ;;  %v3505_v46 = vpop.f32.mrf.mxu0 }
 0x40d   :  { %v4055_v39 = vrot.slane %v4054_v25, 2  ;;  %v3981_v50 = vmax.f32 %v3979_v10, %v3980_v7  ;;  %v3763_v18 = vmul.f32 %v14859_v60, %v3692_v37  ;;  %v3766_v58 = vmul.f32 %v14859_v60, %v3695_v17 }
 0x40e   :  { %v4400_v28 = vsel %vm4390_vm9, %v3967_v48, %v4399_v6  ;;  %v4073_v59 = vsel %vm2434_vm15, %v3835_v56, -inf  ;;  %v4015_v2 = vrot.slane %v15067_v54, 1  ;;  %v4034_v32 = vrot.slane %v15058_v30, 2  ;;  %v12651_v63 = vpop.f32.mrf.mxu0 }
 0x40f   :  { %v4043_v40 = vrot.slane %v4042_v34, 1  ;;  %v4401_v29 = vsel %vm4392_vm10, %v3974_v3, %v4400_v28  ;;  %v4074_v51 = vrot.slane %v4073_v59, 4  ;;  %v3834_v10 = vadd.f32 %v14864_v31, %v3763_v18 }
 0x410   :  { %v4402_v8 = vsel %vm4394_vm11, %v3981_v50, %v4401_v29  ;;  %v3837_v7 = vadd.f32 %v14864_v31, %v3766_v58  ;;  %v15102_v23 = vmax.f32 %v4049_v16, %v4050_v11  ;;  %v4064_v52 = vrot.slane %v15090_v15, 1 }
 0x411   :  { %v15105_v47 = vmax.f32 %v4054_v25, %v4055_v39  ;;  %4447 = vrot.lane.b32.xlu1 %v4402_v8, %s13409_s0  ;;  %v3496_v48 = vadd.f32 %v14854_v62, %v3495_v19  ;;  %v4075_v3 = vmax.f32 %v4073_v59, %v4074_v51  ;;  %v4066_v6 = vsel %vm2434_vm15, %v3834_v10, -inf }
 0x412   :  { %v4087_v56 = vsel %vm2434_vm15, %v3837_v7, -inf  ;;  %v4028_v37 = vmax.f32 %v15060_v4, %v4027_v9  ;;  %v4067_v17 = vrot.slane %v4066_v6, 4  ;;  %v4035_v11 = vmax.f32 %v15058_v30, %v4034_v32  ;;  %v3515_v9 = vpop.f32.mrf.mxu0 }
 0x413   :  { %v4088_v50 = vrot.slane %v4087_v56, 4  ;;  %v3694_v16 = vmax.f32 %v3496_v48, 0.0  ;;  %v15113_v28 = vmax.f32 %v4042_v34, %v4043_v40  ;;  %v4016_v25 = vmax.f32 %v15067_v54, %v4015_v2 }
 0x414   :  { %v4029_v39 = vrot.slane %v4028_v37, 1  ;;  %v3511_v19 = vadd.f32 %v12648_v45, %v14854_v62  ;;  %v4068_v18 = vmax.f32 %v4066_v6, %v4067_v17  ;;  %v4036_v58 = vrot.slane %v4035_v11, 1 }
 0x415   :  { %v3765_v59 = vmul.f32 %v14859_v60, %v3694_v16  ;;  %v4403_v4 = vsel %vm4382_vm5, %v15042_v53, %v15044_v24  ;;  %v4057_v29 = vrot.slane %v15105_v47, 1  ;;  %v17903_v30 = vrot.slane %v15038_v36, 1  ;;  %v12654_v51 = vpop.f32.mrf.mxu0 }
 0x416   :  { %v4404_v54 = vsel %vm4384_vm6, %v15051_v35, %v4403_v4  ;;  %v3697_v2 = vmax.f32 %v3511_v19, 0.0  ;;  %v4076_v45 = vrot.slane %v4075_v3, 2  ;;  %v4089_v32 = vmax.f32 %v4087_v56, %v4088_v50 }
 0x417   :  { %v4023_v34 = vmax.f32 %v15038_v36, %v17903_v30  ;;  %v3836_v40 = vadd.f32 %v14864_v31, %v3765_v59  ;;  %v4030_v8 = vmax.f32 %v4028_v37, %v4029_v39  ;;  %v4069_v10 = vrot.slane %v4068_v18, 2 }
 0x418   :  { %v4405_v53 = vsel %vm4386_vm7, %v15049_v13, %v4404_v54  ;;  %v3768_v24 = vmul.f32 %v14859_v60, %v3697_v2  ;;  %v3506_v7 = vadd.f32 %v14854_v62, %v3505_v46  ;;  %v4037_v48 = vmax.f32 %v4035_v11, %v4036_v58  ;;  %v3525_v46 = vpop.f32.mrf.mxu0 }
 0x419   :  { %v4080_v36 = vsel %vm2434_vm15, %v3836_v40, -inf  ;;  %v4406_v35 = vsel %vm4388_vm8, %v4016_v25, %v4405_v53  ;;  %v3521_v6 = vadd.f32 %v12651_v63, %v14854_v62  ;;  %v4090_v16 = vrot.slane %v4089_v32, 2 }
 0x41a   :  { %v4081_v56 = vrot.slane %v4080_v36, 4  ;;  %v4407_v17 = vsel %vm4390_vm9, %v4023_v34, %v4406_v35  ;;  %v3839_v37 = vadd.f32 %v14864_v31, %v3768_v24  ;;  %v3696_v50 = vmax.f32 %v3506_v7, 0.0 }
 0x41b   :  { %v4408_v13 = vsel %vm4392_vm10, %v4030_v8, %v4407_v17  ;;  %v3699_v39 = vmax.f32 %v3521_v6, 0.0  ;;  %v3516_v19 = vadd.f32 %v14854_v62, %v3515_v9  ;;  %v3531_v34 = vadd.f32 %v12654_v51, %v14854_v62 }
 0x41c   :  { %v4082_v59 = vmax.f32 %v4080_v36, %v4081_v56  ;;  %v4409_v11 = vsel %vm4394_vm11, %v4037_v48, %v4408_v13  ;;  %v4101_v25 = vsel %vm2434_vm15, %v3839_v37, -inf  ;;  %v3767_v63 = vmul.f32 %v14859_v60, %v3696_v50 }
 0x41d   :  { %4449 = vrot.lane.b32.xlu0 %v4409_v11, %s13409_s0  ;;  %v4102_v58 = vrot.slane %v4101_v25, 4  ;;  %v3770_v4 = vmul.f32 %v14859_v60, %v3699_v39  ;;  %v3698_v30 = vmax.f32 %v3516_v19, 0.0  ;;  %v4070_v54 = vmax.f32 %v4068_v18, %v4069_v10  ;;  %v12657_v56 = vpop.f32.mrf.mxu0 }
 0x41e   :  { %v4083_v2 = vrot.slane %v4082_v59, 2  ;;  %v3838_v9 = vadd.f32 %v14864_v31, %v3767_v63  ;;  %v3526_v40 = vadd.f32 %v14854_v62, %v3525_v46  ;;  %v3701_v7 = vmax.f32 %v3531_v34, 0.0 }
 0x41f   :  { %v4103_v8 = vmax.f32 %v4101_v25, %v4102_v58  ;;  %v3841_v53 = vadd.f32 %v14864_v31, %v3770_v4  ;;  %v3769_v24 = vmul.f32 %v14859_v60, %v3698_v30  ;;  %v4077_v36 = vmax.f32 %v4075_v3, %v4076_v45  ;;  %v3535_v58 = vpop.f32.mrf.mxu0 }
 0x420   :  { %v4094_v48 = vsel %vm2434_vm15, %v3838_v9, -inf  ;;  %v3700_v35 = vmax.f32 %v3526_v40, 0.0  ;;  %v4084_v6 = vmax.f32 %v4082_v59, %v4083_v2  ;;  %v4071_v37 = vrot.slane %v4070_v54, 1 }
 0x421   :  { %v4104_v17 = vrot.slane %v4103_v8, 2  ;;  %v4095_v51 = vrot.slane %v4094_v48, 4  ;;  %v4115_v18 = vsel %vm2434_vm15, %v3841_v53, -inf  ;;  %v3840_v10 = vadd.f32 %v14864_v31, %v3769_v24 }
 0x422   :  { %v4116_v50 = vrot.slane %v4115_v18, 4  ;;  %v3772_v13 = vmul.f32 %v14859_v60, %v3701_v7  ;;  %v3771_v39 = vmul.f32 %v14859_v60, %v3700_v35  ;;  %v4091_v45 = vmax.f32 %v4089_v32, %v4090_v16 }
 0x423   :  { %v4105_v19 = vmax.f32 %v4103_v8, %v4104_v17  ;;  %v4096_v46 = vmax.f32 %v4094_v48, %v4095_v51  ;;  %v4108_v3 = vsel %vm2434_vm15, %v3840_v10, -inf  ;;  %v4058_v4 = vmax.f32 %v15105_v47, %v4057_v29 }
 0x424   :  { %v4117_v11 = vmax.f32 %v4115_v18, %v4116_v50  ;;  %v4109_v59 = vrot.slane %v4108_v3, 4  ;;  %v3843_v25 = vadd.f32 %v14864_v31, %v3772_v13  ;;  %v3842_v63 = vadd.f32 %v14864_v31, %v3771_v39 }
 0x425   :  { %v4078_v30 = vrot.slane %v4077_v36, 1  ;;  %v4097_v34 = vrot.slane %v4096_v46, 2  ;;  %v4085_v2 = vrot.slane %v4084_v6, 1  ;;  %v12660_v16 = vpop.f32.mrf.mxu0  ;;  %v4072_v7 = vmax.f32 %v4070_v54, %v4071_v37 }
 0x426   :  { %v4118_v9 = vrot.slane %v4117_v11, 2  ;;  %v4110_v40 = vmax.f32 %v4108_v3, %v4109_v59  ;;  %v4129_v8 = vsel %vm2434_vm15, %v3843_v25, -inf  ;;  %v4122_v32 = vsel %vm2434_vm15, %v3842_v63, -inf }
 0x427   :  { %v4130_v53 = vrot.slane %v4129_v8, 4  ;;  %v4123_v24 = vrot.slane %v4122_v32, 4  ;;  %v4065_v48 = vmax.f32 %v15090_v15, %v4064_v52  ;;  %v4106_v35 = vrot.slane %v4105_v19, 1  ;;  %v3545_v39 = vpop.f32.mrf.mxu0 }
 0x428   :  { %v4092_v17 = vrot.slane %v4091_v45, 1  ;;  %v4410_v47 = vsel %vm4382_vm5, %v15102_v23, %v15113_v28  ;;  %v4098_v29 = vmax.f32 %v4096_v46, %v4097_v34  ;;  %v4111_v51 = vrot.slane %v4110_v40, 2 }
 0x429   :  { %v4086_v18 = vmax.f32 %v4084_v6, %v4085_v2  ;;  %v4411_v10 = vsel %vm4384_vm6, %v4058_v4, %v4410_v47  ;;  %v15169_v50 = vmax.f32 %v4117_v11, %v4118_v9  ;;  %v4079_v13 = vmax.f32 %v4077_v36, %v4078_v30  ;;  %v15194_v47 = vld [vmem:[%s13473_s19] ss:$0 sm:$0xff]  ;;  %s17958_s19 = sld [smem:[#allocation12_spill]] }
 0x42a   :  { %v4412_v54 = vsel %vm4386_vm7, %v4065_v48, %v4411_v10  ;;  %v3541_v37 = vadd.f32 %v12657_v56, %v14854_v62  ;;  %v4131_v15 = vmax.f32 %v4129_v8, %v4130_v53  ;;  %v4124_v52 = vmax.f32 %v4122_v32, %v4123_v24  ;;  %v15188_v53 = vld [vmem:[%s13468_s14] ss:$0 sm:$0xff]  ;;  %s17957_s14 = sld [smem:[#allocation10_spill]] }
 0x42b   :  { %v4413_v3 = vsel %vm4388_vm8, %v4072_v7, %v4412_v54  ;;  %v15174_v59 = vmax.f32 %v4105_v19, %v4106_v35  ;;  %v4093_v23 = vmax.f32 %v4091_v45, %v4092_v17  ;;  %v4099_v25 = vrot.slane %v4098_v29, 1 }
 0x42c   :  { %v4414_v28 = vsel %vm4390_vm9, %v4079_v13, %v4413_v3  ;;  %v3703_v6 = vmax.f32 %v3541_v37, 0.0  ;;  %v4112_v11 = vmax.f32 %v4110_v40, %v4111_v51  ;;  %v3536_v63 = vadd.f32 %v14854_v62, %v3535_v58 }
 0x42d   :  { %v12663_v46 = vpop.f32.mrf.mxu0  ;;  %v4415_v36 = vsel %vm4392_vm10, %v4086_v18, %v4414_v28  ;;  %v4120_v56 = vrot.slane %v15169_v50, 1  ;;  %v3551_v19 = vadd.f32 %v12660_v16, %v14854_v62  ;;  %v4132_v34 = vrot.slane %v4131_v15, 2 }
 0x42e   :  { %v4416_v4 = vsel %vm4394_vm11, %v4093_v23, %v4415_v36  ;;  %v3774_v30 = vmul.f32 %v14859_v60, %v3703_v6  ;;  %v4125_v2 = vrot.slane %v4124_v52, 2  ;;  %v3702_v9 = vmax.f32 %v3536_v63, 0.0 }
 0x42f   :  { %v3555_v45 = vpop.f32.mrf.mxu0  ;;  %4451 = vrot.lane.b32.xlu1 %v4416_v4, %s13409_s0  ;;  %v3546_v40 = vadd.f32 %v14854_v62, %v3545_v39  ;;  %v3705_v58 = vmax.f32 %v3551_v19, 0.0  ;;  %v3561_v32 = vadd.f32 %v12663_v46, %v14854_v62  ;;  %v4100_v16 = vmax.f32 %v4098_v29, %v4099_v25  ;;  %v15198_v62 = vld [vmem:[%s13478_s24] ss:$0 sm:$0xff]  ;;  %s18015_s24 = sld [smem:[#allocation15_spill]] }
 0x430   :  { %v3845_v8 = vadd.f32 %v14864_v31, %v3774_v30  ;;  %v3556_v24 = vadd.f32 %v15188_v53, %v3555_v45  ;;  %v4113_v7 = vrot.slane %v4112_v11, 1  ;;  %v3773_v48 = vmul.f32 %v14859_v60, %v3702_v9 }
 0x431   :  { %v3704_v35 = vmax.f32 %v3546_v40, 0.0  ;;  %v3776_v51 = vmul.f32 %v15194_v47, %v3705_v58  ;;  %v3707_v31 = vmax.f32 %v3561_v32, 0.0  ;;  %v4133_v10 = vmax.f32 %v4131_v15, %v4132_v34 }
 0x432   :  { %v4143_v17 = vsel %vm2434_vm15, %v3845_v8, -inf  ;;  %v3706_v18 = vmax.f32 %v3556_v24, 0.0  ;;  %v3844_v54 = vadd.f32 %v15198_v62, %v3773_v48  ;;  %v4126_v37 = vmax.f32 %v4124_v52, %v4125_v2 }
 0x433   :  { %v4144_v13 = vrot.slane %v4143_v17, 4  ;;  %v3775_v29 = vmul.f32 %v15194_v47, %v3704_v35  ;;  %v3847_v60 = vadd.f32 %v15198_v62, %v3776_v51  ;;  %v3778_v39 = vmul.f32 %v15194_v47, %v3707_v31 }
 0x434   :  { %v3777_v3 = vmul.f32 %v15194_v47, %v3706_v18  ;;  %v4136_v6 = vsel %vm2434_vm15, %v3844_v54, -inf  ;;  %v4127_v58 = vrot.slane %v4126_v37, 1  ;;  %v4114_v35 = vmax.f32 %v4112_v11, %v4113_v7 }
 0x435   :  { %v12666_v23 = vpop.f32.mrf.mxu0  ;;  %v4145_v28 = vmax.f32 %v4143_v17, %v4144_v13  ;;  %v3846_v15 = vadd.f32 %v15198_v62, %v3775_v29  ;;  %v4137_v25 = vrot.slane %v4136_v6, 4  ;;  %v4157_v36 = vsel %vm2434_vm15, %v3847_v60, -inf }
 0x436   :  { %v3571_v46 = vadd.f32 %v15188_v53, %v12666_v23  ;;  %v3849_v63 = vadd.f32 %v15198_v62, %v3778_v39  ;;  %v3848_v52 = vadd.f32 %v15198_v62, %v3777_v3  ;;  %v4158_v30 = vrot.slane %v4157_v36, 4 }
 0x437   :  { %v4146_v4 = vrot.slane %v4145_v28, 2  ;;  %v4150_v19 = vsel %vm2434_vm15, %v3846_v15, -inf  ;;  %v3565_v34 = vpop.f32.mrf.mxu0  ;;  %v4138_v2 = vmax.f32 %v4136_v6, %v4137_v25  ;;  %v4134_v23 = vrot.slane %v4133_v10, 1 }
 0x438   :  { %v3709_v45 = vmax.f32 %v3571_v46, 0.0  ;;  %v4151_v9 = vrot.slane %v4150_v19, 4  ;;  %v4171_v40 = vsel %vm2434_vm15, %v3849_v63, -inf  ;;  %v4164_v8 = vsel %vm2434_vm15, %v3848_v52, -inf }
 0x439   :  { %v4159_v32 = vmax.f32 %v4157_v36, %v4158_v30  ;;  %v4165_v24 = vrot.slane %v4164_v8, 4  ;;  %v4139_v17 = vrot.slane %v4138_v2, 2  ;;  %v3566_v31 = vadd.f32 %v15188_v53, %v3565_v34 }
 0x43a   :  { %v3780_v48 = vmul.f32 %v15194_v47, %v3709_v45  ;;  %v4152_v51 = vmax.f32 %v4150_v19, %v4151_v9  ;;  %v4172_v18 = vrot.slane %v4171_v40, 4  ;;  %v4147_v29 = vmax.f32 %v4145_v28, %v4146_v4 }
 0x43b   :  { %v4166_v13 = vmax.f32 %v4164_v8, %v4165_v24  ;;  %v3708_v39 = vmax.f32 %v3566_v31, 0.0  ;;  %v4140_v3 = vmax.f32 %v4138_v2, %v4139_v17  ;;  %v4160_v6 = vrot.slane %v4159_v32, 2 }
 0x43c   :  { %v3851_v54 = vadd.f32 %v15198_v62, %v3780_v48  ;;  %v4153_v60 = vrot.slane %v4152_v51, 2  ;;  %v4128_v15 = vmax.f32 %v4126_v37, %v4127_v58  ;;  %v4417_v46 = vsel %vm4382_vm5, %v15174_v59, %v4100_v16 }
 0x43d   :  { %v12669_v25 = vpop.f32.mrf.mxu0  ;;  %v4167_v11 = vrot.slane %v4166_v13, 2  ;;  %v3779_v7 = vmul.f32 %v15194_v47, %v3708_v39  ;;  %v4141_v36 = vrot.slane %v4140_v3, 1  ;;  %v4418_v63 = vsel %vm4384_vm6, %v4114_v35, %v4417_v46 }
 0x43e   :  { %v4121_v28 = vmax.f32 %v15169_v50, %v4120_v56  ;;  %v4173_v52 = vmax.f32 %v4171_v40, %v4172_v18  ;;  %v4185_v4 = vsel %vm2434_vm15, %v3851_v54, -inf  ;;  %v4148_v30 = vrot.slane %v4147_v29, 1 }
 0x43f   :  { %v4154_v19 = vmax.f32 %v4152_v51, %v4153_v60  ;;  %v3850_v37 = vadd.f32 %v15198_v62, %v3779_v7  ;;  %v4142_v45 = vmax.f32 %v4140_v3, %v4141_v36  ;;  %v4161_v59 = vmax.f32 %v4159_v32, %v4160_v6  ;;  %v3575_v2 = vpop.f32.mrf.mxu0 }
 0x440   :  { %v4135_v16 = vmax.f32 %v4133_v10, %v4134_v23  ;;  %v4419_v34 = vsel %vm4386_vm7, %v4121_v28, %v4418_v63  ;;  %v4168_v9 = vmax.f32 %v4166_v13, %v4167_v11  ;;  %v4186_v8 = vrot.slane %v4185_v4, 4 }
 0x441   :  { %v4178_v58 = vsel %vm2434_vm15, %v3850_v37, -inf  ;;  %v4420_v24 = vsel %vm4388_vm8, %v4128_v15, %v4419_v34  ;;  %v4174_v50 = vrot.slane %v4173_v52, 2  ;;  %v4149_v40 = vmax.f32 %v4147_v29, %v4148_v30 }
 0x442   :  { %v4179_v56 = vrot.slane %v4178_v58, 4  ;;  %v4421_v48 = vsel %vm4390_vm9, %v4135_v16, %v4420_v24  ;;  %v4155_v35 = vrot.slane %v4154_v19, 1  ;;  %v3581_v32 = vadd.f32 %v15188_v53, %v12669_v25 }
 0x443   :  { %v4422_v17 = vsel %vm4392_vm10, %v4142_v45, %v4421_v48  ;;  %v3576_v10 = vadd.f32 %v15188_v53, %v3575_v2  ;;  %v4162_v31 = vrot.slane %v4161_v59, 1  ;;  %v4169_v60 = vrot.slane %v4168_v9, 1 }
 0x444   :  { %v4180_v18 = vmax.f32 %v4178_v58, %v4179_v56  ;;  %v4423_v13 = vsel %vm4394_vm11, %v4149_v40, %v4422_v17  ;;  %v4187_v39 = vmax.f32 %v4185_v4, %v4186_v8  ;;  %v3711_v29 = vmax.f32 %v3581_v32, 0.0 }
 0x445   :  { %v12672_v51 = vpop.f32.mrf.mxu0  ;;  %4453 = vrot.lane.b32.xlu0 %v4423_v13, %s13409_s0  ;;  %v3710_v3 = vmax.f32 %v3576_v10, 0.0  ;;  %v4175_v6 = vmax.f32 %v4173_v52, %v4174_v50  ;;  %v4156_v11 = vmax.f32 %v4154_v19, %v4155_v35  ;;  %v4163_v63 = vmax.f32 %v4161_v59, %v4162_v31 }
 0x446   :  { %v3591_v54 = vadd.f32 %v15188_v53, %v12672_v51  ;;  %v4181_v15 = vrot.slane %v4180_v18, 2  ;;  %v3782_v7 = vmul.f32 %v15194_v47, %v3711_v29  ;;  %v4170_v37 = vmax.f32 %v4168_v9, %v4169_v60 }
 0x447   :  { %v3585_v23 = vpop.f32.mrf.mxu0  ;;  %v3781_v36 = vmul.f32 %v15194_v47, %v3710_v3  ;;  %v4188_v45 = vrot.slane %v4187_v39, 2  ;;  %v4176_v34 = vrot.slane %v4175_v6, 1  ;;  %v4424_v50 = vsel %vm4382_vm5, %v4163_v63, %v4156_v11 }
 0x448   :  { %v3713_v46 = vmax.f32 %v3591_v54, 0.0  ;;  %v3586_v25 = vadd.f32 %v15188_v53, %v3585_v23  ;;  %v4182_v28 = vmax.f32 %v4180_v18, %v4181_v15  ;;  %v3853_v16 = vadd.f32 %v15198_v62, %v3782_v7 }
 0x449   :  { %v3852_v52 = vadd.f32 %v15198_v62, %v3781_v36  ;;  %v4189_v35 = vmax.f32 %v4187_v39, %v4188_v45  ;;  %v4425_v10 = vsel %vm4384_vm6, %v4170_v37, %v4424_v50  ;;  %v4177_v23 = vmax.f32 %v4175_v6, %v4176_v34 }
 0x44a   :  { %v3784_v30 = vmul.f32 %v15194_v47, %v3713_v46  ;;  %v3712_v4 = vmax.f32 %v3586_v25, 0.0  ;;  %v4183_v8 = vrot.slane %v4182_v28, 1  ;;  %v4199_v58 = vsel %vm2434_vm15, %v3853_v16, -inf }
 0x44b   :  { %v4192_v59 = vsel %vm2434_vm15, %v3852_v52, -inf  ;;  %v4200_v56 = vrot.slane %v4199_v58, 4  ;;  %v4190_v39 = vrot.slane %v4189_v35, 1 }
 0x44c   :  { %v3855_v2 = vadd.f32 %v15198_v62, %v3784_v30  ;;  %v3783_v19 = vmul.f32 %v15194_v47, %v3712_v4  ;;  %v4193_v9 = vrot.slane %v4192_v59, 4  ;;  %v4184_v3 = vmax.f32 %v4182_v28, %v4183_v8 }
 0x44d   :  { %v12675_v24 = vpop.f32.mrf.mxu0  ;;  %v4201_v51 = vmax.f32 %v4199_v58, %v4200_v56  ;;  %v4426_v30 = vsel %vm4386_vm7, %v4177_v23, %v4425_v10  ;;  %v4191_v58 = vmax.f32 %v4189_v35, %v4190_v39 }
 0x44e   :  { %v4213_v40 = vsel %vm2434_vm15, %v3855_v2, -inf  ;;  %v3854_v48 = vadd.f32 %v15198_v62, %v3783_v19  ;;  %v3601_v17 = vadd.f32 %v15188_v53, %v12675_v24  ;;  %v4194_v31 = vmax.f32 %v4192_v59, %v4193_v9 }
 0x44f   :  { %v3595_v32 = vpop.f32.mrf.mxu0  ;;  %v4214_v54 = vrot.slane %v4213_v40, 4  ;;  %v4202_v15 = vrot.slane %v4201_v51, 2  ;;  %v4427_v28 = vsel %vm4388_vm8, %v4184_v3, %v4426_v30 }
 0x450   :  { %v4206_v18 = vsel %vm2434_vm15, %v3854_v48, -inf  ;;  %v3596_v13 = vadd.f32 %v15188_v53, %v3595_v32  ;;  %v3715_v29 = vmax.f32 %v3601_v17, 0.0  ;;  %v4195_v46 = vrot.slane %v4194_v31, 2 }
 0x451   :  { %v4207_v60 = vrot.slane %v4206_v18, 4  ;;  %v4203_v63 = vmax.f32 %v4201_v51, %v4202_v15  ;;  %v4215_v4 = vmax.f32 %v4213_v40, %v4214_v54  ;;  %v4428_v17 = vsel %vm4390_vm9, %v4191_v58, %v4427_v28 }
 0x452   :  { %v3714_v25 = vmax.f32 %v3596_v13, 0.0  ;;  %v3786_v11 = vmul.f32 %v15194_v47, %v3715_v29  ;;  %v4196_v36 = vmax.f32 %v4194_v31, %v4195_v46 }
 0x453   :  { %v4208_v37 = vmax.f32 %v4206_v18, %v4207_v60  ;;  %v4204_v2 = vrot.slane %v4203_v63, 1  ;;  %v4216_v9 = vrot.slane %v4215_v4, 2 }
 0x454   :  { %v3785_v7 = vmul.f32 %v15194_v47, %v3714_v25  ;;  %v3857_v45 = vadd.f32 %v15198_v62, %v3786_v11  ;;  %v4197_v34 = vrot.slane %v4196_v36, 1 }
 0x455   :  { %v12678_v16 = vpop.f32.mrf.mxu0  ;;  %v4209_v32 = vrot.slane %v4208_v37, 2  ;;  %v4205_v31 = vmax.f32 %v4203_v63, %v4204_v2  ;;  %v4217_v3 = vmax.f32 %v4215_v4, %v4216_v9 }
 0x456   :  { %v3856_v6 = vadd.f32 %v15198_v62, %v3785_v7  ;;  %v3611_v52 = vadd.f32 %v15188_v53, %v12678_v16  ;;  %v4227_v19 = vsel %vm2434_vm15, %v3857_v45, -inf  ;;  %v4198_v48 = vmax.f32 %v4196_v36, %v4197_v34 }
 0x457   :  { %v3605_v8 = vpop.f32.mrf.mxu0  ;;  %v4228_v59 = vrot.slane %v4227_v19, 4  ;;  %v4210_v46 = vmax.f32 %v4208_v37, %v4209_v32  ;;  %v4218_v28 = vrot.slane %v4217_v3, 1 }
 0x458   :  { %v4220_v24 = vsel %vm2434_vm15, %v3856_v6, -inf  ;;  %v3717_v50 = vmax.f32 %v3611_v52, 0.0  ;;  %v3606_v56 = vadd.f32 %v15188_v53, %v3605_v8  ;;  %v4429_v35 = vsel %vm4392_vm10, %v4198_v48, %v4428_v17 }
 0x459   :  { %v4221_v40 = vrot.slane %v4220_v24, 4  ;;  %v4229_v18 = vmax.f32 %v4227_v19, %v4228_v59  ;;  %v4430_v29 = vsel %vm4394_vm11, %v4205_v31, %v4429_v35  ;;  %v4211_v34 = vrot.slane %v4210_v46, 1 }
 0x45a   :  { %v3788_v10 = vmul.f32 %v15194_v47, %v3717_v50  ;;  %v3716_v51 = vmax.f32 %v3606_v56, 0.0  ;;  %4455 = vrot.lane.b32.xlu1 %v4430_v29, %s13409_s0  ;;  %v4219_v50 = vmax.f32 %v4217_v3, %v4218_v28 }
 0x45b   :  { %v4222_v13 = vmax.f32 %v4220_v24, %v4221_v40  ;;  %v4230_v7 = vrot.slane %v4229_v18, 2  ;;  %v4212_v48 = vmax.f32 %v4210_v46, %v4211_v34 }
 0x45c   :  { %v3859_v54 = vadd.f32 %v15198_v62, %v3788_v10  ;;  %v3787_v60 = vmul.f32 %v15194_v47, %v3716_v51 }
 0x45d   :  { %v4223_v23 = vrot.slane %v4222_v13, 2  ;;  %v12681_v15 = vpop.f32.mrf.mxu0  ;;  %v4231_v19 = vmax.f32 %v4229_v18, %v4230_v7  ;;  %v13328_v18 = vld [vmem:[%s13428_s9] sm:$0xff] }
 0x45e   :  { %v4241_v25 = vsel %vm2434_vm15, %v3859_v54, -inf  ;;  %v3858_v39 = vadd.f32 %v15198_v62, %v3787_v60  ;;  %v3621_v11 = vadd.f32 %v15188_v53, %v12681_v15 }
 0x45f   :  { %v4242_v36 = vrot.slane %v4241_v25, 4  ;;  %v3615_v63 = vpop.f32.mrf.mxu0  ;;  %v4224_v30 = vmax.f32 %v4222_v13, %v4223_v23  ;;  %v4232_v31 = vrot.slane %v4231_v19, 1 }
 0x460   :  { %v4234_v45 = vsel %vm2434_vm15, %v3858_v39, -inf  ;;  %v3719_v16 = vmax.f32 %v3621_v11, 0.0  ;;  %v3616_v4 = vadd.f32 %v15188_v53, %v3615_v63 }
 0x461   :  { %v4243_v6 = vmax.f32 %v4241_v25, %v4242_v36  ;;  %v4235_v52 = vrot.slane %v4234_v45, 4  ;;  %v4225_v58 = vrot.slane %v4224_v30, 1 }
 0x462   :  { %v3790_v37 = vmul.f32 %v15194_v47, %v3719_v16  ;;  %v3718_v2 = vmax.f32 %v3616_v4, 0.0  ;;  %v4431_v16 = vsel %vm4382_vm5, %v4219_v50, %v4212_v48 }
 0x463   :  { %v4236_v8 = vmax.f32 %v4234_v45, %v4235_v52  ;;  %v4244_v56 = vrot.slane %v4243_v6, 2  ;;  %v4226_v29 = vmax.f32 %v4224_v30, %v4225_v58  ;;  %v4233_v52 = vmax.f32 %v4231_v19, %v4232_v31 }
 0x464   :  { %v3861_v59 = vadd.f32 %v15198_v62, %v3790_v37  ;;  %v3789_v24 = vmul.f32 %v15194_v47, %v3718_v2 }
 0x465   :  { %v4237_v9 = vrot.slane %v4236_v8, 2  ;;  %v12684_v40 = vpop.f32.mrf.mxu0  ;;  %v4446_v17 = vpop.permute.xlu0 %4445  ;;  %v4245_v46 = vmax.f32 %v4243_v6, %v4244_v56  ;;  %v4432_v28 = vsel %vm4384_vm6, %v4226_v29, %v4431_v16 }
 0x466   :  { %v4255_v32 = vsel %vm2434_vm15, %v3861_v59, -inf  ;;  %v3860_v10 = vadd.f32 %v15198_v62, %v3789_v24  ;;  %v3631_v51 = vadd.f32 %v15188_v53, %v12684_v40  ;;  %v4469_v13 = vsel %vm226_vm1, %v13328_v18, %v4446_v17 }
 0x467   :  { %v4238_v35 = vmax.f32 %v4236_v8, %v4237_v9  ;;  %v4256_v54 = vrot.slane %v4255_v32, 4  ;;  %v3625_v60 = vpop.f32.mrf.mxu0  ;;  %12704 = vmatprep.mubr.msk.f32.mxu1 %vm4489_vm12, %v4469_v13  ;;  %v4246_v34 = vrot.slane %v4245_v46, 1  ;;  %v4433_v50 = vsel %vm4386_vm7, %v4233_v52, %v4432_v28 }
 0x468   :  { %v4248_v3 = vsel %vm2434_vm15, %v3860_v10, -inf  ;;  %v3721_v23 = vmax.f32 %v3631_v51, 0.0  ;;  %v3626_v15 = vadd.f32 %v15188_v53, %v3625_v60 }
 0x469   :  { %v4239_v25 = vrot.slane %v4238_v35, 1  ;;  %v4257_v39 = vmax.f32 %v4255_v32, %v4256_v54  ;;  %v4249_v11 = vrot.slane %v4248_v3, 4  ;;  %v4247_v32 = vmax.f32 %v4245_v46, %v4246_v34 }
 0x46a   :  { %v3792_v7 = vmul.f32 %v15194_v47, %v3721_v23  ;;  %v3720_v36 = vmax.f32 %v3626_v15, 0.0 }
 0x46b   :  { %v4258_v63 = vrot.slane %v4257_v39, 2  ;;  %v4250_v45 = vmax.f32 %v4248_v3, %v4249_v11  ;;  %v4240_v4 = vmax.f32 %v4238_v35, %v4239_v25 }
 0x46c   :  { %v3791_v30 = vmul.f32 %v15194_v47, %v3720_v36  ;;  %v3863_v8 = vadd.f32 %v15198_v62, %v3792_v7 }
 0x46d   :  { %v4251_v37 = vrot.slane %v4250_v45, 2  ;;  %v12687_v2 = vpop.f32.mrf.mxu0  ;;  %v4259_v6 = vmax.f32 %v4257_v39, %v4258_v63  ;;  %v4434_v19 = vsel %vm4388_vm8, %v4240_v4, %v4433_v50 }
 0x46e   :  { %v3862_v58 = vadd.f32 %v15198_v62, %v3791_v30  ;;  %v3641_v59 = vadd.f32 %v15188_v53, %v12687_v2  ;;  %v4269_v51 = vsel %vm2434_vm15, %v3863_v8, -inf  ;;  %v4435_v35 = vsel %vm4390_vm9, %v4247_v32, %v4434_v19 }
 0x46f   :  { %v3635_v24 = vpop.f32.mrf.mxu0  ;;  %v4252_v56 = vmax.f32 %v4250_v45, %v4251_v37  ;;  %v4260_v48 = vrot.slane %v4259_v6, 1  ;;  %v4270_v23 = vrot.slane %v4269_v51, 4 }
 0x470   :  { %v3723_v9 = vmax.f32 %v3641_v59, 0.0  ;;  %v3636_v40 = vadd.f32 %v15188_v53, %v3635_v24  ;;  %v4262_v17 = vsel %vm2434_vm15, %v3862_v58, -inf }
 0x471   :  { %v4253_v10 = vrot.slane %v4252_v56, 1  ;;  %v4263_v54 = vrot.slane %v4262_v17, 4  ;;  %v4261_v3 = vmax.f32 %v4259_v6, %v4260_v48  ;;  %v4271_v4 = vmax.f32 %v4269_v51, %v4270_v23 }
 0x472   :  { %v3794_v31 = vmul.f32 %v15194_v47, %v3723_v9  ;;  %v3722_v18 = vmax.f32 %v3636_v40, 0.0 }
 0x473   :  { %v4254_v13 = vmax.f32 %v4252_v56, %v4253_v10  ;;  %v4264_v63 = vmax.f32 %v4262_v17, %v4263_v54  ;;  %v4272_v59 = vrot.slane %v4271_v4, 2 }
 0x474   :  { %v3865_v60 = vadd.f32 %v15198_v62, %v3794_v31  ;;  %v3793_v29 = vmul.f32 %v15194_v47, %v3722_v18 }
 0x475   :  { %v12690_v15 = vpop.f32.mrf.mxu0  ;;  %v4436_v25 = vsel %vm4392_vm10, %v4254_v13, %v4435_v35  ;;  %v4265_v6 = vrot.slane %v4264_v63, 2  ;;  %v4273_v18 = vmax.f32 %v4271_v4, %v4272_v59 }
 0x476   :  { %v3864_v46 = vadd.f32 %v15198_v62, %v3793_v29  ;;  %v3651_v39 = vadd.f32 %v15188_v53, %v12690_v15  ;;  %v4437_v11 = vsel %vm4394_vm11, %v4261_v3, %v4436_v25  ;;  %v4283_v7 = vsel %vm2434_vm15, %v3865_v60, -inf }
 0x477   :  { %v3645_v36 = vpop.f32.mrf.mxu0  ;;  %4457 = vrot.lane.b32.xlu0 %v4437_v11, %s13409_s0  ;;  %v4284_v52 = vrot.slane %v4283_v7, 4  ;;  %v4266_v32 = vmax.f32 %v4264_v63, %v4265_v6  ;;  %v13329_v11 = vld [vmem:[%s13428_s9 + $0x8] sm:$0xff] }
 0x478   :  { %v4276_v45 = vsel %vm2434_vm15, %v3864_v46, -inf  ;;  %v3725_v16 = vmax.f32 %v3651_v39, 0.0  ;;  %v3646_v30 = vadd.f32 %v15188_v53, %v3645_v36  ;;  %v4274_v36 = vrot.slane %v4273_v18, 1 }
 0x479   :  { %v4277_v28 = vrot.slane %v4276_v45, 4  ;;  %v4285_v50 = vmax.f32 %v4283_v7, %v4284_v52  ;;  %v4267_v25 = vrot.slane %v4266_v32, 1 }
 0x47a   :  { %v3796_v34 = vmul.f32 %v15194_v47, %v3725_v16  ;;  %v3724_v37 = vmax.f32 %v3646_v30, 0.0 }
 0x47b   :  { %v4278_v2 = vmax.f32 %v4276_v45, %v4277_v28  ;;  %v4286_v54 = vrot.slane %v4285_v50, 2 }
 0x47c   :  { %v3867_v8 = vadd.f32 %v15198_v62, %v3796_v34  ;;  %v3795_v58 = vmul.f32 %v15194_v47, %v3724_v37  ;;  %v4268_v34 = vmax.f32 %v4266_v32, %v4267_v25 }
 0x47d   :  { %v4279_v24 = vrot.slane %v4278_v2, 2  ;;  %v12693_v56 = vpop.f32.mrf.mxu0  ;;  %v4287_v45 = vmax.f32 %v4285_v50, %v4286_v54 }
 0x47e   :  { %v4297_v9 = vsel %vm2434_vm15, %v3867_v8, -inf  ;;  %v3866_v40 = vadd.f32 %v15198_v62, %v3795_v58  ;;  %v3661_v48 = vadd.f32 %v15188_v53, %v12693_v56  ;;  %v4275_v58 = vmax.f32 %v4273_v18, %v4274_v36 }
 0x47f   :  { %v4298_v19 = vrot.slane %v4297_v9, 4  ;;  %v3655_v17 = vpop.f32.mrf.mxu0  ;;  %v4280_v13 = vmax.f32 %v4278_v2, %v4279_v24  ;;  %v4288_v59 = vrot.slane %v4287_v45, 1 }
 0x480   :  { %v4290_v10 = vsel %vm2434_vm15, %v3866_v40, -inf  ;;  %v3727_v51 = vmax.f32 %v3661_v48, 0.0  ;;  %v3656_v31 = vadd.f32 %v15188_v53, %v3655_v17 }
 0x481   :  { %v4291_v35 = vrot.slane %v4290_v10, 4  ;;  %v4299_v60 = vmax.f32 %v4297_v9, %v4298_v19  ;;  %v4281_v53 = vrot.slane %v4280_v13, 1  ;;  %v4438_v9 = vsel %vm4382_vm5, %v4275_v58, %v4268_v34 }
 0x482   :  { %v3798_v29 = vmul.f32 %v15194_v47, %v3727_v51  ;;  %v3726_v3 = vmax.f32 %v3656_v31, 0.0  ;;  %v4289_v17 = vmax.f32 %v4287_v45, %v4288_v59 }
 0x483   :  { %v4292_v23 = vmax.f32 %v4290_v10, %v4291_v35  ;;  %v4448_v15 = vpop.permute.xlu1 %4447  ;;  %v4300_v16 = vrot.slane %v4299_v60, 2 }
 0x484   :  { %v3869_v46 = vadd.f32 %v15198_v62, %v3798_v29  ;;  %v3797_v39 = vmul.f32 %v15194_v47, %v3726_v3  ;;  %v4470_v7 = vsel %vm226_vm1, %v13329_v11, %v4448_v15  ;;  %v4282_v47 = vmax.f32 %v4280_v13, %v4281_v53  ;;  %v13330_v13 = vld [vmem:[%s13428_s9 + $0x10] sm:$0xff]  ;;  %v13331_v11 = vld [vmem:[%s13428_s9 + $0x18] sm:$0xff]  ;;  %v13332_v53 = vld [vmem:[%s13428_s9 + $0x20] sm:$0xff] }
 0x485   :  { %v4293_v63 = vrot.slane %v4292_v23, 2  ;;  %12705 = vmatmul.mubr.msk.f32.vlgmr.msra.gmra.mxu1 %vm4489_vm12, %v4470_v7  ;;  %v4301_v24 = vmax.f32 %v4299_v60, %v4300_v16  ;;  %v13333_v16 = vld [vmem:[%s13428_s9 + $0x28] sm:$0xff] }
 0x486   :  { %v4311_v30 = vsel %vm2434_vm15, %v3869_v46, -inf  ;;  %v3868_v4 = vadd.f32 %v15198_v62, %v3797_v39  ;;  %v4439_v19 = vsel %vm4384_vm6, %v4282_v47, %v4438_v9 }
 0x487   :  { %v4294_v28 = vmax.f32 %v4292_v23, %v4293_v63  ;;  %v4312_v52 = vrot.slane %v4311_v30, 4  ;;  %v4302_v32 = vrot.slane %v4301_v24, 1  ;;  %v4440_v18 = vsel %vm4386_vm7, %v4289_v17, %v4439_v19 }
 0x488   :  { %v4304_v37 = vsel %vm2434_vm15, %v3868_v4, -inf }
 0x489   :  { %v4295_v2 = vrot.slane %v4294_v28, 1  ;;  %v4313_v6 = vmax.f32 %v4311_v30, %v4312_v52  ;;  %v4305_v8 = vrot.slane %v4304_v37, 4  ;;  %v4303_v29 = vmax.f32 %v4301_v24, %v4302_v32 }
 0x48b   :  { %v4314_v56 = vrot.slane %v4313_v6, 2  ;;  %v4306_v50 = vmax.f32 %v4304_v37, %v4305_v8  ;;  %v4296_v48 = vmax.f32 %v4294_v28, %v4295_v2  ;;  %v13334_v28 = vld [vmem:[%s13428_s9 + $0x30] sm:$0xff]  ;;  %v13335_v37 = vld [vmem:[%s13428_s9 + $0x38] sm:$0xff]  ;;  %v15353_v2 = vpop.f32.mrf.mxu1 }
 0x48c   :  { %17904 = vst [vmem:[#allocation132_spill] sm:$0xff] %v15353_v2 }
 0x48d   :  { %v4307_v40 = vrot.slane %v4306_v50, 2  ;;  %v4315_v62 = vmax.f32 %v4313_v6, %v4314_v56  ;;  %v4441_v60 = vsel %vm4388_vm8, %v4296_v48, %v4440_v18  ;;  %v15356_v6 = vld [vmem:[%s13488_s6] ss:$0 sm:$0xff]  ;;  %s18073_s6 = sld [smem:[#allocation16_spill]] }
 0x48e   :  { %v4442_v15 = vsel %vm4390_vm9, %v4303_v29, %v4441_v60 }
 0x48f   :  { %v4308_v10 = vmax.f32 %v4306_v50, %v4307_v40  ;;  %v4450_v51 = vpop.permute.xlu0 %4449  ;;  %v4316_v31 = vrot.slane %v4315_v62, 1 }
 0x490   :  { %v4471_v35 = vsel %vm226_vm1, %v13330_v13, %v4450_v51 }
 0x491   :  { %v4309_v54 = vrot.slane %v4308_v10, 1  ;;  %12707 = vmatprep.mubr.msk.f32.mxu1 %vm4489_vm12, %v4471_v35  ;;  %v4317_v23 = vmax.f32 %v4315_v62, %v4316_v31 }
 0x493   :  { %v4310_v3 = vmax.f32 %v4308_v10, %v4309_v54 }
 0x495   :  { %v4443_v25 = vsel %vm4392_vm10, %v4310_v3, %v4442_v15 }
 0x496   :  { %v4444_v46 = vsel %vm4394_vm11, %v4317_v23, %v4443_v25 }
 0x497   :  { %4459 = vrot.lane.b32.xlu1 %v4444_v46, %s13409_s0 }
 0x4a1   :  { %v4452_v39 = vpop.permute.xlu1 %4451 }
 0x4a2   :  { %v4472_v7 = vsel %vm226_vm1, %v13331_v11, %v4452_v39 }
 0x4a3   :  { %12708 = vmatmul.mubr.msk.f32.gmra.mxu1 %vm4489_vm12, %v4472_v7 }
 0x4b7   :  { %v4454_v36 = vpop.permute.xlu0 %4453 }
 0x4b8   :  { %v4473_v63 = vsel %vm226_vm1, %v13332_v53, %v4454_v36 }
 0x4b9   :  { %12710 = vmatprep.mubr.msk.f32.mxu1 %vm4489_vm12, %v4473_v63 }
 0x4cc   :  { %v4456_v45 = vpop.permute.xlu1 %4455 }
 0x4cd   :  { %v4474_v30 = vsel %vm226_vm1, %v13333_v16, %v4456_v45 }
 0x4ce   :  { %12711 = vmatmul.mubr.msk.f32.gmra.mxu1 %vm4489_vm12, %v4474_v30 }
 0x4e9   :  { %v4458_v4 = vpop.permute.xlu0 %4457 }
 0x4ea   :  { %v4475_v52 = vsel %vm226_vm1, %v13334_v28, %v4458_v4 }
 0x4eb   :  { %12713 = vmatprep.mubr.msk.f32.mxu1 %vm4489_vm12, %v4475_v52 }
 0x509   :  { %v4460_v34 = vpop.permute.xlu1 %4459 }
 0x50a   :  { %v4476_v47 = vsel %vm226_vm1, %v13335_v37, %v4460_v34 }
 0x50b   :  { %12714 = vmatmul.mubr.msk.f32.gmra.mxu1 %vm4489_vm12, %v4476_v47 }
 0x545   :  { %v12706_v8 = vpop.f32.mrf.mxu1 }
 0x546   :  { %v4589_v58 = vadd.f32 %v12706_v8, %v15356_v6 }
 0x547   :  { %v4583_v59 = vpop.f32.mrf.mxu1 }
 0x548   :  { %v4686_v24 = vrot.slane %v4589_v58, %v14104_v41  ;;  %v4584_v56 = vadd.f32 %v15356_v6, %v4583_v59  ;;  %v4679_v50 = vcombine.high %v4589_v58, %v4589_v58 }
 0x54a   :  { %v4694_v9 = vcombine.high %v4686_v24, %v4686_v24  ;;  %v4702_v40 = vrot.slane %v4686_v24, %v14104_v41  ;;  %v4637_v48 = vrot.slane %v4584_v56, %v14104_v41  ;;  %v4693_v10 = vrot.slane %v4679_v50, %v14104_v41 }
 0x54b   :  { %v4630_v54 = vcombine.high %v4584_v56, %v4584_v56 }
 0x54c   :  { %v5057_v62 = vrot.slane %v4702_v40, %v14118_v44  ;;  %v4716_v19 = vrot.slane %v4694_v9, %v14104_v41  ;;  %v4645_v17 = vcombine.high %v4637_v48, %v4637_v48  ;;  %v4653_v32 = vrot.slane %v4637_v48, %v14104_v41 }
 0x54d   :  { %v4724_v13 = vcombine.high %v4702_v40, %v4702_v40  ;;  %v4695_v35 = vcombine.high %v4693_v10, %v4693_v10  ;;  %v4709_v23 = vrot.slane %v4693_v10, %v14104_v41  ;;  %v4644_v15 = vrot.slane %v4630_v54, %v14104_v41 }
 0x54e   :  { %5294 = vrot.lane.b32.xlu0 %v5057_v62, %s13411_s5  ;;  %v5061_v51 = vrot.slane %v4716_v19, %v14118_v44  ;;  %v4667_v31 = vrot.slane %v4645_v17, %v14104_v41  ;;  %v5025_v18 = vrot.slane %v4653_v32, %v14118_v44  ;;  %v4726_v29 = vcombine.high %v4716_v19, %v4716_v19 }
 0x54f   :  { %v5065_v3 = vrot.slane %v4724_v13, %v14118_v44  ;;  %v4723_v46 = vrot.slane %v4695_v35, %v14104_v41  ;;  %v5073_v39 = vrot.slane %v4709_v23, %v14118_v44  ;;  %v4675_v11 = vcombine.high %v4653_v32, %v4653_v32 }
 0x550   :  { %5296 = vrot.lane.b32.xlu1 %v5061_v51, %s13411_s5  ;;  %v5029_v60 = vrot.slane %v4667_v31, %v14118_v44  ;;  %v5069_v25 = vrot.slane %v4726_v29, %v14118_v44  ;;  %v4646_v7 = vcombine.high %v4644_v15, %v4644_v15  ;;  %v4677_v53 = vcombine.high %v4667_v31, %v4667_v31 }
 0x551   :  { %v5077_v36 = vrot.slane %v4723_v46, %v14118_v44  ;;  %v5033_v63 = vrot.slane %v4675_v11, %v14118_v44  ;;  %v4660_v45 = vrot.slane %v4644_v15, %v14104_v41  ;;  %v4725_v28 = vcombine.high %v4709_v23, %v4709_v23 }
 0x552   :  { %5278 = vrot.lane.b32.xlu0 %v5025_v18, %s13411_s5  ;;  %v5037_v16 = vrot.slane %v4677_v53, %v14118_v44  ;;  %v4674_v30 = vrot.slane %v4646_v7, %v14104_v41  ;;  %v4727_v34 = vcombine.high %v4723_v46, %v4723_v46 }
 0x553   :  { %v5041_v4 = vrot.slane %v4660_v45, %v14118_v44  ;;  %v5081_v47 = vrot.slane %v4725_v28, %v14118_v44  ;;  %v4676_v8 = vcombine.high %v4660_v45, %v4660_v45 }
 0x554   :  { %5280 = vrot.lane.b32.xlu1 %v5029_v60, %s13411_s5  ;;  %v5045_v52 = vrot.slane %v4674_v30, %v14118_v44  ;;  %v5085_v24 = vrot.slane %v4727_v34, %v14118_v44  ;;  %v4678_v56 = vcombine.high %v4674_v30, %v4674_v30 }
 0x555   :  { %v5049_v40 = vrot.slane %v4676_v8, %v14118_v44 }
 0x556   :  { %5298 = vrot.lane.b32.xlu0 %v5065_v3, %s13411_s5  ;;  %v5053_v17 = vrot.slane %v4678_v56, %v14118_v44 }
 0x558   :  { %5300 = vrot.lane.b32.xlu1 %v5069_v25, %s13411_s5 }
 0x55a   :  { %5302 = vrot.lane.b32.xlu0 %v5073_v39, %s13411_s5 }
 0x55c   :  { %5304 = vrot.lane.b32.xlu1 %v5077_v36, %s13411_s5 }
 0x55e   :  { %5282 = vrot.lane.b32.xlu0 %v5033_v63, %s13411_s5 }
 0x560   :  { %5284 = vrot.lane.b32.xlu1 %v5037_v16, %s13411_s5 }
 0x562   :  { %5286 = vrot.lane.b32.xlu0 %v5041_v4, %s13411_s5 }
 0x563   :  { %v12709_v37 = vpop.f32.mrf.mxu1 }
 0x564   :  { %5288 = vrot.lane.b32.xlu1 %v5045_v52, %s13411_s5  ;;  %v4599_v58 = vadd.f32 %v12709_v37, %v15356_v6 }
 0x565   :  { %v4593_v59 = vpop.f32.mrf.mxu1 }
 0x566   :  { %5306 = vrot.lane.b32.xlu0 %v5081_v47, %s13411_s5  ;;  %v4784_v50 = vrot.slane %v4599_v58, %v14104_v41  ;;  %v4594_v9 = vadd.f32 %v15356_v6, %v4593_v59  ;;  %v4777_v32 = vcombine.high %v4599_v58, %v4599_v58 }
 0x568   :  { %5308 = vrot.lane.b32.xlu1 %v5085_v24, %s13411_s5  ;;  %v4792_v48 = vcombine.high %v4784_v50, %v4784_v50  ;;  %v4800_v62 = vrot.slane %v4784_v50, %v14104_v41  ;;  %v4735_v19 = vrot.slane %v4594_v9, %v14104_v41  ;;  %v4791_v35 = vrot.slane %v4777_v32, %v14104_v41 }
 0x569   :  { %v4728_v23 = vcombine.high %v4594_v9, %v4594_v9 }
 0x56a   :  { %5290 = vrot.lane.b32.xlu0 %v5049_v40, %s13411_s5  ;;  %v4743_v10 = vcombine.high %v4735_v19, %v4735_v19  ;;  %v5121_v51 = vrot.slane %v4800_v62, %v14118_v44  ;;  %v4814_v31 = vrot.slane %v4792_v48, %v14104_v41  ;;  %v4751_v18 = vrot.slane %v4735_v19, %v14104_v41 }
 0x56b   :  { %v4822_v60 = vcombine.high %v4800_v62, %v4800_v62  ;;  %v4793_v3 = vcombine.high %v4791_v35, %v4791_v35  ;;  %v4807_v46 = vrot.slane %v4791_v35, %v14104_v41  ;;  %v4742_v7 = vrot.slane %v4728_v23, %v14104_v41 }
 0x56c   :  { %5292 = vrot.lane.b32.xlu1 %v5053_v17, %s13411_s5  ;;  %v5125_v13 = vrot.slane %v4814_v31, %v14118_v44  ;;  %v4765_v54 = vrot.slane %v4743_v10, %v14104_v41  ;;  %v5089_v29 = vrot.slane %v4751_v18, %v14118_v44  ;;  %v4824_v15 = vcombine.high %v4814_v31, %v4814_v31 }
 0x56d   :  { %v5129_v39 = vrot.slane %v4822_v60, %v14118_v44  ;;  %v4821_v11 = vrot.slane %v4793_v3, %v14104_v41  ;;  %v4773_v53 = vcombine.high %v4751_v18, %v4751_v18  ;;  %v5137_v63 = vrot.slane %v4807_v46, %v14118_v44 }
 0x56e   :  { %5326 = vrot.lane.b32.xlu0 %v5121_v51, %s13411_s5  ;;  %v5093_v25 = vrot.slane %v4765_v54, %v14118_v44  ;;  %v5133_v36 = vrot.slane %v4824_v15, %v14118_v44  ;;  %v4744_v45 = vcombine.high %v4742_v7, %v4742_v7  ;;  %v4775_v30 = vcombine.high %v4765_v54, %v4765_v54 }
 0x56f   :  { %v5141_v16 = vrot.slane %v4821_v11, %v14118_v44  ;;  %v4758_v4 = vrot.slane %v4742_v7, %v14104_v41  ;;  %v5097_v28 = vrot.slane %v4773_v53, %v14118_v44  ;;  %v4823_v37 = vcombine.high %v4807_v46, %v4807_v46 }
 0x570   :  { %5328 = vrot.lane.b32.xlu1 %v5125_v13, %s13411_s5  ;;  %v5101_v52 = vrot.slane %v4775_v30, %v14118_v44  ;;  %v4772_v34 = vrot.slane %v4744_v45, %v14104_v41  ;;  %v4825_v58 = vcombine.high %v4821_v11, %v4821_v11 }
 0x571   :  { %v5105_v47 = vrot.slane %v4758_v4, %v14118_v44  ;;  %v5145_v59 = vrot.slane %v4823_v37, %v14118_v44  ;;  %v4774_v24 = vcombine.high %v4758_v4, %v4758_v4 }
 0x572   :  { %5310 = vrot.lane.b32.xlu0 %v5089_v29, %s13411_s5  ;;  %v5109_v8 = vrot.slane %v4772_v34, %v14118_v44  ;;  %v5149_v56 = vrot.slane %v4825_v58, %v14118_v44  ;;  %v4776_v50 = vcombine.high %v4772_v34, %v4772_v34 }
 0x573   :  { %v5113_v9 = vrot.slane %v4774_v24, %v14118_v44 }
 0x574   :  { %5312 = vrot.lane.b32.xlu1 %v5093_v25, %s13411_s5  ;;  %v5117_v40 = vrot.slane %v4776_v50, %v14118_v44 }
 0x576   :  { %5330 = vrot.lane.b32.xlu0 %v5129_v39, %s13411_s5 }
 0x578   :  { %5332 = vrot.lane.b32.xlu1 %v5133_v36, %s13411_s5 }
 0x57a   :  { %5334 = vrot.lane.b32.xlu0 %v5137_v63, %s13411_s5 }
 0x57c   :  { %5336 = vrot.lane.b32.xlu1 %v5141_v16, %s13411_s5 }
 0x57e   :  { %5314 = vrot.lane.b32.xlu0 %v5097_v28, %s13411_s5 }
 0x580   :  { %5316 = vrot.lane.b32.xlu1 %v5101_v52, %s13411_s5 }
 0x582   :  { %5318 = vrot.lane.b32.xlu0 %v5105_v47, %s13411_s5 }
 0x584   :  { %5320 = vrot.lane.b32.xlu1 %v5109_v8, %s13411_s5 }
 0x586   :  { %5338 = vrot.lane.b32.xlu0 %v5145_v59, %s13411_s5 }
 0x588   :  { %5340 = vrot.lane.b32.xlu1 %v5149_v56, %s13411_s5 }
 0x58a   :  { %5322 = vrot.lane.b32.xlu0 %v5113_v9, %s13411_s5 }
 0x58c   :  { %5324 = vrot.lane.b32.xlu1 %v5117_v40, %s13411_s5 }
 0x58e   :  { %v12712_v48 = vpop.f32.mrf.mxu1 }
 0x58f   :  { %v4609_v62 = vadd.f32 %v12712_v48, %v15356_v6 }
 0x590   :  { %v4603_v19 = vpop.f32.mrf.mxu1 }
 0x591   :  { %v4882_v17 = vrot.slane %v4609_v62, %v14104_v41  ;;  %v4604_v32 = vadd.f32 %v15356_v6, %v4603_v19  ;;  %v4875_v10 = vcombine.high %v4609_v62, %v4609_v62  ;;  %v5605_v19 = vld [vmem:[%s17905_s13 + $0x38] sm:$0xff] }
 0x592   :  { %12716 = vmatprep.subr.mxu1 %v5605_v19 }
 0x593   :  { %v4890_v51 = vcombine.high %v4882_v17, %v4882_v17  ;;  %v4898_v31 = vrot.slane %v4882_v17, %v14104_v41  ;;  %v4833_v18 = vrot.slane %v4604_v32, %v14104_v41  ;;  %v4889_v29 = vrot.slane %v4875_v10, %v14104_v41  ;;  %12717 = vmatpush3.msra.mxu1 %v5605_v19  ;;  %v5604_v17 = vld [vmem:[%s17905_s13 + $0x30] sm:$0xff] }
 0x594   :  { %v4826_v11 = vcombine.high %v4604_v32, %v4604_v32  ;;  %12718 = vmatprep.subr.mxu1 %v5604_v17 }
 0x595   :  { %v4912_v13 = vrot.slane %v4890_v51, %v14104_v41  ;;  %v5185_v35 = vrot.slane %v4898_v31, %v14118_v44  ;;  %v4841_v54 = vcombine.high %v4833_v18, %v4833_v18  ;;  %v4849_v60 = vrot.slane %v4833_v18, %v14104_v41  ;;  %12719 = vmatpush3.msra.mxu1 %v5604_v17  ;;  %v5603_v51 = vld [vmem:[%s17905_s13 + $0x28] sm:$0xff]  ;;  %v5601_v18 = vld [vmem:[%s17905_s13 + $0x18] sm:$0xff] }
 0x596   :  { %v4920_v15 = vcombine.high %v4898_v31, %v4898_v31  ;;  %v4891_v46 = vcombine.high %v4889_v29, %v4889_v29  ;;  %v4905_v36 = vrot.slane %v4889_v29, %v14104_v41  ;;  %v4840_v45 = vrot.slane %v4826_v11, %v14104_v41  ;;  %12720 = vmatprep.subr.mxu1 %v5603_v51  ;;  %v5602_v31 = vld [vmem:[%s17905_s13 + $0x20] sm:$0xff] }
 0x597   :  { %v5189_v3 = vrot.slane %v4912_v13, %v14118_v44  ;;  %v4863_v23 = vrot.slane %v4841_v54, %v14104_v41  ;;  %5358 = vrot.lane.b32.xlu0 %v5185_v35, %s13411_s5  ;;  %v5153_v25 = vrot.slane %v4849_v60, %v14118_v44  ;;  %v4922_v39 = vcombine.high %v4912_v13, %v4912_v13  ;;  %v5600_v13 = vld [vmem:[%s17905_s13 + $0x10] sm:$0xff]  ;;  %v5599_v35 = vld [vmem:[%s17905_s13 + $0x8] sm:$0xff]  ;;  %v5598_v54 = vld [vmem:[%s17905_s13] sm:$0xff] }
 0x598   :  { %v5193_v53 = vrot.slane %v4920_v15, %v14118_v44  ;;  %v4919_v63 = vrot.slane %v4891_v46, %v14104_v41  ;;  %v4871_v30 = vcombine.high %v4849_v60, %v4849_v60  ;;  %v5201_v4 = vrot.slane %v4905_v36, %v14118_v44  ;;  %12721 = vmatpush3.msra.mxu1 %v5603_v51 }
 0x599   :  { %5360 = vrot.lane.b32.xlu1 %v5189_v3, %s13411_s5  ;;  %v5157_v7 = vrot.slane %v4863_v23, %v14118_v44  ;;  %v5197_v16 = vrot.slane %v4922_v39, %v14118_v44  ;;  %v4842_v28 = vcombine.high %v4840_v45, %v4840_v45  ;;  %v4873_v34 = vcombine.high %v4863_v23, %v4863_v23 }
 0x59a   :  { %v5205_v52 = vrot.slane %v4919_v63, %v14118_v44  ;;  %v4856_v37 = vrot.slane %v4840_v45, %v14104_v41  ;;  %v5161_v47 = vrot.slane %v4871_v30, %v14118_v44  ;;  %v4921_v59 = vcombine.high %v4905_v36, %v4905_v36  ;;  %12722 = vmatprep.subr.mxu1 %v5602_v31 }
 0x59b   :  { %5342 = vrot.lane.b32.xlu0 %v5153_v25, %s13411_s5  ;;  %v5165_v8 = vrot.slane %v4873_v34, %v14118_v44  ;;  %v4870_v58 = vrot.slane %v4842_v28, %v14104_v41  ;;  %v4923_v50 = vcombine.high %v4919_v63, %v4919_v63  ;;  %12723 = vmatpush3.msra.mxu1 %v5602_v31 }
 0x59c   :  { %v5169_v24 = vrot.slane %v4856_v37, %v14118_v44  ;;  %v5209_v9 = vrot.slane %v4921_v59, %v14118_v44  ;;  %v4872_v40 = vcombine.high %v4856_v37, %v4856_v37  ;;  %12724 = vmatprep.subr.mxu1 %v5601_v18 }
 0x59d   :  { %5344 = vrot.lane.b32.xlu1 %v5157_v7, %s13411_s5  ;;  %v5173_v56 = vrot.slane %v4870_v58, %v14118_v44  ;;  %v5213_v48 = vrot.slane %v4923_v50, %v14118_v44  ;;  %v4874_v62 = vcombine.high %v4870_v58, %v4870_v58  ;;  %12725 = vmatpush3.msra.mxu1 %v5601_v18 }
 0x59e   :  { %v5177_v32 = vrot.slane %v4872_v40, %v14118_v44  ;;  %12726 = vmatprep.subr.mxu1 %v5600_v13 }
 0x59f   :  { %5362 = vrot.lane.b32.xlu0 %v5193_v53, %s13411_s5  ;;  %v5181_v10 = vrot.slane %v4874_v62, %v14118_v44  ;;  %12727 = vmatpush3.msra.mxu1 %v5600_v13 }
 0x5a0   :  { %12728 = vmatprep.subr.mxu1 %v5599_v35 }
 0x5a1   :  { %5364 = vrot.lane.b32.xlu1 %v5197_v16, %s13411_s5  ;;  %12729 = vmatpush3.msra.mxu1 %v5599_v35 }
 0x5a2   :  { %12730 = vmatprep.subr.mxu1 %v5598_v54 }
 0x5a3   :  { %5366 = vrot.lane.b32.xlu0 %v5201_v4, %s13411_s5  ;;  %12731 = vmatpush3.msra.mxu1 %v5598_v54 }
 0x5a5   :  { %5368 = vrot.lane.b32.xlu1 %v5205_v52, %s13411_s5 }
 0x5a7   :  { %5346 = vrot.lane.b32.xlu0 %v5161_v47, %s13411_s5 }
 0x5a9   :  { %5348 = vrot.lane.b32.xlu1 %v5165_v8, %s13411_s5 }
 0x5ab   :  { %5350 = vrot.lane.b32.xlu0 %v5169_v24, %s13411_s5 }
 0x5ad   :  { %5352 = vrot.lane.b32.xlu1 %v5173_v56, %s13411_s5 }
 0x5af   :  { %5370 = vrot.lane.b32.xlu0 %v5209_v9, %s13411_s5 }
 0x5b1   :  { %5372 = vrot.lane.b32.xlu1 %v5213_v48, %s13411_s5 }
 0x5b3   :  { %5354 = vrot.lane.b32.xlu0 %v5177_v32, %s13411_s5 }
 0x5b5   :  { %5356 = vrot.lane.b32.xlu1 %v5181_v10, %s13411_s5 }
 0x5c0   :  { %v5295_v60 = vpop.permute.xlu0 %5294 }
 0x5c1   :  { %v5478_v29 = vadd.f32 %v5295_v60, %v14238_v57 }
 0x5c2   :  { %v5297_v3 = vpop.permute.xlu1 %5296 }
 0x5c3   :  { %v5542_v23 = vmax.f32 %v5478_v29, 0.0  ;;  %v5479_v15 = vadd.f32 %v5297_v3, %v14250_v21 }
 0x5c4   :  { %v5279_v25 = vpop.permute.xlu0 %5278 }
 0x5c5   :  { %v5543_v46 = vmax.f32 %v5479_v15, 0.0  ;;  %v5470_v39 = vadd.f32 %v5279_v25, %v14132_v12  ;;  %5693 = vrot.lane.b32.xlu0 %v5542_v23, %s13412_s17 }
 0x5c6   :  { %v5281_v11 = vpop.permute.xlu1 %5280 }
 0x5c7   :  { %v5534_v7 = vmax.f32 %v5470_v39, 0.0  ;;  %v5471_v36 = vadd.f32 %v5281_v11, %v14144_v55  ;;  %5695 = vrot.lane.b32.xlu1 %v5543_v46, %s13412_s17 }
 0x5c8   :  { %v5299_v53 = vpop.permute.xlu0 %5298 }
 0x5c9   :  { %v5535_v63 = vmax.f32 %v5471_v36, 0.0  ;;  %v5480_v45 = vadd.f32 %v5299_v53, %v14261_v26  ;;  %5677 = vrot.lane.b32.xlu0 %v5534_v7, %s13412_s17 }
 0x5ca   :  { %v5301_v16 = vpop.permute.xlu1 %5300 }
 0x5cb   :  { %v5544_v30 = vmax.f32 %v5480_v45, 0.0  ;;  %v5481_v4 = vadd.f32 %v5301_v16, %v14275_v38  ;;  %5679 = vrot.lane.b32.xlu1 %v5535_v63, %s13412_s17  ;;  %v17906_v45 = vld [vmem:[#allocation38_spill] sm:$0xff] }
 0x5cc   :  { %v5303_v28 = vpop.permute.xlu0 %5302 }
 0x5cd   :  { %v5545_v52 = vmax.f32 %v5481_v4, 0.0  ;;  %v5482_v34 = vadd.f32 %v5303_v28, %v14287_v49  ;;  %5697 = vrot.lane.b32.xlu0 %v5544_v30, %s13412_s17  ;;  %v17907_v28 = vld [vmem:[#allocation40_spill] sm:$0xff] }
 0x5ce   :  { %v5305_v37 = vpop.permute.xlu1 %5304 }
 0x5cf   :  { %v5546_v47 = vmax.f32 %v5482_v34, 0.0  ;;  %v5483_v8 = vadd.f32 %v5305_v37, %v14299_v61  ;;  %5699 = vrot.lane.b32.xlu1 %v5545_v52, %s13412_s17 }
 0x5d0   :  { %v5283_v58 = vpop.permute.xlu0 %5282 }
 0x5d1   :  { %v5547_v59 = vmax.f32 %v5483_v8, 0.0  ;;  %v5472_v24 = vadd.f32 %v5283_v58, %v14156_v0  ;;  %5701 = vrot.lane.b32.xlu0 %v5546_v47, %s13412_s17  ;;  %v17908_v47 = vld [vmem:[#allocation57_spill] sm:$0xff] }
 0x5d2   :  { %v5285_v56 = vpop.permute.xlu1 %5284 }
 0x5d3   :  { %v5536_v50 = vmax.f32 %v5472_v24, 0.0  ;;  %v5473_v9 = vadd.f32 %v5285_v56, %v14169_v1  ;;  %5703 = vrot.lane.b32.xlu1 %v5547_v59, %s13412_s17  ;;  %v17909_v24 = vld [vmem:[#allocation59_spill] sm:$0xff] }
 0x5d4   :  { %v5287_v40 = vpop.permute.xlu0 %5286 }
 0x5d5   :  { %v5537_v48 = vmax.f32 %v5473_v9, 0.0  ;;  %v5474_v62 = vadd.f32 %v5287_v40, %v14186_v20  ;;  %5681 = vrot.lane.b32.xlu0 %v5536_v50, %s13412_s17 }
 0x5d6   :  { %v5289_v19 = vpop.permute.xlu1 %5288 }
 0x5d7   :  { %v5538_v17 = vmax.f32 %v5474_v62, 0.0  ;;  %v5475_v32 = vadd.f32 %v5289_v19, %v14200_v27  ;;  %5683 = vrot.lane.b32.xlu1 %v5537_v48, %s13412_s17  ;;  %v17910_v62 = vld [vmem:[#allocation42_spill] sm:$0xff] }
 0x5d8   :  { %v5307_v10 = vpop.permute.xlu0 %5306 }
 0x5d9   :  { %v5539_v51 = vmax.f32 %v5475_v32, 0.0  ;;  %v5484_v31 = vadd.f32 %v5307_v10, %v14312_v14  ;;  %5685 = vrot.lane.b32.xlu0 %v5538_v17, %s13412_s17  ;;  %v12715_v17 = vpop.f32.mrf.mxu1 }
 0x5da   :  { %v5309_v18 = vpop.permute.xlu1 %5308 }
 0x5db   :  { %v5548_v13 = vmax.f32 %v5484_v31, 0.0  ;;  %v5485_v35 = vadd.f32 %v5309_v18, %v14323_v22  ;;  %5687 = vrot.lane.b32.xlu1 %v5539_v51, %s13412_s17  ;;  %v17911_v51 = vld [vmem:[#allocation44_spill] sm:$0xff] }
 0x5dc   :  { %v5291_v54 = vpop.permute.xlu0 %5290 }
 0x5dd   :  { %v5549_v60 = vmax.f32 %v5485_v35, 0.0  ;;  %v5476_v29 = vadd.f32 %v5291_v54, %v14212_v43  ;;  %5705 = vrot.lane.b32.xlu0 %v5548_v13, %s13412_s17  ;;  %v15555_v13 = vadd.f32 %v12715_v17, %v15356_v6  ;;  %v17912_v54 = vld [vmem:[#allocation46_spill] sm:$0xff] }
 0x5de   :  { %v5293_v3 = vpop.permute.xlu1 %5292 }
 0x5df   :  { %v5540_v23 = vmax.f32 %v5476_v29, 0.0  ;;  %v5477_v15 = vadd.f32 %v5293_v3, %v14224_v33  ;;  %5707 = vrot.lane.b32.xlu1 %v5549_v60, %s13412_s17  ;;  %v4613_v29 = vpop.f32.mrf.mxu1 }
 0x5e0   :  { %v5327_v25 = vpop.permute.xlu0 %5326 }
 0x5e1   :  { %v5541_v46 = vmax.f32 %v5477_v15, 0.0  ;;  %v5494_v39 = vadd.f32 %v5327_v25, %v14397_v5  ;;  %5689 = vrot.lane.b32.xlu0 %v5540_v23, %s13412_s17  ;;  %v17913_v15 = vld [vmem:[#allocation48_spill] sm:$0xff] }
 0x5e2   :  { %v5329_v11 = vpop.permute.xlu1 %5328 }
 0x5e3   :  { %v5558_v7 = vmax.f32 %v5494_v39, 0.0  ;;  %v5495_v36 = vadd.f32 %v5329_v11, %v14404_v42  ;;  %5691 = vrot.lane.b32.xlu1 %v5541_v46, %s13412_s17  ;;  %v4980_v39 = vrot.slane %v15555_v13, %v14104_v41  ;;  %v4614_v11 = vadd.f32 %v15356_v6, %v4613_v29 }
 0x5e4   :  { %v5311_v53 = vpop.permute.xlu0 %5310 }
 0x5e5   :  { %v5559_v63 = vmax.f32 %v5495_v36, 0.0  ;;  %v5486_v16 = vadd.f32 %v5311_v53, %v17906_v45  ;;  %5725 = vrot.lane.b32.xlu0 %v5558_v7, %s13412_s17 }
 0x5e6   :  { %v5313_v30 = vpop.permute.xlu1 %5312 }
 0x5e7   :  { %v5550_v4 = vmax.f32 %v5486_v16, 0.0  ;;  %v5487_v52 = vadd.f32 %v5313_v30, %v17907_v28  ;;  %5727 = vrot.lane.b32.xlu1 %v5559_v63, %s13412_s17  ;;  %v4988_v63 = vcombine.high %v4980_v39, %v4980_v39  ;;  %v4931_v16 = vrot.slane %v4614_v11, %v14104_v41  ;;  %v17914_v30 = vld [vmem:[#allocation50_spill] sm:$0xff] }
 0x5e8   :  { %v5331_v34 = vpop.permute.xlu0 %5330 }
 0x5e9   :  { %v5551_v37 = vmax.f32 %v5487_v52, 0.0  ;;  %v5496_v8 = vadd.f32 %v5331_v34, %v17908_v47  ;;  %5709 = vrot.lane.b32.xlu0 %v5550_v4, %s13412_s17  ;;  %v4996_v34 = vrot.slane %v4980_v39, %v14104_v41  ;;  %v5010_v6 = vrot.slane %v4988_v63, %v14104_v41 }
 0x5ea   :  { %v5333_v58 = vpop.permute.xlu1 %5332 }
 0x5eb   :  { %v5560_v59 = vmax.f32 %v5496_v8, 0.0  ;;  %v5497_v56 = vadd.f32 %v5333_v58, %v17909_v24  ;;  %5711 = vrot.lane.b32.xlu1 %v5551_v37, %s13412_s17  ;;  %v17915_v8 = vld [vmem:[#allocation52_spill] sm:$0xff] }
 0x5ec   :  { %v15546_v50 = vpop.permute.xlu0 %5334 }
 0x5ed   :  { %v5561_v9 = vmax.f32 %v5497_v56, 0.0  ;;  %5729 = vrot.lane.b32.xlu0 %v5560_v59, %s13412_s17  ;;  %v4939_v59 = vcombine.high %v4931_v16, %v4931_v16 }
 0x5ee   :  { %v15549_v40 = vpop.permute.xlu1 %5336 }
 0x5ef   :  { %5731 = vrot.lane.b32.xlu1 %v5561_v9, %s13412_s17  ;;  %v5249_v9 = vrot.slane %v4996_v34, %v14118_v44  ;;  %v4961_v17 = vrot.slane %v4939_v59, %v14104_v41 }
 0x5f0   :  { %v5315_v48 = vpop.permute.xlu0 %5314 }
 0x5f1   :  { %v5488_v19 = vadd.f32 %v5315_v48, %v17910_v62  ;;  %v4947_v48 = vrot.slane %v4931_v16, %v14104_v41 }
 0x5f2   :  { %v5317_v32 = vpop.permute.xlu1 %5316 }
 0x5f3   :  { %v5552_v10 = vmax.f32 %v5488_v19, 0.0  ;;  %v5489_v31 = vadd.f32 %v5317_v32, %v17911_v51  ;;  %v4924_v19 = vcombine.high %v4614_v11, %v4614_v11  ;;  %v5253_v32 = vrot.slane %v5010_v6, %v14118_v44 }
 0x5f4   :  { %v5319_v18 = vpop.permute.xlu0 %5318  ;;  %v4969_v29 = vcombine.high %v4947_v48, %v4947_v48  ;;  %v4971_v11 = vcombine.high %v4961_v17, %v4961_v17 }
 0x5f5   :  { %v5553_v35 = vmax.f32 %v5489_v31, 0.0  ;;  %v5490_v60 = vadd.f32 %v5319_v18, %v17912_v54  ;;  %5713 = vrot.lane.b32.xlu0 %v5552_v10, %s13412_s17  ;;  %v5018_v10 = vcombine.high %v4996_v34, %v4996_v34  ;;  %v5217_v31 = vrot.slane %v4947_v48, %v14118_v44 }
 0x5f6   :  { %v5321_v3 = vpop.permute.xlu1 %5320  ;;  %v5020_v18 = vcombine.high %v5010_v6, %v5010_v6  ;;  %v5225_v63 = vrot.slane %v4969_v29, %v14118_v44 }
 0x5f7   :  { %v5554_v23 = vmax.f32 %v5490_v60, 0.0  ;;  %v5491_v25 = vadd.f32 %v5321_v3, %v17913_v15  ;;  %5715 = vrot.lane.b32.xlu1 %v5553_v35, %s13412_s17  ;;  %v4938_v35 = vrot.slane %v4924_v19, %v14104_v41  ;;  %v5221_v60 = vrot.slane %v4961_v17, %v14118_v44  ;;  %v17917_v19 = vld [vmem:[#allocation61_spill] sm:$0xff] }
 0x5f8   :  { %v15561_v46 = vpop.permute.xlu0 %5338  ;;  %v5257_v3 = vrot.slane %v5018_v10, %v14118_v44  ;;  %v5261_v39 = vrot.slane %v5020_v18, %v14118_v44  ;;  %v5498_v17 = vadd.f32 %v15546_v50, %v17917_v19 }
 0x5f9   :  { %v5555_v7 = vmax.f32 %v5491_v25, 0.0  ;;  %5717 = vrot.lane.b32.xlu0 %v5554_v23, %s13412_s17  ;;  %v4940_v25 = vcombine.high %v4938_v35, %v4938_v35 }
 0x5fa   :  { %v15567_v36 = vpop.permute.xlu1 %5340 }
 0x5fb   :  { %5719 = vrot.lane.b32.xlu1 %v5555_v7, %s13412_s17  ;;  %v4968_v34 = vrot.slane %v4940_v25, %v14104_v41  ;;  %v5562_v25 = vmax.f32 %v5498_v17, 0.0 }
 0x5fc   :  { %v5323_v53 = vpop.permute.xlu0 %5322 }
 0x5fd   :  { %v5492_v4 = vadd.f32 %v5323_v53, %v17914_v30  ;;  %v4954_v53 = vrot.slane %v4938_v35, %v14104_v41  ;;  %v17918_v35 = vld [vmem:[#allocation63_spill] sm:$0xff] }
 0x5fe   :  { %v5325_v52 = vpop.permute.xlu1 %5324 }
 0x5ff   :  { %v5556_v37 = vmax.f32 %v5492_v4, 0.0  ;;  %v5493_v58 = vadd.f32 %v5325_v52, %v17915_v8  ;;  %v4973_v4 = vcombine.high %v15555_v13, %v15555_v13  ;;  %v5229_v52 = vrot.slane %v4971_v11, %v14118_v44  ;;  %v7782_v8 = vld [vmem:[%s17954_s29 + $0x10] sm:$0xff] }
 0x600   :  { %v4970_v6 = vcombine.high %v4954_v53, %v4954_v53  ;;  %v5237_v13 = vrot.slane %v4968_v34, %v14118_v44 }
 0x601   :  { %v5557_v56 = vmax.f32 %v5493_v58, 0.0  ;;  %5721 = vrot.lane.b32.xlu0 %v5556_v37, %s13412_s17  ;;  %v5233_v58 = vrot.slane %v4954_v53, %v14118_v44 }
 0x603   :  { %5723 = vrot.lane.b32.xlu1 %v5557_v56, %s13412_s17  ;;  %v4987_v56 = vrot.slane %v4973_v4, %v14104_v41 }
 0x605   :  { %5390 = vrot.lane.b32.xlu0 %v5249_v9, %s13411_s5  ;;  %v4972_v9 = vcombine.high %v4968_v34, %v4968_v34  ;;  %v4989_v18 = vcombine.high %v4987_v56, %v4987_v56  ;;  %v5003_v50 = vrot.slane %v4987_v56, %v14104_v41  ;;  %v17920_v34 = vld [vmem:[#allocation67_spill] sm:$0xff] }
 0x607   :  { %5392 = vrot.lane.b32.xlu1 %v5253_v32, %s13411_s5  ;;  %v5241_v32 = vrot.slane %v4970_v6, %v14118_v44  ;;  %v5245_v29 = vrot.slane %v4972_v9, %v14118_v44  ;;  %v5017_v11 = vrot.slane %v4989_v18, %v14104_v41  ;;  %v17921_v18 = vld [vmem:[#allocation69_spill] sm:$0xff] }
 0x609   :  { %5374 = vrot.lane.b32.xlu0 %v5217_v31, %s13411_s5  ;;  %v15589_v23 = vpop.permute.xlu0 %5358  ;;  %v6389_v31 = vld [vmem:[%s17916_s21 + $0x38] sm:$0xff]  ;;  %v5269_v6 = vrot.slane %v5017_v11, %v14118_v44 }
 0x60a   :  { %12828 = vmatprep.subr.mxu0 %v6389_v31 }
 0x60b   :  { %5376 = vrot.lane.b32.xlu1 %v5221_v60, %s13411_s5  ;;  %v15593_v7 = vpop.permute.xlu1 %5360  ;;  %v5499_v60 = vadd.f32 %v15549_v40, %v17918_v35  ;;  %12829 = vmatpush3.msra.mxu0 %v6389_v31  ;;  %v6388_v31 = vld [vmem:[%s17916_s21 + $0x30] sm:$0xff] }
 0x60c   :  { %12830 = vmatprep.subr.mxu0 %v6388_v31 }
 0x60d   :  { %5394 = vrot.lane.b32.xlu0 %v5257_v3, %s13411_s5  ;;  %v5343_v16 = vpop.permute.xlu0 %5342  ;;  %v5563_v53 = vmax.f32 %v5499_v60, 0.0  ;;  %12831 = vmatpush3.msra.mxu0 %v6388_v31 }
 0x60e   :  { %v5502_v60 = vadd.f32 %v5343_v16, %v17921_v18 }
 0x60f   :  { %5396 = vrot.lane.b32.xlu1 %v5261_v39, %s13411_s5  ;;  %v5345_v37 = vpop.permute.xlu1 %5344 }
 0x610   :  { %v5566_v16 = vmax.f32 %v5502_v60, 0.0  ;;  %v17927_v60 = vld [vmem:[#allocation81_spill] sm:$0xff] }
 0x611   :  { %5378 = vrot.lane.b32.xlu0 %v5225_v63, %s13411_s5  ;;  %v15605_v59 = vpop.permute.xlu0 %5362  ;;  %v17919_v63 = vld [vmem:[#allocation65_spill] sm:$0xff] }
 0x612   :  { %v5500_v4 = vadd.f32 %v15561_v46, %v17919_v63  ;;  %v5021_v46 = vcombine.high %v5017_v11, %v5017_v11 }
 0x613   :  { %5380 = vrot.lane.b32.xlu1 %v5229_v52, %s13411_s5  ;;  %v15610_v48 = vpop.permute.xlu1 %5364  ;;  %v5265_v52 = vrot.slane %v5003_v50, %v14118_v44 }
 0x614   :  { %v5564_v9 = vmax.f32 %v5500_v4, 0.0  ;;  %v17923_v4 = vld [vmem:[#allocation73_spill] sm:$0xff] }
 0x615   :  { %5382 = vrot.lane.b32.xlu0 %v5233_v58, %s13411_s5  ;;  %v15616_v10 = vpop.permute.xlu0 %5366  ;;  %v5501_v58 = vadd.f32 %v15567_v36, %v17920_v34 }
 0x617   :  { %5384 = vrot.lane.b32.xlu1 %v5237_v13, %s13411_s5  ;;  %v15623_v3 = vpop.permute.xlu1 %5368  ;;  %v5019_v13 = vcombine.high %v5003_v50, %v5003_v50  ;;  %v17922_v50 = vld [vmem:[#allocation71_spill] sm:$0xff] }
 0x619   :  { %5386 = vrot.lane.b32.xlu0 %v5241_v32, %s13411_s5  ;;  %v5347_v39 = vpop.permute.xlu0 %5346  ;;  %v5565_v32 = vmax.f32 %v5501_v58, 0.0  ;;  %v5273_v36 = vrot.slane %v5019_v13, %v14118_v44  ;;  %v17924_v58 = vld [vmem:[#allocation75_spill] sm:$0xff] }
 0x61b   :  { %5388 = vrot.lane.b32.xlu1 %v5245_v29, %s13411_s5  ;;  %v5349_v40 = vpop.permute.xlu1 %5348 }
 0x61d   :  { %5733 = vrot.lane.b32.xlu0 %v5562_v25, %s13412_s17  ;;  %v5351_v56 = vpop.permute.xlu0 %5350  ;;  %v5503_v25 = vadd.f32 %v5345_v37, %v17922_v50  ;;  %v6387_v50 = vld [vmem:[%s17916_s21 + $0x28] sm:$0xff] }
 0x61e   :  { %12832 = vmatprep.subr.mxu0 %v6387_v50 }
 0x61f   :  { %5735 = vrot.lane.b32.xlu1 %v5563_v53, %s13412_s17  ;;  %v5353_v17 = vpop.permute.xlu1 %5352  ;;  %v5277_v53 = vrot.slane %v5021_v46, %v14118_v44  ;;  %v5567_v13 = vmax.f32 %v5503_v25, 0.0  ;;  %v17928_v25 = vld [vmem:[#allocation83_spill] sm:$0xff]  ;;  %12833 = vmatpush3.msra.mxu0 %v6387_v50  ;;  %v17931_v50 = vld [vmem:[#allocation89_spill] sm:$0xff] }
 0x621   :  { %5398 = vrot.lane.b32.xlu0 %v5265_v52, %s13411_s5  ;;  %v15643_v29 = vpop.permute.xlu0 %5370  ;;  %v5504_v52 = vadd.f32 %v5347_v39, %v17923_v4 }
 0x623   :  { %5400 = vrot.lane.b32.xlu1 %v5269_v6, %s13411_s5  ;;  %v15649_v11 = vpop.permute.xlu1 %5372  ;;  %v5505_v6 = vadd.f32 %v5349_v40, %v17924_v58 }
 0x625   :  { %5737 = vrot.lane.b32.xlu0 %v5564_v9, %s13412_s17  ;;  %v5568_v9 = vmax.f32 %v5504_v52, 0.0  ;;  %v5355_v31 = vpop.permute.xlu0 %5354  ;;  %v5569_v46 = vmax.f32 %v5505_v6, 0.0 }
 0x627   :  { %5739 = vrot.lane.b32.xlu1 %v5565_v32, %s13412_s17  ;;  %v17925_v32 = vld [vmem:[#allocation77_spill] sm:$0xff]  ;;  %v5357_v2 = vpop.permute.xlu1 %5356 }
 0x628   :  { %v5506_v37 = vadd.f32 %v5351_v56, %v17925_v32  ;;  %v5509_v52 = vadd.f32 %v5357_v2, %v17928_v25  ;;  %v17934_v25 = vld [vmem:[#allocation95_spill] sm:$0xff] }
 0x629   :  { %5402 = vrot.lane.b32.xlu0 %v5273_v36, %s13411_s5  ;;  %v17926_v36 = vld [vmem:[#allocation79_spill] sm:$0xff] }
 0x62a   :  { %v5507_v39 = vadd.f32 %v5353_v17, %v17926_v36  ;;  %v5570_v4 = vmax.f32 %v5506_v37, 0.0  ;;  %v5573_v6 = vmax.f32 %v5509_v52, 0.0  ;;  %v6385_v52 = vld [vmem:[%s17916_s21 + $0x18] sm:$0xff] }
 0x62b   :  { %5404 = vrot.lane.b32.xlu1 %v5277_v53, %s13411_s5  ;;  %v5508_v53 = vadd.f32 %v5355_v31, %v17927_v60 }
 0x62c   :  { %v5571_v40 = vmax.f32 %v5507_v39, 0.0  ;;  %v17932_v39 = vld [vmem:[#allocation91_spill] sm:$0xff] }
 0x62d   :  { %5741 = vrot.lane.b32.xlu0 %v5566_v16, %s13412_s17  ;;  %v5572_v56 = vmax.f32 %v5508_v53, 0.0  ;;  %v17929_v16 = vld [vmem:[#allocation85_spill] sm:$0xff]  ;;  %v5513_v53 = vadd.f32 %v15610_v48, %v17932_v39  ;;  %v5515_v48 = vadd.f32 %v15623_v3, %v17934_v25 }
 0x62e   :  { %v5510_v17 = vadd.f32 %v15589_v23, %v17929_v16 }
 0x62f   :  { %5743 = vrot.lane.b32.xlu1 %v5567_v13, %s13412_s17 }
 0x630   :  { %v5574_v31 = vmax.f32 %v5510_v17, 0.0  ;;  %v17933_v17 = vld [vmem:[#allocation93_spill] sm:$0xff] }
 0x631   :  { %5745 = vrot.lane.b32.xlu0 %v5568_v9, %s13412_s17  ;;  %v17930_v9 = vld [vmem:[#allocation87_spill] sm:$0xff] }
 0x632   :  { %v5511_v37 = vadd.f32 %v15593_v7, %v17930_v9 }
 0x633   :  { %5747 = vrot.lane.b32.xlu1 %v5569_v46, %s13412_s17 }
 0x634   :  { %v5575_v46 = vmax.f32 %v5511_v37, 0.0  ;;  %v6384_v37 = vld [vmem:[%s17916_s21 + $0x10] sm:$0xff] }
 0x635   :  { %5749 = vrot.lane.b32.xlu0 %v5570_v4, %s13412_s17  ;;  %v5512_v4 = vadd.f32 %v15605_v59, %v17931_v50  ;;  %v5514_v59 = vadd.f32 %v15616_v10, %v17933_v17 }
 0x637   :  { %5751 = vrot.lane.b32.xlu1 %v5571_v40, %s13412_s17  ;;  %v5694_v13 = vpop.permute.xlu0 %5693  ;;  %v6386_v40 = vld [vmem:[%s17916_s21 + $0x20] sm:$0xff] }
 0x638   :  { %12834 = vmatprep.subr.mxu0 %v6386_v40 }
 0x639   :  { %5753 = vrot.lane.b32.xlu0 %v5572_v56, %s13412_s17  ;;  %v5696_v2 = vpop.permute.xlu1 %5695  ;;  %v5576_v56 = vmax.f32 %v5512_v4, 0.0  ;;  %12835 = vmatpush3.msra.mxu0 %v6386_v40  ;;  %v17935_v4 = vld [vmem:[#allocation97_spill] sm:$0xff]  ;;  %v17936_v40 = vld [vmem:[#allocation99_spill] sm:$0xff] }
 0x63a   :  { %12836 = vmatprep.subr.mxu0 %v6385_v52  ;;  %v5516_v60 = vadd.f32 %v15643_v29, %v17935_v4 }
 0x63b   :  { %5755 = vrot.lane.b32.xlu1 %v5573_v6, %s13412_s17  ;;  %v5678_v23 = vpop.permute.xlu0 %5677  ;;  %12837 = vmatpush3.msra.mxu0 %v6385_v52 }
 0x63c   :  { %12732 = vmatprep.mubr.msk.f32.mxu1 %vm755_vm4, %v5678_v23  ;;  %v5577_v23 = vmax.f32 %v5513_v53, 0.0  ;;  %12838 = vmatprep.subr.mxu0 %v6384_v37  ;;  %v5517_v53 = vadd.f32 %v15649_v11, %v17936_v40 }
 0x63d   :  { %5757 = vrot.lane.b32.xlu0 %v5574_v31, %s13412_s17  ;;  %v5680_v7 = vpop.permute.xlu1 %5679  ;;  %12839 = vmatpush3.msra.mxu0 %v6384_v37 }
 0x63e   :  { %12733 = vmatmul.mubr.msk.f32.vlgmr.msra.gmra.mxu1 %vm755_vm4, %v5680_v7  ;;  %v5578_v7 = vmax.f32 %v5514_v59, 0.0  ;;  %v5581_v59 = vmax.f32 %v5517_v53, 0.0 }
 0x63f   :  { %5759 = vrot.lane.b32.xlu1 %v5575_v46, %s13412_s17  ;;  %v5698_v6 = vpop.permute.xlu0 %5697  ;;  %v5579_v46 = vmax.f32 %v5515_v48, 0.0 }
 0x641   :  { %5761 = vrot.lane.b32.xlu0 %v5576_v56, %s13412_s17  ;;  %v5700_v31 = vpop.permute.xlu1 %5699  ;;  %v5580_v56 = vmax.f32 %v5516_v60, 0.0 }
 0x643   :  { %5763 = vrot.lane.b32.xlu1 %v5577_v23, %s13412_s17  ;;  %v5702_v10 = vpop.permute.xlu0 %5701 }
 0x645   :  { %5765 = vrot.lane.b32.xlu0 %v5578_v7, %s13412_s17  ;;  %v5704_v3 = vpop.permute.xlu1 %5703 }
 0x647   :  { %5767 = vrot.lane.b32.xlu1 %v5579_v46, %s13412_s17  ;;  %v5682_v52 = vpop.permute.xlu0 %5681 }
 0x648   :  { %12735 = vmatprep.mubr.msk.f32.mxu1 %vm755_vm4, %v5682_v52 }
 0x649   :  { %5769 = vrot.lane.b32.xlu0 %v5580_v56, %s13412_s17  ;;  %v5684_v29 = vpop.permute.xlu1 %5683 }
 0x64a   :  { %12736 = vmatmul.mubr.msk.f32.gmra.mxu1 %vm755_vm4, %v5684_v29 }
 0x64b   :  { %5771 = vrot.lane.b32.xlu1 %v5581_v59, %s13412_s17  ;;  %v5686_v37 = vpop.permute.xlu0 %5685 }
 0x64c   :  { %12738 = vmatprep.mubr.msk.f32.mxu1 %vm755_vm4, %v5686_v37  ;;  %v6383_v37 = vld [vmem:[%s17916_s21 + $0x8] sm:$0xff] }
 0x64d   :  { %v5688_v11 = vpop.permute.xlu1 %5687  ;;  %12840 = vmatprep.subr.mxu0 %v6383_v37 }
 0x64e   :  { %12739 = vmatmul.mubr.msk.f32.gmra.mxu1 %vm755_vm4, %v5688_v11  ;;  %12841 = vmatpush3.msra.mxu0 %v6383_v37 }
 0x64f   :  { %v5706_v60 = vpop.permute.xlu0 %5705 }
 0x651   :  { %v5708_v23 = vpop.permute.xlu1 %5707 }
 0x653   :  { %v5690_v48 = vpop.permute.xlu0 %5689 }
 0x654   :  { %12741 = vmatprep.mubr.msk.f32.mxu1 %vm755_vm4, %v5690_v48  ;;  %v17937_v48 = vld [vmem:[#allocation101_spill] sm:$0xff] }
 0x655   :  { %v5692_v7 = vpop.permute.xlu1 %5691 }
 0x656   :  { %12742 = vmatmul.mubr.msk.f32.gmra.mxu1 %vm755_vm4, %v5692_v7 }
 0x657   :  { %v5726_v46 = vpop.permute.xlu0 %5725  ;;  %12744 = vmatprep.mubr.msk.f32.mxu1 %vm755_vm4, %v5694_v13 }
 0x659   :  { %v5728_v53 = vpop.permute.xlu1 %5727 }
 0x65a   :  { %12745 = vmatmul.mubr.msk.f32.gmra.mxu1 %vm755_vm4, %v5696_v2 }
 0x65b   :  { %v5710_v56 = vpop.permute.xlu0 %5709  ;;  %12747 = vmatprep.mubr.msk.f32.mxu1 %vm755_vm4, %v5698_v6 }
 0x65d   :  { %v5712_v52 = vpop.permute.xlu1 %5711 }
 0x65e   :  { %12748 = vmatmul.mubr.msk.f32.gmra.mxu1 %vm755_vm4, %v5700_v31 }
 0x65f   :  { %12750 = vmatprep.mubr.msk.f32.mxu1 %vm755_vm4, %v5702_v10  ;;  %v5730_v59 = vpop.permute.xlu0 %5729 }
 0x661   :  { %v5732_v29 = vpop.permute.xlu1 %5731 }
 0x662   :  { %12751 = vmatmul.mubr.msk.f32.gmra.mxu1 %vm755_vm4, %v5704_v3 }
 0x663   :  { %12753 = vmatprep.mubr.msk.f32.mxu1 %vm755_vm4, %v5706_v60 }
 0x666   :  { %12754 = vmatmul.mubr.msk.f32.gmra.mxu1 %vm755_vm4, %v5708_v23 }
 0x667   :  { %v5714_v13 = vpop.permute.xlu0 %5713  ;;  %12756 = vmatprep.mubr.msk.f32.mxu1 %vm755_vm4, %v5710_v56 }
 0x669   :  { %v5716_v2 = vpop.permute.xlu1 %5715 }
 0x66a   :  { %12757 = vmatmul.mubr.msk.f32.gmra.mxu1 %vm755_vm4, %v5712_v52 }
 0x66b   :  { %12759 = vmatprep.mubr.msk.f32.mxu1 %vm755_vm4, %v5714_v13  ;;  %v5718_v6 = vpop.permute.xlu0 %5717  ;;  %v17938_v13 = vld [vmem:[#allocation103_spill] sm:$0xff] }
 0x66d   :  { %v5720_v31 = vpop.permute.xlu1 %5719 }
 0x66e   :  { %12760 = vmatmul.mubr.msk.f32.gmra.mxu1 %vm755_vm4, %v5716_v2 }
 0x66f   :  { %12762 = vmatprep.mubr.msk.f32.mxu1 %vm755_vm4, %v5718_v6 }
 0x672   :  { %12763 = vmatmul.mubr.msk.f32.gmra.mxu1 %vm755_vm4, %v5720_v31 }
 0x673   :  { %v5722_v10 = vpop.permute.xlu0 %5721 }
 0x674   :  { %12765 = vmatprep.mubr.msk.f32.mxu1 %vm755_vm4, %v5722_v10  ;;  %v17939_v10 = vld [vmem:[#allocation105_spill] sm:$0xff] }
 0x675   :  { %v5724_v3 = vpop.permute.xlu1 %5723 }
 0x676   :  { %12766 = vmatmul.mubr.msk.f32.gmra.mxu1 %vm755_vm4, %v5724_v3 }
 0x677   :  { %v5391_v11 = vpop.permute.xlu0 %5390  ;;  %12768 = vmatprep.mubr.msk.f32.mxu1 %vm755_vm4, %v5726_v46 }
 0x679   :  { %v5393_v60 = vpop.permute.xlu1 %5392 }
 0x67a   :  { %12769 = vmatmul.mubr.msk.f32.gmra.mxu1 %vm755_vm4, %v5728_v53 }
 0x67b   :  { %v5375_v23 = vpop.permute.xlu0 %5374  ;;  %12771 = vmatprep.mubr.msk.f32.mxu1 %vm755_vm4, %v5730_v59 }
 0x67c   :  { %v5518_v7 = vadd.f32 %v5375_v23, %v17937_v48  ;;  %v17940_v23 = vld [vmem:[#allocation107_spill] sm:$0xff] }
 0x67d   :  { %v5377_v56 = vpop.permute.xlu1 %5376 }
 0x67e   :  { %v5582_v52 = vmax.f32 %v5518_v7, 0.0  ;;  %v5519_v2 = vadd.f32 %v5377_v56, %v17938_v13  ;;  %12772 = vmatmul.mubr.msk.f32.gmra.mxu1 %vm755_vm4, %v5732_v29  ;;  %v17941_v56 = vld [vmem:[#allocation109_spill] sm:$0xff] }
 0x67f   :  { %v5395_v6 = vpop.permute.xlu0 %5394 }
 0x680   :  { %v5583_v31 = vmax.f32 %v5519_v2, 0.0  ;;  %5773 = vrot.lane.b32.xlu0 %v5582_v52, %s13412_s17  ;;  %v6382_v2 = vld [vmem:[%s17916_s21] sm:$0xff]  ;;  %v17942_v52 = vld [vmem:[#allocation111_spill] sm:$0xff] }
 0x681   :  { %v5397_v46 = vpop.permute.xlu1 %5396  ;;  %12842 = vmatprep.subr.mxu0 %v6382_v2 }
 0x682   :  { %5775 = vrot.lane.b32.xlu1 %v5583_v31, %s13412_s17  ;;  %12843 = vmatpush3.msra.mxu0 %v6382_v2 }
 0x683   :  { %v5379_v53 = vpop.permute.xlu0 %5378 }
 0x684   :  { %v5520_v3 = vadd.f32 %v5379_v53, %v17939_v10 }
 0x685   :  { %v5381_v59 = vpop.permute.xlu1 %5380 }
 0x686   :  { %v5584_v37 = vmax.f32 %v5520_v3, 0.0  ;;  %v5521_v48 = vadd.f32 %v5381_v59, %v17940_v23  ;;  %v17943_v3 = vld [vmem:[#allocation113_spill] sm:$0xff] }
 0x687   :  { %v5383_v7 = vpop.permute.xlu0 %5382  ;;  %v17944_v59 = vld [vmem:[#allocation117_spill] sm:$0xff] }
 0x688   :  { %v5585_v40 = vmax.f32 %v5521_v48, 0.0  ;;  %v5522_v13 = vadd.f32 %v5383_v7, %v17941_v56  ;;  %5777 = vrot.lane.b32.xlu0 %v5584_v37, %s13412_s17  ;;  %v5526_v7 = vadd.f32 %v5391_v11, %v17944_v59  ;;  %v17945_v37 = vld [vmem:[#allocation115_spill] sm:$0xff] }
 0x689   :  { %v5385_v29 = vpop.permute.xlu1 %5384 }
 0x68a   :  { %v5586_v36 = vmax.f32 %v5522_v13, 0.0  ;;  %v5523_v58 = vadd.f32 %v5385_v29, %v17942_v52  ;;  %5779 = vrot.lane.b32.xlu1 %v5585_v40, %s13412_s17  ;;  %v17946_v29 = vld [vmem:[#allocation119_spill] sm:$0xff]  ;;  %v5590_v2 = vmax.f32 %v5526_v7, 0.0 }
 0x68b   :  { %v5387_v31 = vpop.permute.xlu0 %5386  ;;  %v5527_v52 = vadd.f32 %v5393_v60, %v17946_v29 }
 0x68c   :  { %v5587_v53 = vmax.f32 %v5523_v58, 0.0  ;;  %v5524_v10 = vadd.f32 %v5387_v31, %v17943_v3  ;;  %5781 = vrot.lane.b32.xlu0 %v5586_v36, %s13412_s17  ;;  %v17947_v31 = vld [vmem:[#allocation121_spill] sm:$0xff]  ;;  %v17950_v3 = vld [vmem:[#allocation127_spill] sm:$0xff] }
 0x68d   :  { %v5389_v48 = vpop.permute.xlu1 %5388  ;;  %v5528_v36 = vadd.f32 %v5395_v6, %v17947_v31 }
 0x68e   :  { %v5588_v23 = vmax.f32 %v5524_v10, 0.0  ;;  %v5525_v56 = vadd.f32 %v5389_v48, %v17945_v37  ;;  %5783 = vrot.lane.b32.xlu1 %v5587_v53, %s13412_s17  ;;  %v5591_v10 = vmax.f32 %v5527_v52, 0.0  ;;  %v17948_v48 = vld [vmem:[#allocation123_spill] sm:$0xff]  ;;  %v17949_v37 = vld [vmem:[#allocation125_spill] sm:$0xff] }
 0x68f   :  { %v5734_v13 = vpop.permute.xlu0 %5733  ;;  %v5529_v53 = vadd.f32 %v5397_v46, %v17948_v48 }
 0x690   :  { %v5589_v40 = vmax.f32 %v5525_v56, 0.0  ;;  %5785 = vrot.lane.b32.xlu0 %v5588_v23, %s13412_s17  ;;  %12774 = vmatprep.mubr.msk.f32.mxu1 %vm755_vm4, %v5734_v13  ;;  %v5592_v56 = vmax.f32 %v5528_v36, 0.0 }
 0x691   :  { %v5736_v58 = vpop.permute.xlu1 %5735  ;;  %v5593_v7 = vmax.f32 %v5529_v53, 0.0  ;;  %v17952_v53 = vld [vmem:[#allocation131_spill] sm:$0xff] }
 0x692   :  { %5787 = vrot.lane.b32.xlu1 %v5589_v40, %s13412_s17  ;;  %12775 = vmatmul.mubr.msk.f32.gmra.mxu1 %vm755_vm4, %v5736_v58 }
 0x693   :  { %v5399_v11 = vpop.permute.xlu0 %5398 }
 0x694   :  { %5789 = vrot.lane.b32.xlu0 %v5590_v2, %s13412_s17  ;;  %v5530_v23 = vadd.f32 %v5399_v11, %v17949_v37  ;;  %v17951_v2 = vld [vmem:[#allocation129_spill] sm:$0xff] }
 0x695   :  { %v5401_v60 = vpop.permute.xlu1 %5400 }
 0x696   :  { %5791 = vrot.lane.b32.xlu1 %v5591_v10, %s13412_s17  ;;  %v5531_v6 = vadd.f32 %v5401_v60, %v17950_v3  ;;  %v5594_v52 = vmax.f32 %v5530_v23, 0.0 }
 0x697   :  { %v5738_v13 = vpop.permute.xlu0 %5737 }
 0x698   :  { %5793 = vrot.lane.b32.xlu0 %v5592_v56, %s13412_s17  ;;  %12777 = vmatprep.mubr.msk.f32.mxu1 %vm755_vm4, %v5738_v13  ;;  %v5595_v58 = vmax.f32 %v5531_v6, 0.0 }
 0x699   :  { %v5740_v40 = vpop.permute.xlu1 %5739 }
 0x69a   :  { %5795 = vrot.lane.b32.xlu1 %v5593_v7, %s13412_s17  ;;  %12778 = vmatmul.mubr.msk.f32.gmra.mxu1 %vm755_vm4, %v5740_v40 }
 0x69b   :  { %v5403_v46 = vpop.permute.xlu0 %5402 }
 0x69c   :  { %v5532_v36 = vadd.f32 %v5403_v46, %v17951_v2  ;;  %5797 = vrot.lane.b32.xlu0 %v5594_v52, %s13412_s17 }
 0x69d   :  { %v5405_v11 = vpop.permute.xlu1 %5404 }
 0x69e   :  { %v5596_v10 = vmax.f32 %v5532_v36, 0.0  ;;  %v5533_v60 = vadd.f32 %v5405_v11, %v17952_v53  ;;  %5799 = vrot.lane.b32.xlu1 %v5595_v58, %s13412_s17 }
 0x69f   :  { %v5742_v56 = vpop.permute.xlu0 %5741 }
 0x6a0   :  { %v5597_v13 = vmax.f32 %v5533_v60, 0.0  ;;  %5801 = vrot.lane.b32.xlu0 %v5596_v10, %s13412_s17  ;;  %12780 = vmatprep.mubr.msk.f32.mxu1 %vm755_vm4, %v5742_v56 }
 0x6a1   :  { %v5744_v23 = vpop.permute.xlu1 %5743 }
 0x6a2   :  { %5803 = vrot.lane.b32.xlu1 %v5597_v13, %s13412_s17  ;;  %12781 = vmatmul.mubr.msk.f32.gmra.mxu1 %vm755_vm4, %v5744_v23 }
 0x6a3   :  { %v5746_v7 = vpop.permute.xlu0 %5745 }
 0x6a4   :  { %12783 = vmatprep.mubr.msk.f32.mxu1 %vm755_vm4, %v5746_v7 }
 0x6a5   :  { %v5748_v6 = vpop.permute.xlu1 %5747 }
 0x6a6   :  { %12784 = vmatmul.mubr.msk.f32.gmra.mxu1 %vm755_vm4, %v5748_v6 }
 0x6a7   :  { %v5750_v40 = vpop.permute.xlu0 %5749 }
 0x6a8   :  { %12786 = vmatprep.mubr.msk.f32.mxu1 %vm755_vm4, %v5750_v40 }
 0x6a9   :  { %v5752_v52 = vpop.permute.xlu1 %5751 }
 0x6aa   :  { %12787 = vmatmul.mubr.msk.f32.gmra.mxu1 %vm755_vm4, %v5752_v52 }
 0x6ab   :  { %v5754_v46 = vpop.permute.xlu0 %5753 }
 0x6ac   :  { %12789 = vmatprep.mubr.msk.f32.mxu1 %vm755_vm4, %v5754_v46 }
 0x6ad   :  { %v5756_v58 = vpop.permute.xlu1 %5755 }
 0x6ae   :  { %12790 = vmatmul.mubr.msk.f32.gmra.mxu1 %vm755_vm4, %v5756_v58  ;;  %v15780_v58 = vld [vmem:[%s17953_s25] ss:$0 sm:$0xff] }
 0x6af   :  { %v5758_v36 = vpop.permute.xlu0 %5757 }
 0x6b0   :  { %12792 = vmatprep.mubr.msk.f32.mxu1 %vm755_vm4, %v5758_v36 }
 0x6b1   :  { %v5760_v11 = vpop.permute.xlu1 %5759 }
 0x6b2   :  { %12793 = vmatmul.mubr.msk.f32.gmra.mxu1 %vm755_vm4, %v5760_v11 }
 0x6b3   :  { %v5762_v10 = vpop.permute.xlu0 %5761 }
 0x6b4   :  { %12795 = vmatprep.mubr.msk.f32.mxu1 %vm755_vm4, %v5762_v10 }
 0x6b5   :  { %v5764_v60 = vpop.permute.xlu1 %5763 }
 0x6b6   :  { %12796 = vmatmul.mubr.msk.f32.gmra.mxu1 %vm755_vm4, %v5764_v60 }
 0x6b7   :  { %v5766_v56 = vpop.permute.xlu0 %5765 }
 0x6b8   :  { %12798 = vmatprep.mubr.msk.f32.mxu1 %vm755_vm4, %v5766_v56 }
 0x6b9   :  { %v5768_v13 = vpop.permute.xlu1 %5767 }
 0x6ba   :  { %12799 = vmatmul.mubr.msk.f32.gmra.mxu1 %vm755_vm4, %v5768_v13 }
 0x6bb   :  { %v5770_v23 = vpop.permute.xlu0 %5769 }
 0x6bc   :  { %12801 = vmatprep.mubr.msk.f32.mxu1 %vm755_vm4, %v5770_v23 }
 0x6bd   :  { %v5772_v7 = vpop.permute.xlu1 %5771 }
 0x6be   :  { %12802 = vmatmul.mubr.msk.f32.gmra.mxu1 %vm755_vm4, %v5772_v7 }
 0x6f2   :  { %v5774_v6 = vpop.permute.xlu0 %5773 }
 0x6f3   :  { %12804 = vmatprep.mubr.msk.f32.mxu1 %vm755_vm4, %v5774_v6 }
 0x6f4   :  { %v5776_v40 = vpop.permute.xlu1 %5775 }
 0x6f5   :  { %12805 = vmatmul.mubr.msk.f32.gmra.mxu1 %vm755_vm4, %v5776_v40 }
 0x6fa   :  { %v5778_v52 = vpop.permute.xlu0 %5777 }
 0x6fb   :  { %12807 = vmatprep.mubr.msk.f32.mxu1 %vm755_vm4, %v5778_v52 }
 0x6fc   :  { %v5780_v46 = vpop.permute.xlu1 %5779 }
 0x6fd   :  { %12808 = vmatmul.mubr.msk.f32.gmra.mxu1 %vm755_vm4, %v5780_v46 }
 0x6fe   :  { %v5782_v36 = vpop.permute.xlu0 %5781  ;;  %v12734_v11 = vpop.f32.mrf.mxu1 }
 0x6ff   :  { %12810 = vmatprep.mubr.msk.f32.mxu1 %vm755_vm4, %v5782_v36  ;;  %v6005_v60 = vadd.f32 %v12734_v11, %v15780_v58 }
 0x700   :  { %v5784_v10 = vpop.permute.xlu1 %5783  ;;  %v5999_v56 = vpop.f32.mrf.mxu1 }
 0x701   :  { %12811 = vmatmul.mubr.msk.f32.gmra.mxu1 %vm755_vm4, %v5784_v10  ;;  %v6000_v13 = vadd.f32 %v15780_v58, %v5999_v56  ;;  %v6319_v40 = vmax.f32 %v6005_v60, 0.0 }
 0x702   :  { %v5786_v23 = vpop.permute.xlu0 %5785 }
 0x703   :  { %12813 = vmatprep.mubr.msk.f32.mxu1 %vm755_vm4, %v5786_v23  ;;  %v6318_v7 = vmax.f32 %v6000_v13, 0.0 }
 0x704   :  { %v5788_v6 = vpop.permute.xlu1 %5787 }
 0x705   :  { %12814 = vmatmul.mubr.msk.f32.gmra.mxu1 %vm755_vm4, %v5788_v6  ;;  %12844 = vmatprep.mubr.msk.f32.mxu0 %vm755_vm4, %v6318_v7 }
 0x706   :  { %v5790_v52 = vpop.permute.xlu0 %5789  ;;  %12845 = vmatmul.mubr.msk.f32.vlgmr.msra.gmra.mxu0 %vm755_vm4, %v6319_v40 }
 0x707   :  { %12816 = vmatprep.mubr.msk.f32.mxu1 %vm755_vm4, %v5790_v52 }
 0x708   :  { %v5792_v46 = vpop.permute.xlu1 %5791 }
 0x709   :  { %12817 = vmatmul.mubr.msk.f32.gmra.mxu1 %vm755_vm4, %v5792_v46 }
 0x70a   :  { %v5794_v36 = vpop.permute.xlu0 %5793  ;;  %v12737_v11 = vpop.f32.mrf.mxu1 }
 0x70b   :  { %12819 = vmatprep.mubr.msk.f32.mxu1 %vm755_vm4, %v5794_v36  ;;  %v6015_v56 = vadd.f32 %v12737_v11, %v15780_v58 }
 0x70c   :  { %v5796_v10 = vpop.permute.xlu1 %5795  ;;  %v6009_v60 = vpop.f32.mrf.mxu1 }
 0x70d   :  { %12820 = vmatmul.mubr.msk.f32.gmra.mxu1 %vm755_vm4, %v5796_v10  ;;  %v6010_v13 = vadd.f32 %v15780_v58, %v6009_v60  ;;  %v6321_v52 = vmax.f32 %v6015_v56, 0.0 }
 0x70e   :  { %v5798_v23 = vpop.permute.xlu0 %5797  ;;  %v12740_v7 = vpop.f32.mrf.mxu1 }
 0x70f   :  { %12822 = vmatprep.mubr.msk.f32.mxu1 %vm755_vm4, %v5798_v23  ;;  %v6320_v6 = vmax.f32 %v6010_v13, 0.0  ;;  %v6025_v46 = vadd.f32 %v12740_v7, %v15780_v58 }
 0x710   :  { %v5800_v40 = vpop.permute.xlu1 %5799  ;;  %v6019_v53 = vpop.f32.mrf.mxu1 }
 0x711   :  { %12823 = vmatmul.mubr.msk.f32.gmra.mxu1 %vm755_vm4, %v5800_v40  ;;  %v6020_v36 = vadd.f32 %v15780_v58, %v6019_v53  ;;  %12847 = vmatprep.mubr.msk.f32.mxu0 %vm755_vm4, %v6320_v6  ;;  %v6323_v23 = vmax.f32 %v6025_v46, 0.0 }
 0x712   :  { %v5802_v11 = vpop.permute.xlu0 %5801  ;;  %12848 = vmatmul.mubr.msk.f32.gmra.mxu0 %vm755_vm4, %v6321_v52 }
 0x713   :  { %12825 = vmatprep.mubr.msk.f32.mxu1 %vm755_vm4, %v5802_v11  ;;  %v6322_v10 = vmax.f32 %v6020_v36, 0.0 }
 0x714   :  { %v5804_v60 = vpop.permute.xlu1 %5803 }
 0x715   :  { %12826 = vmatmul.mubr.msk.f32.gmra.mxu1 %vm755_vm4, %v5804_v60  ;;  %12850 = vmatprep.mubr.msk.f32.mxu0 %vm755_vm4, %v6322_v10 }
 0x716   :  { %v12743_v56 = vpop.f32.mrf.mxu1  ;;  %12851 = vmatmul.mubr.msk.f32.gmra.mxu0 %vm755_vm4, %v6323_v23 }
 0x717   :  { %v6035_v13 = vadd.f32 %v12743_v56, %v15780_v58 }
 0x718   :  { %v6029_v53 = vpop.f32.mrf.mxu1 }
 0x719   :  { %v6030_v7 = vadd.f32 %v15780_v58, %v6029_v53  ;;  %v6325_v52 = vmax.f32 %v6035_v13, 0.0 }
 0x71a   :  { %v12746_v6 = vpop.f32.mrf.mxu1 }
 0x71b   :  { %v6324_v40 = vmax.f32 %v6030_v7, 0.0  ;;  %v6045_v11 = vadd.f32 %v12746_v6, %v15780_v58 }
 0x71c   :  { %v6039_v36 = vpop.f32.mrf.mxu1 }
 0x71d   :  { %v6040_v46 = vadd.f32 %v15780_v58, %v6039_v36  ;;  %12853 = vmatprep.mubr.msk.f32.mxu0 %vm755_vm4, %v6324_v40  ;;  %v6327_v23 = vmax.f32 %v6045_v11, 0.0 }
 0x71e   :  { %v12749_v60 = vpop.f32.mrf.mxu1  ;;  %12854 = vmatmul.mubr.msk.f32.gmra.mxu0 %vm755_vm4, %v6325_v52 }
 0x71f   :  { %v6326_v10 = vmax.f32 %v6040_v46, 0.0  ;;  %v6055_v56 = vadd.f32 %v12749_v60, %v15780_v58 }
 0x720   :  { %v6049_v2 = vpop.f32.mrf.mxu1 }
 0x721   :  { %v6050_v53 = vadd.f32 %v15780_v58, %v6049_v2  ;;  %12856 = vmatprep.mubr.msk.f32.mxu0 %vm755_vm4, %v6326_v10  ;;  %v6329_v6 = vmax.f32 %v6055_v56, 0.0 }
 0x722   :  { %v12752_v13 = vpop.f32.mrf.mxu1  ;;  %12857 = vmatmul.mubr.msk.f32.gmra.mxu0 %vm755_vm4, %v6327_v23 }
 0x723   :  { %v6328_v7 = vmax.f32 %v6050_v53, 0.0  ;;  %v6065_v36 = vadd.f32 %v12752_v13, %v15780_v58 }
 0x724   :  { %v6059_v40 = vpop.f32.mrf.mxu1 }
 0x725   :  { %v6060_v3 = vadd.f32 %v15780_v58, %v6059_v40  ;;  %12859 = vmatprep.mubr.msk.f32.mxu0 %vm755_vm4, %v6328_v7  ;;  %v6331_v46 = vmax.f32 %v6065_v36, 0.0 }
 0x726   :  { %v12755_v52 = vpop.f32.mrf.mxu1  ;;  %12860 = vmatmul.mubr.msk.f32.gmra.mxu0 %vm755_vm4, %v6329_v6 }
 0x727   :  { %v6330_v11 = vmax.f32 %v6060_v3, 0.0  ;;  %v6075_v2 = vadd.f32 %v12755_v52, %v15780_v58 }
 0x728   :  { %v6069_v60 = vpop.f32.mrf.mxu1 }
 0x729   :  { %v6070_v10 = vadd.f32 %v15780_v58, %v6069_v60  ;;  %12862 = vmatprep.mubr.msk.f32.mxu0 %vm755_vm4, %v6330_v11  ;;  %v6333_v53 = vmax.f32 %v6075_v2, 0.0 }
 0x72a   :  { %v12758_v23 = vpop.f32.mrf.mxu1  ;;  %12863 = vmatmul.mubr.msk.f32.gmra.mxu0 %vm755_vm4, %v6331_v46 }
 0x72b   :  { %v6332_v56 = vmax.f32 %v6070_v10, 0.0  ;;  %v6085_v13 = vadd.f32 %v12758_v23, %v15780_v58 }
 0x72c   :  { %v6079_v7 = vpop.f32.mrf.mxu1 }
 0x72d   :  { %v6080_v40 = vadd.f32 %v15780_v58, %v6079_v7  ;;  %12865 = vmatprep.mubr.msk.f32.mxu0 %vm755_vm4, %v6332_v56  ;;  %v6335_v36 = vmax.f32 %v6085_v13, 0.0 }
 0x72e   :  { %v12761_v3 = vpop.f32.mrf.mxu1  ;;  %12866 = vmatmul.mubr.msk.f32.gmra.mxu0 %vm755_vm4, %v6333_v53 }
 0x72f   :  { %v6334_v6 = vmax.f32 %v6080_v40, 0.0  ;;  %v6095_v52 = vadd.f32 %v12761_v3, %v15780_v58 }
 0x730   :  { %v6089_v11 = vpop.f32.mrf.mxu1 }
 0x731   :  { %v6090_v60 = vadd.f32 %v15780_v58, %v6089_v11  ;;  %12868 = vmatprep.mubr.msk.f32.mxu0 %vm755_vm4, %v6334_v6  ;;  %v6337_v10 = vmax.f32 %v6095_v52, 0.0 }
 0x732   :  { %v12764_v46 = vpop.f32.mrf.mxu1  ;;  %12869 = vmatmul.mubr.msk.f32.gmra.mxu0 %vm755_vm4, %v6335_v36 }
 0x733   :  { %v6336_v2 = vmax.f32 %v6090_v60, 0.0  ;;  %v6105_v23 = vadd.f32 %v12764_v46, %v15780_v58 }
 0x734   :  { %v6099_v56 = vpop.f32.mrf.mxu1 }
 0x735   :  { %v6100_v7 = vadd.f32 %v15780_v58, %v6099_v56  ;;  %12871 = vmatprep.mubr.msk.f32.mxu0 %vm755_vm4, %v6336_v2  ;;  %v6339_v40 = vmax.f32 %v6105_v23, 0.0 }
 0x736   :  { %v12767_v53 = vpop.f32.mrf.mxu1  ;;  %12872 = vmatmul.mubr.msk.f32.gmra.mxu0 %vm755_vm4, %v6337_v10 }
 0x737   :  { %v6338_v13 = vmax.f32 %v6100_v7, 0.0  ;;  %v6115_v3 = vadd.f32 %v12767_v53, %v15780_v58 }
 0x738   :  { %v6109_v6 = vpop.f32.mrf.mxu1 }
 0x739   :  { %v6110_v11 = vadd.f32 %v15780_v58, %v6109_v6  ;;  %12874 = vmatprep.mubr.msk.f32.mxu0 %vm755_vm4, %v6338_v13  ;;  %v6341_v60 = vmax.f32 %v6115_v3, 0.0 }
 0x73a   :  { %v12770_v36 = vpop.f32.mrf.mxu1  ;;  %12875 = vmatmul.mubr.msk.f32.gmra.mxu0 %vm755_vm4, %v6339_v40 }
 0x73b   :  { %v6340_v52 = vmax.f32 %v6110_v11, 0.0  ;;  %v6125_v46 = vadd.f32 %v12770_v36, %v15780_v58 }
 0x73c   :  { %v6119_v2 = vpop.f32.mrf.mxu1 }
 0x73d   :  { %v6120_v56 = vadd.f32 %v15780_v58, %v6119_v2  ;;  %12877 = vmatprep.mubr.msk.f32.mxu0 %vm755_vm4, %v6340_v52  ;;  %v6343_v7 = vmax.f32 %v6125_v46, 0.0 }
 0x73e   :  { %v12773_v10 = vpop.f32.mrf.mxu1  ;;  %12878 = vmatmul.mubr.msk.f32.gmra.mxu0 %vm755_vm4, %v6341_v60 }
 0x73f   :  { %v6342_v23 = vmax.f32 %v6120_v56, 0.0  ;;  %v6135_v53 = vadd.f32 %v12773_v10, %v15780_v58 }
 0x740   :  { %v6129_v13 = vpop.f32.mrf.mxu1 }
 0x741   :  { %v6130_v6 = vadd.f32 %v15780_v58, %v6129_v13  ;;  %12880 = vmatprep.mubr.msk.f32.mxu0 %vm755_vm4, %v6342_v23  ;;  %v6345_v3 = vmax.f32 %v6135_v53, 0.0 }
 0x742   :  { %12881 = vmatmul.mubr.msk.f32.gmra.mxu0 %vm755_vm4, %v6343_v7 }
 0x743   :  { %v6344_v40 = vmax.f32 %v6130_v6, 0.0 }
 0x745   :  { %12883 = vmatprep.mubr.msk.f32.mxu0 %vm755_vm4, %v6344_v40 }
 0x746   :  { %12884 = vmatmul.mubr.msk.f32.gmra.mxu0 %vm755_vm4, %v6345_v3 }
 0x752   :  { %v12776_v11 = vpop.f32.mrf.mxu1 }
 0x753   :  { %v6145_v36 = vadd.f32 %v12776_v11, %v15780_v58 }
 0x754   :  { %v6139_v52 = vpop.f32.mrf.mxu1 }
 0x755   :  { %v6140_v60 = vadd.f32 %v15780_v58, %v6139_v52  ;;  %v6347_v2 = vmax.f32 %v6145_v36, 0.0 }
 0x757   :  { %v6346_v46 = vmax.f32 %v6140_v60, 0.0 }
 0x759   :  { %12886 = vmatprep.mubr.msk.f32.mxu0 %vm755_vm4, %v6346_v46 }
 0x75a   :  { %v12779_v56 = vpop.f32.mrf.mxu1  ;;  %12887 = vmatmul.mubr.msk.f32.gmra.mxu0 %vm755_vm4, %v6347_v2 }
 0x75b   :  { %v6155_v10 = vadd.f32 %v12779_v56, %v15780_v58 }
 0x75c   :  { %v6149_v23 = vpop.f32.mrf.mxu1 }
 0x75d   :  { %v6150_v7 = vadd.f32 %v15780_v58, %v6149_v23  ;;  %v6349_v13 = vmax.f32 %v6155_v10, 0.0 }
 0x75f   :  { %v6348_v53 = vmax.f32 %v6150_v7, 0.0 }
 0x761   :  { %12889 = vmatprep.mubr.msk.f32.mxu0 %vm755_vm4, %v6348_v53 }
 0x762   :  { %v12782_v6 = vpop.f32.mrf.mxu1  ;;  %12890 = vmatmul.mubr.msk.f32.gmra.mxu0 %vm755_vm4, %v6349_v13 }
 0x763   :  { %v6165_v40 = vadd.f32 %v12782_v6, %v15780_v58 }
 0x764   :  { %v6159_v3 = vpop.f32.mrf.mxu1 }
 0x765   :  { %v6160_v11 = vadd.f32 %v15780_v58, %v6159_v3  ;;  %v6351_v60 = vmax.f32 %v6165_v40, 0.0 }
 0x766   :  { %v12785_v36 = vpop.f32.mrf.mxu1 }
 0x767   :  { %v6350_v52 = vmax.f32 %v6160_v11, 0.0  ;;  %v6175_v46 = vadd.f32 %v12785_v36, %v15780_v58 }
 0x768   :  { %v6169_v2 = vpop.f32.mrf.mxu1 }
 0x769   :  { %12892 = vmatprep.mubr.msk.f32.mxu0 %vm755_vm4, %v6350_v52  ;;  %v6170_v56 = vadd.f32 %v15780_v58, %v6169_v2  ;;  %v6353_v7 = vmax.f32 %v6175_v46, 0.0 }
 0x76a   :  { %12893 = vmatmul.mubr.msk.f32.gmra.mxu0 %vm755_vm4, %v6351_v60  ;;  %v12788_v10 = vpop.f32.mrf.mxu1 }
 0x76b   :  { %v6352_v23 = vmax.f32 %v6170_v56, 0.0  ;;  %v6185_v53 = vadd.f32 %v12788_v10, %v15780_v58 }
 0x76c   :  { %v6179_v13 = vpop.f32.mrf.mxu1 }
 0x76d   :  { %v6180_v6 = vadd.f32 %v15780_v58, %v6179_v13  ;;  %12895 = vmatprep.mubr.msk.f32.mxu0 %vm755_vm4, %v6352_v23  ;;  %v6355_v11 = vmax.f32 %v6185_v53, 0.0 }
 0x76e   :  { %12896 = vmatmul.mubr.msk.f32.gmra.mxu0 %vm755_vm4, %v6353_v7  ;;  %v12791_v40 = vpop.f32.mrf.mxu1 }
 0x76f   :  { %v6354_v3 = vmax.f32 %v6180_v6, 0.0  ;;  %v6195_v36 = vadd.f32 %v12791_v40, %v15780_v58 }
 0x770   :  { %v6189_v52 = vpop.f32.mrf.mxu1 }
 0x771   :  { %12898 = vmatprep.mubr.msk.f32.mxu0 %vm755_vm4, %v6354_v3  ;;  %v6190_v60 = vadd.f32 %v15780_v58, %v6189_v52  ;;  %v6357_v56 = vmax.f32 %v6195_v36, 0.0 }
 0x772   :  { %12899 = vmatmul.mubr.msk.f32.gmra.mxu0 %vm755_vm4, %v6355_v11  ;;  %v12794_v46 = vpop.f32.mrf.mxu1 }
 0x773   :  { %v6356_v2 = vmax.f32 %v6190_v60, 0.0  ;;  %v6205_v10 = vadd.f32 %v12794_v46, %v15780_v58 }
 0x774   :  { %v6199_v23 = vpop.f32.mrf.mxu1 }
 0x775   :  { %v6200_v7 = vadd.f32 %v15780_v58, %v6199_v23  ;;  %12901 = vmatprep.mubr.msk.f32.mxu0 %vm755_vm4, %v6356_v2  ;;  %v6359_v6 = vmax.f32 %v6205_v10, 0.0 }
 0x776   :  { %v12797_v53 = vpop.f32.mrf.mxu1  ;;  %12902 = vmatmul.mubr.msk.f32.gmra.mxu0 %vm755_vm4, %v6357_v56 }
 0x777   :  { %v6358_v13 = vmax.f32 %v6200_v7, 0.0  ;;  %v6215_v40 = vadd.f32 %v12797_v53, %v15780_v58 }
 0x778   :  { %v6209_v3 = vpop.f32.mrf.mxu1 }
 0x779   :  { %v6210_v11 = vadd.f32 %v15780_v58, %v6209_v3  ;;  %12904 = vmatprep.mubr.msk.f32.mxu0 %vm755_vm4, %v6358_v13  ;;  %v6361_v60 = vmax.f32 %v6215_v40, 0.0 }
 0x77a   :  { %v12800_v36 = vpop.f32.mrf.mxu1  ;;  %12905 = vmatmul.mubr.msk.f32.gmra.mxu0 %vm755_vm4, %v6359_v6 }
 0x77b   :  { %v6360_v52 = vmax.f32 %v6210_v11, 0.0  ;;  %v6225_v46 = vadd.f32 %v12800_v36, %v15780_v58  ;;  %v7788_v11 = vld [vmem:[%s17954_s29 + $0x40] sm:$0x7]  ;;  %v7787_v36 = vld [vmem:[%s17954_s29 + $0x38] sm:$0xff] }
 0x77c   :  { %v6219_v2 = vpop.f32.mrf.mxu1  ;;  %12940 = vmatprep.subr.msk.mxu1 %vm251_vm0, %v7788_v11 }
 0x77d   :  { %v6220_v56 = vadd.f32 %v15780_v58, %v6219_v2  ;;  %12907 = vmatprep.mubr.msk.f32.mxu0 %vm755_vm4, %v6360_v52  ;;  %v6363_v7 = vmax.f32 %v6225_v46, 0.0  ;;  %12941 = vmatpush3.msk.msra.mxu1 %vm251_vm0, %v7788_v11  ;;  %v7786_v52 = vld [vmem:[%s17954_s29 + $0x30] sm:$0xff]  ;;  %vm7796_vm0 = vcmask 547840  }
 0x77e   :  { %v12803_v10 = vpop.f32.mrf.mxu1  ;;  %12908 = vmatmul.mubr.msk.f32.gmra.mxu0 %vm755_vm4, %v6361_v60  ;;  %12942 = vmatprep.subr.mxu1 %v7787_v36 }
 0x77f   :  { %v6362_v23 = vmax.f32 %v6220_v56, 0.0  ;;  %v6235_v53 = vadd.f32 %v12803_v10, %v15780_v58  ;;  %12943 = vmatpush3.msra.mxu1 %v7787_v36 }
 0x780   :  { %v6229_v13 = vpop.f32.mrf.mxu1  ;;  %12944 = vmatprep.subr.mxu1 %v7786_v52 }
 0x781   :  { %v6230_v6 = vadd.f32 %v15780_v58, %v6229_v13  ;;  %12910 = vmatprep.mubr.msk.f32.mxu0 %vm755_vm4, %v6362_v23  ;;  %v6365_v3 = vmax.f32 %v6235_v53, 0.0  ;;  %12945 = vmatpush3.msra.mxu1 %v7786_v52 }
 0x782   :  { %12911 = vmatmul.mubr.msk.f32.gmra.mxu0 %vm755_vm4, %v6363_v7 }
 0x783   :  { %v6364_v40 = vmax.f32 %v6230_v6, 0.0 }
 0x785   :  { %12913 = vmatprep.mubr.msk.f32.mxu0 %vm755_vm4, %v6364_v40 }
 0x786   :  { %12914 = vmatmul.mubr.msk.f32.gmra.mxu0 %vm755_vm4, %v6365_v3 }
 0x7b5   :  { %v12806_v60 = vpop.f32.mrf.mxu1 }
 0x7b6   :  { %v6245_v46 = vadd.f32 %v12806_v60, %v15780_v58 }
 0x7b7   :  { %v6239_v2 = vpop.f32.mrf.mxu1 }
 0x7b8   :  { %v6240_v56 = vadd.f32 %v15780_v58, %v6239_v2  ;;  %v6367_v23 = vmax.f32 %v6245_v46, 0.0  ;;  %v15905_v46 = vld [vmem:[%s17955_s3] ss:$0 sm:$0xff]  ;;  %v7785_v2 = vld [vmem:[%s17954_s29 + $0x28] sm:$0xff] }
 0x7b9   :  { %12946 = vmatprep.subr.mxu1 %v7785_v2 }
 0x7ba   :  { %v6366_v10 = vmax.f32 %v6240_v56, 0.0  ;;  %12947 = vmatpush3.msra.mxu1 %v7785_v2 }
 0x7bc   :  { %12916 = vmatprep.mubr.msk.f32.mxu0 %vm755_vm4, %v6366_v10 }
 0x7bd   :  { %v12809_v7 = vpop.f32.mrf.mxu1  ;;  %12917 = vmatmul.mubr.msk.f32.gmra.mxu0 %vm755_vm4, %v6367_v23 }
 0x7be   :  { %v6255_v53 = vadd.f32 %v12809_v7, %v15780_v58 }
 0x7bf   :  { %v6249_v13 = vpop.f32.mrf.mxu1 }
 0x7c0   :  { %v6250_v6 = vadd.f32 %v15780_v58, %v6249_v13  ;;  %v6369_v11 = vmax.f32 %v6255_v53, 0.0 }
 0x7c1   :  { %v12812_v40 = vpop.f32.mrf.mxu1 }
 0x7c2   :  { %v6368_v3 = vmax.f32 %v6250_v6, 0.0  ;;  %v6265_v36 = vadd.f32 %v12812_v40, %v15780_v58 }
 0x7c3   :  { %v6259_v52 = vpop.f32.mrf.mxu1 }
 0x7c4   :  { %v6260_v60 = vadd.f32 %v15780_v58, %v6259_v52  ;;  %12919 = vmatprep.mubr.msk.f32.mxu0 %vm755_vm4, %v6368_v3  ;;  %v6371_v7 = vmax.f32 %v6265_v36, 0.0  ;;  %v15914_v3 = vld [vmem:[%s17956_s8] ss:$0 sm:$0xff] }
 0x7c5   :  { %v12815_v56 = vpop.f32.mrf.mxu1  ;;  %12920 = vmatmul.mubr.msk.f32.gmra.mxu0 %vm755_vm4, %v6369_v11  ;;  %v15919_v36 = vld [vmem:[%s17957_s14] ss:$0 sm:$0xff] }
 0x7c6   :  { %v6370_v10 = vmax.f32 %v6260_v60, 0.0  ;;  %v12846_v23 = vpop.f32.mrf.mxu0  ;;  %v6275_v53 = vadd.f32 %v12815_v56, %v15780_v58  ;;  %v7784_v56 = vld [vmem:[%s17954_s29 + $0x20] sm:$0xff] }
 0x7c7   :  { %v6269_v13 = vpop.f32.mrf.mxu1  ;;  %v6661_v6 = vadd.f32 %v12846_v23, %v15905_v46  ;;  %12948 = vmatprep.subr.mxu1 %v7784_v56 }
 0x7c8   :  { %v6270_v40 = vadd.f32 %v15780_v58, %v6269_v13  ;;  %12922 = vmatprep.mubr.msk.f32.mxu0 %vm755_vm4, %v6370_v10  ;;  %v6655_v52 = vpop.f32.mrf.mxu0  ;;  %v6373_v48 = vmax.f32 %v6275_v53, 0.0  ;;  %12949 = vmatpush3.msra.mxu1 %v7784_v56 }
 0x7c9   :  { %v12818_v11 = vpop.f32.mrf.mxu1  ;;  %12923 = vmatmul.mubr.msk.f32.gmra.mxu0 %vm755_vm4, %v6371_v7  ;;  %v6975_v60 = vmax.f32 %v6661_v6, 0.0  ;;  %v6656_v37 = vadd.f32 %v15905_v46, %v6655_v52 }
 0x7ca   :  { %v6372_v2 = vmax.f32 %v6270_v40, 0.0  ;;  %v6285_v23 = vadd.f32 %v12818_v11, %v15780_v58 }
 0x7cb   :  { %v6279_v31 = vpop.f32.mrf.mxu1  ;;  %v7046_v13 = vmul.f32 %v15914_v3, %v6975_v60  ;;  %v6974_v10 = vmax.f32 %v6656_v37, 0.0 }
 0x7cc   :  { %v6280_v29 = vadd.f32 %v15780_v58, %v6279_v31  ;;  %12925 = vmatprep.mubr.msk.f32.mxu0 %vm755_vm4, %v6372_v2  ;;  %v6375_v52 = vmax.f32 %v6285_v23, 0.0 }
 0x7cd   :  { %v12821_v7 = vpop.f32.mrf.mxu1  ;;  %12926 = vmatmul.mubr.msk.f32.gmra.mxu0 %vm755_vm4, %v6373_v48  ;;  %v7117_v6 = vadd.f32 %v15919_v36, %v7046_v13  ;;  %v7045_v40 = vmul.f32 %v15914_v3, %v6974_v10 }
 0x7ce   :  { %v6374_v53 = vmax.f32 %v6280_v29, 0.0  ;;  %v6295_v11 = vadd.f32 %v12821_v7, %v15780_v58 }
 0x7cf   :  { %v6289_v59 = vpop.f32.mrf.mxu1  ;;  %v7116_v37 = vadd.f32 %v15919_v36, %v7045_v40  ;;  %v7187_v31 = vsel %vm755_vm4, %v7117_v6, -inf }
 0x7d0   :  { %v6290_v60 = vadd.f32 %v15780_v58, %v6289_v59  ;;  %12928 = vmatprep.mubr.msk.f32.mxu0 %vm755_vm4, %v6374_v53  ;;  %v6377_v23 = vmax.f32 %v6295_v11, 0.0  ;;  %v7188_v4 = vrot.slane %v7187_v31, 4 }
 0x7d1   :  { %v7180_v2 = vsel %vm755_vm4, %v7116_v37, -inf  ;;  %v12824_v48 = vpop.f32.mrf.mxu1  ;;  %12929 = vmatmul.mubr.msk.f32.gmra.mxu0 %vm755_vm4, %v6375_v52 }
 0x7d2   :  { %v6376_v56 = vmax.f32 %v6290_v60, 0.0  ;;  %v7181_v13 = vrot.slane %v7180_v2, 4  ;;  %v12849_v29 = vpop.f32.mrf.mxu0  ;;  %v6305_v10 = vadd.f32 %v12824_v48, %v15780_v58 }
 0x7d3   :  { %v6299_v7 = vpop.f32.mrf.mxu1  ;;  %v6671_v40 = vadd.f32 %v12849_v29, %v15905_v46 }
 0x7d4   :  { %v7182_v59 = vmax.f32 %v7180_v2, %v7181_v13  ;;  %v6300_v53 = vadd.f32 %v15780_v58, %v6299_v7  ;;  %12931 = vmatprep.mubr.msk.f32.mxu0 %vm755_vm4, %v6376_v56  ;;  %v6665_v6 = vpop.f32.mrf.mxu0  ;;  %v6379_v39 = vmax.f32 %v6305_v10, 0.0  ;;  %v7189_v7 = vmax.f32 %v7187_v31, %v7188_v4 }
 0x7d5   :  { %v12827_v37 = vpop.f32.mrf.mxu1  ;;  %12932 = vmatmul.mubr.msk.f32.gmra.mxu0 %vm755_vm4, %v6377_v23  ;;  %v6977_v52 = vmax.f32 %v6671_v40, 0.0  ;;  %v6666_v60 = vadd.f32 %v15905_v46, %v6665_v6 }
 0x7d6   :  { %v6378_v25 = vmax.f32 %v6300_v53, 0.0  ;;  %v6315_v11 = vadd.f32 %v12827_v37, %v15780_v58  ;;  %v12852_v48 = vpop.f32.mrf.mxu0  ;;  %v7183_v56 = vrot.slane %v7182_v59, 2 }
 0x7d7   :  { %v6309_v32 = vpop.f32.mrf.mxu1  ;;  %v7048_v29 = vmul.f32 %v15914_v3, %v6977_v52  ;;  %v6976_v2 = vmax.f32 %v6666_v60, 0.0  ;;  %v6681_v13 = vadd.f32 %v12852_v48, %v15905_v46 }
 0x7d8   :  { %v6310_v17 = vadd.f32 %v15780_v58, %v6309_v32  ;;  %12934 = vmatprep.mubr.msk.f32.mxu0 %vm755_vm4, %v6378_v25  ;;  %v6675_v23 = vpop.f32.mrf.mxu0  ;;  %v6381_v37 = vmax.f32 %v6315_v11, 0.0  ;;  %v7190_v25 = vrot.slane %v7189_v7, 2 }
 0x7d9   :  { %12935 = vmatmul.mubr.msk.f32.gmra.mxu0 %vm755_vm4, %v6379_v39  ;;  %v7119_v40 = vadd.f32 %v15919_v36, %v7048_v29  ;;  %v7047_v53 = vmul.f32 %v15914_v3, %v6976_v2  ;;  %v6979_v10 = vmax.f32 %v6681_v13, 0.0  ;;  %v6676_v6 = vadd.f32 %v15905_v46, %v6675_v23 }
 0x7da   :  { %v6380_v52 = vmax.f32 %v6310_v17, 0.0  ;;  %v7184_v39 = vmax.f32 %v7182_v59, %v7183_v56 }
 0x7db   :  { %v7201_v60 = vsel %vm755_vm4, %v7119_v40, -inf  ;;  %v7118_v4 = vadd.f32 %v15919_v36, %v7047_v53  ;;  %v7050_v32 = vmul.f32 %v15914_v3, %v6979_v10  ;;  %v6978_v58 = vmax.f32 %v6676_v6, 0.0 }
 0x7dc   :  { %v7202_v31 = vrot.slane %v7201_v60, 4  ;;  %12937 = vmatprep.mubr.msk.f32.mxu0 %vm755_vm4, %v6380_v52  ;;  %v7191_v10 = vmax.f32 %v7189_v7, %v7190_v25 }
 0x7dd   :  { %v7194_v48 = vsel %vm755_vm4, %v7118_v4, -inf  ;;  %12938 = vmatmul.mubr.msk.f32.gmra.mxu0 %vm755_vm4, %v6381_v37  ;;  %v7121_v11 = vadd.f32 %v15919_v36, %v7050_v32  ;;  %v7049_v17 = vmul.f32 %v15914_v3, %v6978_v58  ;;  %v7783_v4 = vld [vmem:[%s17954_s29 + $0x18] sm:$0xff]  ;;  %v7185_v37 = vrot.slane %v7184_v39, 1 }
 0x7de   :  { %v7203_v29 = vmax.f32 %v7201_v60, %v7202_v31  ;;  %v7195_v2 = vrot.slane %v7194_v48, 4  ;;  %v12855_v13 = vpop.f32.mrf.mxu0  ;;  %12950 = vmatprep.subr.mxu1 %v7783_v4 }
 0x7df   :  { %v7215_v23 = vsel %vm755_vm4, %v7121_v11, -inf  ;;  %v7120_v40 = vadd.f32 %v15919_v36, %v7049_v17  ;;  %v6691_v53 = vadd.f32 %v12855_v13, %v15905_v46  ;;  %12951 = vmatpush3.msra.mxu1 %v7783_v4 }
 0x7e0   :  { %v7204_v59 = vrot.slane %v7203_v29, 2  ;;  %v7196_v56 = vmax.f32 %v7194_v48, %v7195_v2  ;;  %v7216_v6 = vrot.slane %v7215_v23, 4  ;;  %v6685_v52 = vpop.f32.mrf.mxu0  ;;  %v7192_v2 = vrot.slane %v7191_v10, 1  ;;  %12952 = vmatprep.subr.mxu1 %v7782_v8 }
 0x7e1   :  { %v7208_v32 = vsel %vm755_vm4, %v7120_v40, -inf  ;;  %v6981_v50 = vmax.f32 %v6691_v53, 0.0  ;;  %v6686_v60 = vadd.f32 %v15905_v46, %v6685_v52  ;;  %12953 = vmatpush3.msra.mxu1 %v7782_v8 }
 0x7e2   :  { %v7205_v58 = vmax.f32 %v7203_v29, %v7204_v59  ;;  %v7197_v31 = vrot.slane %v7196_v56, 2  ;;  %v7217_v11 = vmax.f32 %v7215_v23, %v7216_v6  ;;  %v7209_v9 = vrot.slane %v7208_v32, 4  ;;  %v12858_v17 = vpop.f32.mrf.mxu0 }
 0x7e3   :  { %v7052_v7 = vmul.f32 %v15914_v3, %v6981_v50  ;;  %v6980_v25 = vmax.f32 %v6686_v60, 0.0  ;;  %v6701_v48 = vadd.f32 %v12858_v17, %v15905_v46  ;;  %v7186_v6 = vmax.f32 %v7184_v39, %v7185_v37  ;;  %v7781_v17 = vld [vmem:[%s17954_s29 + $0x8] sm:$0xff] }
 0x7e4   :  { %v7198_v13 = vmax.f32 %v7196_v56, %v7197_v31  ;;  %v7218_v40 = vrot.slane %v7217_v11, 2  ;;  %v7210_v53 = vmax.f32 %v7208_v32, %v7209_v9  ;;  %v6695_v18 = vpop.f32.mrf.mxu0  ;;  %v7206_v4 = vrot.slane %v7205_v58, 1  ;;  %12954 = vmatprep.subr.mxu1 %v7781_v17 }
 0x7e5   :  { %v7123_v52 = vadd.f32 %v15919_v36, %v7052_v7  ;;  %v7051_v29 = vmul.f32 %v15914_v3, %v6980_v25  ;;  %v6983_v23 = vmax.f32 %v6701_v48, 0.0  ;;  %v6696_v59 = vadd.f32 %v15905_v46, %v6695_v18  ;;  %12955 = vmatpush3.msra.mxu1 %v7781_v17 }
 0x7e6   :  { %v7199_v50 = vrot.slane %v7198_v13, 1  ;;  %v7219_v60 = vmax.f32 %v7217_v11, %v7218_v40  ;;  %v12861_v16 = vpop.f32.mrf.mxu0  ;;  %v7193_v32 = vmax.f32 %v7191_v10, %v7192_v2  ;;  %v7211_v7 = vrot.slane %v7210_v53, 2 }
 0x7e7   :  { %v7122_v34 = vadd.f32 %v15919_v36, %v7051_v29  ;;  %v7054_v56 = vmul.f32 %v15914_v3, %v6983_v23  ;;  %v6982_v9 = vmax.f32 %v6696_v59, 0.0  ;;  %v7229_v25 = vsel %vm755_vm4, %v7123_v52, -inf }
 0x7e8   :  { %v7220_v31 = vrot.slane %v7219_v60, 1  ;;  %v6705_v48 = vpop.f32.mrf.mxu0  ;;  %v6711_v11 = vadd.f32 %v12861_v16, %v15905_v46  ;;  %v15979_v40 = vmax.f32 %v7205_v58, %v7206_v4  ;;  %v15981_v29 = vmax.f32 %v7198_v13, %v7199_v50 }
 0x7e9   :  { %v7222_v18 = vsel %vm755_vm4, %v7122_v34, -inf  ;;  %v7125_v39 = vadd.f32 %v15919_v36, %v7054_v56  ;;  %v7053_v37 = vmul.f32 %v15914_v3, %v6982_v9  ;;  %v15984_v23 = vsel %vm4382_vm5, %v7193_v32, %v7186_v6 }
 0x7ea   :  { %v7223_v10 = vrot.slane %v7222_v18, 4  ;;  %v12864_v2 = vpop.f32.mrf.mxu0  ;;  %v6985_v52 = vmax.f32 %v6711_v11, 0.0  ;;  %v6706_v59 = vadd.f32 %v15905_v46, %v6705_v48  ;;  %v15989_v56 = vmax.f32 %v7219_v60, %v7220_v31 }
 0x7eb   :  { %v7243_v8 = vsel %vm755_vm4, %v7125_v39, -inf  ;;  %v7124_v34 = vadd.f32 %v15919_v36, %v7053_v37  ;;  %v15991_v16 = vmax.f32 %v7210_v53, %v7211_v7  ;;  %v7230_v58 = vrot.slane %v7229_v25, 4 }
 0x7ec   :  { %v7244_v13 = vrot.slane %v7243_v8, 4  ;;  %v6715_v4 = vpop.f32.mrf.mxu0  ;;  %v7056_v6 = vmul.f32 %v15914_v3, %v6985_v52  ;;  %v6984_v9 = vmax.f32 %v6706_v59, 0.0  ;;  %v6721_v17 = vadd.f32 %v12864_v2, %v15905_v46 }
 0x7ed   :  { %v7236_v50 = vsel %vm755_vm4, %v7124_v34, -inf  ;;  %v7224_v32 = vmax.f32 %v7222_v18, %v7223_v10  ;;  %v6716_v11 = vadd.f32 %v15905_v46, %v6715_v4  ;;  %v7213_v34 = vrot.slane %v15991_v16, 1 }
 0x7ee   :  { %v7245_v39 = vmax.f32 %v7243_v8, %v7244_v13  ;;  %v7237_v37 = vrot.slane %v7236_v50, 4  ;;  %v12867_v48 = vpop.f32.mrf.mxu0  ;;  %v7127_v60 = vadd.f32 %v15919_v36, %v7056_v6  ;;  %v7055_v53 = vmul.f32 %v15914_v3, %v6984_v9 }
 0x7ef   :  { %v6987_v31 = vmax.f32 %v6721_v17, 0.0  ;;  %v6731_v7 = vadd.f32 %v12867_v48, %v15905_v46  ;;  %v6986_v59 = vmax.f32 %v6716_v11, 0.0  ;;  %v7225_v13 = vrot.slane %v7224_v32, 2 }
 0x7f0   :  { %v7246_v30 = vrot.slane %v7245_v39, 2  ;;  %v7238_v52 = vmax.f32 %v7236_v50, %v7237_v37  ;;  %v6725_v15 = vpop.f32.mrf.mxu0  ;;  %v7257_v18 = vsel %vm755_vm4, %v7127_v60, -inf  ;;  %v7126_v10 = vadd.f32 %v15919_v36, %v7055_v53 }
 0x7f1   :  { %v7058_v2 = vmul.f32 %v15914_v3, %v6987_v31  ;;  %v6989_v8 = vmax.f32 %v6731_v7, 0.0  ;;  %v7258_v6 = vrot.slane %v7257_v18, 4  ;;  %v7057_v9 = vmul.f32 %v15914_v3, %v6986_v59 }
 0x7f2   :  { %v7239_v4 = vrot.slane %v7238_v52, 2  ;;  %v12870_v17 = vpop.f32.mrf.mxu0  ;;  %v7250_v48 = vsel %vm755_vm4, %v7126_v10, -inf  ;;  %v6726_v37 = vadd.f32 %v15905_v46, %v6725_v15  ;;  %v7231_v11 = vmax.f32 %v7229_v25, %v7230_v58 }
 0x7f3   :  { %v7129_v51 = vadd.f32 %v15919_v36, %v7058_v2  ;;  %v7060_v50 = vmul.f32 %v15914_v3, %v6989_v8  ;;  %v7247_v60 = vmax.f32 %v7245_v39, %v7246_v30  ;;  %v7259_v53 = vmax.f32 %v7257_v18, %v7258_v6 }
 0x7f4   :  { %v7251_v63 = vrot.slane %v7250_v48, 4  ;;  %v6735_v31 = vpop.f32.mrf.mxu0  ;;  %v7128_v35 = vadd.f32 %v15919_v36, %v7057_v9  ;;  %v6988_v24 = vmax.f32 %v6726_v37, 0.0  ;;  %v7226_v54 = vmax.f32 %v7224_v32, %v7225_v13 }
 0x7f5   :  { %v7271_v7 = vsel %vm755_vm4, %v7129_v51, -inf  ;;  %v7131_v59 = vadd.f32 %v15919_v36, %v7060_v50  ;;  %v7240_v10 = vmax.f32 %v7238_v52, %v7239_v4  ;;  %v7260_v62 = vrot.slane %v7259_v53, 2 }
 0x7f6   :  { %v7252_v2 = vmax.f32 %v7250_v48, %v7251_v63  ;;  %v12873_v28 = vpop.f32.mrf.mxu0  ;;  %v7272_v8 = vrot.slane %v7271_v7, 4  ;;  %v7264_v15 = vsel %vm755_vm4, %v7128_v35, -inf  ;;  %v7059_v25 = vmul.f32 %v15914_v3, %v6988_v24 }
 0x7f7   :  { %v7285_v30 = vsel %vm755_vm4, %v7131_v59, -inf  ;;  %v7248_v58 = vrot.slane %v7247_v60, 1  ;;  %v7261_v39 = vmax.f32 %v7259_v53, %v7260_v62  ;;  %v7265_v18 = vrot.slane %v7264_v15, 4 }
 0x7f8   :  { %v7253_v51 = vrot.slane %v7252_v2, 2  ;;  %v6745_v6 = vpop.f32.mrf.mxu0  ;;  %v7273_v9 = vmax.f32 %v7271_v7, %v7272_v8  ;;  %v7286_v50 = vrot.slane %v7285_v30, 4  ;;  %v7130_v32 = vadd.f32 %v15919_v36, %v7059_v25 }
 0x7f9   :  { %v6741_v52 = vadd.f32 %v12870_v17, %v15905_v46  ;;  %v7241_v63 = vrot.slane %v7240_v10, 1  ;;  %v7266_v4 = vmax.f32 %v7264_v15, %v7265_v18  ;;  %v6736_v35 = vadd.f32 %v15905_v46, %v6735_v31 }
 0x7fa   :  { %v7254_v13 = vmax.f32 %v7252_v2, %v7253_v51  ;;  %v12876_v48 = vpop.f32.mrf.mxu0  ;;  %v7262_v37 = vrot.slane %v7261_v39, 1  ;;  %v7274_v24 = vrot.slane %v7273_v9, 2  ;;  %v7278_v62 = vsel %vm755_vm4, %v7130_v32, -inf  ;;  %v7780_v51 = vld [vmem:[%s17954_s29] sm:$0xff] }
 0x7fb   :  { %v6991_v53 = vmax.f32 %v6741_v52, 0.0  ;;  %v7214_v59 = vmax.f32 %v15991_v16, %v7213_v34  ;;  %v7232_v7 = vrot.slane %v7231_v11, 2  ;;  %v16020_v19 = vmax.f32 %v7285_v30, %v7286_v50  ;;  %12956 = vmatprep.subr.mxu1 %v7780_v51 }
 0x7fc   :  { %v7255_v8 = vrot.slane %v7254_v13, 1  ;;  %v6755_v25 = vpop.f32.mrf.mxu0  ;;  %v7267_v17 = vrot.slane %v7266_v4, 2  ;;  %v7279_v47 = vrot.slane %v7278_v62, 4  ;;  %v6990_v15 = vmax.f32 %v6736_v35, 0.0  ;;  %12957 = vmatpush3.msra.mxu1 %v7780_v51 }
 0x7fd   :  { %v7062_v2 = vmul.f32 %v15914_v3, %v6991_v53  ;;  %v16024_v31 = vmax.f32 %v7247_v60, %v7248_v58  ;;  %v16026_v18 = vmax.f32 %v7240_v10, %v7241_v63  ;;  %v7275_v42 = vmax.f32 %v7273_v9, %v7274_v24 }
 0x7fe   :  { %v6751_v32 = vadd.f32 %v12873_v28, %v15905_v46  ;;  %v16029_v16 = vmax.f32 %v7261_v39, %v7262_v37  ;;  %v7061_v30 = vmul.f32 %v15914_v3, %v6990_v15  ;;  %v7227_v50 = vrot.slane %v7226_v54, 1  ;;  %v12879_v10 = vpop.f32.mrf.mxu0 }
 0x7ff   :  { %v7133_v34 = vadd.f32 %v15919_v36, %v7062_v2  ;;  %v16033_v52 = vmax.f32 %v7254_v13, %v7255_v8  ;;  %v7288_v35 = vrot.slane %v16020_v19, 2  ;;  %v7233_v58 = vmax.f32 %v7231_v11, %v7232_v7 }
 0x800   :  { %v6993_v60 = vmax.f32 %v6751_v32, 0.0  ;;  %v7268_v63 = vmax.f32 %v7266_v4, %v7267_v17  ;;  %v16036_v9 = vmax.f32 %v7278_v62, %v7279_v47  ;;  %v7132_v39 = vadd.f32 %v15919_v36, %v7061_v30  ;;  %v6765_v15 = vpop.f32.mrf.mxu0 }
 0x801   :  { %v7299_v28 = vsel %vm755_vm4, %v7133_v34, -inf  ;;  %v7276_v37 = vrot.slane %v7275_v42, 1  ;;  %v7228_v2 = vmax.f32 %v7226_v54, %v7227_v50  ;;  %v7234_v8 = vrot.slane %v7233_v58, 1 }
 0x802   :  { %v7300_v24 = vrot.slane %v7299_v28, 4  ;;  %v7064_v53 = vmul.f32 %v15914_v3, %v6993_v60  ;;  %v7292_v13 = vsel %vm755_vm4, %v7132_v39, -inf  ;;  %v7693_v11 = vsel %vm4384_vm6, %v15981_v29, %v15984_v23 }
 0x803   :  { %v6746_v4 = vadd.f32 %v15905_v46, %v6745_v6  ;;  %v7293_v62 = vrot.slane %v7292_v13, 4  ;;  %v7694_v17 = vsel %vm4386_vm7, %v15979_v40, %v7693_v11  ;;  %v7235_v51 = vmax.f32 %v7233_v58, %v7234_v8 }
 0x804   :  { %v7301_v47 = vmax.f32 %v7299_v28, %v7300_v24  ;;  %v7135_v7 = vadd.f32 %v15919_v36, %v7064_v53  ;;  %v7695_v54 = vsel %vm4388_vm8, %v7214_v59, %v7694_v17  ;;  %v6761_v34 = vadd.f32 %v12876_v48, %v15905_v46  ;;  %v12882_v48 = vpop.f32.mrf.mxu0 }
 0x805   :  { %v6992_v32 = vmax.f32 %v6746_v4, 0.0  ;;  %v7294_v50 = vmax.f32 %v7292_v13, %v7293_v62  ;;  %v7696_v23 = vsel %vm4390_vm9, %v15989_v56, %v7695_v54  ;;  %v7269_v39 = vrot.slane %v7268_v63, 1 }
 0x806   :  { %v7302_v30 = vrot.slane %v7301_v47, 2  ;;  %v7313_v29 = vsel %vm755_vm4, %v7135_v7, -inf  ;;  %v7697_v60 = vsel %vm4392_vm10, %v7228_v2, %v7696_v23  ;;  %v6995_v40 = vmax.f32 %v6761_v34, 0.0 }
 0x807   :  { %v7314_v6 = vrot.slane %v7313_v29, 4  ;;  %v7063_v28 = vmul.f32 %v15914_v3, %v6992_v32  ;;  %v7295_v58 = vrot.slane %v7294_v50, 2  ;;  %v7698_v59 = vsel %vm4394_vm11, %v7235_v51, %v7697_v60 }
 0x808   :  { %v6756_v24 = vadd.f32 %v15905_v46, %v6755_v25  ;;  %7748 = vrot.lane.b32.xlu0 %v7698_v59, %s13409_s0  ;;  %v7066_v56 = vmul.f32 %v15914_v3, %v6995_v40  ;;  %v6771_v8 = vadd.f32 %v12879_v10, %v15905_v46  ;;  %v7281_v2 = vrot.slane %v16036_v9, 2  ;;  %v6775_v10 = vpop.f32.mrf.mxu0 }
 0x809   :  { %v7315_v53 = vmax.f32 %v7313_v29, %v7314_v6  ;;  %v7134_v13 = vadd.f32 %v15919_v36, %v7063_v28  ;;  %v7303_v11 = vmax.f32 %v7301_v47, %v7302_v30  ;;  %v6766_v62 = vadd.f32 %v15905_v46, %v6765_v15 }
 0x80a   :  { %v6994_v4 = vmax.f32 %v6756_v24, 0.0  ;;  %v7137_v25 = vadd.f32 %v15919_v36, %v7066_v56  ;;  %v6997_v51 = vmax.f32 %v6771_v8, 0.0  ;;  %v16066_v54 = vmax.f32 %v7275_v42, %v7276_v37 }
 0x80b   :  { %v7316_v7 = vrot.slane %v7315_v53, 2  ;;  %v7306_v17 = vsel %vm755_vm4, %v7134_v13, -inf  ;;  %v16068_v32 = vmax.f32 %v7268_v63, %v7269_v39  ;;  %v7296_v23 = vmax.f32 %v7294_v50, %v7295_v58  ;;  %v12885_v13 = vpop.f32.mrf.mxu0 }
 0x80c   :  { %v7307_v34 = vrot.slane %v7306_v17, 4  ;;  %v7065_v29 = vmul.f32 %v15914_v3, %v6994_v4  ;;  %v7327_v47 = vsel %vm755_vm4, %v7137_v25, -inf  ;;  %v7068_v30 = vmul.f32 %v15914_v3, %v6997_v51 }
 0x80d   :  { %v6996_v15 = vmax.f32 %v6766_v62, 0.0  ;;  %v7304_v6 = vrot.slane %v7303_v11, 1  ;;  %v7328_v28 = vrot.slane %v7327_v47, 4  ;;  %v7317_v59 = vmax.f32 %v7315_v53, %v7316_v7 }
 0x80e   :  { %v7308_v60 = vmax.f32 %v7306_v17, %v7307_v34  ;;  %v7136_v40 = vadd.f32 %v15919_v36, %v7065_v29  ;;  %v7139_v42 = vadd.f32 %v15919_v36, %v7068_v30  ;;  %v6781_v37 = vadd.f32 %v12882_v48, %v15905_v46 }
 0x80f   :  { %v7067_v63 = vmul.f32 %v15914_v3, %v6996_v15  ;;  %v7329_v24 = vmax.f32 %v7327_v47, %v7328_v28  ;;  %v6776_v58 = vadd.f32 %v15905_v46, %v6775_v10  ;;  %v7297_v56 = vrot.slane %v7296_v23, 1 }
 0x810   :  { %v7309_v39 = vrot.slane %v7308_v60, 2  ;;  %v7320_v50 = vsel %vm755_vm4, %v7136_v40, -inf  ;;  %v7341_v4 = vsel %vm755_vm4, %v7139_v42, -inf  ;;  %v6999_v25 = vmax.f32 %v6781_v37, 0.0 }
 0x811   :  { %v7321_v8 = vrot.slane %v7320_v50, 4  ;;  %v7138_v62 = vadd.f32 %v15919_v36, %v7067_v63  ;;  %v7330_v7 = vrot.slane %v7329_v24, 2  ;;  %v7342_v17 = vrot.slane %v7341_v4, 4  ;;  %v6785_v63 = vpop.f32.mrf.mxu0 }
 0x812   :  { %v7310_v53 = vmax.f32 %v7308_v60, %v7309_v39  ;;  %v6998_v34 = vmax.f32 %v6776_v58, 0.0  ;;  %v6791_v29 = vadd.f32 %v12885_v13, %v15905_v46  ;;  %v7282_v47 = vmax.f32 %v16036_v9, %v7281_v2 }
 0x813   :  { %v7322_v51 = vmax.f32 %v7320_v50, %v7321_v8  ;;  %v7334_v48 = vsel %vm755_vm4, %v7138_v62, -inf  ;;  %v7318_v10 = vrot.slane %v7317_v59, 1  ;;  %v16084_v28 = vmax.f32 %v7303_v11, %v7304_v6 }
 0x814   :  { %v7311_v30 = vrot.slane %v7310_v53, 1  ;;  %v7335_v15 = vrot.slane %v7334_v48, 4  ;;  %v7070_v40 = vmul.f32 %v15914_v3, %v6999_v25  ;;  %v7069_v60 = vmul.f32 %v15914_v3, %v6998_v34 }
 0x815   :  { %v7001_v42 = vmax.f32 %v6791_v29, 0.0  ;;  %v16088_v37 = vmax.f32 %v7296_v23, %v7297_v56  ;;  %v7331_v39 = vmax.f32 %v7329_v24, %v7330_v7  ;;  %v16090_v50 = vmax.f32 %v7341_v4, %v7342_v17 }
 0x816   :  { %v7336_v58 = vmax.f32 %v7334_v48, %v7335_v15  ;;  %v7323_v13 = vrot.slane %v7322_v51, 2  ;;  %v7141_v9 = vadd.f32 %v15919_v36, %v7070_v40  ;;  %v7140_v2 = vadd.f32 %v15919_v36, %v7069_v60 }
 0x817   :  { %v7072_v11 = vmul.f32 %v15914_v3, %v7001_v42  ;;  %v16095_v6 = vmax.f32 %v7317_v59, %v7318_v10  ;;  %v16097_v8 = vmax.f32 %v7310_v53, %v7311_v30  ;;  %v6786_v25 = vadd.f32 %v15905_v46, %v6785_v63 }
 0x818   :  { %v7337_v62 = vrot.slane %v7336_v58, 2  ;;  %v7355_v23 = vsel %vm755_vm4, %v7141_v9, -inf  ;;  %v7348_v24 = vsel %vm755_vm4, %v7140_v2, -inf  ;;  %v7283_v4 = vrot.slane %v7282_v47, 1 }
 0x819   :  { %v7143_v56 = vadd.f32 %v15919_v36, %v7072_v11  ;;  %v7332_v7 = vrot.slane %v7331_v39, 1  ;;  %v7356_v17 = vrot.slane %v7355_v23, 4  ;;  %v7349_v48 = vrot.slane %v7348_v24, 4 }
 0x81a   :  { %v7000_v34 = vmax.f32 %v6786_v25, 0.0  ;;  %v12888_v29 = vpop.f32.mrf.mxu0  ;;  %v7324_v15 = vmax.f32 %v7322_v51, %v7323_v13  ;;  %v7344_v59 = vrot.slane %v16090_v50, 2  ;;  %v7289_v10 = vmax.f32 %v16020_v19, %v7288_v35 }
 0x81b   :  { %v7369_v53 = vsel %vm755_vm4, %v7143_v56, -inf  ;;  %v7338_v30 = vmax.f32 %v7336_v58, %v7337_v62  ;;  %v7357_v40 = vmax.f32 %v7355_v23, %v7356_v17  ;;  %v7350_v60 = vmax.f32 %v7348_v24, %v7349_v48 }
 0x81c   :  { %v7370_v42 = vrot.slane %v7369_v53, 4  ;;  %v7071_v63 = vmul.f32 %v15914_v3, %v7000_v34  ;;  %v7284_v9 = vmax.f32 %v7282_v47, %v7283_v4  ;;  %v7699_v2 = vsel %vm4382_vm5, %v16024_v31, %v16026_v18  ;;  %v6795_v19 = vpop.f32.mrf.mxu0 }
 0x81d   :  { %v6801_v51 = vadd.f32 %v12888_v29, %v15905_v46  ;;  %v7358_v13 = vrot.slane %v7357_v40, 2  ;;  %v7351_v11 = vrot.slane %v7350_v60, 2  ;;  %v7700_v56 = vsel %vm4384_vm6, %v16033_v52, %v7699_v2 }
 0x81e   :  { %v7371_v25 = vmax.f32 %v7369_v53, %v7370_v42  ;;  %v7142_v35 = vadd.f32 %v15919_v36, %v7071_v63  ;;  %v7290_v58 = vrot.slane %v7289_v10, 1  ;;  %v7701_v62 = vsel %vm4386_vm7, %v16029_v16, %v7700_v56 }
 0x81f   :  { %v7003_v47 = vmax.f32 %v6801_v51, 0.0  ;;  %v7325_v23 = vrot.slane %v7324_v15, 1  ;;  %v7359_v24 = vmax.f32 %v7357_v40, %v7358_v13  ;;  %v7352_v4 = vmax.f32 %v7350_v60, %v7351_v11 }
 0x820   :  { %v7702_v31 = vsel %vm4388_vm8, %v16068_v32, %v7701_v62  ;;  %v7339_v18 = vrot.slane %v7338_v30, 1  ;;  %v7362_v17 = vsel %vm755_vm4, %v7142_v35, -inf  ;;  %v6796_v52 = vadd.f32 %v15905_v46, %v6795_v19 }
 0x821   :  { %v7074_v48 = vmul.f32 %v15914_v3, %v7003_v47  ;;  %v7360_v34 = vrot.slane %v7359_v24, 1  ;;  %v7372_v29 = vrot.slane %v7371_v25, 2  ;;  %v7363_v53 = vrot.slane %v7362_v17, 4 }
 0x822   :  { %v7703_v16 = vsel %vm4390_vm9, %v16066_v54, %v7702_v31  ;;  %v12891_v42 = vpop.f32.mrf.mxu0  ;;  %v7291_v63 = vmax.f32 %v7289_v10, %v7290_v58  ;;  %v7002_v32 = vmax.f32 %v6796_v52, 0.0  ;;  %v7333_v2 = vmax.f32 %v7331_v39, %v7332_v7 }
 0x823   :  { %v7704_v40 = vsel %vm4392_vm10, %v7284_v9, %v7703_v16  ;;  %v7145_v60 = vadd.f32 %v15919_v36, %v7074_v48  ;;  %v7326_v51 = vmax.f32 %v7324_v15, %v7325_v23  ;;  %v7353_v13 = vrot.slane %v7352_v4, 1 }
 0x824   :  { %v7364_v11 = vmax.f32 %v7362_v17, %v7363_v53  ;;  %v7705_v56 = vsel %vm4394_vm11, %v7291_v63, %v7704_v40  ;;  %v7073_v35 = vmul.f32 %v15914_v3, %v7002_v32  ;;  %v7345_v62 = vmax.f32 %v16090_v50, %v7344_v59  ;;  %v6805_v54 = vpop.f32.mrf.mxu0 }
 0x825   :  { %v7383_v19 = vsel %vm755_vm4, %v7145_v60, -inf  ;;  %v7361_v47 = vmax.f32 %v7359_v24, %v7360_v34  ;;  %v7373_v10 = vmax.f32 %v7371_v25, %v7372_v29  ;;  %7750 = vrot.lane.b32.xlu1 %v7705_v56, %s13409_s0  ;;  %v7340_v9 = vmax.f32 %v7338_v30, %v7339_v18 }
 0x826   :  { %v7365_v58 = vrot.slane %v7364_v11, 2  ;;  %v7144_v39 = vadd.f32 %v15919_v36, %v7073_v35  ;;  %v7346_v7 = vrot.slane %v7345_v62, 1  ;;  %v7706_v15 = vsel %vm4382_vm5, %v16084_v28, %v16088_v37 }
 0x827   :  { %v6811_v23 = vadd.f32 %v12891_v42, %v15905_v46  ;;  %v7384_v17 = vrot.slane %v7383_v19, 4  ;;  %v7707_v50 = vsel %vm4384_vm6, %v16097_v8, %v7706_v15  ;;  %v6806_v59 = vadd.f32 %v15905_v46, %v6805_v54 }
 0x828   :  { %v7366_v31 = vmax.f32 %v7364_v11, %v7365_v58  ;;  %v7354_v25 = vmax.f32 %v7352_v4, %v7353_v13  ;;  %v7376_v24 = vsel %vm755_vm4, %v7144_v39, -inf  ;;  %v7708_v30 = vsel %vm4386_vm7, %v16095_v6, %v7707_v50 }
 0x829   :  { %v7005_v18 = vmax.f32 %v6811_v23, 0.0  ;;  %v7374_v48 = vrot.slane %v7373_v10, 1  ;;  %v7377_v52 = vrot.slane %v7376_v24, 4  ;;  %v7347_v34 = vmax.f32 %v7345_v62, %v7346_v7 }
 0x82a   :  { %v7709_v28 = vsel %vm4388_vm8, %v7326_v51, %v7708_v30  ;;  %v12894_v37 = vpop.f32.mrf.mxu0  ;;  %v7004_v8 = vmax.f32 %v6806_v59, 0.0  ;;  %v7367_v4 = vrot.slane %v7366_v31, 1  ;;  %v7385_v42 = vmax.f32 %v7383_v19, %v7384_v17 }
 0x82b   :  { %v7710_v29 = vsel %vm4390_vm9, %v7333_v2, %v7709_v28  ;;  %v7076_v53 = vmul.f32 %v15914_v3, %v7005_v18  ;;  %v6821_v16 = vadd.f32 %v12894_v37, %v15905_v46  ;;  %v7378_v63 = vmax.f32 %v7376_v24, %v7377_v52 }
 0x82c   :  { %v7711_v40 = vsel %vm4392_vm10, %v7340_v9, %v7710_v29  ;;  %v6815_v6 = vpop.f32.mrf.mxu0  ;;  %v7075_v51 = vmul.f32 %v15914_v3, %v7004_v8  ;;  %v7713_v2 = vsel %vm4382_vm5, %v7361_v47, %v7354_v25  ;;  %v16152_v11 = vmax.f32 %v7373_v10, %v7374_v48 }
 0x82d   :  { %v7712_v60 = vsel %vm4394_vm11, %v7347_v34, %v7711_v40  ;;  %v7147_v32 = vadd.f32 %v15919_v36, %v7076_v53  ;;  %v7007_v13 = vmax.f32 %v6821_v16, 0.0  ;;  %v7379_v56 = vrot.slane %v7378_v63, 2 }
 0x82e   :  { %7752 = vrot.lane.b32.xlu0 %v7712_v60, %s13409_s0  ;;  %v6816_v19 = vadd.f32 %v15905_v46, %v6815_v6  ;;  %v12897_v35 = vpop.f32.mrf.mxu0  ;;  %v7146_v54 = vadd.f32 %v15919_v36, %v7075_v51  ;;  %v7368_v39 = vmax.f32 %v7366_v31, %v7367_v4  ;;  %v7386_v7 = vrot.slane %v7385_v42, 2 }
 0x82f   :  { %v7397_v62 = vsel %vm755_vm4, %v7147_v32, -inf  ;;  %v7078_v58 = vmul.f32 %v15914_v3, %v7007_v13  ;;  %v6831_v9 = vadd.f32 %v12897_v35, %v15905_v46  ;;  %v7380_v25 = vmax.f32 %v7378_v63, %v7379_v56 }
 0x830   :  { %v7398_v15 = vrot.slane %v7397_v62, 4  ;;  %v7006_v47 = vmax.f32 %v6816_v19, 0.0  ;;  %v6825_v10 = vpop.f32.mrf.mxu0  ;;  %v7390_v23 = vsel %vm755_vm4, %v7146_v54, -inf  ;;  %v7387_v37 = vmax.f32 %v7385_v42, %v7386_v7 }
 0x831   :  { %v7149_v17 = vadd.f32 %v15919_v36, %v7078_v58  ;;  %v7009_v50 = vmax.f32 %v6831_v9, 0.0  ;;  %v6826_v59 = vadd.f32 %v15905_v46, %v6825_v10  ;;  %v7391_v30 = vrot.slane %v7390_v23, 4 }
 0x832   :  { %v7399_v24 = vmax.f32 %v7397_v62, %v7398_v15  ;;  %v7077_v18 = vmul.f32 %v15914_v3, %v7006_v47  ;;  %v12900_v48 = vpop.f32.mrf.mxu0  ;;  %v7381_v60 = vrot.slane %v7380_v25, 1 }
 0x833   :  { %v7411_v52 = vsel %vm755_vm4, %v7149_v17, -inf  ;;  %v7080_v31 = vmul.f32 %v15914_v3, %v7009_v50  ;;  %v7008_v34 = vmax.f32 %v6826_v59, 0.0  ;;  %v6841_v28 = vadd.f32 %v12900_v48, %v15905_v46 }
 0x834   :  { %v7400_v29 = vrot.slane %v7399_v24, 2  ;;  %v7392_v53 = vmax.f32 %v7390_v23, %v7391_v30  ;;  %v7412_v8 = vrot.slane %v7411_v52, 4  ;;  %v6835_v16 = vpop.f32.mrf.mxu0  ;;  %v7148_v4 = vadd.f32 %v15919_v36, %v7077_v18 }
 0x835   :  { %v7151_v63 = vadd.f32 %v15919_v36, %v7080_v31  ;;  %v7079_v40 = vmul.f32 %v15914_v3, %v7008_v34  ;;  %v7011_v6 = vmax.f32 %v6841_v28, 0.0  ;;  %v6836_v13 = vadd.f32 %v15905_v46, %v6835_v16 }
 0x836   :  { %v7393_v32 = vrot.slane %v7392_v53, 2  ;;  %v7413_v51 = vmax.f32 %v7411_v52, %v7412_v8  ;;  %v12903_v56 = vpop.f32.mrf.mxu0  ;;  %v7404_v19 = vsel %vm755_vm4, %v7148_v4, -inf  ;;  %v7401_v7 = vmax.f32 %v7399_v24, %v7400_v29 }
 0x837   :  { %v7425_v42 = vsel %vm755_vm4, %v7151_v63, -inf  ;;  %v7150_v35 = vadd.f32 %v15919_v36, %v7079_v40  ;;  %v7082_v62 = vmul.f32 %v15914_v3, %v7011_v6  ;;  %v7405_v58 = vrot.slane %v7404_v19, 4 }
 0x838   :  { %v7394_v54 = vmax.f32 %v7392_v53, %v7393_v32  ;;  %v7426_v9 = vrot.slane %v7425_v42, 4  ;;  %v6845_v15 = vpop.f32.mrf.mxu0  ;;  %v7414_v47 = vrot.slane %v7413_v51, 2  ;;  %v7010_v46 = vmax.f32 %v6836_v13, 0.0 }
 0x839   :  { %v7418_v10 = vsel %vm755_vm4, %v7150_v35, -inf  ;;  %v7153_v23 = vadd.f32 %v15919_v36, %v7082_v62  ;;  %v7406_v50 = vmax.f32 %v7404_v19, %v7405_v58  ;;  %v7714_v30 = vsel %vm4384_vm6, %v7368_v39, %v7713_v2  ;;  %v16186_v19 = vld [vmem:[%s17955_s3] ss:$0 sm:$0xff] }
 0x83a   :  { %v7395_v17 = vrot.slane %v7394_v54, 1  ;;  %v7427_v59 = vmax.f32 %v7425_v42, %v7426_v9  ;;  %v12906_v18 = vpop.f32.mrf.mxu0  ;;  %v7382_v48 = vmax.f32 %v7380_v25, %v7381_v60  ;;  %v7419_v52 = vrot.slane %v7418_v10, 4 }
 0x83b   :  { %v7439_v31 = vsel %vm755_vm4, %v7153_v23, -inf  ;;  %v7081_v34 = vmul.f32 %v15914_v3, %v7010_v46  ;;  %v7388_v24 = vrot.slane %v7387_v37, 1  ;;  %v7407_v28 = vrot.slane %v7406_v50, 2 }
 0x83c   :  { %v7428_v29 = vrot.slane %v7427_v59, 2  ;;  %v7440_v53 = vrot.slane %v7439_v31, 4  ;;  %v6855_v8 = vpop.f32.mrf.mxu0  ;;  %v7415_v16 = vmax.f32 %v7413_v51, %v7414_v47  ;;  %v7420_v4 = vmax.f32 %v7418_v10, %v7419_v52 }
 0x83d   :  { %v7152_v63 = vadd.f32 %v15919_v36, %v7081_v34  ;;  %v7402_v40 = vrot.slane %v7401_v7, 1  ;;  %v7408_v6 = vmax.f32 %v7406_v50, %v7407_v28  ;;  %v7396_v39 = vmax.f32 %v7394_v54, %v7395_v17  ;;  %v16193_v50 = vld [vmem:[%s17956_s8] ss:$0 sm:$0xff] }
 0x83e   :  { %v7429_v2 = vmax.f32 %v7427_v59, %v7428_v29  ;;  %v7715_v25 = vsel %vm4386_vm7, %v16152_v11, %v7714_v30  ;;  %v12909_v60 = vpop.f32.mrf.mxu0  ;;  %v7441_v32 = vmax.f32 %v7439_v31, %v7440_v53  ;;  %v6851_v51 = vadd.f32 %v16186_v19, %v12903_v56  ;;  %v16205_v28 = vld [vmem:[%s17957_s14] ss:$0 sm:$0xff] }
 0x83f   :  { %v7432_v3 = vsel %vm755_vm4, %v7152_v63, -inf  ;;  %v7716_v13 = vsel %vm4388_vm8, %v7382_v48, %v7715_v25  ;;  %v7389_v42 = vmax.f32 %v7387_v37, %v7388_v24  ;;  %v7421_v36 = vrot.slane %v7420_v4, 2 }
 0x840   :  { %v7433_v35 = vrot.slane %v7432_v3, 4  ;;  %v7416_v62 = vrot.slane %v7415_v16, 1  ;;  %v7409_v58 = vrot.slane %v7408_v6, 1  ;;  %v7013_v54 = vmax.f32 %v6851_v51, 0.0  ;;  %v6865_v11 = vpop.f32.mrf.mxu0 }
 0x841   :  { %v6846_v9 = vadd.f32 %v16186_v19, %v6845_v15  ;;  %v7430_v47 = vrot.slane %v7429_v2, 1  ;;  %v7403_v10 = vmax.f32 %v7401_v7, %v7402_v40  ;;  %v7717_v23 = vsel %vm4390_vm9, %v7389_v42, %v7716_v13 }
 0x842   :  { %v7442_v46 = vrot.slane %v7441_v32, 2  ;;  %v7718_v17 = vsel %vm4392_vm10, %v7396_v39, %v7717_v23  ;;  %v7084_v37 = vmul.f32 %v16193_v50, %v7013_v54  ;;  %v16196_v59 = vmax.f32 %v7420_v4, %v7421_v36  ;;  %v12912_v34 = vpop.f32.mrf.mxu0 }
 0x843   :  { %v7012_v56 = vmax.f32 %v6846_v9, 0.0  ;;  %v7434_v30 = vmax.f32 %v7432_v3, %v7433_v35  ;;  %v7719_v48 = vsel %vm4394_vm11, %v7403_v10, %v7718_v17  ;;  %v7417_v15 = vmax.f32 %v7415_v16, %v7416_v62 }
 0x844   :  { %v7410_v52 = vmax.f32 %v7408_v6, %v7409_v58  ;;  %7754 = vrot.lane.b32.xlu1 %v7719_v48, %s13409_s0  ;;  %v6861_v31 = vadd.f32 %v16186_v19, %v12906_v18  ;;  %v16202_v24 = vmax.f32 %v7429_v2, %v7430_v47  ;;  %v7155_v29 = vadd.f32 %v16205_v28, %v7084_v37 }
 0x845   :  { %v7083_v7 = vmul.f32 %v16193_v50, %v7012_v56  ;;  %v6856_v53 = vadd.f32 %v16186_v19, %v6855_v8  ;;  %v6871_v4 = vadd.f32 %v16186_v19, %v12909_v60  ;;  %v16210_v63 = vmax.f32 %v7441_v32, %v7442_v46  ;;  %v6875_v60 = vpop.f32.mrf.mxu0 }
 0x846   :  { %v7015_v40 = vmax.f32 %v6861_v31, 0.0  ;;  %v6866_v6 = vadd.f32 %v16186_v19, %v6865_v11  ;;  %v7423_v18 = vrot.slane %v16196_v59, 1  ;;  %v7435_v39 = vrot.slane %v7434_v30, 2 }
 0x847   :  { %v7154_v16 = vadd.f32 %v16205_v28, %v7083_v7  ;;  %v7014_v2 = vmax.f32 %v6856_v53, 0.0  ;;  %v7017_v25 = vmax.f32 %v6871_v4, 0.0  ;;  %v6881_v8 = vadd.f32 %v16186_v19, %v12912_v34  ;;  %v12915_v48 = vpop.f32.mrf.mxu0 }
 0x848   :  { %v7086_v13 = vmul.f32 %v16193_v50, %v7015_v40  ;;  %v7016_v51 = vmax.f32 %v6866_v6, 0.0  ;;  %v16219_v32 = vsel %vm4382_vm5, %v7417_v15, %v7410_v52  ;;  %v7453_v42 = vsel %vm755_vm4, %v7155_v29, -inf }
 0x849   :  { %v7446_v3 = vsel %vm755_vm4, %v7154_v16, -inf  ;;  %v7085_v35 = vmul.f32 %v16193_v50, %v7014_v2  ;;  %v7088_v58 = vmul.f32 %v16193_v50, %v7017_v25  ;;  %v7019_v9 = vmax.f32 %v6881_v8, 0.0 }
 0x84a   :  { %v7447_v36 = vrot.slane %v7446_v3, 4  ;;  %v7157_v62 = vadd.f32 %v16205_v28, %v7086_v13  ;;  %v7087_v54 = vmul.f32 %v16193_v50, %v7016_v51  ;;  %v7436_v11 = vmax.f32 %v7434_v30, %v7435_v39  ;;  %v6885_v13 = vpop.f32.mrf.mxu0 }
 0x84b   :  { %v7156_v10 = vadd.f32 %v16205_v28, %v7085_v35  ;;  %v6876_v23 = vadd.f32 %v16186_v19, %v6875_v60  ;;  %v7159_v17 = vadd.f32 %v16205_v28, %v7088_v58  ;;  %v7090_v56 = vmul.f32 %v16193_v50, %v7019_v9 }
 0x84c   :  { %v7448_v47 = vmax.f32 %v7446_v3, %v7447_v36  ;;  %v7467_v46 = vsel %vm755_vm4, %v7157_v62, -inf  ;;  %v7158_v37 = vadd.f32 %v16205_v28, %v7087_v54  ;;  %v7454_v15 = vrot.slane %v7453_v42, 4 }
 0x84d   :  { %v7468_v52 = vrot.slane %v7467_v46, 4  ;;  %v7460_v7 = vsel %vm755_vm4, %v7156_v10, -inf  ;;  %v7018_v31 = vmax.f32 %v6876_v23, 0.0  ;;  %v7481_v34 = vsel %vm755_vm4, %v7159_v17, -inf }
 0x84e   :  { %v7461_v30 = vrot.slane %v7460_v7, 4  ;;  %v7474_v29 = vsel %vm755_vm4, %v7158_v37, -inf  ;;  %v7161_v53 = vadd.f32 %v16205_v28, %v7090_v56  ;;  %v7449_v4 = vrot.slane %v7448_v47, 2 }
 0x84f   :  { %v7469_v16 = vmax.f32 %v7467_v46, %v7468_v52  ;;  %v7482_v40 = vrot.slane %v7481_v34, 4  ;;  %v7475_v6 = vrot.slane %v7474_v29, 4  ;;  %v7089_v25 = vmul.f32 %v16193_v50, %v7018_v31 }
 0x850   :  { %v7462_v39 = vmax.f32 %v7460_v7, %v7461_v30  ;;  %v7495_v2 = vsel %vm755_vm4, %v7161_v53, -inf  ;;  %v6891_v3 = vadd.f32 %v16186_v19, %v12915_v48  ;;  %v7444_v51 = vrot.slane %v16210_v63, 1 }
 0x851   :  { %v7470_v8 = vrot.slane %v7469_v16, 2  ;;  %v7483_v60 = vmax.f32 %v7481_v34, %v7482_v40  ;;  %v7476_v36 = vmax.f32 %v7474_v29, %v7475_v6  ;;  %v7496_v62 = vrot.slane %v7495_v2, 4 }
 0x852   :  { %v7463_v35 = vrot.slane %v7462_v39, 2  ;;  %v7160_v58 = vadd.f32 %v16205_v28, %v7089_v25  ;;  %v7021_v54 = vmax.f32 %v6891_v3, 0.0  ;;  %v7437_v9 = vrot.slane %v7436_v11, 1 }
 0x853   :  { %v7455_v10 = vmax.f32 %v7453_v42, %v7454_v15  ;;  %v7477_v23 = vrot.slane %v7476_v36, 2  ;;  %v6886_v46 = vadd.f32 %v16186_v19, %v6885_v13  ;;  %v7450_v17 = vmax.f32 %v7448_v47, %v7449_v4 }
 0x854   :  { %v7464_v37 = vmax.f32 %v7462_v39, %v7463_v35  ;;  %v7488_v56 = vsel %vm755_vm4, %v7160_v58, -inf  ;;  %v7092_v48 = vmul.f32 %v16193_v50, %v7021_v54  ;;  %v7471_v52 = vmax.f32 %v7469_v16, %v7470_v8 }
 0x855   :  { %v7484_v7 = vrot.slane %v7483_v60, 2  ;;  %v7478_v31 = vmax.f32 %v7476_v36, %v7477_v23  ;;  %v7489_v30 = vrot.slane %v7488_v56, 4  ;;  %v7497_v29 = vmax.f32 %v7495_v2, %v7496_v62 }
 0x856   :  { %v7465_v34 = vrot.slane %v7464_v37, 1  ;;  %v7163_v53 = vadd.f32 %v16205_v28, %v7092_v48  ;;  %v7020_v40 = vmax.f32 %v6886_v46, 0.0  ;;  %v7424_v42 = vmax.f32 %v16196_v59, %v7423_v18 }
 0x857   :  { %v7445_v47 = vmax.f32 %v16210_v63, %v7444_v51  ;;  %v7456_v15 = vrot.slane %v7455_v10, 2  ;;  %v7490_v4 = vmax.f32 %v7488_v56, %v7489_v30  ;;  %v7451_v6 = vrot.slane %v7450_v17, 1 }
 0x858   :  { %v7479_v39 = vrot.slane %v7478_v31, 1  ;;  %v7509_v16 = vsel %vm755_vm4, %v7163_v53, -inf  ;;  %v7091_v25 = vmul.f32 %v16193_v50, %v7020_v40  ;;  %v7438_v3 = vmax.f32 %v7436_v11, %v7437_v9 }
 0x859   :  { %v7472_v13 = vrot.slane %v7471_v52, 1  ;;  %v7491_v2 = vrot.slane %v7490_v4, 2  ;;  %v7510_v8 = vrot.slane %v7509_v16, 4  ;;  %v7466_v36 = vmax.f32 %v7464_v37, %v7465_v34 }
 0x85a   :  { %v7485_v35 = vmax.f32 %v7483_v60, %v7484_v7  ;;  %v7498_v62 = vrot.slane %v7497_v29, 2  ;;  %v7162_v58 = vadd.f32 %v16205_v28, %v7091_v25  ;;  %v7457_v63 = vmax.f32 %v7455_v10, %v7456_v15 }
 0x85b   :  { %v7492_v59 = vmax.f32 %v7490_v4, %v7491_v2  ;;  %v7511_v18 = vmax.f32 %v7509_v16, %v7510_v8  ;;  %v7721_v51 = vsel %vm4384_vm6, %v7424_v42, %v16219_v32  ;;  %v7480_v54 = vmax.f32 %v7478_v31, %v7479_v39 }
 0x85c   :  { %v7502_v23 = vsel %vm755_vm4, %v7162_v58, -inf  ;;  %v7452_v46 = vmax.f32 %v7450_v17, %v7451_v6  ;;  %v7722_v11 = vsel %vm4386_vm7, %v16202_v24, %v7721_v51  ;;  %v7458_v60 = vrot.slane %v7457_v63, 1  ;;  %v13339_v58 = vld [vmem:[%s13428_s9] sm:$0xff] }
 0x85d   :  { %v7493_v9 = vrot.slane %v7492_v59, 1  ;;  %v7512_v56 = vrot.slane %v7511_v18, 2  ;;  %v7503_v37 = vrot.slane %v7502_v23, 4  ;;  %v7473_v48 = vmax.f32 %v7471_v52, %v7472_v13 }
 0x85e   :  { %v7486_v7 = vrot.slane %v7485_v35, 1  ;;  %v7499_v30 = vmax.f32 %v7497_v29, %v7498_v62  ;;  %v7723_v34 = vsel %vm4388_vm8, %v7438_v3, %v7722_v11  ;;  %v7459_v53 = vmax.f32 %v7457_v63, %v7458_v60 }
 0x85f   :  { %v7504_v10 = vmax.f32 %v7502_v23, %v7503_v37  ;;  %v7724_v32 = vsel %vm4390_vm9, %v7445_v47, %v7723_v34  ;;  %v7727_v31 = vsel %vm4382_vm5, %v7473_v48, %v7466_v36  ;;  %v7513_v40 = vmax.f32 %v7511_v18, %v7512_v56 }
 0x860   :  { %v7725_v17 = vsel %vm4392_vm10, %v7452_v46, %v7724_v32  ;;  %v7494_v42 = vmax.f32 %v7492_v59, %v7493_v9  ;;  %v7728_v4 = vsel %vm4384_vm6, %v7480_v54, %v7727_v31  ;;  %v7487_v52 = vmax.f32 %v7485_v35, %v7486_v7 }
 0x861   :  { %v7505_v24 = vrot.slane %v7504_v10, 2  ;;  %v7726_v15 = vsel %vm4394_vm11, %v7459_v53, %v7725_v17  ;;  %v7500_v6 = vrot.slane %v7499_v30, 1  ;;  %v7514_v39 = vrot.slane %v7513_v40, 1 }
 0x862   :  { %7756 = vrot.lane.b32.xlu0 %v7726_v15, %s13409_s0  ;;  %v7729_v47 = vsel %vm4386_vm7, %v7487_v52, %v7728_v4 }
 0x863   :  { %v7506_v29 = vmax.f32 %v7504_v10, %v7505_v24  ;;  %v7730_v25 = vsel %vm4388_vm8, %v7494_v42, %v7729_v47  ;;  %v7501_v3 = vmax.f32 %v7499_v30, %v7500_v6  ;;  %v7515_v2 = vmax.f32 %v7513_v40, %v7514_v39 }
 0x865   :  { %v7507_v16 = vrot.slane %v7506_v29, 1  ;;  %v7731_v8 = vsel %vm4390_vm9, %v7501_v3, %v7730_v25 }
 0x867   :  { %v7508_v13 = vmax.f32 %v7506_v29, %v7507_v16 }
 0x869   :  { %v7732_v36 = vsel %vm4392_vm10, %v7508_v13, %v7731_v8 }
 0x86a   :  { %v7733_v35 = vsel %vm4394_vm11, %v7515_v2, %v7732_v36 }
 0x86b   :  { %7758 = vrot.lane.b32.xlu1 %v7733_v35, %s13409_s0 }
 0x87a   :  { %v7749_v62 = vpop.permute.xlu0 %7748 }
 0x87b   :  { %v7772_v59 = vsel %vm226_vm1, %v13339_v58, %v7749_v62 }
 0x87c   :  { %12958 = vmatprep.mubr.msk.f32.mxu1 %vm7796_vm0, %v7772_v59 }
 0x87d   :  { %v12918_v18 = vpop.f32.mrf.mxu0 }
 0x87e   :  { %v6901_v63 = vadd.f32 %v16186_v19, %v12918_v18 }
 0x87f   :  { %v6895_v51 = vpop.f32.mrf.mxu0 }
 0x880   :  { %v7023_v54 = vmax.f32 %v6901_v63, 0.0  ;;  %v6896_v23 = vadd.f32 %v16186_v19, %v6895_v51 }
 0x882   :  { %v7094_v46 = vmul.f32 %v16193_v50, %v7023_v54  ;;  %v7022_v11 = vmax.f32 %v6896_v23, 0.0 }
 0x884   :  { %v7165_v9 = vadd.f32 %v16205_v28, %v7094_v46  ;;  %v7093_v56 = vmul.f32 %v16193_v50, %v7022_v11 }
 0x885   :  { %v12921_v37 = vpop.f32.mrf.mxu0 }
 0x886   :  { %v7523_v60 = vsel %vm755_vm4, %v7165_v9, -inf  ;;  %v7164_v48 = vadd.f32 %v16205_v28, %v7093_v56  ;;  %v6911_v7 = vadd.f32 %v16186_v19, %v12921_v37 }
 0x887   :  { %v7524_v30 = vrot.slane %v7523_v60, 4  ;;  %v6905_v34 = vpop.f32.mrf.mxu0 }
 0x888   :  { %v7516_v10 = vsel %vm755_vm4, %v7164_v48, -inf  ;;  %v7025_v53 = vmax.f32 %v6911_v7, 0.0  ;;  %v6906_v32 = vadd.f32 %v16186_v19, %v6905_v34 }
 0x889   :  { %v7525_v31 = vmax.f32 %v7523_v60, %v7524_v30  ;;  %v7517_v17 = vrot.slane %v7516_v10, 4  ;;  %v12924_v40 = vpop.f32.mrf.mxu0 }
 0x88a   :  { %v7096_v42 = vmul.f32 %v16193_v50, %v7025_v53  ;;  %v7024_v24 = vmax.f32 %v6906_v32, 0.0  ;;  %v6921_v15 = vadd.f32 %v16186_v19, %v12924_v40 }
 0x88b   :  { %v7526_v4 = vrot.slane %v7525_v31, 2  ;;  %v7518_v52 = vmax.f32 %v7516_v10, %v7517_v17  ;;  %v6915_v6 = vpop.f32.mrf.mxu0 }
 0x88c   :  { %v7167_v29 = vadd.f32 %v16205_v28, %v7096_v42  ;;  %v7095_v39 = vmul.f32 %v16193_v50, %v7024_v24  ;;  %v7027_v47 = vmax.f32 %v6921_v15, 0.0  ;;  %v6916_v16 = vadd.f32 %v16186_v19, %v6915_v6 }
 0x88d   :  { %v7527_v25 = vmax.f32 %v7525_v31, %v7526_v4  ;;  %v7519_v3 = vrot.slane %v7518_v52, 2  ;;  %v12927_v13 = vpop.f32.mrf.mxu0 }
 0x88e   :  { %v7537_v2 = vsel %vm755_vm4, %v7167_v29, -inf  ;;  %v7166_v8 = vadd.f32 %v16205_v28, %v7095_v39  ;;  %v7098_v36 = vmul.f32 %v16193_v50, %v7027_v47  ;;  %v7026_v35 = vmax.f32 %v6916_v16, 0.0 }
 0x88f   :  { %v7520_v62 = vmax.f32 %v7518_v52, %v7519_v3  ;;  %v7538_v58 = vrot.slane %v7537_v2, 4  ;;  %v6931_v59 = vadd.f32 %v16186_v19, %v12927_v13  ;;  %v6925_v18 = vpop.f32.mrf.mxu0  ;;  %v7528_v46 = vrot.slane %v7527_v25, 1 }
 0x890   :  { %v7530_v63 = vsel %vm755_vm4, %v7166_v8, -inf  ;;  %v7169_v51 = vadd.f32 %v16205_v28, %v7098_v36  ;;  %v7097_v54 = vmul.f32 %v16193_v50, %v7026_v35  ;;  %v6926_v23 = vadd.f32 %v16186_v19, %v6925_v18 }
 0x891   :  { %v7539_v11 = vmax.f32 %v7537_v2, %v7538_v58  ;;  %v7531_v9 = vrot.slane %v7530_v63, 4  ;;  %v12930_v56 = vpop.f32.mrf.mxu0  ;;  %v7029_v48 = vmax.f32 %v6931_v59, 0.0  ;;  %v7521_v30 = vrot.slane %v7520_v62, 1 }
 0x892   :  { %v7551_v37 = vsel %vm755_vm4, %v7169_v51, -inf  ;;  %v7168_v60 = vadd.f32 %v16205_v28, %v7097_v54  ;;  %v7028_v7 = vmax.f32 %v6926_v23, 0.0  ;;  %v6941_v42 = vadd.f32 %v16186_v19, %v12930_v56 }
 0x893   :  { %v7540_v34 = vrot.slane %v7539_v11, 2  ;;  %v7532_v10 = vmax.f32 %v7530_v63, %v7531_v9  ;;  %v7552_v53 = vrot.slane %v7551_v37, 4  ;;  %v6935_v32 = vpop.f32.mrf.mxu0  ;;  %v7100_v17 = vmul.f32 %v16193_v50, %v7029_v48  ;;  %v13340_v63 = vld [vmem:[%s13428_s9 + $0x8] sm:$0xff] }
 0x894   :  { %v7544_v31 = vsel %vm755_vm4, %v7168_v60, -inf  ;;  %v7099_v40 = vmul.f32 %v16193_v50, %v7028_v7  ;;  %v7031_v47 = vmax.f32 %v6941_v42, 0.0  ;;  %v7522_v16 = vmax.f32 %v7520_v62, %v7521_v30 }
 0x895   :  { %v7541_v24 = vmax.f32 %v7539_v11, %v7540_v34  ;;  %v7533_v15 = vrot.slane %v7532_v10, 2  ;;  %v7553_v4 = vmax.f32 %v7551_v37, %v7552_v53  ;;  %v12933_v52 = vpop.f32.mrf.mxu0  ;;  %v7545_v6 = vrot.slane %v7544_v31, 4 }
 0x896   :  { %v7171_v29 = vadd.f32 %v16205_v28, %v7100_v17  ;;  %v7170_v39 = vadd.f32 %v16205_v28, %v7099_v40  ;;  %v6936_v2 = vadd.f32 %v16186_v19, %v6935_v32  ;;  %v7529_v36 = vmax.f32 %v7527_v25, %v7528_v46 }
 0x897   :  { %v7534_v3 = vmax.f32 %v7532_v10, %v7533_v15  ;;  %v7554_v13 = vrot.slane %v7553_v4, 2  ;;  %v6945_v8 = vpop.f32.mrf.mxu0  ;;  %v7751_v35 = vpop.permute.xlu1 %7750  ;;  %v7546_v58 = vmax.f32 %v7544_v31, %v7545_v6  ;;  %v7102_v18 = vmul.f32 %v16193_v50, %v7031_v47 }
 0x898   :  { %v7558_v59 = vsel %vm755_vm4, %v7170_v39, -inf  ;;  %v7773_v51 = vsel %vm226_vm1, %v13340_v63, %v7751_v35  ;;  %v7542_v54 = vrot.slane %v7541_v24, 1  ;;  %v7565_v11 = vsel %vm755_vm4, %v7171_v29, -inf }
 0x899   :  { %v7555_v23 = vmax.f32 %v7553_v4, %v7554_v13  ;;  %v12936_v62 = vpop.f32.mrf.mxu0  ;;  %12959 = vmatmul.mubr.msk.f32.vlgmr.msra.gmra.mxu1 %vm7796_vm0, %v7773_v51  ;;  %v7535_v9 = vrot.slane %v7534_v3, 1  ;;  %v7547_v56 = vrot.slane %v7546_v58, 2  ;;  %v7559_v37 = vrot.slane %v7558_v59, 4 }
 0x89a   :  { %v7173_v25 = vadd.f32 %v16205_v28, %v7102_v18  ;;  %v16313_v46 = vsel %vm4382_vm5, %v7529_v36, %v7522_v16  ;;  %v7030_v60 = vmax.f32 %v6936_v2, 0.0  ;;  %v6951_v48 = vadd.f32 %v16186_v19, %v12933_v52 }
 0x89b   :  { %v6955_v7 = vpop.f32.mrf.mxu0  ;;  %v7556_v30 = vrot.slane %v7555_v23, 1  ;;  %v7566_v34 = vrot.slane %v7565_v11, 4  ;;  %v7560_v10 = vmax.f32 %v7558_v59, %v7559_v37  ;;  %v16317_v32 = vmax.f32 %v7541_v24, %v7542_v54 }
 0x89c   :  { %v7579_v53 = vsel %vm755_vm4, %v7173_v25, -inf  ;;  %v7101_v17 = vmul.f32 %v16193_v50, %v7030_v60  ;;  %v7033_v40 = vmax.f32 %v6951_v48, 0.0  ;;  %v16320_v42 = vmax.f32 %v7534_v3, %v7535_v9 }
 0x89d   :  { %v7580_v31 = vrot.slane %v7579_v53, 4  ;;  %v7548_v15 = vmax.f32 %v7546_v58, %v7547_v56  ;;  %v7561_v4 = vrot.slane %v7560_v10, 2  ;;  %v6946_v6 = vadd.f32 %v16186_v19, %v6945_v8  ;;  %v12939_v52 = vpop.f32.mrf.mxu0  ;;  %v13341_v58 = vld [vmem:[%s13428_s9 + $0x10] sm:$0xff] }
 0x89e   :  { %v7172_v39 = vadd.f32 %v16205_v28, %v7101_v17  ;;  %v7104_v47 = vmul.f32 %v16193_v50, %v7033_v40  ;;  %v6961_v24 = vadd.f32 %v16186_v19, %v12936_v62  ;;  %v16326_v16 = vmax.f32 %v7555_v23, %v7556_v30 }
 0x89f   :  { %v7581_v29 = vmax.f32 %v7579_v53, %v7580_v31  ;;  %v7567_v13 = vmax.f32 %v7565_v11, %v7566_v34  ;;  %v7032_v36 = vmax.f32 %v6946_v6, 0.0  ;;  %v6956_v3 = vadd.f32 %v16186_v19, %v6955_v7  ;;  %v6965_v11 = vpop.f32.mrf.mxu0 }
 0x8a0   :  { %v7753_v2 = vpop.permute.xlu0 %7752  ;;  %v7572_v8 = vsel %vm755_vm4, %v7172_v39, -inf  ;;  %v7175_v18 = vadd.f32 %v16205_v28, %v7104_v47  ;;  %v7549_v63 = vrot.slane %v7548_v15, 1  ;;  %v7035_v23 = vmax.f32 %v6961_v24, 0.0 }
 0x8a1   :  { %v7582_v35 = vrot.slane %v7581_v29, 2  ;;  %v7774_v59 = vsel %vm226_vm1, %v13341_v58, %v7753_v2  ;;  %v7573_v51 = vrot.slane %v7572_v8, 4  ;;  %v7103_v54 = vmul.f32 %v16193_v50, %v7032_v36 }
 0x8a2   :  { %12961 = vmatprep.mubr.msk.f32.mxu1 %vm7796_vm0, %v7774_v59  ;;  %v7562_v62 = vmax.f32 %v7560_v10, %v7561_v4  ;;  %v7593_v9 = vsel %vm755_vm4, %v7175_v18, -inf  ;;  %v7034_v56 = vmax.f32 %v6956_v3, 0.0  ;;  %v6971_v37 = vadd.f32 %v16186_v19, %v12939_v52 }
 0x8a3   :  { %v7574_v25 = vmax.f32 %v7572_v8, %v7573_v51  ;;  %v7594_v60 = vrot.slane %v7593_v9, 4  ;;  %v7174_v48 = vadd.f32 %v16205_v28, %v7103_v54  ;;  %v7106_v7 = vmul.f32 %v16193_v50, %v7035_v23 }
 0x8a4   :  { %v7583_v30 = vmax.f32 %v7581_v29, %v7582_v35  ;;  %v7105_v34 = vmul.f32 %v16193_v50, %v7034_v56  ;;  %v7037_v53 = vmax.f32 %v6971_v37, 0.0  ;;  %v6966_v31 = vadd.f32 %v16186_v19, %v6965_v11 }
 0x8a5   :  { %v7575_v17 = vrot.slane %v7574_v25, 2  ;;  %v7595_v40 = vmax.f32 %v7593_v9, %v7594_v60  ;;  %v7586_v10 = vsel %vm755_vm4, %v7174_v48, -inf  ;;  %v7177_v4 = vadd.f32 %v16205_v28, %v7106_v7 }
 0x8a6   :  { %v7568_v6 = vrot.slane %v7567_v13, 2  ;;  %v7587_v52 = vrot.slane %v7586_v10, 4  ;;  %v7176_v39 = vadd.f32 %v16205_v28, %v7105_v34  ;;  %v7108_v47 = vmul.f32 %v16193_v50, %v7037_v53 }
 0x8a7   :  { %v7576_v24 = vmax.f32 %v7574_v25, %v7575_v17  ;;  %v7596_v2 = vrot.slane %v7595_v40, 2  ;;  %v7607_v29 = vsel %vm755_vm4, %v7177_v4, -inf  ;;  %v7036_v36 = vmax.f32 %v6966_v31, 0.0 }
 0x8a8   :  { %v7588_v3 = vmax.f32 %v7586_v10, %v7587_v52  ;;  %v7608_v35 = vrot.slane %v7607_v29, 4  ;;  %v7600_v19 = vsel %vm755_vm4, %v7176_v39, -inf  ;;  %v7179_v58 = vadd.f32 %v16205_v28, %v7108_v47 }
 0x8a9   :  { %v7563_v59 = vrot.slane %v7562_v62, 1  ;;  %v7584_v8 = vrot.slane %v7583_v30, 1  ;;  %v7601_v18 = vrot.slane %v7600_v19, 4  ;;  %v7107_v51 = vmul.f32 %v16193_v50, %v7036_v36 }
 0x8aa   :  { %v7577_v54 = vrot.slane %v7576_v24, 1  ;;  %v7589_v23 = vrot.slane %v7588_v3, 2  ;;  %v7609_v11 = vmax.f32 %v7607_v29, %v7608_v35  ;;  %v7621_v9 = vsel %vm755_vm4, %v7179_v58, -inf }
 0x8ab   :  { %v7550_v56 = vmax.f32 %v7548_v15, %v7549_v63  ;;  %v7597_v37 = vmax.f32 %v7595_v40, %v7596_v2  ;;  %v7602_v25 = vmax.f32 %v7600_v19, %v7601_v18  ;;  %v7622_v60 = vrot.slane %v7621_v9, 4 }
 0x8ac   :  { %v7590_v48 = vmax.f32 %v7588_v3, %v7589_v23  ;;  %v7610_v7 = vrot.slane %v7609_v11, 2  ;;  %v7178_v34 = vadd.f32 %v16205_v28, %v7107_v51  ;;  %v7569_v53 = vmax.f32 %v7567_v13, %v7568_v6 }
 0x8ad   :  { %v7585_v31 = vmax.f32 %v7583_v30, %v7584_v8  ;;  %v7603_v17 = vrot.slane %v7602_v25, 2  ;;  %v7623_v10 = vmax.f32 %v7621_v9, %v7622_v60  ;;  %v7564_v4 = vmax.f32 %v7562_v62, %v7563_v59  ;;  %v13342_v9 = vld [vmem:[%s13428_s9 + $0x18] sm:$0xff] }
 0x8ae   :  { %v7578_v52 = vmax.f32 %v7576_v24, %v7577_v54  ;;  %v7591_v50 = vrot.slane %v7590_v48, 1  ;;  %v7614_v39 = vsel %vm755_vm4, %v7178_v34, -inf  ;;  %v7570_v47 = vrot.slane %v7569_v53, 1 }
 0x8af   :  { %v7604_v29 = vmax.f32 %v7602_v25, %v7603_v17  ;;  %v7624_v36 = vrot.slane %v7623_v10, 2  ;;  %v7615_v15 = vrot.slane %v7614_v39, 4  ;;  %v7735_v63 = vsel %vm4384_vm6, %v16320_v42, %v16313_v46  ;;  %v13343_v17 = vld [vmem:[%s13428_s9 + $0x20] sm:$0xff] }
 0x8b0   :  { %v7598_v40 = vrot.slane %v7597_v37, 1  ;;  %v7592_v2 = vmax.f32 %v7590_v48, %v7591_v50  ;;  %v7611_v28 = vmax.f32 %v7609_v11, %v7610_v7  ;;  %v7736_v13 = vsel %vm4386_vm7, %v16317_v32, %v7735_v63 }
 0x8b1   :  { %v7605_v30 = vrot.slane %v7604_v29, 1  ;;  %v7616_v62 = vmax.f32 %v7614_v39, %v7615_v15  ;;  %v7737_v6 = vsel %vm4388_vm8, %v7550_v56, %v7736_v13  ;;  %v7741_v24 = vsel %vm4382_vm5, %v7585_v31, %v7578_v52  ;;  %v13344_v52 = vld [vmem:[%s13428_s9 + $0x28] sm:$0xff]  ;;  %v13346_v15 = vld [vmem:[%s13428_s9 + $0x38] sm:$0xff] }
 0x8b2   :  { %v7571_v3 = vmax.f32 %v7569_v53, %v7570_v47  ;;  %v7738_v35 = vsel %vm4390_vm9, %v16326_v16, %v7737_v6  ;;  %v7625_v19 = vmax.f32 %v7623_v10, %v7624_v36  ;;  %v7742_v59 = vsel %vm4384_vm6, %v7592_v2, %v7741_v24  ;;  %v13345_v47 = vld [vmem:[%s13428_s9 + $0x30] sm:$0xff]  ;;  %s17959_s9 = sld [smem:[#allocation13_spill]] }
 0x8b3   :  { %v7606_v58 = vmax.f32 %v7604_v29, %v7605_v30  ;;  %v7617_v46 = vrot.slane %v7616_v62, 2  ;;  %v7739_v42 = vsel %vm4392_vm10, %v7564_v4, %v7738_v35  ;;  %v7599_v8 = vmax.f32 %v7597_v37, %v7598_v40  ;;  %v16387_v40 = vld [vmem:[%s17958_s19] ss:$0 sm:$0xff] }
 0x8b4   :  { %v7612_v32 = vrot.slane %v7611_v28, 1  ;;  %v7740_v18 = vsel %vm4394_vm11, %v7571_v3, %v7739_v42  ;;  %v7626_v23 = vrot.slane %v7625_v19, 1 }
 0x8b5   :  { %v7618_v51 = vmax.f32 %v7616_v62, %v7617_v46  ;;  %7760 = vrot.lane.b32.xlu0 %v7740_v18, %s13409_s0  ;;  %v7743_v11 = vsel %vm4386_vm7, %v7599_v8, %v7742_v59 }
 0x8b6   :  { %v7755_v54 = vpop.permute.xlu1 %7754  ;;  %v7744_v25 = vsel %vm4388_vm8, %v7606_v58, %v7743_v11  ;;  %v7613_v60 = vmax.f32 %v7611_v28, %v7612_v32  ;;  %v7627_v48 = vmax.f32 %v7625_v19, %v7626_v23 }
 0x8b7   :  { %v7619_v16 = vrot.slane %v7618_v51, 1  ;;  %v7775_v56 = vsel %vm226_vm1, %v13342_v9, %v7755_v54 }
 0x8b8   :  { %12962 = vmatmul.mubr.msk.f32.gmra.mxu1 %vm7796_vm0, %v7775_v56  ;;  %v7745_v7 = vsel %vm4390_vm9, %v7613_v60, %v7744_v25 }
 0x8b9   :  { %v7620_v37 = vmax.f32 %v7618_v51, %v7619_v16 }
 0x8bb   :  { %v7746_v34 = vsel %vm4392_vm10, %v7620_v37, %v7745_v7 }
 0x8bc   :  { %v7747_v53 = vsel %vm4394_vm11, %v7627_v48, %v7746_v34 }
 0x8bd   :  { %7762 = vrot.lane.b32.xlu1 %v7747_v53, %s13409_s0 }
 0x8d4   :  { %v7757_v31 = vpop.permute.xlu0 %7756 }
 0x8d5   :  { %v7776_v10 = vsel %vm226_vm1, %v13343_v17, %v7757_v31 }
 0x8d6   :  { %12964 = vmatprep.mubr.msk.f32.mxu1 %vm7796_vm0, %v7776_v10 }
 0x8dd   :  { %v7759_v4 = vpop.permute.xlu1 %7758 }
 0x8de   :  { %v7777_v50 = vsel %vm226_vm1, %v13344_v52, %v7759_v4 }
 0x8df   :  { %12965 = vmatmul.mubr.msk.f32.gmra.mxu1 %vm7796_vm0, %v7777_v50 }
 0x927   :  { %v7761_v39 = vpop.permute.xlu0 %7760 }
 0x928   :  { %v7778_v29 = vsel %vm226_vm1, %v13345_v47, %v7761_v39 }
 0x929   :  { %12967 = vmatprep.mubr.msk.f32.mxu1 %vm7796_vm0, %v7778_v29 }
 0x92f   :  { %v7763_v36 = vpop.permute.xlu1 %7762 }
 0x930   :  { %v7779_v63 = vsel %vm226_vm1, %v13346_v15, %v7763_v36  ;;  %vm13413_vm1 = vmmov 0  }
 0x931   :  { %12968 = vmatmul.mubr.msk.f32.gmra.mxu1 %vm7796_vm0, %v7779_v63 }
 0x959   :  { %v12960_v2 = vpop.f32.mrf.mxu1 }
 0x95a   :  { %v7896_v28 = vadd.f32 %v12960_v2, %v16387_v40 }
 0x95b   :  { %v7890_v13 = vpop.f32.mrf.mxu1 }
 0x95c   :  { %v7993_v30 = vrot.slane %v7896_v28, %v14104_v41  ;;  %v7891_v62 = vadd.f32 %v16387_v40, %v7890_v13  ;;  %v7986_v6 = vcombine.high %v7896_v28, %v7896_v28 }
 0x95e   :  { %v8001_v24 = vcombine.high %v7993_v30, %v7993_v30  ;;  %v8009_v3 = vrot.slane %v7993_v30, %v14104_v41  ;;  %v7944_v35 = vrot.slane %v7891_v62, %v14104_v41  ;;  %v8000_v59 = vrot.slane %v7986_v6, %v14104_v41 }
 0x95f   :  { %v7937_v11 = vcombine.high %v7891_v62, %v7891_v62 }
 0x960   :  { %v8023_v19 = vrot.slane %v8001_v24, %v14104_v41  ;;  %v8364_v58 = vrot.slane %v8009_v3, %v14118_v44  ;;  %v7952_v46 = vcombine.high %v7944_v35, %v7944_v35  ;;  %v7960_v42 = vrot.slane %v7944_v35, %v14104_v41 }
 0x961   :  { %v8031_v18 = vcombine.high %v8009_v3, %v8009_v3  ;;  %v8002_v54 = vcombine.high %v8000_v59, %v8000_v59  ;;  %v8016_v9 = vrot.slane %v8000_v59, %v14104_v41  ;;  %v7951_v60 = vrot.slane %v7937_v11, %v14104_v41 }
 0x962   :  { %v8368_v8 = vrot.slane %v8023_v19, %v14118_v44  ;;  %v7974_v32 = vrot.slane %v7952_v46, %v14104_v41  ;;  %8601 = vrot.lane.b32.xlu0 %v8364_v58, %s13412_s17  ;;  %v8332_v51 = vrot.slane %v7960_v42, %v14118_v44  ;;  %v8033_v23 = vcombine.high %v8023_v19, %v8023_v19 }
 0x963   :  { %v8372_v56 = vrot.slane %v8031_v18, %v14118_v44  ;;  %v8030_v25 = vrot.slane %v8002_v54, %v14104_v41  ;;  %v7982_v48 = vcombine.high %v7960_v42, %v7960_v42  ;;  %v8380_v7 = vrot.slane %v8016_v9, %v14118_v44 }
 0x964   :  { %8603 = vrot.lane.b32.xlu1 %v8368_v8, %s13412_s17  ;;  %v8336_v16 = vrot.slane %v7974_v32, %v14118_v44  ;;  %v8376_v37 = vrot.slane %v8033_v23, %v14118_v44  ;;  %v7953_v34 = vcombine.high %v7951_v60, %v7951_v60  ;;  %v7984_v53 = vcombine.high %v7974_v32, %v7974_v32 }
 0x965   :  { %v8384_v31 = vrot.slane %v8030_v25, %v14118_v44  ;;  %v7967_v17 = vrot.slane %v7951_v60, %v14104_v41  ;;  %v8340_v10 = vrot.slane %v7982_v48, %v14118_v44  ;;  %v8032_v50 = vcombine.high %v8016_v9, %v8016_v9 }
 0x966   :  { %8585 = vrot.lane.b32.xlu0 %v8332_v51, %s13412_s17  ;;  %v7981_v4 = vrot.slane %v7953_v34, %v14104_v41  ;;  %v8344_v52 = vrot.slane %v7984_v53, %v14118_v44  ;;  %v8034_v29 = vcombine.high %v8030_v25, %v8030_v25 }
 0x967   :  { %v8348_v39 = vrot.slane %v7967_v17, %v14118_v44  ;;  %v7983_v15 = vcombine.high %v7967_v17, %v7967_v17  ;;  %v8388_v63 = vrot.slane %v8032_v50, %v14118_v44 }
 0x968   :  { %8587 = vrot.lane.b32.xlu1 %v8336_v16, %s13412_s17  ;;  %v8352_v47 = vrot.slane %v7981_v4, %v14118_v44  ;;  %v8392_v28 = vrot.slane %v8034_v29, %v14118_v44  ;;  %v7985_v13 = vcombine.high %v7981_v4, %v7981_v4 }
 0x969   :  { %v8356_v24 = vrot.slane %v7983_v15, %v14118_v44 }
 0x96a   :  { %8605 = vrot.lane.b32.xlu0 %v8372_v56, %s13412_s17  ;;  %v8360_v19 = vrot.slane %v7985_v13, %v14118_v44 }
 0x96c   :  { %8607 = vrot.lane.b32.xlu1 %v8376_v37, %s13412_s17 }
 0x96e   :  { %8609 = vrot.lane.b32.xlu0 %v8380_v7, %s13412_s17 }
 0x970   :  { %8611 = vrot.lane.b32.xlu1 %v8384_v31, %s13412_s17 }
 0x972   :  { %8589 = vrot.lane.b32.xlu0 %v8340_v10, %s13412_s17 }
 0x974   :  { %8591 = vrot.lane.b32.xlu1 %v8344_v52, %s13412_s17 }
 0x976   :  { %8593 = vrot.lane.b32.xlu0 %v8348_v39, %s13412_s17 }
 0x978   :  { %8595 = vrot.lane.b32.xlu1 %v8352_v47, %s13412_s17  ;;  %v12963_v36 = vpop.f32.mrf.mxu1 }
 0x979   :  { %v7906_v2 = vadd.f32 %v12963_v36, %v16387_v40 }
 0x97a   :  { %v7900_v30 = vpop.f32.mrf.mxu1  ;;  %8613 = vrot.lane.b32.xlu0 %v8388_v63, %s13412_s17 }
 0x97b   :  { %v8091_v62 = vrot.slane %v7906_v2, %v14104_v41  ;;  %v7901_v6 = vadd.f32 %v16387_v40, %v7900_v30  ;;  %v8084_v58 = vcombine.high %v7906_v2, %v7906_v2 }
 0x97c   :  { %8615 = vrot.lane.b32.xlu1 %v8392_v28, %s13412_s17 }
 0x97d   :  { %v8099_v3 = vcombine.high %v8091_v62, %v8091_v62  ;;  %v8107_v35 = vrot.slane %v8091_v62, %v14104_v41  ;;  %v8042_v46 = vrot.slane %v7901_v6, %v14104_v41  ;;  %v8098_v51 = vrot.slane %v8084_v58, %v14104_v41 }
 0x97e   :  { %8597 = vrot.lane.b32.xlu0 %v8356_v24, %s13412_s17  ;;  %v8035_v56 = vcombine.high %v7901_v6, %v7901_v6 }
 0x97f   :  { %v8121_v42 = vrot.slane %v8099_v3, %v14104_v41  ;;  %v8428_v59 = vrot.slane %v8107_v35, %v14118_v44  ;;  %v8050_v8 = vcombine.high %v8042_v46, %v8042_v46  ;;  %v8058_v32 = vrot.slane %v8042_v46, %v14104_v41 }
 0x980   :  { %8599 = vrot.lane.b32.xlu1 %v8360_v19, %s13412_s17  ;;  %v8129_v23 = vcombine.high %v8107_v35, %v8107_v35  ;;  %v8100_v16 = vcombine.high %v8098_v51, %v8098_v51  ;;  %v8114_v60 = vrot.slane %v8098_v51, %v14104_v41  ;;  %v8049_v7 = vrot.slane %v8035_v56, %v14104_v41 }
 0x981   :  { %v8432_v18 = vrot.slane %v8121_v42, %v14118_v44  ;;  %v8072_v54 = vrot.slane %v8050_v8, %v14104_v41  ;;  %v8396_v11 = vrot.slane %v8058_v32, %v14118_v44  ;;  %v8131_v9 = vcombine.high %v8121_v42, %v8121_v42 }
 0x982   :  { %8633 = vrot.lane.b32.xlu0 %v8428_v59, %s13412_s17  ;;  %v8436_v37 = vrot.slane %v8129_v23, %v14118_v44  ;;  %v8128_v48 = vrot.slane %v8100_v16, %v14104_v41  ;;  %v8080_v53 = vcombine.high %v8058_v32, %v8058_v32  ;;  %v8444_v31 = vrot.slane %v8114_v60, %v14118_v44 }
 0x983   :  { %v8400_v25 = vrot.slane %v8072_v54, %v14118_v44  ;;  %v8440_v34 = vrot.slane %v8131_v9, %v14118_v44  ;;  %v8051_v17 = vcombine.high %v8049_v7, %v8049_v7  ;;  %v8082_v10 = vcombine.high %v8072_v54, %v8072_v54 }
 0x984   :  { %8635 = vrot.lane.b32.xlu1 %v8432_v18, %s13412_s17  ;;  %v8448_v4 = vrot.slane %v8128_v48, %v14118_v44  ;;  %v8065_v52 = vrot.slane %v8049_v7, %v14104_v41  ;;  %v8404_v50 = vrot.slane %v8080_v53, %v14118_v44  ;;  %v8130_v29 = vcombine.high %v8114_v60, %v8114_v60 }
 0x985   :  { %v8079_v39 = vrot.slane %v8051_v17, %v14104_v41  ;;  %v8408_v47 = vrot.slane %v8082_v10, %v14118_v44  ;;  %v8132_v63 = vcombine.high %v8128_v48, %v8128_v48 }
 0x986   :  { %8617 = vrot.lane.b32.xlu0 %v8396_v11, %s13412_s17  ;;  %v8412_v36 = vrot.slane %v8065_v52, %v14118_v44  ;;  %v8081_v2 = vcombine.high %v8065_v52, %v8065_v52  ;;  %v8452_v28 = vrot.slane %v8130_v29, %v14118_v44 }
 0x987   :  { %v8416_v15 = vrot.slane %v8079_v39, %v14118_v44  ;;  %v8456_v13 = vrot.slane %v8132_v63, %v14118_v44  ;;  %v8083_v30 = vcombine.high %v8079_v39, %v8079_v39 }
 0x988   :  { %8619 = vrot.lane.b32.xlu1 %v8400_v25, %s13412_s17  ;;  %v8420_v62 = vrot.slane %v8081_v2, %v14118_v44 }
 0x989   :  { %v8424_v6 = vrot.slane %v8083_v30, %v14118_v44 }
 0x98a   :  { %8637 = vrot.lane.b32.xlu0 %v8436_v37, %s13412_s17 }
 0x98c   :  { %8639 = vrot.lane.b32.xlu1 %v8440_v34, %s13412_s17 }
 0x98e   :  { %8641 = vrot.lane.b32.xlu0 %v8444_v31, %s13412_s17 }
 0x990   :  { %8643 = vrot.lane.b32.xlu1 %v8448_v4, %s13412_s17 }
 0x992   :  { %8621 = vrot.lane.b32.xlu0 %v8404_v50, %s13412_s17 }
 0x994   :  { %8623 = vrot.lane.b32.xlu1 %v8408_v47, %s13412_s17 }
 0x996   :  { %8625 = vrot.lane.b32.xlu0 %v8412_v36, %s13412_s17 }
 0x998   :  { %8627 = vrot.lane.b32.xlu1 %v8416_v15, %s13412_s17 }
 0x99a   :  { %8645 = vrot.lane.b32.xlu0 %v8452_v28, %s13412_s17 }
 0x99c   :  { %8647 = vrot.lane.b32.xlu1 %v8456_v13, %s13412_s17 }
 0x99e   :  { %8629 = vrot.lane.b32.xlu0 %v8420_v62, %s13412_s17 }
 0x99f   :  { %v12966_v24 = vpop.f32.mrf.mxu1 }
 0x9a0   :  { %8631 = vrot.lane.b32.xlu1 %v8424_v6, %s13412_s17  ;;  %v7916_v3 = vadd.f32 %v12966_v24, %v16387_v40 }
 0x9a1   :  { %v7910_v35 = vpop.f32.mrf.mxu1 }
 0x9a2   :  { %v8189_v19 = vrot.slane %v7916_v3, %v14104_v41  ;;  %v7911_v58 = vadd.f32 %v16387_v40, %v7910_v35  ;;  %v8182_v46 = vcombine.high %v7916_v3, %v7916_v3 }
 0x9a4   :  { %v8197_v42 = vcombine.high %v8189_v19, %v8189_v19  ;;  %v8205_v59 = vrot.slane %v8189_v19, %v14104_v41  ;;  %v8140_v8 = vrot.slane %v7911_v58, %v14104_v41  ;;  %v8196_v23 = vrot.slane %v8182_v46, %v14104_v41  ;;  %v9040_v19 = vld [vmem:[%s17959_s9 + $0x38] sm:$0xff] }
 0x9a5   :  { %v8133_v37 = vcombine.high %v7911_v58, %v7911_v58  ;;  %12970 = vmatprep.subr.mxu1 %v9040_v19  ;;  %v9039_v58 = vld [vmem:[%s17959_s9 + $0x30] sm:$0xff] }
 0x9a6   :  { %v8219_v32 = vrot.slane %v8197_v42, %v14104_v41  ;;  %v8492_v18 = vrot.slane %v8205_v59, %v14118_v44  ;;  %v8148_v51 = vcombine.high %v8140_v8, %v8140_v8  ;;  %v8156_v54 = vrot.slane %v8140_v8, %v14104_v41  ;;  %12971 = vmatpush3.msra.mxu1 %v9040_v19 }
 0x9a7   :  { %v8227_v9 = vcombine.high %v8205_v59, %v8205_v59  ;;  %v8198_v25 = vcombine.high %v8196_v23, %v8196_v23  ;;  %v8212_v7 = vrot.slane %v8196_v23, %v14104_v41  ;;  %v8147_v31 = vrot.slane %v8133_v37, %v14104_v41  ;;  %12972 = vmatprep.subr.mxu1 %v9039_v58  ;;  %v17960_v59 = vld [vmem:[#allocation30_spill] sm:$0xff]  ;;  %v17962_v37 = vld [vmem:[#allocation31_spill] sm:$0xff] }
 0x9a8   :  { %v8496_v11 = vrot.slane %v8219_v32, %v14118_v44  ;;  %v8170_v16 = vrot.slane %v8148_v51, %v14104_v41  ;;  %8665 = vrot.lane.b32.xlu0 %v8492_v18, %s13412_s17  ;;  %v8460_v56 = vrot.slane %v8156_v54, %v14118_v44  ;;  %v8229_v60 = vcombine.high %v8219_v32, %v8219_v32  ;;  %v9038_v18 = vld [vmem:[%s17959_s9 + $0x28] sm:$0xff]  ;;  %v9037_v23 = vld [vmem:[%s17959_s9 + $0x20] sm:$0xff] }
 0x9a9   :  { %v8500_v34 = vrot.slane %v8227_v9, %v14118_v44  ;;  %v8226_v53 = vrot.slane %v8198_v25, %v14104_v41  ;;  %v8178_v10 = vcombine.high %v8156_v54, %v8156_v54  ;;  %v8508_v4 = vrot.slane %v8212_v7, %v14118_v44  ;;  %12973 = vmatpush3.msra.mxu1 %v9039_v58  ;;  %v17961_v9 = vld [vmem:[#allocation22_spill] sm:$0xff]  ;;  %v9036_v25 = vld [vmem:[%s17959_s9 + $0x18] sm:$0xff] }
 0x9aa   :  { %8667 = vrot.lane.b32.xlu1 %v8496_v11, %s13412_s17  ;;  %v8464_v48 = vrot.slane %v8170_v16, %v14118_v44  ;;  %v8504_v17 = vrot.slane %v8229_v60, %v14118_v44  ;;  %v8149_v52 = vcombine.high %v8147_v31, %v8147_v31  ;;  %v8180_v50 = vcombine.high %v8170_v16, %v8170_v16 }
 0x9ab   :  { %v8512_v39 = vrot.slane %v8226_v53, %v14118_v44  ;;  %v8163_v47 = vrot.slane %v8147_v31, %v14104_v41  ;;  %v8468_v29 = vrot.slane %v8178_v10, %v14118_v44  ;;  %v8228_v63 = vcombine.high %v8212_v7, %v8212_v7  ;;  %12974 = vmatprep.subr.mxu1 %v9038_v18 }
 0x9ac   :  { %8649 = vrot.lane.b32.xlu0 %v8460_v56, %s13412_s17  ;;  %v8177_v36 = vrot.slane %v8149_v52, %v14104_v41  ;;  %v8472_v15 = vrot.slane %v8180_v50, %v14118_v44  ;;  %v8230_v13 = vcombine.high %v8226_v53, %v8226_v53  ;;  %12975 = vmatpush3.msra.mxu1 %v9038_v18  ;;  %v9035_v53 = vld [vmem:[%s17959_s9 + $0x10] sm:$0xff] }
 0x9ad   :  { %v8476_v2 = vrot.slane %v8163_v47, %v14118_v44  ;;  %v8179_v30 = vcombine.high %v8163_v47, %v8163_v47  ;;  %v8516_v62 = vrot.slane %v8228_v63, %v14118_v44  ;;  %12976 = vmatprep.subr.mxu1 %v9037_v23  ;;  %v17963_v52 = vld [vmem:[#allocation32_spill] sm:$0xff]  ;;  %v9033_v47 = vld [vmem:[%s17959_s9] sm:$0xff] }
 0x9ae   :  { %8651 = vrot.lane.b32.xlu1 %v8464_v48, %s13412_s17  ;;  %v8480_v28 = vrot.slane %v8177_v36, %v14118_v44  ;;  %v8520_v6 = vrot.slane %v8230_v13, %v14118_v44  ;;  %v8181_v24 = vcombine.high %v8177_v36, %v8177_v36  ;;  %12977 = vmatpush3.msra.mxu1 %v9037_v23  ;;  %v17968_v23 = vld [vmem:[#allocation26_spill] sm:$0xff] }
 0x9af   :  { %v8484_v3 = vrot.slane %v8179_v30, %v14118_v44  ;;  %12978 = vmatprep.subr.mxu1 %v9036_v25  ;;  %v17965_v30 = vmov 0.0  }
 0x9b0   :  { %8669 = vrot.lane.b32.xlu0 %v8500_v34, %s13412_s17  ;;  %v8488_v35 = vrot.slane %v8181_v24, %v14118_v44  ;;  %12979 = vmatpush3.msra.mxu1 %v9036_v25 }
 0x9b1   :  { %12980 = vmatprep.subr.mxu1 %v9035_v53 }
 0x9b2   :  { %8671 = vrot.lane.b32.xlu1 %v8504_v17, %s13412_s17  ;;  %v9034_v17 = vld [vmem:[%s17959_s9 + $0x8] sm:$0xff]  ;;  %12981 = vmatpush3.msra.mxu1 %v9035_v53 }
 0x9b3   :  { %12982 = vmatprep.subr.mxu1 %v9034_v17  ;;  %v17970_v53 = vld [vmem:[#allocation35_spill] sm:$0xff] }
 0x9b4   :  { %8673 = vrot.lane.b32.xlu0 %v8508_v4, %s13412_s17  ;;  %12983 = vmatpush3.msra.mxu1 %v9034_v17 }
 0x9b5   :  { %12984 = vmatprep.subr.mxu1 %v9033_v47 }
 0x9b6   :  { %8675 = vrot.lane.b32.xlu1 %v8512_v39, %s13412_s17  ;;  %12985 = vmatpush3.msra.mxu1 %v9033_v47  ;;  %v17972_v47 = vld [vmem:[#allocation25_spill] sm:$0xff] }
 0x9b7   :  { %13210 = vmatprep.subr.mxu1 %v17965_v30 }
 0x9b8   :  { %8653 = vrot.lane.b32.xlu0 %v8468_v29, %s13412_s17 }
 0x9ba   :  { %8655 = vrot.lane.b32.xlu1 %v8472_v15, %s13412_s17 }
 0x9bc   :  { %8657 = vrot.lane.b32.xlu0 %v8476_v2, %s13412_s17  ;;  %v17964_v2 = vld [vmem:[#allocation34_spill] sm:$0xff] }
 0x9be   :  { %8659 = vrot.lane.b32.xlu1 %v8480_v28, %s13412_s17 }
 0x9c0   :  { %8677 = vrot.lane.b32.xlu0 %v8516_v62, %s13412_s17 }
 0x9c2   :  { %8679 = vrot.lane.b32.xlu1 %v8520_v6, %s13412_s17  ;;  %v17966_v6 = vld [vmem:[#allocation23_spill] sm:$0xff] }
 0x9c4   :  { %8661 = vrot.lane.b32.xlu0 %v8484_v3, %s13412_s17 }
 0x9c6   :  { %8663 = vrot.lane.b32.xlu1 %v8488_v35, %s13412_s17 }
 0x9d4   :  { %v8602_v46 = vpop.permute.xlu0 %8601 }
 0x9d5   :  { %v8793_v42 = vadd.f32 %v8602_v46, %v14238_v57  ;;  %v8794_v8 = vadd.f32 %v8602_v46, %v17960_v59  ;;  %v17967_v59 = vld [vmem:[#allocation24_spill] sm:$0xff] }
 0x9d6   :  { %v8604_v32 = vpop.permute.xlu1 %8603 }
 0x9d7   :  { %v8921_v51 = vmax.f32 %v8793_v42, 0.0  ;;  %v8922_v54 = vmax.f32 %v8794_v8, 0.0  ;;  %v8795_v60 = vadd.f32 %v8604_v32, %v14250_v21  ;;  %v8796_v48 = vadd.f32 %v8604_v32, %v17962_v37 }
 0x9d8   :  { %v8586_v11 = vpop.permute.xlu0 %8585 }
 0x9d9   :  { %v8777_v16 = vadd.f32 %v8586_v11, %v14132_v12  ;;  %v8778_v56 = vadd.f32 %v8586_v11, %v17961_v9  ;;  %9208 = vrot.lane.b32.xlu0 %v8921_v51, %s13411_s5  ;;  %9210 = vrot.lane.b32.xlu1 %v8922_v54, %s13411_s5  ;;  %v8923_v10 = vmax.f32 %v8795_v60, 0.0  ;;  %v8924_v4 = vmax.f32 %v8796_v48, 0.0 }
 0x9da   :  { %v8588_v57 = vpop.permute.xlu1 %8587 }
 0x9db   :  { %v8905_v7 = vmax.f32 %v8777_v16, 0.0  ;;  %v8906_v34 = vmax.f32 %v8778_v56, 0.0  ;;  %v8779_v62 = vadd.f32 %v8588_v57, %v14144_v55  ;;  %v8780_v24 = vadd.f32 %v8588_v57, %v17966_v6  ;;  %v17969_v56 = vld [vmem:[#allocation33_spill] sm:$0xff] }
 0x9dc   :  { %v8606_v12 = vpop.permute.xlu0 %8605 }
 0x9dd   :  { %9176 = vrot.lane.b32.xlu0 %v8905_v7, %s13411_s5  ;;  %9178 = vrot.lane.b32.xlu1 %v8906_v34, %s13411_s5  ;;  %v8797_v21 = vadd.f32 %v8606_v12, %v14261_v26  ;;  %v8798_v50 = vadd.f32 %v8606_v12, %v17963_v52  ;;  %v8907_v58 = vmax.f32 %v8779_v62, 0.0  ;;  %v8908_v46 = vmax.f32 %v8780_v24, 0.0  ;;  %v17973_v62 = vld [vmem:[#allocation27_spill] sm:$0xff] }
 0x9de   :  { %v8608_v31 = vpop.permute.xlu1 %8607 }
 0x9df   :  { %v8925_v36 = vmax.f32 %v8797_v21, 0.0  ;;  %v8926_v15 = vmax.f32 %v8798_v50, 0.0  ;;  %v8800_v57 = vadd.f32 %v8608_v31, %v17969_v56  ;;  %v17971_v21 = vld [vmem:[#allocation36_spill] sm:$0xff]  ;;  %v17977_v56 = vld [vmem:[#allocation54_spill] sm:$0xff] }
 0x9e0   :  { %v8610_v39 = vpop.permute.xlu0 %8609 }
 0x9e1   :  { %9212 = vrot.lane.b32.xlu0 %v8923_v10, %s13411_s5  ;;  %9214 = vrot.lane.b32.xlu1 %v8924_v4, %s13411_s5  ;;  %v8801_v63 = vadd.f32 %v8610_v39, %v14287_v49  ;;  %v8802_v28 = vadd.f32 %v8610_v39, %v17964_v2  ;;  %v8928_v7 = vmax.f32 %v8800_v57, 0.0 }
 0x9e2   :  { %v8612_v29 = vpop.permute.xlu1 %8611 }
 0x9e3   :  { %v8929_v3 = vmax.f32 %v8801_v63, 0.0  ;;  %v8930_v35 = vmax.f32 %v8802_v28, 0.0  ;;  %v8803_v34 = vadd.f32 %v8612_v29, %v14299_v61  ;;  %v8804_v12 = vadd.f32 %v8612_v29, %v17970_v53  ;;  %v17980_v53 = vld [vmem:[#allocation56_spill] sm:$0xff] }
 0x9e4   :  { %v8590_v26 = vpop.permute.xlu0 %8589 }
 0x9e5   :  { %9216 = vrot.lane.b32.xlu0 %v8925_v36, %s13411_s5  ;;  %9218 = vrot.lane.b32.xlu1 %v8926_v15, %s13411_s5  ;;  %v8781_v42 = vadd.f32 %v8590_v26, %v14156_v0  ;;  %v8782_v8 = vadd.f32 %v8590_v26, %v17967_v59  ;;  %v8799_v0 = vadd.f32 %v8608_v31, %v14275_v38  ;;  %v8931_v31 = vmax.f32 %v8803_v34, 0.0 }
 0x9e6   :  { %v8592_v13 = vpop.permute.xlu1 %8591  ;;  %v8932_v10 = vmax.f32 %v8804_v12, 0.0 }
 0x9e7   :  { %v8909_v18 = vmax.f32 %v8781_v42, 0.0  ;;  %v8910_v51 = vmax.f32 %v8782_v8, 0.0  ;;  %v8927_v48 = vmax.f32 %v8799_v0, 0.0  ;;  %v8783_v39 = vadd.f32 %v8592_v13, %v14169_v1 }
 0x9e8   :  { %v8594_v19 = vpop.permute.xlu0 %8593  ;;  %v8784_v29 = vadd.f32 %v8592_v13, %v17972_v47  ;;  %v17982_v47 = vld [vmem:[#allocation58_spill] sm:$0xff] }
 0x9e9   :  { %9224 = vrot.lane.b32.xlu0 %v8929_v3, %s13411_s5  ;;  %9226 = vrot.lane.b32.xlu1 %v8930_v35, %s13411_s5  ;;  %v8785_v54 = vadd.f32 %v8594_v19, %v14186_v20  ;;  %v8786_v11 = vadd.f32 %v8594_v19, %v17968_v23  ;;  %v8911_v2 = vmax.f32 %v8783_v39, 0.0  ;;  %v17974_v19 = vld [vmem:[#allocation28_spill] sm:$0xff] }
 0x9ea   :  { %v8596_v49 = vpop.permute.xlu1 %8595  ;;  %v8912_v28 = vmax.f32 %v8784_v29, 0.0 }
 0x9eb   :  { %v8913_v25 = vmax.f32 %v8785_v54, 0.0  ;;  %v8914_v60 = vmax.f32 %v8786_v11, 0.0  ;;  %v8787_v26 = vadd.f32 %v8596_v49, %v14200_v27  ;;  %v8788_v6 = vadd.f32 %v8596_v49, %v17973_v62  ;;  %v17975_v49 = vld [vmem:[#allocation37_spill] sm:$0xff]  ;;  %v17984_v62 = vld [vmem:[#allocation62_spill] sm:$0xff] }
 0x9ec   :  { %v8614_v32 = vpop.permute.xlu0 %8613  ;;  %v17976_v54 = vld [vmem:[#allocation29_spill] sm:$0xff] }
 0x9ed   :  { %9180 = vrot.lane.b32.xlu0 %v8907_v58, %s13411_s5  ;;  %9182 = vrot.lane.b32.xlu1 %v8908_v46, %s13411_s5  ;;  %v8805_v4 = vadd.f32 %v8614_v32, %v14312_v14  ;;  %v8806_v52 = vadd.f32 %v8614_v32, %v17971_v21  ;;  %v8915_v24 = vmax.f32 %v8787_v26, 0.0  ;;  %v8916_v3 = vmax.f32 %v8788_v6, 0.0 }
 0x9ee   :  { %v8616_v55 = vpop.permute.xlu1 %8615 }
 0x9ef   :  { %v8933_v36 = vmax.f32 %v8805_v4, 0.0  ;;  %v8934_v15 = vmax.f32 %v8806_v52, 0.0  ;;  %v8807_v27 = vadd.f32 %v8616_v55, %v14323_v22  ;;  %v8808_v46 = vadd.f32 %v8616_v55, %v17975_v49  ;;  %v17981_v52 = vld [vmem:[#allocation57_spill] sm:$0xff] }
 0x9f0   :  { %v8598_v16 = vpop.permute.xlu0 %8597 }
 0x9f1   :  { %9184 = vrot.lane.b32.xlu0 %v8909_v18, %s13411_s5  ;;  %9186 = vrot.lane.b32.xlu1 %v8910_v51, %s13411_s5  ;;  %v8789_v35 = vadd.f32 %v8598_v16, %v14212_v43  ;;  %v8790_v58 = vadd.f32 %v8598_v16, %v17974_v19  ;;  %v8935_v43 = vmax.f32 %v8807_v27, 0.0  ;;  %v8936_v18 = vmax.f32 %v8808_v46, 0.0 }
 0x9f2   :  { %v8600_v9 = vpop.permute.xlu1 %8599 }
 0x9f3   :  { %v8917_v42 = vmax.f32 %v8789_v35, 0.0  ;;  %v8918_v59 = vmax.f32 %v8790_v58, 0.0  ;;  %v8791_v51 = vadd.f32 %v8600_v9, %v14224_v33  ;;  %v8792_v23 = vadd.f32 %v8600_v9, %v17976_v54 }
 0x9f4   :  { %v8634_v37 = vpop.permute.xlu0 %8633 }
 0x9f5   :  { %9192 = vrot.lane.b32.xlu0 %v8913_v25, %s13411_s5  ;;  %9194 = vrot.lane.b32.xlu1 %v8914_v60, %s13411_s5  ;;  %v8919_v11 = vmax.f32 %v8791_v51, 0.0  ;;  %v8920_v16 = vmax.f32 %v8792_v23, 0.0  ;;  %v8825_v0 = vadd.f32 %v8634_v37, %v14397_v5  ;;  %v8826_v57 = vadd.f32 %v8634_v37, %v17977_v56  ;;  %v17978_v60 = vld [vmem:[#allocation39_spill] sm:$0xff] }
 0x9f6   :  { %v16570_v20 = vpop.permute.xlu1 %8635  ;;  %v17979_v5 = vld [vmem:[#allocation55_spill] sm:$0xff] }
 0x9f7   :  { %v8953_v33 = vmax.f32 %v8825_v0, 0.0  ;;  %v8954_v9 = vmax.f32 %v8826_v57, 0.0  ;;  %v8827_v37 = vadd.f32 %v16570_v20, %v17979_v5  ;;  %v8828_v12 = vadd.f32 %v16570_v20, %v17980_v53  ;;  %v17990_v0 = vld [vmem:[#allocation47_spill] sm:$0xff] }
 0x9f8   :  { %v8618_v17 = vpop.permute.xlu0 %8617  ;;  %v17993_v53 = vld [vmem:[#allocation63_spill] sm:$0xff] }
 0x9f9   :  { %9220 = vrot.lane.b32.xlu0 %v8927_v48, %s13411_s5  ;;  %9222 = vrot.lane.b32.xlu1 %v8928_v7, %s13411_s5  ;;  %v8809_v25 = vadd.f32 %v8618_v17, %v17906_v45  ;;  %v8810_v48 = vadd.f32 %v8618_v17, %v17978_v60  ;;  %v8955_v17 = vmax.f32 %v8827_v37, 0.0  ;;  %v8956_v21 = vmax.f32 %v8828_v12, 0.0 }
 0x9fa   :  { %v16576_v38 = vpop.permute.xlu1 %8619 }
 0x9fc   :  { %v16580_v50 = vpop.permute.xlu0 %8637 }
 0x9fd   :  { %9228 = vrot.lane.b32.xlu0 %v8931_v31, %s13411_s5  ;;  %9230 = vrot.lane.b32.xlu1 %v8932_v10, %s13411_s5  ;;  %v8937_v31 = vmax.f32 %v8809_v25, 0.0  ;;  %v8938_v10 = vmax.f32 %v8810_v48, 0.0  ;;  %v8829_v39 = vadd.f32 %v16580_v50, %v17981_v52  ;;  %v8830_v29 = vadd.f32 %v16580_v50, %v17982_v47  ;;  %v17985_v50 = vld [vmem:[#allocation40_spill] sm:$0xff] }
 0x9fe   :  { %v16584_v61 = vpop.permute.xlu1 %8639 }
 0xa00   :  { %v16588_v63 = vpop.permute.xlu0 %8641 }
 0xa01   :  { %9232 = vrot.lane.b32.xlu0 %v8933_v36, %s13411_s5  ;;  %9234 = vrot.lane.b32.xlu1 %v8934_v15, %s13411_s5  ;;  %v8957_v15 = vmax.f32 %v8829_v39, 0.0  ;;  %v8834_v6 = vadd.f32 %v16588_v63, %v17984_v62  ;;  %v17995_v39 = vld [vmem:[#allocation65_spill] sm:$0xff] }
 0xa02   :  { %v16592_v14 = vpop.permute.xlu1 %8643 }
 0xa03   :  { %v8962_v58 = vmax.f32 %v8834_v6, 0.0  ;;  %v8835_v12 = vadd.f32 %v16592_v14, %v17993_v53 }
 0xa04   :  { %v16598_v1 = vpop.permute.xlu0 %8621 }
 0xa05   :  { %9188 = vrot.lane.b32.xlu0 %v8911_v2, %s13411_s5  ;;  %9190 = vrot.lane.b32.xlu1 %v8912_v28, %s13411_s5  ;;  %v8958_v2 = vmax.f32 %v8830_v29, 0.0  ;;  %v17983_v28 = vld [vmem:[#allocation61_spill] sm:$0xff]  ;;  %v17996_v29 = vld [vmem:[#allocation66_spill] sm:$0xff] }
 0xa06   :  { %v16600_v13 = vpop.permute.xlu1 %8623  ;;  %v8833_v26 = vadd.f32 %v16588_v63, %v17983_v28  ;;  %v17998_v28 = vld [vmem:[#allocation45_spill] sm:$0xff] }
 0xa08   :  { %v16608_v8 = vpop.permute.xlu0 %8625  ;;  %v8961_v19 = vmax.f32 %v8833_v26, 0.0  ;;  %v8816_v26 = vadd.f32 %v16600_v13, %v17998_v28 }
 0xa09   :  { %9196 = vrot.lane.b32.xlu0 %v8915_v24, %s13411_s5  ;;  %9198 = vrot.lane.b32.xlu1 %v8916_v3, %s13411_s5  ;;  %v8811_v24 = vadd.f32 %v16576_v38, %v17985_v50  ;;  %v17986_v3 = vld [vmem:[#allocation41_spill] sm:$0xff]  ;;  %v8818_v56 = vadd.f32 %v16608_v8, %v17990_v0 }
 0xa0a   :  { %v16610_v32 = vpop.permute.xlu1 %8627  ;;  %v8812_v35 = vadd.f32 %v16576_v38, %v17986_v3 }
 0xa0b   :  { %v8939_v63 = vmax.f32 %v8811_v24, 0.0  ;;  %v8946_v60 = vmax.f32 %v8818_v56, 0.0 }
 0xa0c   :  { %v16618_v22 = vpop.permute.xlu0 %8645  ;;  %v8940_v46 = vmax.f32 %v8812_v35, 0.0  ;;  %v8944_v35 = vmax.f32 %v8816_v26, 0.0 }
 0xa0d   :  { %9200 = vrot.lane.b32.xlu0 %v8917_v42, %s13411_s5  ;;  %9202 = vrot.lane.b32.xlu1 %v8918_v59, %s13411_s5  ;;  %v17987_v42 = vld [vmem:[#allocation42_spill] sm:$0xff]  ;;  %v8837_v47 = vadd.f32 %v16618_v22, %v17995_v39 }
 0xa0e   :  { %v16620_v55 = vpop.permute.xlu1 %8647  ;;  %v8813_v59 = vadd.f32 %v16598_v1, %v17987_v42 }
 0xa0f   :  { %v8965_v62 = vmax.f32 %v8837_v47, 0.0 }
 0xa10   :  { %v16628_v7 = vpop.permute.xlu0 %8629  ;;  %v8941_v54 = vmax.f32 %v8813_v59, 0.0 }
 0xa11   :  { %9236 = vrot.lane.b32.xlu0 %v8935_v43, %s13411_s5  ;;  %9238 = vrot.lane.b32.xlu1 %v8936_v18, %s13411_s5  ;;  %v17988_v43 = vld [vmem:[#allocation43_spill] sm:$0xff] }
 0xa12   :  { %v16630_v34 = vpop.permute.xlu1 %8631  ;;  %v8814_v18 = vadd.f32 %v16598_v1, %v17988_v43  ;;  %v17991_v1 = vld [vmem:[#allocation59_spill] sm:$0xff] }
 0xa13   :  { %v8831_v57 = vadd.f32 %v16584_v61, %v17991_v1  ;;  %v18003_v1 = vld [vmem:[#allocation67_spill] sm:$0xff] }
 0xa14   :  { %v8942_v23 = vmax.f32 %v8814_v18, 0.0 }
 0xa15   :  { %9204 = vrot.lane.b32.xlu0 %v8919_v11, %s13411_s5  ;;  %9206 = vrot.lane.b32.xlu1 %v8920_v16, %s13411_s5  ;;  %v17989_v11 = vld [vmem:[#allocation46_spill] sm:$0xff] }
 0xa16   :  { %v8817_v16 = vadd.f32 %v16608_v8, %v17989_v11  ;;  %v8959_v8 = vmax.f32 %v8831_v57, 0.0  ;;  %v8839_v57 = vadd.f32 %v16620_v55, %v18003_v1 }
 0xa18   :  { %v8945_v25 = vmax.f32 %v8817_v16, 0.0  ;;  %v18002_v16 = vld [vmem:[#allocation51_spill] sm:$0xff] }
 0xa19   :  { %9272 = vrot.lane.b32.xlu0 %v8953_v33, %s13411_s5  ;;  %9274 = vrot.lane.b32.xlu1 %v8954_v9, %s13411_s5  ;;  %v17992_v33 = vld [vmem:[#allocation60_spill] sm:$0xff]  ;;  %v8822_v0 = vadd.f32 %v16628_v7, %v18002_v16 }
 0xa1a   :  { %v16638_v4 = vpop.permute.xlu0 %8665  ;;  %v8832_v9 = vadd.f32 %v16584_v61, %v17992_v33  ;;  %v18004_v33 = vld [vmem:[#allocation68_spill] sm:$0xff] }
 0xa1c   :  { %v16640_v45 = vpop.permute.xlu1 %8667  ;;  %v8960_v37 = vmax.f32 %v8832_v9, 0.0  ;;  %v8840_v9 = vadd.f32 %v16620_v55, %v18004_v33 }
 0xa1d   :  { %9240 = vrot.lane.b32.xlu0 %v8937_v31, %s13411_s5  ;;  %9242 = vrot.lane.b32.xlu1 %v8938_v10, %s13411_s5  ;;  %v17994_v31 = vld [vmem:[#allocation64_spill] sm:$0xff] }
 0xa1e   :  { %v16650_v20 = vpop.permute.xlu0 %8649  ;;  %v8836_v10 = vadd.f32 %v16592_v14, %v17994_v31  ;;  %v17997_v14 = vld [vmem:[#allocation44_spill] sm:$0xff] }
 0xa1f   :  { %v18005_v31 = vld [vmem:[#allocation52_spill] sm:$0xff] }
 0xa20   :  { %v16652_v36 = vpop.permute.xlu1 %8651  ;;  %v8964_v52 = vmax.f32 %v8836_v10, 0.0  ;;  %v8823_v10 = vadd.f32 %v16630_v34, %v18005_v31 }
 0xa21   :  { %9276 = vrot.lane.b32.xlu0 %v8955_v17, %s13411_s5  ;;  %9278 = vrot.lane.b32.xlu1 %v8956_v21, %s13411_s5  ;;  %v8963_v21 = vmax.f32 %v8835_v12, 0.0  ;;  %v8968_v12 = vmax.f32 %v8840_v9, 0.0 }
 0xa22   :  { %v16664_v27 = vpop.permute.xlu0 %8669  ;;  %v8951_v28 = vmax.f32 %v8823_v10, 0.0 }
 0xa24   :  { %v16666_v49 = vpop.permute.xlu1 %8671 }
 0xa25   :  { %9280 = vrot.lane.b32.xlu0 %v8957_v15, %s13411_s5  ;;  %9282 = vrot.lane.b32.xlu1 %v8958_v2, %s13411_s5  ;;  %v8838_v15 = vadd.f32 %v16618_v22, %v17996_v29  ;;  %v8815_v2 = vadd.f32 %v16600_v13, %v17997_v14  ;;  %v12969_v22 = vpop.f32.mrf.mxu1 }
 0xa26   :  { %v16676_v38 = vpop.permute.xlu0 %8673  ;;  %v7926_v59 = vadd.f32 %v12969_v22, %v16387_v40 }
 0xa27   :  { %v8966_v6 = vmax.f32 %v8838_v15, 0.0  ;;  %v8943_v3 = vmax.f32 %v8815_v2, 0.0  ;;  %v7920_v43 = vpop.f32.mrf.mxu1 }
 0xa28   :  { %v16678_v51 = vpop.permute.xlu1 %8675  ;;  %v7921_v56 = vadd.f32 %v16387_v40, %v7920_v43  ;;  %v8967_v40 = vmax.f32 %v8839_v57, 0.0  ;;  %v8280_v29 = vcombine.high %v7926_v59, %v7926_v59 }
 0xa29   :  { %9288 = vrot.lane.b32.xlu0 %v8961_v19, %s13411_s5  ;;  %9290 = vrot.lane.b32.xlu1 %v8962_v58, %s13411_s5  ;;  %v17999_v19 = vld [vmem:[#allocation48_spill] sm:$0xff] }
 0xa2a   :  { %v16690_v48 = vpop.permute.xlu0 %8653  ;;  %v8819_v58 = vadd.f32 %v16610_v32, %v17999_v19  ;;  %v8238_v53 = vrot.slane %v7921_v56, %v14104_v41 }
 0xa2c   :  { %v16692_v5 = vpop.permute.xlu1 %8655  ;;  %v8947_v18 = vmax.f32 %v8819_v58, 0.0  ;;  %v8246_v2 = vcombine.high %v8238_v53, %v8238_v53 }
 0xa2d   :  { %9244 = vrot.lane.b32.xlu0 %v8939_v63, %s13411_s5  ;;  %9246 = vrot.lane.b32.xlu1 %v8940_v46, %s13411_s5  ;;  %v18000_v63 = vld [vmem:[#allocation49_spill] sm:$0xff] }
 0xa2e   :  { %v16702_v61 = vpop.permute.xlu0 %8657  ;;  %v8820_v46 = vadd.f32 %v16610_v32, %v18000_v63  ;;  %v8287_v32 = vrot.slane %v7926_v59, %v14104_v41  ;;  %v8231_v59 = vcombine.high %v7921_v56, %v7921_v56 }
 0xa30   :  { %v16704_v17 = vpop.permute.xlu1 %8659  ;;  %v8303_v15 = vrot.slane %v8287_v32, %v14104_v41 }
 0xa31   :  { %9248 = vrot.lane.b32.xlu0 %v8941_v54, %s13411_s5  ;;  %9250 = vrot.lane.b32.xlu1 %v8942_v23, %s13411_s5  ;;  %v8948_v54 = vmax.f32 %v8820_v46, 0.0  ;;  %v18001_v23 = vld [vmem:[#allocation50_spill] sm:$0xff] }
 0xa32   :  { %v16716_v50 = vpop.permute.xlu0 %8677  ;;  %v8821_v11 = vadd.f32 %v16628_v7, %v18001_v23  ;;  %v8295_v7 = vcombine.high %v8287_v32, %v8287_v32  ;;  %v8556_v22 = vrot.slane %v8303_v15, %v14118_v44  ;;  %v8325_v43 = vcombine.high %v8303_v15, %v8303_v15 }
 0xa34   :  { %v16718_v24 = vpop.permute.xlu1 %8679  ;;  %v8317_v14 = vrot.slane %v8295_v7, %v14104_v41  ;;  %v8564_v57 = vrot.slane %v8325_v43, %v14118_v44  ;;  %v18007_v43 = vld [vmem:[#allocation85_spill] sm:$0xff] }
 0xa35   :  { %9256 = vrot.lane.b32.xlu0 %v8945_v25, %s13411_s5  ;;  %9258 = vrot.lane.b32.xlu1 %v8946_v60, %s13411_s5  ;;  %v8949_v25 = vmax.f32 %v8821_v11, 0.0  ;;  %v8950_v60 = vmax.f32 %v8822_v0, 0.0  ;;  %v8245_v0 = vrot.slane %v8231_v59, %v14104_v41 }
 0xa36   :  { %v16727_v13 = vpop.permute.xlu0 %8661  ;;  %v8560_v63 = vrot.slane %v8317_v14, %v14118_v44 }
 0xa38   :  { %v16730_v42 = vpop.permute.xlu1 %8663 }
 0xa39   :  { %9284 = vrot.lane.b32.xlu0 %v8959_v8, %s13411_s5  ;;  %9286 = vrot.lane.b32.xlu1 %v8960_v37, %s13411_s5 }
 0xa3d   :  { %9292 = vrot.lane.b32.xlu0 %v8963_v21, %s13411_s5  ;;  %9294 = vrot.lane.b32.xlu1 %v8964_v52, %s13411_s5  ;;  %v18006_v21 = vld [vmem:[#allocation53_spill] sm:$0xff] }
 0xa3e   :  { %v8824_v55 = vadd.f32 %v16630_v34, %v18006_v21 }
 0xa40   :  { %v8952_v26 = vmax.f32 %v8824_v55, 0.0  ;;  %v8261_v55 = vrot.slane %v8245_v0, %v14104_v41 }
 0xa41   :  { %9296 = vrot.lane.b32.xlu0 %v8965_v62, %s13411_s5  ;;  %9298 = vrot.lane.b32.xlu1 %v8966_v6, %s13411_s5  ;;  %v8294_v6 = vrot.slane %v8280_v29, %v14104_v41 }
 0xa43   :  { %v8296_v46 = vcombine.high %v8294_v6, %v8294_v6  ;;  %v8310_v32 = vrot.slane %v8294_v6, %v14104_v41 }
 0xa45   :  { %9252 = vrot.lane.b32.xlu0 %v8943_v3, %s13411_s5  ;;  %9254 = vrot.lane.b32.xlu1 %v8944_v35, %s13411_s5  ;;  %v8254_v3 = vrot.slane %v8238_v53, %v14104_v41  ;;  %v8268_v35 = vrot.slane %v8246_v2, %v14104_v41  ;;  %v8324_v56 = vrot.slane %v8296_v46, %v14104_v41 }
 0xa47   :  { %v8528_v16 = vrot.slane %v8268_v35, %v14118_v44  ;;  %v8276_v7 = vcombine.high %v8254_v3, %v8254_v3  ;;  %v8278_v53 = vcombine.high %v8268_v35, %v8268_v35  ;;  %v8576_v10 = vrot.slane %v8324_v56, %v14118_v44 }
 0xa49   :  { %9260 = vrot.lane.b32.xlu0 %v8947_v18, %s13411_s5  ;;  %9262 = vrot.lane.b32.xlu1 %v8948_v54, %s13411_s5  ;;  %v8327_v18 = vcombine.high %v8317_v14, %v8317_v14  ;;  %v8524_v54 = vrot.slane %v8254_v3, %v14118_v44  ;;  %v8536_v15 = vrot.slane %v8278_v53, %v14118_v44 }
 0xa4a   :  { %v8326_v14 = vcombine.high %v8310_v32, %v8310_v32 }
 0xa4b   :  { %v16745_v8 = vpop.permute.xlu0 %9208  ;;  %v16747_v37 = vpop.permute.xlu1 %9210  ;;  %v8568_v9 = vrot.slane %v8327_v18, %v14118_v44  ;;  %v8857_v18 = vadd.f32 %v16638_v4, %v18007_v43  ;;  %v18016_v43 = vld [vmem:[#allocation93_spill] sm:$0xff] }
 0xa4c   :  { %v8580_v35 = vrot.slane %v8326_v14, %v14118_v44  ;;  %v18013_v14 = vld [vmem:[#allocation89_spill] sm:$0xff] }
 0xa4d   :  { %9264 = vrot.lane.b32.xlu0 %v8949_v25, %s13411_s5  ;;  %9266 = vrot.lane.b32.xlu1 %v8950_v60, %s13411_s5  ;;  %v8247_v60 = vcombine.high %v8245_v0, %v8245_v0 }
 0xa4f   :  { %v9177_v52 = vpop.permute.xlu0 %9176  ;;  %v9179_v39 = vpop.permute.xlu1 %9178 }
 0xa50   :  { %v9432_v47 = vsel %vm2434_vm15, %v9177_v52, %v9179_v39  ;;  %v8275_v52 = vrot.slane %v8247_v60, %v14104_v41  ;;  %v8328_v41 = vcombine.high %v8324_v56, %v8324_v56  ;;  %v18010_v60 = vld [vmem:[#allocation70_spill] sm:$0xff] }
 0xa51   :  { %9300 = vrot.lane.b32.xlu0 %v8967_v40, %s13411_s5  ;;  %9302 = vrot.lane.b32.xlu1 %v8968_v12, %s13411_s5  ;;  %v8572_v12 = vrot.slane %v8310_v32, %v14118_v44 }
 0xa52   :  { %12986 = vmatprep.mubr.msk.f32.mxu1 %vm755_vm4, %v9432_v47  ;;  %v8532_v47 = vrot.slane %v8276_v7, %v14118_v44  ;;  %v8544_v6 = vrot.slane %v8275_v52, %v14118_v44  ;;  %v8584_v46 = vrot.slane %v8328_v41, %v14118_v44  ;;  %v8279_v59 = vcombine.high %v8275_v52, %v8275_v52 }
 0xa53   :  { %v16762_v62 = vpop.permute.xlu0 %9212  ;;  %v16764_v34 = vpop.permute.xlu1 %9214 }
 0xa55   :  { %9268 = vrot.lane.b32.xlu0 %v8951_v28, %s13411_s5  ;;  %9270 = vrot.lane.b32.xlu1 %v8952_v26, %s13411_s5  ;;  %v8540_v28 = vrot.slane %v8261_v55, %v14118_v44 }
 0xa57   :  { %v16772_v19 = vpop.permute.xlu0 %9216  ;;  %v16774_v58 = vpop.permute.xlu1 %9218 }
 0xa59   :  { %8697 = vrot.lane.b32.xlu0 %v8556_v22, %s13412_s17  ;;  %8699 = vrot.lane.b32.xlu1 %v8560_v63, %s13412_s17  ;;  %v8277_v22 = vcombine.high %v8261_v55, %v8261_v55 }
 0xa5b   :  { %v16780_v23 = vpop.permute.xlu0 %9224  ;;  %v16782_v11 = vpop.permute.xlu1 %9226  ;;  %v8548_v32 = vrot.slane %v8277_v22, %v14118_v44 }
 0xa5d   :  { %8681 = vrot.lane.b32.xlu0 %v8524_v54, %s13412_s17  ;;  %8683 = vrot.lane.b32.xlu1 %v8528_v16, %s13412_s17  ;;  %v18008_v54 = vld [vmem:[#allocation86_spill] sm:$0xff] }
 0xa5e   :  { %v8858_v16 = vadd.f32 %v16638_v4, %v18008_v54  ;;  %v8842_v4 = vadd.f32 %v16650_v20, %v18010_v60  ;;  %v18017_v54 = vld [vmem:[#allocation94_spill] sm:$0xff] }
 0xa5f   :  { %v9181_v1 = vpop.permute.xlu0 %9180  ;;  %v9183_v33 = vpop.permute.xlu1 %9182 }
 0xa60   :  { %v9433_v25 = vsel %vm2434_vm15, %v9181_v1, %v9183_v33  ;;  %v8552_v1 = vrot.slane %v8279_v59, %v14118_v44  ;;  %v8986_v33 = vmax.f32 %v8858_v16, 0.0  ;;  %v8866_v16 = vadd.f32 %v16676_v38, %v18017_v54  ;;  %v18026_v54 = vld [vmem:[#allocation95_spill] sm:$0xff] }
 0xa61   :  { %8701 = vrot.lane.b32.xlu0 %v8564_v57, %s13412_s17  ;;  %8703 = vrot.lane.b32.xlu1 %v8568_v9, %s13412_s17  ;;  %v8985_v57 = vmax.f32 %v8857_v18, 0.0  ;;  %v18009_v9 = vld [vmem:[#allocation69_spill] sm:$0xff]  ;;  %v8865_v18 = vadd.f32 %v16676_v38, %v18016_v43 }
 0xa62   :  { %12987 = vmatmul.mubr.msk.f32.vlgmr.msra.gmra.mxu1 %vm755_vm4, %v9433_v25  ;;  %v8841_v25 = vadd.f32 %v16650_v20, %v18009_v9  ;;  %v8970_v20 = vmax.f32 %v8842_v4, 0.0  ;;  %v8994_v60 = vmax.f32 %v8866_v16, 0.0  ;;  %v8867_v16 = vadd.f32 %v16678_v51, %v18026_v54  ;;  %v10075_v54 = vld [vmem:[%s18015_s24 + $0x10] sm:$0xff] }
 0xa63   :  { %v9185_v40 = vpop.permute.xlu0 %9184  ;;  %v9187_v31 = vpop.permute.xlu1 %9186 }
 0xa64   :  { %v9434_v21 = vsel %vm2434_vm15, %v9185_v40, %v9187_v31  ;;  %v8969_v55 = vmax.f32 %v8841_v25, 0.0  ;;  %v8993_v25 = vmax.f32 %v8865_v18, 0.0 }
 0xa65   :  { %8705 = vrot.lane.b32.xlu0 %v8572_v12, %s13412_s17  ;;  %8707 = vrot.lane.b32.xlu1 %v8576_v10, %s13412_s17  ;;  %v18011_v12 = vld [vmem:[#allocation87_spill] sm:$0xff]  ;;  %v18012_v10 = vld [vmem:[#allocation88_spill] sm:$0xff] }
 0xa66   :  { %12989 = vmatprep.mubr.msk.f32.mxu1 %vm755_vm4, %v9434_v21  ;;  %v8859_v31 = vadd.f32 %v16640_v45, %v18011_v12  ;;  %v8860_v21 = vadd.f32 %v16640_v45, %v18012_v10  ;;  %v18014_v45 = vld [vmem:[#allocation90_spill] sm:$0xff]  ;;  %v18020_v12 = vld [vmem:[#allocation73_spill] sm:$0xff] }
 0xa67   :  { %v9193_v39 = vpop.permute.xlu0 %9192  ;;  %v9195_v29 = vpop.permute.xlu1 %9194  ;;  %v18021_v10 = vld [vmem:[#allocation74_spill] sm:$0xff] }
 0xa68   :  { %v9436_v44 = vsel %vm2434_vm15, %v9193_v39, %v9195_v29  ;;  %v8987_v39 = vmax.f32 %v8859_v31, 0.0  ;;  %v8988_v29 = vmax.f32 %v8860_v21, 0.0  ;;  %v8845_v31 = vadd.f32 %v16690_v48, %v18020_v12 }
 0xa69   :  { %8685 = vrot.lane.b32.xlu0 %v8532_v47, %s13412_s17  ;;  %8687 = vrot.lane.b32.xlu1 %v8536_v15, %s13412_s17  ;;  %v8846_v21 = vadd.f32 %v16690_v48, %v18021_v10  ;;  %v9442_v48 = vsel %vm2434_vm15, %v16772_v19, %v16774_v58  ;;  %v18024_v58 = vld [vmem:[#allocation91_spill] sm:$0xff] }
 0xa6b   :  { %v16808_v2 = vpop.permute.xlu0 %9220  ;;  %v16811_v26 = vpop.permute.xlu1 %9222 }
 0xa6c   :  { %v9443_v19 = vsel %vm2434_vm15, %v16808_v2, %v16811_v26 }
 0xa6d   :  { %8689 = vrot.lane.b32.xlu0 %v8540_v28, %s13412_s17  ;;  %8691 = vrot.lane.b32.xlu1 %v8544_v6, %s13412_s17  ;;  %v8861_v28 = vadd.f32 %v16664_v27, %v18013_v14  ;;  %v8862_v6 = vadd.f32 %v16664_v27, %v18014_v45  ;;  %v18023_v14 = vld [vmem:[#allocation78_spill] sm:$0xff] }
 0xa6e   :  { %v10085_v45 = vld [vmem:[%s18015_s24 + $0x60] sm:$0xff] }
 0xa6f   :  { %v16816_v3 = vpop.permute.xlu0 %9228  ;;  %v16819_v63 = vpop.permute.xlu1 %9230  ;;  %v8990_v59 = vmax.f32 %v8862_v6, 0.0  ;;  %v8863_v6 = vadd.f32 %v16666_v49, %v18024_v58  ;;  %v18035_v58 = vld [vmem:[#allocation82_spill] sm:$0xff] }
 0xa71   :  { %8709 = vrot.lane.b32.xlu0 %v8580_v35, %s13412_s17  ;;  %8711 = vrot.lane.b32.xlu1 %v8584_v46, %s13412_s17  ;;  %v8989_v46 = vmax.f32 %v8861_v28, 0.0  ;;  %v8991_v43 = vmax.f32 %v8863_v6, 0.0  ;;  %v8854_v6 = vadd.f32 %v16727_v13, %v18035_v58  ;;  %v18043_v58 = vld [vmem:[#allocation102_spill] sm:$0xff] }
 0xa73   :  { %v16828_v0 = vpop.permute.xlu0 %9232  ;;  %v16831_v56 = vpop.permute.xlu1 %9234 }
 0xa75   :  { %8693 = vrot.lane.b32.xlu0 %v8548_v32, %s13412_s17  ;;  %8695 = vrot.lane.b32.xlu1 %v8552_v1, %s13412_s17  ;;  %v18018_v1 = vld [vmem:[#allocation71_spill] sm:$0xff] }
 0xa77   :  { %v9189_v7 = vpop.permute.xlu0 %9188  ;;  %v9191_v53 = vpop.permute.xlu1 %9190 }
 0xa78   :  { %v9435_v40 = vsel %vm2434_vm15, %v9189_v7, %v9191_v53  ;;  %v10088_v53 = vld [vmem:[%s18015_s24 + $0x78] sm:$0xff] }
 0xa79   :  { %9336 = vrot.lane.b32.xlu0 %v8985_v57, %s13411_s5  ;;  %9338 = vrot.lane.b32.xlu1 %v8986_v33, %s13411_s5  ;;  %v8843_v57 = vadd.f32 %v16652_v36, %v18018_v1  ;;  %v18019_v33 = vld [vmem:[#allocation72_spill] sm:$0xff] }
 0xa7a   :  { %12990 = vmatmul.mubr.msk.f32.gmra.mxu1 %vm755_vm4, %v9435_v40  ;;  %v8844_v9 = vadd.f32 %v16652_v36, %v18019_v33  ;;  %v9440_v40 = vsel %vm2434_vm15, %v16745_v8, %v16747_v37  ;;  %13082 = vmatprep.subr.mxu0 %v10088_v53  ;;  %v9441_v8 = vsel %vm2434_vm15, %v16762_v62, %v16764_v34  ;;  %v10086_v37 = vld [vmem:[%s18015_s24 + $0x68] sm:$0xff]  ;;  %v18027_v1 = vld [vmem:[#allocation96_spill] sm:$0xff]  ;;  %v8995_v33 = vmax.f32 %v8867_v16, 0.0 }
 0xa7b   :  { %v9197_v52 = vpop.permute.xlu0 %9196  ;;  %12992 = vmatprep.mubr.msk.f32.mxu1 %vm755_vm4, %v9436_v44  ;;  %v9199_v47 = vpop.permute.xlu1 %9198  ;;  %v8971_v36 = vmax.f32 %v8843_v57, 0.0  ;;  %13083 = vmatpush3.msra.mxu0 %v10088_v53  ;;  %v8850_v62 = vadd.f32 %v16702_v61, %v18023_v14  ;;  %v10080_v53 = vld [vmem:[%s18015_s24 + $0x38] sm:$0xff]  ;;  %v10074_v16 = vld [vmem:[%s18015_s24 + $0x8] sm:$0xff] }
 0xa7c   :  { %v9437_v15 = vsel %vm2434_vm15, %v9197_v52, %v9199_v47  ;;  %v8972_v44 = vmax.f32 %v8844_v9, 0.0  ;;  %v10087_v52 = vld [vmem:[%s18015_s24 + $0x70] sm:$0xff]  ;;  %v8973_v47 = vmax.f32 %v8845_v31, 0.0 }
 0xa7d   :  { %9304 = vrot.lane.b32.xlu0 %v8969_v55, %s13411_s5  ;;  %9306 = vrot.lane.b32.xlu1 %v8970_v20, %s13411_s5  ;;  %v8978_v2 = vmax.f32 %v8850_v62, 0.0  ;;  %v10078_v62 = vld [vmem:[%s18015_s24 + $0x28] sm:$0xff] }
 0xa7e   :  { %12993 = vmatmul.mubr.msk.f32.gmra.mxu1 %vm755_vm4, %v9437_v15  ;;  %13084 = vmatprep.subr.mxu0 %v10087_v52  ;;  %v8974_v15 = vmax.f32 %v8846_v21, 0.0 }
 0xa7f   :  { %v9201_v41 = vpop.permute.xlu0 %9200  ;;  %v9203_v22 = vpop.permute.xlu1 %9202  ;;  %13085 = vmatpush3.msra.mxu0 %v10087_v52 }
 0xa80   :  { %v9438_v35 = vsel %vm2434_vm15, %v9201_v41, %v9203_v22  ;;  %13086 = vmatprep.subr.mxu0 %v10086_v37  ;;  %v18025_v41 = vld [vmem:[#allocation92_spill] sm:$0xff] }
 0xa81   :  { %9340 = vrot.lane.b32.xlu0 %v8987_v39, %s13411_s5  ;;  %9342 = vrot.lane.b32.xlu1 %v8988_v29, %s13411_s5  ;;  %v18022_v39 = vld [vmem:[#allocation77_spill] sm:$0xff]  ;;  %v8864_v22 = vadd.f32 %v16666_v49, %v18025_v41  ;;  %v10083_v49 = vld [vmem:[%s18015_s24 + $0x50] sm:$0xff] }
 0xa82   :  { %12995 = vmatprep.mubr.msk.f32.mxu1 %vm755_vm4, %v9438_v35  ;;  %v8849_v29 = vadd.f32 %v16702_v61, %v18022_v39  ;;  %v9444_v61 = vsel %vm2434_vm15, %v16780_v23, %v16782_v11  ;;  %13087 = vmatpush3.msra.mxu0 %v10086_v37  ;;  %v10084_v23 = vld [vmem:[%s18015_s24 + $0x58] sm:$0xff]  ;;  %v9445_v11 = vsel %vm2434_vm15, %v16816_v3, %v16819_v63 }
 0xa83   :  { %v16866_v27 = vpop.permute.xlu0 %9236  ;;  %v16868_v32 = vpop.permute.xlu1 %9238  ;;  %13088 = vmatprep.subr.mxu0 %v10085_v45  ;;  %v8992_v18 = vmax.f32 %v8864_v22, 0.0  ;;  %v8868_v3 = vadd.f32 %v16678_v51, %v18027_v1 }
 0xa84   :  { %v8977_v35 = vmax.f32 %v8849_v29, 0.0  ;;  %13089 = vmatpush3.msra.mxu0 %v10085_v45 }
 0xa85   :  { %9344 = vrot.lane.b32.xlu0 %v8989_v46, %s13411_s5  ;;  %9346 = vrot.lane.b32.xlu1 %v8990_v59, %s13411_s5  ;;  %v9446_v59 = vsel %vm2434_vm15, %v16828_v0, %v16831_v56  ;;  %v10082_v0 = vld [vmem:[%s18015_s24 + $0x48] sm:$0xff]  ;;  %v9447_v56 = vsel %vm2434_vm15, %v16866_v27, %v16868_v32  ;;  %v8996_v9 = vmax.f32 %v8868_v3, 0.0  ;;  %v10081_v32 = vld [vmem:[%s18015_s24 + $0x40] sm:$0xff] }
 0xa86   :  { %13090 = vmatprep.subr.mxu0 %v10084_v23 }
 0xa87   :  { %v9205_v4 = vpop.permute.xlu0 %9204  ;;  %v9207_v7 = vpop.permute.xlu1 %9206  ;;  %13091 = vmatpush3.msra.mxu0 %v10084_v23 }
 0xa88   :  { %v9439_v38 = vsel %vm2434_vm15, %v9205_v4, %v9207_v7  ;;  %13092 = vmatprep.subr.mxu0 %v10083_v49  ;;  %v18029_v4 = vld [vmem:[#allocation98_spill] sm:$0xff] }
 0xa89   :  { %9352 = vrot.lane.b32.xlu0 %v8993_v25, %s13411_s5  ;;  %9354 = vrot.lane.b32.xlu1 %v8994_v60, %s13411_s5  ;;  %v18028_v25 = vld [vmem:[#allocation97_spill] sm:$0xff]  ;;  %v8870_v7 = vadd.f32 %v16716_v50, %v18029_v4 }
 0xa8a   :  { %12996 = vmatmul.mubr.msk.f32.gmra.mxu1 %vm755_vm4, %v9439_v38  ;;  %13093 = vmatpush3.msra.mxu0 %v10083_v49  ;;  %v8869_v60 = vadd.f32 %v16716_v50, %v18028_v25  ;;  %v18031_v50 = vld [vmem:[#allocation76_spill] sm:$0xff]  ;;  %v10073_v25 = vld [vmem:[%s18015_s24] sm:$0xff] }
 0xa8b   :  { %v16888_v55 = vpop.permute.xlu0 %9272  ;;  %12998 = vmatprep.mubr.msk.f32.mxu1 %vm755_vm4, %v9440_v40  ;;  %v16891_v20 = vpop.permute.xlu1 %9274  ;;  %13094 = vmatprep.subr.mxu0 %v10082_v0  ;;  %v18030_v40 = vld [vmem:[#allocation75_spill] sm:$0xff]  ;;  %v8998_v31 = vmax.f32 %v8870_v7, 0.0 }
 0xa8c   :  { %13095 = vmatpush3.msra.mxu0 %v10082_v0  ;;  %v8997_v12 = vmax.f32 %v8869_v60, 0.0  ;;  %v18038_v0 = vld [vmem:[#allocation83_spill] sm:$0xff] }
 0xa8d   :  { %9308 = vrot.lane.b32.xlu0 %v8971_v36, %s13411_s5  ;;  %9310 = vrot.lane.b32.xlu1 %v8972_v44, %s13411_s5  ;;  %v8847_v36 = vadd.f32 %v16692_v5, %v18030_v40  ;;  %v8848_v44 = vadd.f32 %v16692_v5, %v18031_v50 }
 0xa8e   :  { %12999 = vmatmul.mubr.msk.f32.gmra.mxu1 %vm755_vm4, %v9441_v8  ;;  %13096 = vmatprep.subr.mxu0 %v10081_v32  ;;  %v10079_v8 = vld [vmem:[%s18015_s24 + $0x30] sm:$0xff] }
 0xa8f   :  { %v9241_v34 = vpop.permute.xlu0 %9240  ;;  %13001 = vmatprep.mubr.msk.f32.mxu1 %vm755_vm4, %v9442_v48  ;;  %v9243_v28 = vpop.permute.xlu1 %9242  ;;  %13097 = vmatpush3.msra.mxu0 %v10081_v32  ;;  %v8975_v37 = vmax.f32 %v8847_v36, 0.0  ;;  %v8976_v5 = vmax.f32 %v8848_v44, 0.0  ;;  %v18032_v48 = vld [vmem:[#allocation79_spill] sm:$0xff] }
 0xa90   :  { %v9448_v51 = vsel %vm2434_vm15, %v9241_v34, %v9243_v28  ;;  %13098 = vmatprep.subr.mxu0 %v10080_v53  ;;  %v10077_v28 = vld [vmem:[%s18015_s24 + $0x20] sm:$0xff] }
 0xa91   :  { %9312 = vrot.lane.b32.xlu0 %v8973_v47, %s13411_s5  ;;  %9314 = vrot.lane.b32.xlu1 %v8974_v15, %s13411_s5  ;;  %v8851_v47 = vadd.f32 %v16704_v17, %v18032_v48  ;;  %v18033_v15 = vld [vmem:[#allocation80_spill] sm:$0xff] }
 0xa92   :  { %13002 = vmatmul.mubr.msk.f32.gmra.mxu1 %vm755_vm4, %v9443_v19  ;;  %13099 = vmatpush3.msra.mxu0 %v10080_v53  ;;  %v8852_v39 = vadd.f32 %v16704_v17, %v18033_v15 }
 0xa93   :  { %v16923_v26 = vpop.permute.xlu0 %9276  ;;  %13004 = vmatprep.mubr.msk.f32.mxu1 %vm755_vm4, %v9444_v61  ;;  %v16926_v46 = vpop.permute.xlu1 %9278  ;;  %13100 = vmatprep.subr.mxu0 %v10079_v8  ;;  %v8979_v45 = vmax.f32 %v8851_v47, 0.0  ;;  %v18034_v61 = vld [vmem:[#allocation81_spill] sm:$0xff]  ;;  %v9456_v47 = vsel %vm2434_vm15, %v16888_v55, %v16891_v20 }
 0xa94   :  { %13101 = vmatpush3.msra.mxu0 %v10079_v8  ;;  %v8980_v19 = vmax.f32 %v8852_v39, 0.0  ;;  %v8853_v17 = vadd.f32 %v16727_v13, %v18034_v61  ;;  %v8982_v13 = vmax.f32 %v8854_v6, 0.0 }
 0xa95   :  { %9320 = vrot.lane.b32.xlu0 %v8977_v35, %s13411_s5  ;;  %9322 = vrot.lane.b32.xlu1 %v8978_v2, %s13411_s5  ;;  %v10076_v35 = vld [vmem:[%s18015_s24 + $0x18] sm:$0xff]  ;;  %v18036_v2 = vld [vmem:[#allocation99_spill] sm:$0xff] }
 0xa96   :  { %13005 = vmatmul.mubr.msk.f32.gmra.mxu1 %vm755_vm4, %v9445_v11  ;;  %13102 = vmatprep.subr.mxu0 %v10078_v62  ;;  %v8871_v23 = vadd.f32 %v16718_v24, %v18036_v2  ;;  %v18037_v11 = vld [vmem:[#allocation100_spill] sm:$0xff] }
 0xa97   :  { %v16943_v63 = vpop.permute.xlu0 %9280  ;;  %13007 = vmatprep.mubr.msk.f32.mxu1 %vm755_vm4, %v9446_v59  ;;  %v16946_v57 = vpop.permute.xlu1 %9282  ;;  %13103 = vmatpush3.msra.mxu0 %v10078_v62  ;;  %v8872_v49 = vadd.f32 %v16718_v24, %v18037_v11  ;;  %v8981_v59 = vmax.f32 %v8853_v17, 0.0  ;;  %v8855_v24 = vadd.f32 %v16730_v42, %v18038_v0 }
 0xa98   :  { %13104 = vmatprep.subr.mxu0 %v10077_v28  ;;  %v8999_v1 = vmax.f32 %v8871_v23, 0.0 }
 0xa99   :  { %9348 = vrot.lane.b32.xlu0 %v8991_v43, %s13411_s5  ;;  %9350 = vrot.lane.b32.xlu1 %v8992_v18, %s13411_s5  ;;  %v9000_v3 = vmax.f32 %v8872_v49, 0.0  ;;  %v8983_v60 = vmax.f32 %v8855_v24, 0.0  ;;  %v18048_v24 = vld [vmem:[#allocation103_spill] sm:$0xff] }
 0xa9a   :  { %13008 = vmatmul.mubr.msk.f32.gmra.mxu1 %vm755_vm4, %v9447_v56  ;;  %13105 = vmatpush3.msra.mxu0 %v10077_v28  ;;  %v18039_v56 = vld [vmem:[#allocation84_spill] sm:$0xff] }
 0xa9b   :  { %v16960_v38 = vpop.permute.xlu0 %9288  ;;  %13010 = vmatprep.mubr.msk.f32.mxu1 %vm755_vm4, %v9448_v51  ;;  %v16963_v27 = vpop.permute.xlu1 %9290  ;;  %13106 = vmatprep.subr.mxu0 %v10076_v35  ;;  %v8856_v51 = vadd.f32 %v16730_v42, %v18039_v56 }
 0xa9c   :  { %13107 = vmatpush3.msra.mxu0 %v10076_v35 }
 0xa9d   :  { %9356 = vrot.lane.b32.xlu0 %v8995_v33, %s13411_s5  ;;  %9358 = vrot.lane.b32.xlu1 %v8996_v9, %s13411_s5  ;;  %v8984_v4 = vmax.f32 %v8856_v51, 0.0  ;;  %v18049_v51 = vld [vmem:[#allocation104_spill] sm:$0xff] }
 0xa9e   :  { %13108 = vmatprep.subr.mxu0 %v10075_v54 }
 0xa9f   :  { %v9245_v10 = vpop.permute.xlu0 %9244  ;;  %v9247_v21 = vpop.permute.xlu1 %9246  ;;  %13109 = vmatpush3.msra.mxu0 %v10075_v54  ;;  %v18047_v54 = vld [vmem:[#allocation122_spill] sm:$0xff] }
 0xaa0   :  { %v9449_v52 = vsel %vm2434_vm15, %v9245_v10, %v9247_v21  ;;  %13110 = vmatprep.subr.mxu0 %v10074_v16 }
 0xaa1   :  { %9360 = vrot.lane.b32.xlu0 %v8997_v12, %s13411_s5  ;;  %9362 = vrot.lane.b32.xlu1 %v8998_v31, %s13411_s5 }
 0xaa2   :  { %13011 = vmatmul.mubr.msk.f32.gmra.mxu1 %vm755_vm4, %v9449_v52  ;;  %13111 = vmatpush3.msra.mxu0 %v10074_v16 }
 0xaa3   :  { %v9249_v29 = vpop.permute.xlu0 %9248  ;;  %v9251_v14 = vpop.permute.xlu1 %9250  ;;  %13112 = vmatprep.subr.mxu0 %v10073_v25 }
 0xaa4   :  { %v9450_v34 = vsel %vm2434_vm15, %v9249_v29, %v9251_v14  ;;  %13113 = vmatpush3.msra.mxu0 %v10073_v25  ;;  %v9457_v29 = vsel %vm2434_vm15, %v16923_v26, %v16926_v46  ;;  %v18040_v14 = vld [vmem:[#allocation117_spill] sm:$0xff] }
 0xaa5   :  { %9316 = vrot.lane.b32.xlu0 %v8975_v37, %s13411_s5  ;;  %9318 = vrot.lane.b32.xlu1 %v8976_v5, %s13411_s5  ;;  %v18042_v46 = vld [vmem:[#allocation101_spill] sm:$0xff] }
 0xaa6   :  { %13013 = vmatprep.mubr.msk.f32.mxu1 %vm755_vm4, %v9450_v34  ;;  %13245 = vmatprep.subr.mxu0 %v17965_v30  ;;  %v18041_v34 = vld [vmem:[#allocation118_spill] sm:$0xff] }
 0xaa7   :  { %v9257_v41 = vpop.permute.xlu0 %9256  ;;  %v9259_v22 = vpop.permute.xlu1 %9258 }
 0xaa8   :  { %v9452_v36 = vsel %vm2434_vm15, %v9257_v41, %v9259_v22  ;;  %v18045_v22 = vld [vmem:[#allocation120_spill] sm:$0xff] }
 0xaa9   :  { %9324 = vrot.lane.b32.xlu0 %v8979_v45, %s13411_s5  ;;  %9326 = vrot.lane.b32.xlu1 %v8980_v19, %s13411_s5  ;;  %v9458_v45 = vsel %vm2434_vm15, %v16943_v63, %v16946_v57  ;;  %v9460_v63 = vsel %vm2434_vm15, %v16960_v38, %v16963_v27  ;;  %v18044_v57 = vld [vmem:[#allocation119_spill] sm:$0xff] }
 0xaab   :  { %v16999_v43 = vpop.permute.xlu0 %9284  ;;  %v17001_v18 = vpop.permute.xlu1 %9286 }
 0xaac   :  { %v9459_v26 = vsel %vm2434_vm15, %v16999_v43, %v17001_v18  ;;  %v18046_v43 = vld [vmem:[#allocation121_spill] sm:$0xff] }
 0xaad   :  { %9328 = vrot.lane.b32.xlu0 %v8981_v59, %s13411_s5  ;;  %9330 = vrot.lane.b32.xlu1 %v8982_v13, %s13411_s5 }
 0xaaf   :  { %v17011_v33 = vpop.permute.xlu0 %9292  ;;  %v17013_v9 = vpop.permute.xlu1 %9294 }
 0xab0   :  { %v9461_v59 = vsel %vm2434_vm15, %v17011_v33, %v17013_v9 }
 0xab1   :  { %9364 = vrot.lane.b32.xlu0 %v8999_v1, %s13411_s5  ;;  %9366 = vrot.lane.b32.xlu1 %v9000_v3, %s13411_s5 }
 0xab3   :  { %v9297_v7 = vpop.permute.xlu0 %9296  ;;  %v9299_v32 = vpop.permute.xlu1 %9298 }
 0xab4   :  { %v9462_v38 = vsel %vm2434_vm15, %v9297_v7, %v9299_v32 }
 0xab5   :  { %9332 = vrot.lane.b32.xlu0 %v8983_v60, %s13411_s5  ;;  %9334 = vrot.lane.b32.xlu1 %v8984_v4, %s13411_s5 }
 0xab7   :  { %v9253_v42 = vpop.permute.xlu0 %9252  ;;  %v9255_v53 = vpop.permute.xlu1 %9254 }
 0xab8   :  { %v9451_v40 = vsel %vm2434_vm15, %v9253_v42, %v9255_v53  ;;  %v18050_v42 = vld [vmem:[#allocation105_spill] sm:$0xff] }
 0xab9   :  { %13014 = vmatmul.mubr.msk.f32.gmra.mxu1 %vm755_vm4, %v9451_v40  ;;  %v18051_v40 = vld [vmem:[#allocation106_spill] sm:$0xff] }
 0xaba   :  { %13016 = vmatprep.mubr.msk.f32.mxu1 %vm755_vm4, %v9452_v36 }
 0xabb   :  { %v9261_v50 = vpop.permute.xlu0 %9260  ;;  %v9263_v44 = vpop.permute.xlu1 %9262 }
 0xabc   :  { %v9453_v12 = vsel %vm2434_vm15, %v9261_v50, %v9263_v44 }
 0xabd   :  { %13017 = vmatmul.mubr.msk.f32.gmra.mxu1 %vm755_vm4, %v9453_v12 }
 0xabf   :  { %v9265_v31 = vpop.permute.xlu0 %9264  ;;  %v9267_v10 = vpop.permute.xlu1 %9266 }
 0xac0   :  { %v9454_v21 = vsel %vm2434_vm15, %v9265_v31, %v9267_v10  ;;  %v18052_v10 = vld [vmem:[#allocation109_spill] sm:$0xff] }
 0xac1   :  { %13019 = vmatprep.mubr.msk.f32.mxu1 %vm755_vm4, %v9454_v21 }
 0xac3   :  { %v9301_v52 = vpop.permute.xlu0 %9300  ;;  %v9303_v8 = vpop.permute.xlu1 %9302 }
 0xac4   :  { %v9463_v0 = vsel %vm2434_vm15, %v9301_v52, %v9303_v8  ;;  %v18053_v52 = vld [vmem:[#allocation110_spill] sm:$0xff] }
 0xac7   :  { %v9269_v37 = vpop.permute.xlu0 %9268  ;;  %v9271_v5 = vpop.permute.xlu1 %9270 }
 0xac8   :  { %v9455_v48 = vsel %vm2434_vm15, %v9269_v37, %v9271_v5 }
 0xac9   :  { %13020 = vmatmul.mubr.msk.f32.gmra.mxu1 %vm755_vm4, %v9455_v48  ;;  %v18054_v48 = vld [vmem:[#allocation123_spill] sm:$0xff] }
 0xaca   :  { %13022 = vmatprep.mubr.msk.f32.mxu1 %vm755_vm4, %v9456_v47 }
 0xacb   :  { %v8698_v15 = vpop.permute.xlu0 %8697  ;;  %v8700_v39 = vpop.permute.xlu1 %8699 }
 0xacc   :  { %v8889_v62 = vadd.f32 %v8698_v15, %v18040_v14  ;;  %v8890_v28 = vadd.f32 %v8698_v15, %v18041_v34  ;;  %v8891_v41 = vadd.f32 %v8700_v39, %v18044_v57  ;;  %v8892_v35 = vadd.f32 %v8700_v39, %v18045_v22  ;;  %v18055_v15 = vld [vmem:[#allocation124_spill] sm:$0xff] }
 0xacd   :  { %13023 = vmatmul.mubr.msk.f32.gmra.mxu1 %vm755_vm4, %v9457_v29  ;;  %v18059_v57 = vld [vmem:[#allocation112_spill] sm:$0xff] }
 0xace   :  { %v9017_v55 = vmax.f32 %v8889_v62, 0.0  ;;  %v9018_v20 = vmax.f32 %v8890_v28, 0.0  ;;  %13025 = vmatprep.mubr.msk.f32.mxu1 %vm755_vm4, %v9458_v45  ;;  %v9019_v27 = vmax.f32 %v8891_v41, 0.0  ;;  %v9020_v13 = vmax.f32 %v8892_v35, 0.0 }
 0xacf   :  { %v8682_v19 = vpop.permute.xlu0 %8681  ;;  %v8684_v61 = vpop.permute.xlu1 %8683 }
 0xad0   :  { %v8873_v17 = vadd.f32 %v8682_v19, %v18042_v46  ;;  %v8874_v6 = vadd.f32 %v8682_v19, %v18043_v58  ;;  %9400 = vrot.lane.b32.xlu0 %v9017_v55, %s13411_s5  ;;  %9402 = vrot.lane.b32.xlu1 %v9018_v20, %s13411_s5  ;;  %v8875_v56 = vadd.f32 %v8684_v61, %v18048_v24  ;;  %v18056_v55 = vld [vmem:[#allocation107_spill] sm:$0xff]  ;;  %v18057_v19 = vld [vmem:[#allocation108_spill] sm:$0xff] }
 0xad1   :  { %13026 = vmatmul.mubr.msk.f32.gmra.mxu1 %vm755_vm4, %v9459_v26  ;;  %v8876_v33 = vadd.f32 %v8684_v61, %v18049_v51  ;;  %v18063_v24 = vld [vmem:[#allocation116_spill] sm:$0xff] }
 0xad2   :  { %v9001_v2 = vmax.f32 %v8873_v17, 0.0  ;;  %v9002_v23 = vmax.f32 %v8874_v6, 0.0  ;;  %13028 = vmatprep.mubr.msk.f32.mxu1 %vm755_vm4, %v9460_v63  ;;  %v9003_v7 = vmax.f32 %v8875_v56, 0.0  ;;  %v18058_v6 = vld [vmem:[#allocation111_spill] sm:$0xff] }
 0xad3   :  { %v8702_v11 = vpop.permute.xlu0 %8701  ;;  %v8704_v49 = vpop.permute.xlu1 %8703  ;;  %v9004_v32 = vmax.f32 %v8876_v33, 0.0 }
 0xad4   :  { %9368 = vrot.lane.b32.xlu0 %v9001_v2, %s13411_s5  ;;  %9370 = vrot.lane.b32.xlu1 %v9002_v23, %s13411_s5  ;;  %v8893_v18 = vadd.f32 %v8702_v11, %v18046_v43  ;;  %v8894_v16 = vadd.f32 %v8702_v11, %v18047_v54  ;;  %v8895_v47 = vadd.f32 %v8704_v49, %v18054_v48  ;;  %v18068_v48 = vld [vmem:[#allocation129_spill] sm:$0xff] }
 0xad5   :  { %13029 = vmatmul.mubr.msk.f32.gmra.mxu1 %vm755_vm4, %v9461_v59  ;;  %v8896_v39 = vadd.f32 %v8704_v49, %v18055_v15  ;;  %v18060_v49 = vld [vmem:[#allocation113_spill] sm:$0xff]  ;;  %v18069_v15 = vld [vmem:[#allocation130_spill] sm:$0xff] }
 0xad6   :  { %13031 = vmatprep.mubr.msk.f32.mxu1 %vm755_vm4, %v9462_v38  ;;  %v9021_v9 = vmax.f32 %v8893_v18, 0.0  ;;  %v9022_v25 = vmax.f32 %v8894_v16, 0.0  ;;  %v9023_v28 = vmax.f32 %v8895_v47, 0.0  ;;  %v18061_v38 = vld [vmem:[#allocation114_spill] sm:$0xff]  ;;  %v18062_v16 = vld [vmem:[#allocation115_spill] sm:$0xff] }
 0xad7   :  { %v17069_v1 = vpop.permute.xlu0 %8705  ;;  %v17071_v3 = vpop.permute.xlu1 %8707  ;;  %v9024_v45 = vmax.f32 %v8896_v39, 0.0 }
 0xad8   :  { %9406 = vrot.lane.b32.xlu1 %v9020_v13, %s13411_s5  ;;  %9404 = vrot.lane.b32.xlu0 %v9019_v27, %s13411_s5 }
 0xad9   :  { %13032 = vmatmul.mubr.msk.f32.gmra.mxu1 %vm755_vm4, %v9463_v0 }
 0xadb   :  { %v8686_v60 = vpop.permute.xlu0 %8685  ;;  %v8688_v4 = vpop.permute.xlu1 %8687 }
 0xadc   :  { %9410 = vrot.lane.b32.xlu1 %v9022_v25, %s13411_s5  ;;  %9408 = vrot.lane.b32.xlu0 %v9021_v9, %s13411_s5  ;;  %v8877_v53 = vadd.f32 %v8686_v60, %v18050_v42  ;;  %v8878_v36 = vadd.f32 %v8686_v60, %v18051_v40  ;;  %v8879_v20 = vadd.f32 %v8688_v4, %v18056_v55  ;;  %v18064_v9 = vld [vmem:[#allocation125_spill] sm:$0xff]  ;;  %v18065_v60 = vld [vmem:[#allocation126_spill] sm:$0xff]  ;;  %v18071_v55 = vld [vmem:[#allocation132_spill] sm:$0xff] }
 0xadd   :  { %v8880_v61 = vadd.f32 %v8688_v4, %v18057_v19  ;;  %v8897_v25 = vadd.f32 %v17069_v1, %v18064_v9  ;;  %v8898_v4 = vadd.f32 %v17069_v1, %v18065_v60 }
 0xade   :  { %v9005_v12 = vmax.f32 %v8877_v53, 0.0  ;;  %v9006_v31 = vmax.f32 %v8878_v36, 0.0  ;;  %v9007_v17 = vmax.f32 %v8879_v20, 0.0 }
 0xadf   :  { %v8690_v50 = vpop.permute.xlu0 %8689  ;;  %v8692_v44 = vpop.permute.xlu1 %8691  ;;  %v9008_v58 = vmax.f32 %v8880_v61, 0.0  ;;  %v9025_v40 = vmax.f32 %v8897_v25, 0.0  ;;  %v9026_v36 = vmax.f32 %v8898_v4, 0.0 }
 0xae0   :  { %9374 = vrot.lane.b32.xlu1 %v9004_v32, %s13411_s5  ;;  %9372 = vrot.lane.b32.xlu0 %v9003_v7, %s13411_s5  ;;  %v8881_v21 = vadd.f32 %v8690_v50, %v18052_v10  ;;  %v8882_v8 = vadd.f32 %v8690_v50, %v18053_v52  ;;  %v8883_v63 = vadd.f32 %v8692_v44, %v18058_v6  ;;  %v18066_v50 = vld [vmem:[#allocation127_spill] sm:$0xff] }
 0xae1   :  { %v8884_v41 = vadd.f32 %v8692_v44, %v18059_v57  ;;  %v8899_v44 = vadd.f32 %v17071_v3, %v18066_v50 }
 0xae2   :  { %v9009_v29 = vmax.f32 %v8881_v21, 0.0  ;;  %v9010_v14 = vmax.f32 %v8882_v8, 0.0  ;;  %v9011_v23 = vmax.f32 %v8883_v63, 0.0 }
 0xae3   :  { %v17087_v37 = vpop.permute.xlu0 %8709  ;;  %v17089_v5 = vpop.permute.xlu1 %8711  ;;  %v9012_v11 = vmax.f32 %v8884_v41, 0.0  ;;  %v9027_v52 = vmax.f32 %v8899_v44, 0.0 }
 0xae4   :  { %9378 = vrot.lane.b32.xlu1 %v9006_v31, %s13411_s5  ;;  %9376 = vrot.lane.b32.xlu0 %v9005_v12, %s13411_s5  ;;  %v18067_v12 = vld [vmem:[#allocation128_spill] sm:$0xff]  ;;  %v8901_v47 = vadd.f32 %v17087_v37, %v18068_v48  ;;  %v8902_v39 = vadd.f32 %v17087_v37, %v18069_v15  ;;  %v8904_v20 = vadd.f32 %v17089_v5, %v18071_v55 }
 0xae5   :  { %v8900_v31 = vadd.f32 %v17071_v3, %v18067_v12 }
 0xae7   :  { %v8694_v62 = vpop.permute.xlu0 %8693  ;;  %v8696_v34 = vpop.permute.xlu1 %8695  ;;  %v9028_v8 = vmax.f32 %v8900_v31, 0.0 }
 0xae8   :  { %9386 = vrot.lane.b32.xlu1 %v9010_v14, %s13411_s5  ;;  %9384 = vrot.lane.b32.xlu0 %v9009_v29, %s13411_s5  ;;  %v8885_v59 = vadd.f32 %v8694_v62, %v18060_v49  ;;  %v8886_v27 = vadd.f32 %v8694_v62, %v18061_v38  ;;  %v8887_v0 = vadd.f32 %v8696_v34, %v18062_v16  ;;  %v9029_v62 = vmax.f32 %v8901_v47, 0.0 }
 0xae9   :  { %v8888_v56 = vadd.f32 %v8696_v34, %v18063_v24  ;;  %v9030_v34 = vmax.f32 %v8902_v39, 0.0 }
 0xaea   :  { %v9013_v18 = vmax.f32 %v8885_v59, 0.0  ;;  %v9014_v54 = vmax.f32 %v8886_v27, 0.0  ;;  %v9015_v7 = vmax.f32 %v8887_v0, 0.0 }
 0xaeb   :  { %v17099_v26 = vpop.permute.xlu0 %9336  ;;  %v17101_v46 = vpop.permute.xlu1 %9338  ;;  %v9016_v32 = vmax.f32 %v8888_v56, 0.0 }
 0xaec   :  { %9414 = vrot.lane.b32.xlu1 %v9024_v45, %s13411_s5  ;;  %9412 = vrot.lane.b32.xlu0 %v9023_v28, %s13411_s5  ;;  %v18070_v28 = vld [vmem:[#allocation131_spill] sm:$0xff] }
 0xaed   :  { %v8903_v45 = vadd.f32 %v17089_v5, %v18070_v28 }
 0xaef   :  { %v9305_v22 = vpop.permute.xlu0 %9304  ;;  %v9307_v35 = vpop.permute.xlu1 %9306  ;;  %v9031_v61 = vmax.f32 %v8903_v45, 0.0 }
 0xaf0   :  { %9382 = vrot.lane.b32.xlu1 %v9008_v58, %s13411_s5  ;;  %9380 = vrot.lane.b32.xlu0 %v9007_v17, %s13411_s5  ;;  %v9464_v2 = vsel %vm2434_vm15, %v9305_v22, %v9307_v35  ;;  %v9032_v17 = vmax.f32 %v8904_v20, 0.0 }
 0xaf1   :  { %13034 = vmatprep.mubr.msk.f32.mxu1 %vm755_vm4, %v9464_v2 }
 0xaf3   :  { %v17113_v13 = vpop.permute.xlu0 %9340  ;;  %v17115_v43 = vpop.permute.xlu1 %9342 }
 0xaf4   :  { %9390 = vrot.lane.b32.xlu1 %v9012_v11, %s13411_s5  ;;  %9388 = vrot.lane.b32.xlu0 %v9011_v23, %s13411_s5  ;;  %v9473_v50 = vsel %vm2434_vm15, %v17113_v13, %v17115_v43 }
 0xaf7   :  { %v17121_v51 = vpop.permute.xlu0 %9344  ;;  %v17123_v33 = vpop.permute.xlu1 %9346 }
 0xaf8   :  { %9394 = vrot.lane.b32.xlu1 %v9014_v54, %s13411_s5  ;;  %9392 = vrot.lane.b32.xlu0 %v9013_v18, %s13411_s5  ;;  %v17169_v54 = vld [vmem:[%s18072_s30] ss:$0 sm:$0xff]  ;;  %v9474_v44 = vsel %vm2434_vm15, %v17121_v51, %v17123_v33 }
 0xafb   :  { %v17131_v42 = vpop.permute.xlu0 %9352  ;;  %v17133_v53 = vpop.permute.xlu1 %9354 }
 0xafc   :  { %9398 = vrot.lane.b32.xlu1 %v9016_v32, %s13411_s5  ;;  %9396 = vrot.lane.b32.xlu0 %v9015_v7, %s13411_s5 }
 0xaff   :  { %v9309_v10 = vpop.permute.xlu0 %9308  ;;  %v9311_v1 = vpop.permute.xlu1 %9310 }
 0xb00   :  { %9418 = vrot.lane.b32.xlu1 %v9026_v36, %s13411_s5  ;;  %9416 = vrot.lane.b32.xlu0 %v9025_v40, %s13411_s5  ;;  %v9465_v21 = vsel %vm2434_vm15, %v9309_v10, %v9311_v1  ;;  %v9472_v36 = vsel %vm2434_vm15, %v17099_v26, %v17101_v46  ;;  %v9476_v46 = vsel %vm2434_vm15, %v17131_v42, %v17133_v53 }
 0xb01   :  { %13035 = vmatmul.mubr.msk.f32.gmra.mxu1 %vm755_vm4, %v9465_v21 }
 0xb03   :  { %v9313_v29 = vpop.permute.xlu0 %9312  ;;  %v9315_v3 = vpop.permute.xlu1 %9314 }
 0xb04   :  { %9422 = vrot.lane.b32.xlu1 %v9028_v8, %s13411_s5  ;;  %9420 = vrot.lane.b32.xlu0 %v9027_v52, %s13411_s5  ;;  %v9466_v14 = vsel %vm2434_vm15, %v9313_v29, %v9315_v3 }
 0xb05   :  { %13037 = vmatprep.mubr.msk.f32.mxu1 %vm755_vm4, %v9466_v14 }
 0xb07   :  { %v9321_v19 = vpop.permute.xlu0 %9320  ;;  %v9323_v37 = vpop.permute.xlu1 %9322 }
 0xb08   :  { %9426 = vrot.lane.b32.xlu1 %v9030_v34, %s13411_s5  ;;  %9424 = vrot.lane.b32.xlu0 %v9029_v62, %s13411_s5  ;;  %v9468_v23 = vsel %vm2434_vm15, %v9321_v19, %v9323_v37 }
 0xb0b   :  { %v9349_v58 = vpop.permute.xlu0 %9348  ;;  %v9351_v6 = vpop.permute.xlu1 %9350 }
 0xb0c   :  { %9430 = vrot.lane.b32.xlu1 %v9032_v17, %s13411_s5  ;;  %9428 = vrot.lane.b32.xlu0 %v9031_v61, %s13411_s5  ;;  %v9475_v26 = vsel %vm2434_vm15, %v9349_v58, %v9351_v6 }
 0xb0f   :  { %v9357_v63 = vpop.permute.xlu0 %9356  ;;  %v9359_v57 = vpop.permute.xlu1 %9358 }
 0xb10   :  { %v9477_v13 = vsel %vm2434_vm15, %v9357_v63, %v9359_v57 }
 0xb13   :  { %v9361_v41 = vpop.permute.xlu0 %9360  ;;  %v9363_v22 = vpop.permute.xlu1 %9362 }
 0xb14   :  { %v9478_v43 = vsel %vm2434_vm15, %v9361_v41, %v9363_v22 }
 0xb17   :  { %v9317_v5 = vpop.permute.xlu0 %9316  ;;  %v9319_v35 = vpop.permute.xlu1 %9318 }
 0xb18   :  { %v9467_v2 = vsel %vm2434_vm15, %v9317_v5, %v9319_v35 }
 0xb19   :  { %13038 = vmatmul.mubr.msk.f32.gmra.mxu1 %vm755_vm4, %v9467_v2 }
 0xb1a   :  { %13040 = vmatprep.mubr.msk.f32.mxu1 %vm755_vm4, %v9468_v23 }
 0xb1b   :  { %v9325_v11 = vpop.permute.xlu0 %9324  ;;  %v9327_v49 = vpop.permute.xlu1 %9326 }
 0xb1c   :  { %v9469_v59 = vsel %vm2434_vm15, %v9325_v11, %v9327_v49 }
 0xb1d   :  { %13041 = vmatmul.mubr.msk.f32.gmra.mxu1 %vm755_vm4, %v9469_v59 }
 0xb1f   :  { %v9329_v38 = vpop.permute.xlu0 %9328  ;;  %v9331_v27 = vpop.permute.xlu1 %9330 }
 0xb20   :  { %v9470_v18 = vsel %vm2434_vm15, %v9329_v38, %v9331_v27 }
 0xb21   :  { %13043 = vmatprep.mubr.msk.f32.mxu1 %vm755_vm4, %v9470_v18 }
 0xb22   :  { %v12988_v16 = vpop.f32.mrf.mxu1 }
 0xb23   :  { %v9365_v0 = vpop.permute.xlu0 %9364  ;;  %v9367_v24 = vpop.permute.xlu1 %9366  ;;  %v9696_v56 = vadd.f32 %v12988_v16, %v17169_v54 }
 0xb24   :  { %v9690_v9 = vpop.f32.mrf.mxu1  ;;  %v9479_v51 = vsel %vm2434_vm15, %v9365_v0, %v9367_v24 }
 0xb25   :  { %v9691_v25 = vadd.f32 %v17169_v54, %v9690_v9  ;;  %v10010_v32 = vmax.f32 %v9696_v56, 0.0 }
 0xb27   :  { %v10009_v60 = vmax.f32 %v9691_v25, 0.0  ;;  %v9333_v4 = vpop.permute.xlu0 %9332  ;;  %v9335_v7 = vpop.permute.xlu1 %9334 }
 0xb28   :  { %v9471_v40 = vsel %vm2434_vm15, %v9333_v4, %v9335_v7 }
 0xb29   :  { %13114 = vmatprep.mubr.f32.mxu0 %v10009_v60  ;;  %13044 = vmatmul.mubr.msk.f32.gmra.mxu1 %vm755_vm4, %v9471_v40 }
 0xb2a   :  { %13115 = vmatmul.mubr.f32.vlgmr.msra.gmra.mxu0 %v10010_v32  ;;  %13046 = vmatprep.mubr.msk.f32.mxu1 %vm755_vm4, %v9472_v36 }
 0xb2d   :  { %13047 = vmatmul.mubr.msk.f32.gmra.mxu1 %vm755_vm4, %v9473_v50 }
 0xb2e   :  { %13049 = vmatprep.mubr.msk.f32.mxu1 %vm755_vm4, %v9474_v44 }
 0xb31   :  { %13050 = vmatmul.mubr.msk.f32.gmra.mxu1 %vm755_vm4, %v9475_v26 }
 0xb32   :  { %13052 = vmatprep.mubr.msk.f32.mxu1 %vm755_vm4, %v9476_v46 }
 0xb35   :  { %13053 = vmatmul.mubr.msk.f32.gmra.mxu1 %vm755_vm4, %v9477_v13 }
 0xb36   :  { %13055 = vmatprep.mubr.msk.f32.mxu1 %vm755_vm4, %v9478_v43 }
 0xb39   :  { %13056 = vmatmul.mubr.msk.f32.gmra.mxu1 %vm755_vm4, %v9479_v51 }
 0xb3a   :  { %v12991_v33 = vpop.f32.mrf.mxu1 }
 0xb3b   :  { %v9706_v12 = vadd.f32 %v12991_v33, %v17169_v54 }
 0xb3c   :  { %v9700_v42 = vpop.f32.mrf.mxu1 }
 0xb3d   :  { %v9701_v53 = vadd.f32 %v17169_v54, %v9700_v42  ;;  %v10012_v1 = vmax.f32 %v9706_v12, 0.0 }
 0xb3e   :  { %v12994_v31 = vpop.f32.mrf.mxu1 }
 0xb3f   :  { %v10011_v10 = vmax.f32 %v9701_v53, 0.0  ;;  %v9716_v21 = vadd.f32 %v12994_v31, %v17169_v54 }
 0xb40   :  { %v9710_v52 = vpop.f32.mrf.mxu1 }
 0xb41   :  { %v9711_v8 = vadd.f32 %v17169_v54, %v9710_v52  ;;  %13117 = vmatprep.mubr.f32.mxu0 %v10011_v10  ;;  %v10014_v39 = vmax.f32 %v9716_v21, 0.0 }
 0xb42   :  { %v17204_v48 = vpop.permute.xlu0 %9400  ;;  %v17206_v47 = vpop.permute.xlu1 %9402  ;;  %13118 = vmatmul.mubr.f32.gmra.mxu0 %v10012_v1 }
 0xb43   :  { %v10013_v15 = vmax.f32 %v9711_v8, 0.0 }
 0xb45   :  { %13120 = vmatprep.mubr.f32.mxu0 %v10013_v15 }
 0xb46   :  { %v9369_v29 = vpop.permute.xlu0 %9368  ;;  %v9371_v3 = vpop.permute.xlu1 %9370  ;;  %13121 = vmatmul.mubr.f32.gmra.mxu0 %v10014_v39 }
 0xb47   :  { %v9480_v14 = vsel %vm2434_vm15, %v9369_v29, %v9371_v3 }
 0xb48   :  { %13058 = vmatprep.mubr.msk.f32.mxu1 %vm755_vm4, %v9480_v14 }
 0xb4a   :  { %v17210_v62 = vpop.permute.xlu0 %9404  ;;  %v17212_v34 = vpop.permute.xlu1 %9406 }
 0xb4b   :  { %v12997_v28 = vpop.f32.mrf.mxu1 }
 0xb4c   :  { %v9726_v45 = vadd.f32 %v12997_v28, %v17169_v54 }
 0xb4d   :  { %v9720_v55 = vpop.f32.mrf.mxu1 }
 0xb4e   :  { %v9721_v20 = vadd.f32 %v17169_v54, %v9720_v55  ;;  %v17216_v19 = vpop.permute.xlu0 %9408  ;;  %v17218_v37 = vpop.permute.xlu1 %9410  ;;  %v10016_v58 = vmax.f32 %v9726_v45, 0.0 }
 0xb4f   :  { %v13000_v61 = vpop.f32.mrf.mxu1 }
 0xb50   :  { %v10015_v17 = vmax.f32 %v9721_v20, 0.0  ;;  %v9736_v6 = vadd.f32 %v13000_v61, %v17169_v54  ;;  %v9488_v20 = vsel %vm2434_vm15, %v17204_v48, %v17206_v47 }
 0xb51   :  { %v9730_v63 = vpop.f32.mrf.mxu1 }
 0xb52   :  { %v9731_v57 = vadd.f32 %v17169_v54, %v9730_v63  ;;  %13123 = vmatprep.mubr.f32.mxu0 %v10015_v17  ;;  %v9373_v41 = vpop.permute.xlu0 %9372  ;;  %v9375_v22 = vpop.permute.xlu1 %9374  ;;  %v10018_v23 = vmax.f32 %v9736_v6, 0.0  ;;  %v9490_v6 = vsel %vm2434_vm15, %v17216_v19, %v17218_v37 }
 0xb53   :  { %v9481_v5 = vsel %vm2434_vm15, %v9373_v41, %v9375_v22  ;;  %v13003_v35 = vpop.f32.mrf.mxu1  ;;  %13124 = vmatmul.mubr.f32.gmra.mxu0 %v10016_v58  ;;  %v9489_v58 = vsel %vm2434_vm15, %v17210_v62, %v17212_v34 }
 0xb54   :  { %v10017_v2 = vmax.f32 %v9731_v57, 0.0  ;;  %13059 = vmatmul.mubr.msk.f32.gmra.mxu1 %vm755_vm4, %v9481_v5  ;;  %v9746_v11 = vadd.f32 %v13003_v35, %v17169_v54 }
 0xb55   :  { %v9740_v49 = vpop.f32.mrf.mxu1 }
 0xb56   :  { %v9741_v59 = vadd.f32 %v17169_v54, %v9740_v49  ;;  %13126 = vmatprep.mubr.f32.mxu0 %v10017_v2  ;;  %v9377_v38 = vpop.permute.xlu0 %9376  ;;  %v9379_v27 = vpop.permute.xlu1 %9378  ;;  %v10020_v24 = vmax.f32 %v9746_v11, 0.0 }
 0xb57   :  { %v9482_v18 = vsel %vm2434_vm15, %v9377_v38, %v9379_v27  ;;  %v13006_v16 = vpop.f32.mrf.mxu1  ;;  %13127 = vmatmul.mubr.f32.gmra.mxu0 %v10018_v23 }
 0xb58   :  { %v10019_v0 = vmax.f32 %v9741_v59, 0.0  ;;  %13061 = vmatprep.mubr.msk.f32.mxu1 %vm755_vm4, %v9482_v18  ;;  %v9756_v56 = vadd.f32 %v13006_v16, %v17169_v54 }
 0xb59   :  { %v9750_v9 = vpop.f32.mrf.mxu1 }
 0xb5a   :  { %v9751_v25 = vadd.f32 %v17169_v54, %v9750_v9  ;;  %13129 = vmatprep.mubr.f32.mxu0 %v10019_v0  ;;  %v9385_v60 = vpop.permute.xlu0 %9384  ;;  %v9387_v4 = vpop.permute.xlu1 %9386  ;;  %v10022_v40 = vmax.f32 %v9756_v56, 0.0 }
 0xb5b   :  { %v13009_v7 = vpop.f32.mrf.mxu1  ;;  %13130 = vmatmul.mubr.f32.gmra.mxu0 %v10020_v24  ;;  %v9484_v53 = vsel %vm2434_vm15, %v9385_v60, %v9387_v4 }
 0xb5c   :  { %v10021_v32 = vmax.f32 %v9751_v25, 0.0  ;;  %v9766_v36 = vadd.f32 %v13009_v7, %v17169_v54 }
 0xb5d   :  { %v9760_v50 = vpop.f32.mrf.mxu1 }
 0xb5e   :  { %v9761_v44 = vadd.f32 %v17169_v54, %v9760_v50  ;;  %13132 = vmatprep.mubr.f32.mxu0 %v10021_v32  ;;  %v9413_v26 = vpop.permute.xlu0 %9412  ;;  %v9415_v46 = vpop.permute.xlu1 %9414  ;;  %v10024_v43 = vmax.f32 %v9766_v36, 0.0 }
 0xb5f   :  { %13133 = vmatmul.mubr.f32.gmra.mxu0 %v10022_v40  ;;  %v9491_v47 = vsel %vm2434_vm15, %v9413_v26, %v9415_v46 }
 0xb60   :  { %v10023_v13 = vmax.f32 %v9761_v44, 0.0 }
 0xb62   :  { %13135 = vmatprep.mubr.f32.mxu0 %v10023_v13  ;;  %v9381_v51 = vpop.permute.xlu0 %9380  ;;  %v9383_v33 = vpop.permute.xlu1 %9382 }
 0xb63   :  { %v9483_v12 = vsel %vm2434_vm15, %v9381_v51, %v9383_v33  ;;  %v13012_v42 = vpop.f32.mrf.mxu1  ;;  %13136 = vmatmul.mubr.f32.gmra.mxu0 %v10024_v43 }
 0xb64   :  { %13062 = vmatmul.mubr.msk.f32.gmra.mxu1 %vm755_vm4, %v9483_v12  ;;  %v9776_v31 = vadd.f32 %v13012_v42, %v17169_v54 }
 0xb65   :  { %v9770_v10 = vpop.f32.mrf.mxu1  ;;  %13064 = vmatprep.mubr.msk.f32.mxu1 %vm755_vm4, %v9484_v53 }
 0xb66   :  { %v9771_v1 = vadd.f32 %v17169_v54, %v9770_v10  ;;  %v9389_v21 = vpop.permute.xlu0 %9388  ;;  %v9391_v52 = vpop.permute.xlu1 %9390  ;;  %v10026_v39 = vmax.f32 %v9776_v31, 0.0 }
 0xb67   :  { %v9485_v8 = vsel %vm2434_vm15, %v9389_v21, %v9391_v52 }
 0xb68   :  { %v10025_v15 = vmax.f32 %v9771_v1, 0.0  ;;  %13065 = vmatmul.mubr.msk.f32.gmra.mxu1 %vm755_vm4, %v9485_v8 }
 0xb6a   :  { %13138 = vmatprep.mubr.f32.mxu0 %v10025_v15  ;;  %v9393_v29 = vpop.permute.xlu0 %9392  ;;  %v9395_v3 = vpop.permute.xlu1 %9394 }
 0xb6b   :  { %v9486_v14 = vsel %vm2434_vm15, %v9393_v29, %v9395_v3  ;;  %13139 = vmatmul.mubr.f32.gmra.mxu0 %v10026_v39 }
 0xb6c   :  { %13067 = vmatprep.mubr.msk.f32.mxu1 %vm755_vm4, %v9486_v14 }
 0xb6e   :  { %v9397_v28 = vpop.permute.xlu0 %9396  ;;  %v9399_v45 = vpop.permute.xlu1 %9398 }
 0xb6f   :  { %v9487_v55 = vsel %vm2434_vm15, %v9397_v28, %v9399_v45 }
 0xb70   :  { %13068 = vmatmul.mubr.msk.f32.gmra.mxu1 %vm755_vm4, %v9487_v55 }
 0xb71   :  { %13070 = vmatprep.mubr.msk.f32.mxu1 %vm755_vm4, %v9488_v20 }
 0xb72   :  { %v9417_v61 = vpop.permute.xlu0 %9416  ;;  %v9419_v17 = vpop.permute.xlu1 %9418 }
 0xb73   :  { %v9492_v57 = vsel %vm2434_vm15, %v9417_v61, %v9419_v17 }
 0xb74   :  { %13071 = vmatmul.mubr.msk.f32.gmra.mxu1 %vm755_vm4, %v9489_v58 }
 0xb75   :  { %13073 = vmatprep.mubr.msk.f32.mxu1 %vm755_vm4, %v9490_v6 }
 0xb76   :  { %v9421_v63 = vpop.permute.xlu0 %9420  ;;  %v9423_v48 = vpop.permute.xlu1 %9422 }
 0xb77   :  { %v9493_v22 = vsel %vm2434_vm15, %v9421_v63, %v9423_v48 }
 0xb78   :  { %13074 = vmatmul.mubr.msk.f32.gmra.mxu1 %vm755_vm4, %v9491_v47 }
 0xb79   :  { %13076 = vmatprep.mubr.msk.f32.mxu1 %vm755_vm4, %v9492_v57  ;;  %v13015_v41 = vpop.f32.mrf.mxu1 }
 0xb7a   :  { %v9425_v62 = vpop.permute.xlu0 %9424  ;;  %v9427_v34 = vpop.permute.xlu1 %9426  ;;  %v9786_v37 = vadd.f32 %v13015_v41, %v17169_v54 }
 0xb7b   :  { %v9494_v19 = vsel %vm2434_vm15, %v9425_v62, %v9427_v34  ;;  %v9780_v5 = vpop.f32.mrf.mxu1 }
 0xb7c   :  { %13077 = vmatmul.mubr.msk.f32.gmra.mxu1 %vm755_vm4, %v9493_v22  ;;  %v9781_v35 = vadd.f32 %v17169_v54, %v9780_v5  ;;  %v10028_v59 = vmax.f32 %v9786_v37, 0.0 }
 0xb7d   :  { %13079 = vmatprep.mubr.msk.f32.mxu1 %vm755_vm4, %v9494_v19  ;;  %v13018_v2 = vpop.f32.mrf.mxu1 }
 0xb7e   :  { %v10027_v23 = vmax.f32 %v9781_v35, 0.0  ;;  %v9429_v11 = vpop.permute.xlu0 %9428  ;;  %v9431_v49 = vpop.permute.xlu1 %9430  ;;  %v9796_v27 = vadd.f32 %v13018_v2, %v17169_v54 }
 0xb7f   :  { %v9495_v38 = vsel %vm2434_vm15, %v9429_v11, %v9431_v49  ;;  %v9790_v18 = vpop.f32.mrf.mxu1  ;;  %v17289_v11 = vld [vmem:[%s18073_s6] ss:$0 sm:$0xff] }
 0xb80   :  { %13080 = vmatmul.mubr.msk.f32.gmra.mxu1 %vm755_vm4, %v9495_v38  ;;  %v9791_v16 = vadd.f32 %v17169_v54, %v9790_v18  ;;  %13141 = vmatprep.mubr.f32.mxu0 %v10027_v23  ;;  %v10030_v24 = vmax.f32 %v9796_v27, 0.0 }
 0xb81   :  { %13142 = vmatmul.mubr.f32.gmra.mxu0 %v10028_v59  ;;  %13242 = vmatprep.mubr.msk.f32.mxu1 %vm13413_vm1, %v17965_v30 }
 0xb82   :  { %v10029_v0 = vmax.f32 %v9791_v16, 0.0 }
 0xb84   :  { %13144 = vmatprep.mubr.f32.mxu0 %v10029_v0 }
 0xb85   :  { %13145 = vmatmul.mubr.f32.gmra.mxu0 %v10030_v24 }
 0xb89   :  { %v13021_v56 = vpop.f32.mrf.mxu1 }
 0xb8a   :  { %v9806_v9 = vadd.f32 %v13021_v56, %v17169_v54 }
 0xb8b   :  { %v9800_v25 = vpop.f32.mrf.mxu1 }
 0xb8c   :  { %v9801_v60 = vadd.f32 %v17169_v54, %v9800_v25  ;;  %v10032_v32 = vmax.f32 %v9806_v9, 0.0 }
 0xb8d   :  { %v13024_v4 = vpop.f32.mrf.mxu1 }
 0xb8e   :  { %v10031_v7 = vmax.f32 %v9801_v60, 0.0  ;;  %v9816_v40 = vadd.f32 %v13024_v4, %v17169_v54 }
 0xb8f   :  { %v9810_v36 = vpop.f32.mrf.mxu1 }
 0xb90   :  { %v9811_v50 = vadd.f32 %v17169_v54, %v9810_v36  ;;  %13147 = vmatprep.mubr.f32.mxu0 %v10031_v7  ;;  %v10034_v46 = vmax.f32 %v9816_v40, 0.0  ;;  %v17298_v36 = vld [vmem:[%s18074_s15] ss:$0 sm:$0xff] }
 0xb91   :  { %v13027_v44 = vpop.f32.mrf.mxu1  ;;  %13148 = vmatmul.mubr.f32.gmra.mxu0 %v10032_v32 }
 0xb92   :  { %v10033_v26 = vmax.f32 %v9811_v50, 0.0  ;;  %v9826_v13 = vadd.f32 %v13027_v44, %v17169_v54 }
 0xb93   :  { %v9820_v43 = vpop.f32.mrf.mxu1 }
 0xb94   :  { %v9821_v51 = vadd.f32 %v17169_v54, %v9820_v43  ;;  %13150 = vmatprep.mubr.f32.mxu0 %v10033_v26  ;;  %v10036_v42 = vmax.f32 %v9826_v13, 0.0 }
 0xb95   :  { %v13030_v33 = vpop.f32.mrf.mxu1  ;;  %13151 = vmatmul.mubr.f32.gmra.mxu0 %v10034_v46 }
 0xb96   :  { %v10035_v12 = vmax.f32 %v9821_v51, 0.0  ;;  %v9836_v53 = vadd.f32 %v13030_v33, %v17169_v54 }
 0xb97   :  { %v9830_v31 = vpop.f32.mrf.mxu1 }
 0xb98   :  { %v9831_v10 = vadd.f32 %v17169_v54, %v9830_v31  ;;  %13153 = vmatprep.mubr.f32.mxu0 %v10035_v12  ;;  %v10038_v52 = vmax.f32 %v9836_v53, 0.0  ;;  %v17304_v12 = vld [vmem:[%s18075_s16] ss:$0 sm:$0xff] }
 0xb99   :  { %v13033_v1 = vpop.f32.mrf.mxu1  ;;  %13154 = vmatmul.mubr.f32.gmra.mxu0 %v10036_v42 }
 0xb9a   :  { %v10037_v21 = vmax.f32 %v9831_v10, 0.0  ;;  %v9846_v8 = vadd.f32 %v13033_v1, %v17169_v54 }
 0xb9b   :  { %v9840_v15 = vpop.f32.mrf.mxu1 }
 0xb9c   :  { %v9841_v39 = vadd.f32 %v17169_v54, %v9840_v15  ;;  %13156 = vmatprep.mubr.f32.mxu0 %v10037_v21  ;;  %v10040_v3 = vmax.f32 %v9846_v8, 0.0 }
 0xb9d   :  { %13157 = vmatmul.mubr.f32.gmra.mxu0 %v10038_v52 }
 0xb9e   :  { %v10039_v29 = vmax.f32 %v9841_v39, 0.0 }
 0xba0   :  { %13159 = vmatprep.mubr.f32.mxu0 %v10039_v29 }
 0xba1   :  { %13160 = vmatmul.mubr.f32.gmra.mxu0 %v10040_v3 }
 0xbc1   :  { %v13036_v14 = vpop.f32.mrf.mxu1 }
 0xbc2   :  { %v9856_v28 = vadd.f32 %v13036_v14, %v17169_v54 }
 0xbc3   :  { %v9850_v45 = vpop.f32.mrf.mxu1 }
 0xbc4   :  { %v9851_v55 = vadd.f32 %v17169_v54, %v9850_v45  ;;  %v10042_v61 = vmax.f32 %v9856_v28, 0.0 }
 0xbc6   :  { %v10041_v20 = vmax.f32 %v9851_v55, 0.0 }
 0xbc8   :  { %13162 = vmatprep.mubr.f32.mxu0 %v10041_v20 }
 0xbc9   :  { %13163 = vmatmul.mubr.f32.gmra.mxu0 %v10042_v61 }
 0xbd9   :  { %v13039_v17 = vpop.f32.mrf.mxu1 }
 0xbda   :  { %v9866_v58 = vadd.f32 %v13039_v17, %v17169_v54 }
 0xbdb   :  { %v9860_v6 = vpop.f32.mrf.mxu1 }
 0xbdc   :  { %v9861_v63 = vadd.f32 %v17169_v54, %v9860_v6  ;;  %v10044_v57 = vmax.f32 %v9866_v58, 0.0 }
 0xbdd   :  { %v13042_v48 = vpop.f32.mrf.mxu1 }
 0xbde   :  { %v10043_v47 = vmax.f32 %v9861_v63, 0.0  ;;  %v9876_v41 = vadd.f32 %v13042_v48, %v17169_v54 }
 0xbdf   :  { %v9870_v62 = vpop.f32.mrf.mxu1 }
 0xbe0   :  { %v9871_v34 = vadd.f32 %v17169_v54, %v9870_v62  ;;  %13165 = vmatprep.mubr.f32.mxu0 %v10043_v47  ;;  %v10046_v19 = vmax.f32 %v9876_v41, 0.0 }
 0xbe1   :  { %13166 = vmatmul.mubr.f32.gmra.mxu0 %v10044_v57 }
 0xbe2   :  { %v10045_v22 = vmax.f32 %v9871_v34, 0.0 }
 0xbe4   :  { %13168 = vmatprep.mubr.f32.mxu0 %v10045_v22 }
 0xbe5   :  { %13169 = vmatmul.mubr.f32.gmra.mxu0 %v10046_v19 }
 0xbe9   :  { %v13045_v37 = vpop.f32.mrf.mxu1 }
 0xbea   :  { %v9886_v5 = vadd.f32 %v13045_v37, %v17169_v54  ;;  %v13116_v35 = vpop.f32.mrf.mxu0 }
 0xbeb   :  { %v9880_v2 = vpop.f32.mrf.mxu1  ;;  %v10168_v0 = vadd.f32 %v13116_v35, %v17289_v11 }
 0xbec   :  { %v9881_v23 = vadd.f32 %v17169_v54, %v9880_v2  ;;  %v10048_v38 = vmax.f32 %v9886_v5, 0.0  ;;  %v10162_v27 = vpop.f32.mrf.mxu0 }
 0xbed   :  { %v13048_v49 = vpop.f32.mrf.mxu1  ;;  %v10163_v9 = vadd.f32 %v17289_v11, %v10162_v27  ;;  %v10482_v32 = vmax.f32 %v10168_v0, 0.0 }
 0xbee   :  { %v10047_v59 = vmax.f32 %v9881_v23, 0.0  ;;  %v9896_v18 = vadd.f32 %v13048_v49, %v17169_v54 }
 0xbef   :  { %v9890_v16 = vpop.f32.mrf.mxu1  ;;  %v10481_v44 = vmax.f32 %v10163_v9, 0.0  ;;  %v10553_v51 = vmul.f32 %v17298_v36, %v10482_v32 }
 0xbf0   :  { %v9891_v24 = vadd.f32 %v17169_v54, %v9890_v16  ;;  %13171 = vmatprep.mubr.f32.mxu0 %v10047_v59  ;;  %v10050_v60 = vmax.f32 %v9896_v18, 0.0 }
 0xbf1   :  { %v13051_v56 = vpop.f32.mrf.mxu1  ;;  %13172 = vmatmul.mubr.f32.gmra.mxu0 %v10048_v38  ;;  %v10552_v53 = vmul.f32 %v17298_v36, %v10481_v44  ;;  %v10624_v52 = vadd.f32 %v17304_v12, %v10553_v51 }
 0xbf2   :  { %v10049_v25 = vmax.f32 %v9891_v24, 0.0  ;;  %v9906_v4 = vadd.f32 %v13051_v56, %v17169_v54 }
 0xbf3   :  { %v9900_v7 = vpop.f32.mrf.mxu1  ;;  %v10623_v15 = vadd.f32 %v17304_v12, %v10552_v53  ;;  %v10693_v3 = vrot.slane %v10624_v52, 4 }
 0xbf4   :  { %v9901_v40 = vadd.f32 %v17169_v54, %v9900_v7  ;;  %13174 = vmatprep.mubr.f32.mxu0 %v10049_v25  ;;  %v10052_v46 = vmax.f32 %v9906_v4, 0.0 }
 0xbf5   :  { %v13054_v50 = vpop.f32.mrf.mxu1  ;;  %13175 = vmatmul.mubr.f32.gmra.mxu0 %v10050_v60  ;;  %v10687_v14 = vrot.slane %v10623_v15, 4  ;;  %v10694_v55 = vmax.f32 %v10624_v52, %v10693_v3 }
 0xbf6   :  { %v10051_v26 = vmax.f32 %v9901_v40, 0.0  ;;  %v9916_v13 = vadd.f32 %v13054_v50, %v17169_v54 }
 0xbf7   :  { %v9910_v43 = vpop.f32.mrf.mxu1  ;;  %v10688_v58 = vmax.f32 %v10623_v15, %v10687_v14  ;;  %v10695_v57 = vrot.slane %v10694_v55, 2 }
 0xbf8   :  { %v9911_v33 = vadd.f32 %v17169_v54, %v9910_v43  ;;  %13177 = vmatprep.mubr.f32.mxu0 %v10051_v26  ;;  %v10054_v10 = vmax.f32 %v9916_v13, 0.0 }
 0xbf9   :  { %v13057_v42 = vpop.f32.mrf.mxu1  ;;  %13178 = vmatmul.mubr.f32.gmra.mxu0 %v10052_v46  ;;  %v10689_v37 = vrot.slane %v10688_v58, 2  ;;  %v10696_v49 = vmax.f32 %v10694_v55, %v10695_v57 }
 0xbfa   :  { %v10053_v31 = vmax.f32 %v9911_v33, 0.0  ;;  %v9926_v1 = vadd.f32 %v13057_v42, %v17169_v54 }
 0xbfb   :  { %v9920_v21 = vpop.f32.mrf.mxu1  ;;  %v10690_v16 = vmax.f32 %v10688_v58, %v10689_v37  ;;  %v10697_v25 = vrot.slane %v10696_v49, 1 }
 0xbfc   :  { %v9921_v8 = vadd.f32 %v17169_v54, %v9920_v21  ;;  %13180 = vmatprep.mubr.f32.mxu0 %v10053_v31  ;;  %v10056_v29 = vmax.f32 %v9926_v1, 0.0 }
 0xbfd   :  { %13181 = vmatmul.mubr.f32.gmra.mxu0 %v10054_v10  ;;  %v10691_v40 = vrot.slane %v10690_v16, 1  ;;  %v10698_v43 = vmax.f32 %v10696_v49, %v10697_v25 }
 0xbfe   :  { %v10055_v39 = vmax.f32 %v9921_v8, 0.0 }
 0xbff   :  { %v10692_v21 = vmax.f32 %v10690_v16, %v10691_v40 }
 0xc00   :  { %13183 = vmatprep.mubr.f32.mxu0 %v10055_v39 }
 0xc01   :  { %13184 = vmatmul.mubr.f32.gmra.mxu0 %v10056_v29 }
 0xc02   :  { %v13119_v28 = vpop.f32.mrf.mxu0 }
 0xc03   :  { %v10178_v45 = vadd.f32 %v13119_v28, %v17289_v11 }
 0xc04   :  { %v10172_v20 = vpop.f32.mrf.mxu0 }
 0xc05   :  { %v10484_v61 = vmax.f32 %v10178_v45, 0.0  ;;  %v10173_v17 = vadd.f32 %v17289_v11, %v10172_v20 }
 0xc06   :  { %v13122_v6 = vpop.f32.mrf.mxu0 }
 0xc07   :  { %v10555_v63 = vmul.f32 %v17298_v36, %v10484_v61  ;;  %v10483_v48 = vmax.f32 %v10173_v17, 0.0  ;;  %v10188_v47 = vadd.f32 %v13122_v6, %v17289_v11 }
 0xc08   :  { %v10182_v41 = vpop.f32.mrf.mxu0 }
 0xc09   :  { %v10626_v62 = vadd.f32 %v17304_v12, %v10555_v63  ;;  %v10554_v34 = vmul.f32 %v17298_v36, %v10483_v48  ;;  %v10486_v22 = vmax.f32 %v10188_v47, 0.0  ;;  %v10183_v19 = vadd.f32 %v17289_v11, %v10182_v41 }
 0xc0b   :  { %v10705_v5 = vrot.slane %v10626_v62, 4  ;;  %v10625_v35 = vadd.f32 %v17304_v12, %v10554_v34  ;;  %v10557_v2 = vmul.f32 %v17298_v36, %v10486_v22  ;;  %v10485_v23 = vmax.f32 %v10183_v19, 0.0 }
 0xc0d   :  { %v10706_v59 = vmax.f32 %v10626_v62, %v10705_v5  ;;  %v10699_v38 = vrot.slane %v10625_v35, 4  ;;  %v10628_v27 = vadd.f32 %v17304_v12, %v10557_v2  ;;  %v10556_v18 = vmul.f32 %v17298_v36, %v10485_v23 }
 0xc0f   :  { %v10707_v0 = vrot.slane %v10706_v59, 2  ;;  %v10700_v24 = vmax.f32 %v10625_v35, %v10699_v38  ;;  %v10717_v56 = vrot.slane %v10628_v27, 4  ;;  %v10627_v9 = vadd.f32 %v17304_v12, %v10556_v18 }
 0xc11   :  { %v10708_v60 = vmax.f32 %v10706_v59, %v10707_v0  ;;  %v10701_v4 = vrot.slane %v10700_v24, 2  ;;  %v10718_v7 = vmax.f32 %v10628_v27, %v10717_v56  ;;  %v10711_v32 = vrot.slane %v10627_v9, 4 }
 0xc13   :  { %v10709_v50 = vrot.slane %v10708_v60, 1  ;;  %v10702_v44 = vmax.f32 %v10700_v24, %v10701_v4  ;;  %v10719_v26 = vrot.slane %v10718_v7, 2  ;;  %v10712_v46 = vmax.f32 %v10627_v9, %v10711_v32  ;;  %v13125_v13 = vpop.f32.mrf.mxu0 }
 0xc14   :  { %v10198_v51 = vadd.f32 %v13125_v13, %v17289_v11  ;;  %v13060_v33 = vpop.f32.mrf.mxu1 }
 0xc15   :  { %v10710_v42 = vmax.f32 %v10708_v60, %v10709_v50  ;;  %v10703_v53 = vrot.slane %v10702_v44, 1  ;;  %v10720_v31 = vmax.f32 %v10718_v7, %v10719_v26  ;;  %v10713_v10 = vrot.slane %v10712_v46, 2  ;;  %v10192_v1 = vpop.f32.mrf.mxu0 }
 0xc16   :  { %v10488_v52 = vmax.f32 %v10198_v51, 0.0  ;;  %v9936_v8 = vadd.f32 %v13060_v33, %v17169_v54  ;;  %v10193_v15 = vadd.f32 %v17289_v11, %v10192_v1  ;;  %v9930_v39 = vpop.f32.mrf.mxu1 }
 0xc17   :  { %v11072_v29 = vmax.f32 %v10698_v43, %v10710_v42  ;;  %v10704_v3 = vmax.f32 %v10702_v44, %v10703_v53  ;;  %v10721_v14 = vrot.slane %v10720_v31, 1  ;;  %v10714_v28 = vmax.f32 %v10712_v46, %v10713_v10  ;;  %v13128_v45 = vpop.f32.mrf.mxu0 }
 0xc18   :  { %v10559_v55 = vmul.f32 %v17298_v36, %v10488_v52  ;;  %v10487_v20 = vmax.f32 %v10193_v15, 0.0  ;;  %v9931_v61 = vadd.f32 %v17169_v54, %v9930_v39  ;;  %v10208_v63 = vadd.f32 %v13128_v45, %v17289_v11 }
 0xc19   :  { %v11071_v17 = vmax.f32 %v10692_v21, %v10704_v3  ;;  %v10722_v58 = vmax.f32 %v10720_v31, %v10721_v14  ;;  %v10715_v6 = vrot.slane %v10714_v28, 1  ;;  %v10202_v48 = vpop.f32.mrf.mxu0  ;;  %v10058_v19 = vmax.f32 %v9936_v8, 0.0 }
 0xc1a   :  { %v10630_v47 = vadd.f32 %v17304_v12, %v10559_v55  ;;  %v10558_v57 = vmul.f32 %v17298_v36, %v10487_v20  ;;  %v10057_v41 = vmax.f32 %v9931_v61, 0.0  ;;  %v10203_v62 = vadd.f32 %v17289_v11, %v10202_v48 }
 0xc1b   :  { %v17332_v34 = vmax.f32 %v11072_v29, %v10722_v58  ;;  %v10716_v22 = vmax.f32 %v10714_v28, %v10715_v6  ;;  %v10490_v37 = vmax.f32 %v10208_v63, 0.0  ;;  %v13131_v5 = vpop.f32.mrf.mxu0 }
 0xc1c   :  { %v10729_v35 = vrot.slane %v10630_v47, 4  ;;  %v10629_v2 = vadd.f32 %v17304_v12, %v10558_v57  ;;  %v10489_v23 = vmax.f32 %v10203_v62, 0.0  ;;  %v10218_v49 = vadd.f32 %v13131_v5, %v17289_v11  ;;  %13186 = vmatprep.mubr.f32.mxu0 %v10057_v41 }
 0xc1d   :  { %v17336_v59 = vmax.f32 %v11071_v17, %v10716_v22  ;;  %v10561_v38 = vmul.f32 %v17298_v36, %v10490_v37  ;;  %13187 = vmatmul.mubr.f32.gmra.mxu0 %v10058_v19  ;;  %v10212_v27 = vpop.f32.mrf.mxu0 }
 0xc1e   :  { %v10730_v18 = vmax.f32 %v10630_v47, %v10729_v35  ;;  %v10723_v16 = vrot.slane %v10629_v2, 4  ;;  %v10560_v0 = vmul.f32 %v17298_v36, %v10489_v23  ;;  %v10492_v24 = vmax.f32 %v10218_v49, 0.0 }
 0xc1f   :  { %v10632_v56 = vadd.f32 %v17304_v12, %v10561_v38  ;;  %v10213_v9 = vadd.f32 %v17289_v11, %v10212_v27  ;;  %v13134_v25 = vpop.f32.mrf.mxu0 }
 0xc20   :  { %v10731_v60 = vrot.slane %v10730_v18, 2  ;;  %v10724_v4 = vmax.f32 %v10629_v2, %v10723_v16  ;;  %v10631_v7 = vadd.f32 %v17304_v12, %v10560_v0  ;;  %v10563_v32 = vmul.f32 %v17298_v36, %v10492_v24 }
 0xc21   :  { %v10741_v40 = vrot.slane %v10632_v56, 4  ;;  %v10491_v50 = vmax.f32 %v10213_v9, 0.0  ;;  %v10228_v44 = vadd.f32 %v13134_v25, %v17289_v11  ;;  %v10222_v26 = vpop.f32.mrf.mxu0 }
 0xc22   :  { %v10732_v46 = vmax.f32 %v10730_v18, %v10731_v60  ;;  %v10725_v13 = vrot.slane %v10724_v4, 2  ;;  %v10735_v43 = vrot.slane %v10631_v7, 4  ;;  %v10634_v51 = vadd.f32 %v17304_v12, %v10563_v32 }
 0xc23   :  { %v10742_v33 = vmax.f32 %v10632_v56, %v10741_v40  ;;  %v10562_v42 = vmul.f32 %v17298_v36, %v10491_v50  ;;  %v10494_v53 = vmax.f32 %v10228_v44, 0.0  ;;  %v10223_v31 = vadd.f32 %v17289_v11, %v10222_v26  ;;  %v13137_v63 = vpop.f32.mrf.mxu0 }
 0xc24   :  { %v10733_v10 = vrot.slane %v10732_v46, 1  ;;  %v10726_v1 = vmax.f32 %v10724_v4, %v10725_v13  ;;  %v10736_v21 = vmax.f32 %v10631_v7, %v10735_v43  ;;  %v10753_v52 = vrot.slane %v10634_v51, 4  ;;  %v13063_v8 = vpop.f32.mrf.mxu1 }
 0xc25   :  { %v10743_v15 = vrot.slane %v10742_v33, 2  ;;  %v10633_v39 = vadd.f32 %v17304_v12, %v10562_v42  ;;  %v10565_v29 = vmul.f32 %v17298_v36, %v10494_v53  ;;  %v10493_v3 = vmax.f32 %v10223_v31, 0.0 }
 0xc26   :  { %v10734_v14 = vmax.f32 %v10732_v46, %v10733_v10  ;;  %v10727_v28 = vrot.slane %v10726_v1, 1  ;;  %v10737_v45 = vrot.slane %v10736_v21, 2  ;;  %v10754_v55 = vmax.f32 %v10634_v51, %v10753_v52  ;;  %v9940_v20 = vpop.f32.mrf.mxu1 }
 0xc27   :  { %v10744_v61 = vmax.f32 %v10742_v33, %v10743_v15  ;;  %v10747_v17 = vrot.slane %v10633_v39, 4  ;;  %v10636_v58 = vadd.f32 %v17304_v12, %v10565_v29  ;;  %v10564_v6 = vmul.f32 %v17298_v36, %v10493_v3 }
 0xc28   :  { %v11076_v48 = vmax.f32 %v17332_v34, %v10734_v14  ;;  %v10728_v47 = vmax.f32 %v10726_v1, %v10727_v28  ;;  %v10738_v57 = vmax.f32 %v10736_v21, %v10737_v45  ;;  %v10755_v41 = vrot.slane %v10754_v55, 2  ;;  %v13066_v49 = vpop.f32.mrf.mxu1  ;;  %v10232_v34 = vpop.f32.mrf.mxu0 }
 0xc29   :  { %v10745_v62 = vrot.slane %v10744_v61, 1  ;;  %v10748_v22 = vmax.f32 %v10633_v39, %v10747_v17  ;;  %v10765_v19 = vrot.slane %v10636_v58, 4  ;;  %v10635_v37 = vadd.f32 %v17304_v12, %v10564_v6 }
 0xc2a   :  { %v11075_v5 = vmax.f32 %v17336_v59, %v10728_v47  ;;  %v10739_v35 = vrot.slane %v10738_v57, 1  ;;  %v10756_v2 = vmax.f32 %v10754_v55, %v10755_v41  ;;  %v10238_v23 = vadd.f32 %v13137_v63, %v17289_v11  ;;  %v9950_v44 = vpop.f32.mrf.mxu1 }
 0xc2b   :  { %v10746_v38 = vmax.f32 %v10744_v61, %v10745_v62  ;;  %v10749_v27 = vrot.slane %v10748_v22, 2  ;;  %v10766_v18 = vmax.f32 %v10636_v58, %v10765_v19  ;;  %v10759_v16 = vrot.slane %v10635_v37, 4  ;;  %v13140_v59 = vpop.f32.mrf.mxu0 }
 0xc2c   :  { %v10740_v0 = vmax.f32 %v10738_v57, %v10739_v35  ;;  %v10757_v24 = vrot.slane %v10756_v2, 1  ;;  %v10496_v56 = vmax.f32 %v10238_v23, 0.0  ;;  %v9946_v9 = vadd.f32 %v13063_v8, %v17169_v54  ;;  %v11148_v35 = vld [vmem:[%s18076_s18 + $0x78] sm:$0xff] }
 0xc2d   :  { %v11078_v25 = vmax.f32 %v11076_v48, %v10746_v38  ;;  %v10750_v60 = vmax.f32 %v10748_v22, %v10749_v27  ;;  %v10767_v4 = vrot.slane %v10766_v18, 2  ;;  %v10760_v7 = vmax.f32 %v10635_v37, %v10759_v16  ;;  %v10242_v8 = vpop.f32.mrf.mxu0  ;;  %13211 = vmatpush3.msra.mxu1 %v11148_v35 }
 0xc2e   :  { %v11077_v32 = vmax.f32 %v11075_v5, %v10740_v0  ;;  %v10758_v40 = vmax.f32 %v10756_v2, %v10757_v24  ;;  %v10567_v50 = vmul.f32 %v17298_v36, %v10496_v56  ;;  %v10233_v43 = vadd.f32 %v17289_v11, %v10232_v34  ;;  %13212 = vmatprep.subr.mxu1 %v17965_v30 }
 0xc2f   :  { %v10751_v26 = vrot.slane %v10750_v60, 1  ;;  %v10768_v46 = vmax.f32 %v10766_v18, %v10767_v4  ;;  %v10761_v13 = vrot.slane %v10760_v7, 2  ;;  %v10060_v42 = vmax.f32 %v9946_v9, 0.0 }
 0xc30   :  { %v11080_v51 = vmax.f32 %v11078_v25, %v10758_v40  ;;  %v10638_v33 = vadd.f32 %v17304_v12, %v10567_v50  ;;  %v9941_v53 = vadd.f32 %v17169_v54, %v9940_v20  ;;  %v13069_v31 = vpop.f32.mrf.mxu1  ;;  %v10495_v52 = vmax.f32 %v10233_v43, 0.0  ;;  %v11147_v43 = vld [vmem:[%s18076_s18 + $0x70] sm:$0xff] }
 0xc31   :  { %v10752_v10 = vmax.f32 %v10750_v60, %v10751_v26  ;;  %v10769_v1 = vrot.slane %v10768_v46, 1  ;;  %v10762_v21 = vmax.f32 %v10760_v7, %v10761_v13  ;;  %v9956_v29 = vadd.f32 %v13066_v49, %v17169_v54  ;;  %13213 = vmatpush3.msra.mxu1 %v11147_v43 }
 0xc32   :  { %v10777_v15 = vrot.slane %v10638_v33, 4  ;;  %v10059_v39 = vmax.f32 %v9941_v53, 0.0  ;;  %v9951_v3 = vadd.f32 %v17169_v54, %v9950_v44  ;;  %v9960_v14 = vpop.f32.mrf.mxu1  ;;  %v10566_v61 = vmul.f32 %v17298_v36, %v10495_v52  ;;  %13214 = vmatprep.subr.mxu1 %v17965_v30 }
 0xc33   :  { %v11079_v28 = vmax.f32 %v11077_v32, %v10752_v10  ;;  %v10770_v45 = vmax.f32 %v10768_v46, %v10769_v1  ;;  %v10763_v55 = vrot.slane %v10762_v21, 1  ;;  %v10248_v58 = vadd.f32 %v13140_v59, %v17289_v11  ;;  %v13347_v59 = vld [vmem:[%s18072_s30] ss:$0 sm:$0xff] }
 0xc34   :  { %v10778_v17 = vmax.f32 %v10638_v33, %v10777_v15  ;;  %v10061_v20 = vmax.f32 %v9951_v3, 0.0  ;;  %13189 = vmatprep.mubr.f32.mxu0 %v10059_v39  ;;  %v10243_v6 = vadd.f32 %v17289_v11, %v10242_v8  ;;  %v13072_v63 = vpop.f32.mrf.mxu1  ;;  %v10637_v57 = vadd.f32 %v17304_v12, %v10566_v61 }
 0xc35   :  { %v17366_v48 = vmax.f32 %v11080_v51, %v10770_v45  ;;  %v10764_v47 = vmax.f32 %v10762_v21, %v10763_v55  ;;  %13190 = vmatmul.mubr.f32.gmra.mxu0 %v10060_v42  ;;  %v9966_v41 = vadd.f32 %v13069_v31, %v17169_v54  ;;  %v10498_v22 = vmax.f32 %v10248_v58, 0.0 }
 0xc36   :  { %v10779_v62 = vrot.slane %v10778_v17, 2  ;;  %v10497_v19 = vmax.f32 %v10243_v6, 0.0  ;;  %13192 = vmatprep.mubr.f32.mxu0 %v10061_v20  ;;  %v9961_v37 = vadd.f32 %v17169_v54, %v9960_v14  ;;  %v9970_v5 = vpop.f32.mrf.mxu1  ;;  %v10771_v23 = vrot.slane %v10637_v57, 4 }
 0xc37   :  { %v17372_v2 = vmax.f32 %v11079_v28, %v10764_v47  ;;  %v10062_v49 = vmax.f32 %v9956_v29, 0.0  ;;  %v10569_v27 = vmul.f32 %v17298_v36, %v10498_v22  ;;  %v9971_v24 = vadd.f32 %v17169_v54, %v9970_v5 }
 0xc38   :  { %v10780_v38 = vmax.f32 %v10778_v17, %v10779_v62  ;;  %v10568_v18 = vmul.f32 %v17298_v36, %v10497_v19  ;;  %v10063_v16 = vmax.f32 %v9961_v37, 0.0  ;;  %v13075_v34 = vpop.f32.mrf.mxu1  ;;  %v10772_v0 = vmax.f32 %v10637_v57, %v10771_v23 }
 0xc39   :  { %13193 = vmatmul.mubr.f32.gmra.mxu0 %v10062_v49  ;;  %v10640_v9 = vadd.f32 %v17304_v12, %v10569_v27  ;;  %v10064_v60 = vmax.f32 %v9966_v41, 0.0  ;;  %v9976_v32 = vadd.f32 %v13347_v59, %v13072_v63  ;;  %v10065_v40 = vmax.f32 %v9971_v24, 0.0  ;;  %v11146_v27 = vld [vmem:[%s18076_s18 + $0x68] sm:$0xff] }
 0xc3a   :  { %v10781_v56 = vrot.slane %v10780_v38, 1  ;;  %v10639_v25 = vadd.f32 %v17304_v12, %v10568_v18  ;;  %13195 = vmatprep.mubr.f32.mxu0 %v10063_v16  ;;  %v9980_v4 = vpop.f32.mrf.mxu1  ;;  %v10773_v7 = vrot.slane %v10772_v0, 2  ;;  %v9986_v21 = vadd.f32 %v13347_v59, %v13075_v34  ;;  %13215 = vmatpush3.msra.mxu1 %v11146_v27 }
 0xc3b   :  { %v9981_v50 = vadd.f32 %v13347_v59, %v9980_v4  ;;  %v10789_v26 = vrot.slane %v10640_v9, 4  ;;  %v10066_v1 = vmax.f32 %v9976_v32, 0.0  ;;  %13216 = vmatprep.subr.mxu1 %v17965_v30 }
 0xc3c   :  { %v10782_v44 = vmax.f32 %v10780_v38, %v10781_v56  ;;  %v10783_v46 = vrot.slane %v10639_v25, 4  ;;  %v13078_v13 = vpop.f32.mrf.mxu1  ;;  %v10774_v54 = vmax.f32 %v10772_v0, %v10773_v7  ;;  %v10068_v20 = vmax.f32 %v9986_v21, 0.0 }
 0xc3d   :  { %13196 = vmatmul.mubr.f32.gmra.mxu0 %v10064_v60  ;;  %v10790_v33 = vmax.f32 %v10640_v9, %v10789_v26  ;;  %v10067_v53 = vmax.f32 %v9981_v50, 0.0  ;;  %v9996_v58 = vadd.f32 %v13347_v59, %v13078_v13 }
 0xc3e   :  { %v11084_v51 = vmax.f32 %v17366_v48, %v10782_v44  ;;  %v10784_v42 = vmax.f32 %v10639_v25, %v10783_v46  ;;  %13198 = vmatprep.mubr.f32.mxu0 %v10065_v40  ;;  %v9990_v31 = vpop.f32.mrf.mxu1  ;;  %v10775_v10 = vrot.slane %v10774_v54, 1  ;;  %v11145_v46 = vld [vmem:[%s18076_s18 + $0x60] sm:$0xff] }
 0xc3f   :  { %v9991_v52 = vadd.f32 %v13347_v59, %v9990_v31  ;;  %v10791_v8 = vrot.slane %v10790_v33, 2  ;;  %13217 = vmatpush3.msra.mxu1 %v11145_v46 }
 0xc40   :  { %v10785_v15 = vrot.slane %v10784_v42, 2  ;;  %v13081_v39 = vpop.f32.mrf.mxu1  ;;  %v10776_v29 = vmax.f32 %v10774_v54, %v10775_v10  ;;  %13218 = vmatprep.subr.mxu1 %v17965_v30 }
 0xc41   :  { %13199 = vmatmul.mubr.f32.gmra.mxu0 %v10066_v1  ;;  %v13143_v3 = vpop.f32.mrf.mxu0  ;;  %v10792_v14 = vmax.f32 %v10790_v33, %v10791_v8  ;;  %v10069_v45 = vmax.f32 %v9991_v52, 0.0  ;;  %v10006_v23 = vadd.f32 %v13347_v59, %v13081_v39 }
 0xc42   :  { %v10786_v28 = vmax.f32 %v10784_v42, %v10785_v15  ;;  %13201 = vmatprep.mubr.f32.mxu0 %v10067_v53  ;;  %v10000_v55 = vpop.f32.mrf.mxu1  ;;  %v10258_v61 = vadd.f32 %v13143_v3, %v17289_v11  ;;  %v11083_v17 = vmax.f32 %v17372_v2, %v10776_v29  ;;  %v10070_v2 = vmax.f32 %v9996_v58, 0.0 }
 0xc43   :  { %v10001_v6 = vadd.f32 %v13347_v59, %v10000_v55  ;;  %v10252_v63 = vpop.f32.mrf.mxu0  ;;  %v10793_v48 = vrot.slane %v10792_v14, 1  ;;  %v10072_v60 = vmax.f32 %v10006_v23, 0.0 }
 0xc44   :  { %v10787_v47 = vrot.slane %v10786_v28, 1  ;;  %v10500_v57 = vmax.f32 %v10258_v61, 0.0  ;;  %v10253_v41 = vadd.f32 %v17289_v11, %v10252_v63 }
 0xc45   :  { %13202 = vmatmul.mubr.f32.gmra.mxu0 %v10068_v20  ;;  %v10071_v62 = vmax.f32 %v10001_v6, 0.0  ;;  %v13146_v22 = vpop.f32.mrf.mxu0  ;;  %v10794_v19 = vmax.f32 %v10792_v14, %v10793_v48 }
 0xc46   :  { %v10788_v37 = vmax.f32 %v10786_v28, %v10787_v47  ;;  %v10571_v5 = vmul.f32 %v17298_v36, %v10500_v57  ;;  %13204 = vmatprep.mubr.f32.mxu0 %v10069_v45  ;;  %v10499_v35 = vmax.f32 %v10253_v41, 0.0  ;;  %v10268_v49 = vadd.f32 %v13146_v22, %v17289_v11 }
 0xc47   :  { %v10262_v38 = vpop.f32.mrf.mxu0  ;;  %v17390_v18 = vmax.f32 %v11084_v51, %v10794_v19 }
 0xc48   :  { %v17392_v16 = vmax.f32 %v11083_v17, %v10788_v37  ;;  %v10642_v34 = vadd.f32 %v17304_v12, %v10571_v5  ;;  %v10570_v0 = vmul.f32 %v17298_v36, %v10499_v35  ;;  %v10502_v24 = vmax.f32 %v10268_v49, 0.0 }
 0xc49   :  { %13205 = vmatmul.mubr.f32.gmra.mxu0 %v10070_v2  ;;  %v10263_v56 = vadd.f32 %v17289_v11, %v10262_v38 }
 0xc4a   :  { %v10801_v9 = vrot.slane %v10642_v34, 4  ;;  %v10641_v25 = vadd.f32 %v17304_v12, %v10570_v0  ;;  %13207 = vmatprep.mubr.f32.mxu0 %v10071_v62  ;;  %v10573_v4 = vmul.f32 %v17298_v36, %v10502_v24 }
 0xc4b   :  { %v10501_v7 = vmax.f32 %v10263_v56, 0.0 }
 0xc4c   :  { %v10802_v59 = vmax.f32 %v10642_v34, %v10801_v9  ;;  %v10795_v32 = vrot.slane %v10641_v25, 4  ;;  %v10644_v40 = vadd.f32 %v17304_v12, %v10573_v4 }
 0xc4d   :  { %13208 = vmatmul.mubr.f32.gmra.mxu0 %v10072_v60  ;;  %v10572_v50 = vmul.f32 %v17298_v36, %v10501_v7  ;;  %v11144_v7 = vld [vmem:[%s18076_s18 + $0x58] sm:$0xff] }
 0xc4e   :  { %v10803_v44 = vrot.slane %v10802_v59, 2  ;;  %v10796_v26 = vmax.f32 %v10641_v25, %v10795_v32  ;;  %v10813_v13 = vrot.slane %v10644_v40, 4  ;;  %13219 = vmatpush3.msra.mxu1 %v11144_v7  ;;  %13261 = vmatprep.mubr.msk.f32.mxu0 %vm13413_vm1, %v17965_v30 }
 0xc4f   :  { %v10643_v43 = vadd.f32 %v17304_v12, %v10572_v50  ;;  %13220 = vmatprep.subr.mxu1 %v17965_v30 }
 0xc50   :  { %v10804_v54 = vmax.f32 %v10802_v59, %v10803_v44  ;;  %v10797_v51 = vrot.slane %v10796_v26, 2  ;;  %v10814_v33 = vmax.f32 %v10644_v40, %v10813_v13 }
 0xc51   :  { %v10807_v42 = vrot.slane %v10643_v43, 4  ;;  %v13149_v53 = vpop.f32.mrf.mxu0 }
 0xc52   :  { %v10805_v31 = vrot.slane %v10804_v54, 1  ;;  %v10798_v10 = vmax.f32 %v10796_v26, %v10797_v51  ;;  %v10278_v1 = vadd.f32 %v13149_v53, %v17289_v11  ;;  %v10815_v21 = vrot.slane %v10814_v33, 2 }
 0xc53   :  { %v10808_v52 = vmax.f32 %v10643_v43, %v10807_v42  ;;  %v10272_v8 = vpop.f32.mrf.mxu0  ;;  %v11143_v43 = vld [vmem:[%s18076_s18 + $0x50] sm:$0xff] }
 0xc54   :  { %v10806_v15 = vmax.f32 %v10804_v54, %v10805_v31  ;;  %v10799_v39 = vrot.slane %v10798_v10, 1  ;;  %v10504_v29 = vmax.f32 %v10278_v1, 0.0  ;;  %v10273_v3 = vadd.f32 %v17289_v11, %v10272_v8  ;;  %v11142_v54 = vld [vmem:[%s18076_s18 + $0x48] sm:$0xff]  ;;  %13221 = vmatpush3.msra.mxu1 %v11143_v43 }
 0xc55   :  { %v10816_v14 = vmax.f32 %v10814_v33, %v10815_v21  ;;  %v10809_v28 = vrot.slane %v10808_v52, 2  ;;  %v13152_v45 = vpop.f32.mrf.mxu0  ;;  %13222 = vmatprep.subr.mxu1 %v17965_v30 }
 0xc56   :  { %v11088_v55 = vmax.f32 %v17390_v18, %v10806_v15  ;;  %v10800_v61 = vmax.f32 %v10798_v10, %v10799_v39  ;;  %v10575_v17 = vmul.f32 %v17298_v36, %v10504_v29  ;;  %v10503_v20 = vmax.f32 %v10273_v3, 0.0  ;;  %13223 = vmatpush3.msra.mxu1 %v11142_v54 }
 0xc57   :  { %v10817_v58 = vrot.slane %v10816_v14, 1  ;;  %v10810_v6 = vmax.f32 %v10808_v52, %v10809_v28  ;;  %v10288_v63 = vadd.f32 %v13152_v45, %v17289_v11  ;;  %v10282_v48 = vpop.f32.mrf.mxu0  ;;  %13224 = vmatprep.subr.mxu1 %v17965_v30 }
 0xc58   :  { %v11087_v47 = vmax.f32 %v17392_v16, %v10800_v61  ;;  %v10646_v57 = vadd.f32 %v17304_v12, %v10575_v17  ;;  %v10574_v41 = vmul.f32 %v17298_v36, %v10503_v20  ;;  %v10283_v62 = vadd.f32 %v17289_v11, %v10282_v48 }
 0xc59   :  { %v10818_v22 = vmax.f32 %v10816_v14, %v10817_v58  ;;  %v10811_v19 = vrot.slane %v10810_v6, 1  ;;  %v10506_v37 = vmax.f32 %v10288_v63, 0.0  ;;  %v13155_v5 = vpop.f32.mrf.mxu0 }
 0xc5a   :  { %v10825_v35 = vrot.slane %v10646_v57, 4  ;;  %v10645_v2 = vadd.f32 %v17304_v12, %v10574_v41  ;;  %v10505_v23 = vmax.f32 %v10283_v62, 0.0  ;;  %v10298_v49 = vadd.f32 %v13155_v5, %v17289_v11 }
 0xc5b   :  { %v17416_v38 = vmax.f32 %v11088_v55, %v10818_v22  ;;  %v10812_v27 = vmax.f32 %v10810_v6, %v10811_v19  ;;  %v10577_v18 = vmul.f32 %v17298_v36, %v10506_v37  ;;  %v10292_v16 = vpop.f32.mrf.mxu0 }
 0xc5c   :  { %v10826_v34 = vmax.f32 %v10646_v57, %v10825_v35  ;;  %v10819_v0 = vrot.slane %v10645_v2, 4  ;;  %v10576_v24 = vmul.f32 %v17298_v36, %v10505_v23  ;;  %v10508_v56 = vmax.f32 %v10298_v49, 0.0 }
 0xc5d   :  { %v17420_v9 = vmax.f32 %v11087_v47, %v10812_v27  ;;  %v10648_v25 = vadd.f32 %v17304_v12, %v10577_v18  ;;  %v10293_v60 = vadd.f32 %v17289_v11, %v10292_v16  ;;  %v13158_v4 = vpop.f32.mrf.mxu0 }
 0xc5e   :  { %v10827_v59 = vrot.slane %v10826_v34, 2  ;;  %v10820_v32 = vmax.f32 %v10645_v2, %v10819_v0  ;;  %v10647_v40 = vadd.f32 %v17304_v12, %v10576_v24  ;;  %v10579_v50 = vmul.f32 %v17298_v36, %v10508_v56 }
 0xc5f   :  { %v10837_v44 = vrot.slane %v10648_v25, 4  ;;  %v10507_v26 = vmax.f32 %v10293_v60, 0.0  ;;  %v10308_v46 = vadd.f32 %v13158_v4, %v17289_v11  ;;  %v10302_v13 = vpop.f32.mrf.mxu0 }
 0xc60   :  { %v10828_v51 = vmax.f32 %v10826_v34, %v10827_v59  ;;  %v10821_v33 = vrot.slane %v10820_v32, 2  ;;  %v10831_v42 = vrot.slane %v10647_v40, 4  ;;  %v10650_v53 = vadd.f32 %v17304_v12, %v10579_v50 }
 0xc61   :  { %v10838_v31 = vmax.f32 %v10648_v25, %v10837_v44  ;;  %v10578_v10 = vmul.f32 %v17298_v36, %v10507_v26  ;;  %v10510_v1 = vmax.f32 %v10308_v46, 0.0  ;;  %v10303_v21 = vadd.f32 %v17289_v11, %v10302_v13  ;;  %v13161_v45 = vpop.f32.mrf.mxu0 }
 0xc62   :  { %v10829_v52 = vrot.slane %v10828_v51, 1  ;;  %v10822_v8 = vmax.f32 %v10820_v32, %v10821_v33  ;;  %v10832_v15 = vmax.f32 %v10647_v40, %v10831_v42  ;;  %v10849_v39 = vrot.slane %v10650_v53, 4 }
 0xc63   :  { %v10839_v29 = vrot.slane %v10838_v31, 2  ;;  %v10649_v3 = vadd.f32 %v17304_v12, %v10578_v10  ;;  %v10581_v14 = vmul.f32 %v17298_v36, %v10510_v1  ;;  %v10509_v28 = vmax.f32 %v10303_v21, 0.0  ;;  %v10312_v35 = vpop.f32.mrf.mxu0 }
 0xc64   :  { %v10830_v55 = vmax.f32 %v10828_v51, %v10829_v52  ;;  %v10823_v61 = vrot.slane %v10822_v8, 1  ;;  %v10833_v17 = vrot.slane %v10832_v15, 2  ;;  %v10850_v20 = vmax.f32 %v10650_v53, %v10849_v39 }
 0xc65   :  { %v10840_v58 = vmax.f32 %v10838_v31, %v10839_v29  ;;  %v10843_v6 = vrot.slane %v10649_v3, 4  ;;  %v10652_v63 = vadd.f32 %v17304_v12, %v10581_v14  ;;  %v10580_v48 = vmul.f32 %v17298_v36, %v10509_v28 }
 0xc66   :  { %v11092_v47 = vmax.f32 %v17416_v38, %v10830_v55  ;;  %v10824_v57 = vmax.f32 %v10822_v8, %v10823_v61  ;;  %v10834_v41 = vmax.f32 %v10832_v15, %v10833_v17  ;;  %v10851_v62 = vrot.slane %v10850_v20, 2  ;;  %v11141_v8 = vld [vmem:[%s18076_s18 + $0x40] sm:$0xff] }
 0xc67   :  { %v10841_v22 = vrot.slane %v10840_v58, 1  ;;  %v10844_v19 = vmax.f32 %v10649_v3, %v10843_v6  ;;  %v10861_v37 = vrot.slane %v10652_v63, 4  ;;  %v10651_v5 = vadd.f32 %v17304_v12, %v10580_v48  ;;  %13225 = vmatpush3.msra.mxu1 %v11141_v8  ;;  %v11139_v48 = vld [vmem:[%s18076_s18 + $0x30] sm:$0xff] }
 0xc68   :  { %v11091_v2 = vmax.f32 %v17420_v9, %v10824_v57  ;;  %v10835_v23 = vrot.slane %v10834_v41, 1  ;;  %v10852_v49 = vmax.f32 %v10850_v20, %v10851_v62  ;;  %v10318_v27 = vadd.f32 %v13161_v45, %v17289_v11  ;;  %13226 = vmatprep.subr.mxu1 %v17965_v30  ;;  %v11137_v57 = vld [vmem:[%s18076_s18 + $0x20] sm:$0xff] }
 0xc69   :  { %v10842_v18 = vmax.f32 %v10840_v58, %v10841_v22  ;;  %v10845_v16 = vrot.slane %v10844_v19, 2  ;;  %v10862_v34 = vmax.f32 %v10652_v63, %v10861_v37  ;;  %v10855_v0 = vrot.slane %v10651_v5, 4  ;;  %v11134_v37 = vld [vmem:[%s18076_s18 + $0x8] sm:$0xff] }
 0xc6a   :  { %v10836_v38 = vmax.f32 %v10834_v41, %v10835_v23  ;;  %v10853_v24 = vrot.slane %v10852_v49, 1  ;;  %v10512_v56 = vmax.f32 %v10318_v27, 0.0  ;;  %v10313_v25 = vadd.f32 %v17289_v11, %v10312_v35  ;;  %v11136_v41 = vld [vmem:[%s18076_s18 + $0x18] sm:$0xff]  ;;  %v11133_v35 = vld [vmem:[%s18076_s18] sm:$0xff]  ;;  %v11236_v27 = vld [vmem:[%s18077_s22 + $0x28] sm:$0xff] }
 0xc6b   :  { %v11094_v60 = vmax.f32 %v11092_v47, %v10842_v18  ;;  %v10846_v4 = vmax.f32 %v10844_v19, %v10845_v16  ;;  %v10863_v7 = vrot.slane %v10862_v34, 2  ;;  %v10856_v59 = vmax.f32 %v10651_v5, %v10855_v0  ;;  %v11138_v47 = vld [vmem:[%s18076_s18 + $0x28] sm:$0xff]  ;;  %v11135_v19 = vld [vmem:[%s18076_s18 + $0x10] sm:$0xff]  ;;  %v11238_v23 = vld [vmem:[%s18077_s22 + $0x38] sm:$0xff] }
 0xc6c   :  { %v11093_v32 = vmax.f32 %v11091_v2, %v10836_v38  ;;  %v10854_v40 = vmax.f32 %v10852_v49, %v10853_v24  ;;  %v10583_v9 = vmul.f32 %v17298_v36, %v10512_v56  ;;  %v10511_v50 = vmax.f32 %v10313_v25, 0.0  ;;  %v11237_v49 = vld [vmem:[%s18077_s22 + $0x30] sm:$0xff]  ;;  %13246 = vmatpush3.msra.mxu0 %v11238_v23  ;;  %v11235_v16 = vld [vmem:[%s18077_s22 + $0x20] sm:$0xff]  ;;  %v11232_v56 = vld [vmem:[%s18077_s22 + $0x8] sm:$0xff] }
 0xc6d   :  { %v10847_v44 = vrot.slane %v10846_v4, 1  ;;  %v10864_v26 = vmax.f32 %v10862_v34, %v10863_v7  ;;  %v10857_v46 = vrot.slane %v10856_v59, 2  ;;  %13247 = vmatprep.subr.mxu0 %v17965_v30  ;;  %v11234_v34 = vld [vmem:[%s18077_s22 + $0x18] sm:$0xff]  ;;  %v11233_v38 = vld [vmem:[%s18077_s22 + $0x10] sm:$0xff]  ;;  %v11231_v25 = vld [vmem:[%s18077_s22] sm:$0xff] }
 0xc6e   :  { %v11096_v13 = vmax.f32 %v11094_v60, %v10854_v40  ;;  %v10654_v43 = vadd.f32 %v17304_v12, %v10583_v9  ;;  %v10582_v54 = vmul.f32 %v17298_v36, %v10511_v50  ;;  %v11140_v36 = vld [vmem:[%s18076_s18 + $0x38] sm:$0xff]  ;;  %13248 = vmatpush3.msra.mxu0 %v11237_v49  ;;  %v17488_v60 = vld [vmem:[%s18073_s6] ss:$0 sm:$0xff] }
 0xc6f   :  { %v10848_v51 = vmax.f32 %v10846_v4, %v10847_v44  ;;  %v10865_v11 = vrot.slane %v10864_v26, 1  ;;  %v10858_v33 = vmax.f32 %v10856_v59, %v10857_v46  ;;  %13227 = vmatpush3.msra.mxu1 %v11140_v36  ;;  %13249 = vmatprep.subr.mxu0 %v17965_v30  ;;  %v17494_v50 = vld [vmem:[%s18074_s15] ss:$0 sm:$0xff] }
 0xc70   :  { %v10873_v42 = vrot.slane %v10654_v43, 4  ;;  %v10653_v53 = vadd.f32 %v17304_v12, %v10582_v54  ;;  %13228 = vmatprep.subr.mxu1 %v17965_v30  ;;  %13250 = vmatpush3.msra.mxu0 %v11236_v27 }
 0xc71   :  { %v11095_v31 = vmax.f32 %v11093_v32, %v10848_v51  ;;  %v10866_v10 = vmax.f32 %v10864_v26, %v10865_v11  ;;  %v10859_v1 = vrot.slane %v10858_v33, 1  ;;  %13229 = vmatpush3.msra.mxu1 %v11139_v48  ;;  %13251 = vmatprep.subr.mxu0 %v17965_v30 }
 0xc72   :  { %v10874_v21 = vmax.f32 %v10654_v43, %v10873_v42  ;;  %v10867_v52 = vrot.slane %v10653_v53, 4  ;;  %13230 = vmatprep.subr.mxu1 %v17965_v30  ;;  %13252 = vmatpush3.msra.mxu0 %v11235_v16 }
 0xc73   :  { %v11098_v15 = vmax.f32 %v11096_v13, %v10866_v10  ;;  %v10860_v39 = vmax.f32 %v10858_v33, %v10859_v1  ;;  %13231 = vmatpush3.msra.mxu1 %v11138_v47  ;;  %13253 = vmatprep.subr.mxu0 %v17965_v30  ;;  %v17499_v13 = vld [vmem:[%s18075_s16] ss:$0 sm:$0xff] }
 0xc74   :  { %v10875_v29 = vrot.slane %v10874_v21, 2  ;;  %v10868_v3 = vmax.f32 %v10653_v53, %v10867_v52  ;;  %13232 = vmatprep.subr.mxu1 %v17965_v30  ;;  %13254 = vmatpush3.msra.mxu0 %v11234_v34 }
 0xc75   :  { %v11097_v14 = vmax.f32 %v11095_v31, %v10860_v39  ;;  %13233 = vmatpush3.msra.mxu1 %v11137_v57  ;;  %13255 = vmatprep.subr.mxu0 %v17965_v30 }
 0xc76   :  { %v10876_v28 = vmax.f32 %v10874_v21, %v10875_v29  ;;  %v10869_v12 = vrot.slane %v10868_v3, 2  ;;  %13234 = vmatprep.subr.mxu1 %v17965_v30  ;;  %13256 = vmatpush3.msra.mxu0 %v11233_v38 }
 0xc77   :  { %13235 = vmatpush3.msra.mxu1 %v11136_v41  ;;  %13257 = vmatprep.subr.mxu0 %v17965_v30 }
 0xc78   :  { %v10877_v45 = vrot.slane %v10876_v28, 1  ;;  %v10870_v55 = vmax.f32 %v10868_v3, %v10869_v12  ;;  %13236 = vmatprep.subr.mxu1 %v17965_v30  ;;  %13258 = vmatpush3.msra.mxu0 %v11232_v56 }
 0xc79   :  { %13237 = vmatpush3.msra.mxu1 %v11135_v19  ;;  %13259 = vmatprep.subr.mxu0 %v17965_v30 }
 0xc7a   :  { %v10878_v61 = vmax.f32 %v10876_v28, %v10877_v45  ;;  %v10871_v17 = vrot.slane %v10870_v55, 1  ;;  %13238 = vmatprep.subr.mxu1 %v17965_v30  ;;  %13260 = vmatpush3.msra.mxu0 %v11231_v25 }
 0xc7b   :  { %13239 = vmatpush3.msra.mxu1 %v11134_v37 }
 0xc7c   :  { %v11100_v20 = vmax.f32 %v11098_v15, %v10878_v61  ;;  %v10872_v58 = vmax.f32 %v10870_v55, %v10871_v17  ;;  %13240 = vmatprep.subr.mxu1 %v17965_v30 }
 0xc7d   :  { %13241 = vmatpush3.msra.mxu1 %v11133_v35 }
 0xc7e   :  { %v11099_v6 = vmax.f32 %v11097_v14, %v10872_v58  ;;  %13264 = vmatprep.subr.mxu1 %v17965_v30 }
 0xc80   :  { %v17453_v63 = vmax.f32 %v11099_v6, %v11100_v20 }
 0xc89   :  { %v13164_v62 = vpop.f32.mrf.mxu0 }
 0xc8a   :  { %v10328_v4 = vadd.f32 %v17488_v60, %v13164_v62 }
 0xc8b   :  { %v10322_v22 = vpop.f32.mrf.mxu0 }
 0xc8c   :  { %v10323_v59 = vadd.f32 %v17488_v60, %v10322_v22  ;;  %v10514_v32 = vmax.f32 %v10328_v4, 0.0 }
 0xc8e   :  { %v10513_v9 = vmax.f32 %v10323_v59, 0.0  ;;  %v10585_v44 = vmul.f32 %v17494_v50, %v10514_v32 }
 0xc90   :  { %v10584_v46 = vmul.f32 %v17494_v50, %v10513_v9  ;;  %v10656_v43 = vadd.f32 %v17499_v13, %v10585_v44 }
 0xc92   :  { %v10655_v11 = vadd.f32 %v17499_v13, %v10584_v46  ;;  %v10885_v53 = vrot.slane %v10656_v43, 4 }
 0xc94   :  { %v10879_v52 = vrot.slane %v10655_v11, 4  ;;  %v10886_v3 = vmax.f32 %v10656_v43, %v10885_v53 }
 0xc96   :  { %v10880_v55 = vmax.f32 %v10655_v11, %v10879_v52  ;;  %v10887_v48 = vrot.slane %v10886_v3, 2 }
 0xc98   :  { %v10881_v37 = vrot.slane %v10880_v55, 2  ;;  %v10888_v27 = vmax.f32 %v10886_v3, %v10887_v48 }
 0xc9a   :  { %v10882_v25 = vmax.f32 %v10880_v55, %v10881_v37  ;;  %v10889_v9 = vrot.slane %v10888_v27, 1 }
 0xca1   :  { %v13167_v5 = vpop.f32.mrf.mxu0 }
 0xca2   :  { %v10338_v54 = vadd.f32 %v17488_v60, %v13167_v5 }
 0xca3   :  { %v10332_v2 = vpop.f32.mrf.mxu0 }
 0xca4   :  { %v10333_v33 = vadd.f32 %v17488_v60, %v10332_v2  ;;  %v10516_v31 = vmax.f32 %v10338_v54, 0.0 }
 0xca5   :  { %v13170_v18 = vpop.f32.mrf.mxu0 }
 0xca6   :  { %v10348_v42 = vadd.f32 %v17488_v60, %v13170_v18  ;;  %v10515_v8 = vmax.f32 %v10333_v33, 0.0  ;;  %v10587_v36 = vmul.f32 %v17494_v50, %v10516_v31  ;;  %v10883_v33 = vrot.slane %v10882_v25, 1 }
 0xca7   :  { %v10342_v0 = vpop.f32.mrf.mxu0 }
 0xca8   :  { %v10343_v10 = vadd.f32 %v17488_v60, %v10342_v0  ;;  %v10518_v15 = vmax.f32 %v10348_v42, 0.0  ;;  %v10586_v17 = vmul.f32 %v17494_v50, %v10515_v8  ;;  %v10658_v57 = vadd.f32 %v17499_v13, %v10587_v36 }
 0xca9   :  { %v17534_v8 = vmax.f32 %v10888_v27, %v10889_v9 }
 0xcaa   :  { %v10517_v14 = vmax.f32 %v10343_v10, 0.0  ;;  %v10589_v20 = vmul.f32 %v17494_v50, %v10518_v15  ;;  %v10657_v35 = vadd.f32 %v17499_v13, %v10586_v17  ;;  %v10897_v34 = vrot.slane %v10658_v57, 4 }
 0xcac   :  { %v10588_v41 = vmul.f32 %v17494_v50, %v10517_v14  ;;  %v10660_v2 = vadd.f32 %v17499_v13, %v10589_v20  ;;  %v10898_v46 = vmax.f32 %v10658_v57, %v10897_v34 }
 0xcae   :  { %v10659_v0 = vadd.f32 %v17499_v13, %v10588_v41  ;;  %v10909_v59 = vrot.slane %v10660_v2, 4 }
 0xcb0   :  { %v10903_v43 = vrot.slane %v10659_v0, 4  ;;  %v10910_v10 = vmax.f32 %v10660_v2, %v10909_v59 }
 0xcb1   :  { %v13173_v24 = vpop.f32.mrf.mxu0 }
 0xcb2   :  { %v10358_v1 = vadd.f32 %v17488_v60, %v13173_v24  ;;  %v10904_v3 = vmax.f32 %v10659_v0, %v10903_v43  ;;  %v10911_v17 = vrot.slane %v10910_v10, 2 }
 0xcb3   :  { %v10352_v7 = vpop.f32.mrf.mxu0 }
 0xcb4   :  { %v10353_v39 = vadd.f32 %v17488_v60, %v10352_v7  ;;  %v10520_v28 = vmax.f32 %v10358_v1, 0.0  ;;  %v10891_v7 = vrot.slane %v10657_v35, 4  ;;  %v10912_v27 = vmax.f32 %v10910_v10, %v10911_v17 }
 0xcb5   :  { %v13176_v40 = vpop.f32.mrf.mxu0 }
 0xcb6   :  { %v10368_v29 = vadd.f32 %v17488_v60, %v13176_v40  ;;  %v10519_v58 = vmax.f32 %v10353_v39, 0.0  ;;  %v10591_v62 = vmul.f32 %v17494_v50, %v10520_v28  ;;  %v10892_v31 = vmax.f32 %v10657_v35, %v10891_v7 }
 0xcb7   :  { %v10362_v26 = vpop.f32.mrf.mxu0  ;;  %v17538_v28 = vmax.f32 %v10882_v25, %v10883_v33 }
 0xcb8   :  { %v10363_v12 = vadd.f32 %v17488_v60, %v10362_v26  ;;  %v10522_v6 = vmax.f32 %v10368_v29, 0.0  ;;  %v10590_v23 = vmul.f32 %v17494_v50, %v10519_v58  ;;  %v10662_v38 = vadd.f32 %v17499_v13, %v10591_v62 }
 0xcb9   :  { %v13179_v51 = vpop.f32.mrf.mxu0  ;;  %v10899_v29 = vrot.slane %v10898_v46, 2 }
 0xcba   :  { %v10378_v61 = vadd.f32 %v17488_v60, %v13179_v51  ;;  %v10521_v22 = vmax.f32 %v10363_v12, 0.0  ;;  %v10593_v49 = vmul.f32 %v17494_v50, %v10522_v6  ;;  %v10661_v32 = vadd.f32 %v17499_v13, %v10590_v23 }
 0xcbb   :  { %v10372_v21 = vpop.f32.mrf.mxu0  ;;  %v10921_v54 = vrot.slane %v10662_v38, 4  ;;  %v10900_v62 = vmax.f32 %v10898_v46, %v10899_v29 }
 0xcbc   :  { %v10373_v47 = vadd.f32 %v17488_v60, %v10372_v21  ;;  %v10524_v5 = vmax.f32 %v10378_v61, 0.0  ;;  %v10592_v24 = vmul.f32 %v17494_v50, %v10521_v22  ;;  %v10664_v40 = vadd.f32 %v17499_v13, %v10593_v49 }
 0xcbd   :  { %v13182_v45 = vpop.f32.mrf.mxu0  ;;  %v10915_v1 = vrot.slane %v10661_v32, 4  ;;  %v10922_v36 = vmax.f32 %v10662_v38, %v10921_v54  ;;  %v10893_v61 = vrot.slane %v10892_v31, 2  ;;  %v10905_v22 = vrot.slane %v10904_v3, 2 }
 0xcbe   :  { %v10523_v18 = vmax.f32 %v10373_v47, 0.0  ;;  %v10388_v16 = vadd.f32 %v17488_v60, %v13182_v45  ;;  %v10595_v4 = vmul.f32 %v17494_v50, %v10524_v5  ;;  %v10663_v51 = vadd.f32 %v17499_v13, %v10592_v24 }
 0xcbf   :  { %v10382_v19 = vpop.f32.mrf.mxu0  ;;  %v10933_v21 = vrot.slane %v10664_v40, 4  ;;  %v10916_v20 = vmax.f32 %v10661_v32, %v10915_v1  ;;  %v10894_v49 = vmax.f32 %v10892_v31, %v10893_v61  ;;  %v10906_v25 = vmax.f32 %v10904_v3, %v10905_v22 }
 0xcc0   :  { %v10594_v44 = vmul.f32 %v17494_v50, %v10523_v18  ;;  %v10526_v26 = vmax.f32 %v10388_v16, 0.0  ;;  %v10666_v42 = vadd.f32 %v17499_v13, %v10595_v4  ;;  %v10383_v53 = vadd.f32 %v17488_v60, %v10382_v19 }
 0xcc1   :  { %v13185_v56 = vpop.f32.mrf.mxu0  ;;  %v10927_v14 = vrot.slane %v10663_v51, 4  ;;  %v10934_v58 = vmax.f32 %v10664_v40, %v10933_v21  ;;  %v10923_v19 = vrot.slane %v10922_v36, 2  ;;  %v10917_v18 = vrot.slane %v10916_v20, 2 }
 0xcc2   :  { %v10665_v15 = vadd.f32 %v17499_v13, %v10594_v44  ;;  %v10597_v39 = vmul.f32 %v17494_v50, %v10526_v26  ;;  %v10945_v12 = vrot.slane %v10666_v42, 4  ;;  %v10525_v45 = vmax.f32 %v10383_v53, 0.0 }
 0xcc3   :  { %v10392_v11 = vpop.f32.mrf.mxu0  ;;  %v10398_v55 = vadd.f32 %v17488_v60, %v13185_v56  ;;  %v10928_v37 = vmax.f32 %v10663_v51, %v10927_v14  ;;  %v10935_v16 = vrot.slane %v10934_v58, 2  ;;  %v10901_v56 = vrot.slane %v10900_v62, 1 }
 0xcc4   :  { %v10939_v48 = vrot.slane %v10665_v15, 4  ;;  %v10668_v47 = vadd.f32 %v17499_v13, %v10597_v39  ;;  %v10393_v57 = vadd.f32 %v17488_v60, %v10392_v11  ;;  %v10946_v5 = vmax.f32 %v10666_v42, %v10945_v12 }
 0xcc5   :  { %v10596_v35 = vmul.f32 %v17494_v50, %v10525_v45  ;;  %v10528_v2 = vmax.f32 %v10398_v55, 0.0  ;;  %v10924_v4 = vmax.f32 %v10922_v36, %v10923_v19  ;;  %v10929_v7 = vrot.slane %v10928_v37, 2 }
 0xcc6   :  { %v10940_v34 = vmax.f32 %v10665_v15, %v10939_v48  ;;  %v10957_v0 = vrot.slane %v10668_v47, 4  ;;  %v10527_v38 = vmax.f32 %v10393_v57, 0.0  ;;  %v10947_v59 = vrot.slane %v10946_v5, 2 }
 0xcc7   :  { %v10667_v32 = vadd.f32 %v17499_v13, %v10596_v35  ;;  %v10599_v40 = vmul.f32 %v17494_v50, %v10528_v2  ;;  %v10895_v44 = vrot.slane %v10894_v49, 1  ;;  %v10913_v26 = vrot.slane %v10912_v27, 1 }
 0xcc8   :  { %v10918_v46 = vmax.f32 %v10916_v20, %v10917_v18  ;;  %v10936_v43 = vmax.f32 %v10934_v58, %v10935_v16  ;;  %v10941_v54 = vrot.slane %v10940_v34, 2  ;;  %v10958_v51 = vmax.f32 %v10668_v47, %v10957_v0 }
 0xcc9   :  { %v10598_v11 = vmul.f32 %v17494_v50, %v10527_v38  ;;  %v10902_v42 = vmax.f32 %v10900_v62, %v10901_v56  ;;  %v10907_v53 = vrot.slane %v10906_v25, 1  ;;  %v10925_v31 = vrot.slane %v10924_v4, 1 }
 0xcca   :  { %v10930_v10 = vmax.f32 %v10928_v37, %v10929_v7  ;;  %v10948_v1 = vmax.f32 %v10946_v5, %v10947_v59  ;;  %v10951_v21 = vrot.slane %v10667_v32, 4  ;;  %v10896_v39 = vmax.f32 %v10894_v49, %v10895_v44 }
 0xccb   :  { %v10914_v29 = vmax.f32 %v10912_v27, %v10913_v26  ;;  %v10919_v3 = vrot.slane %v10918_v46, 1  ;;  %v10937_v36 = vrot.slane %v10936_v43, 1  ;;  %v10942_v14 = vmax.f32 %v10940_v34, %v10941_v54 }
 0xccc   :  { %v10959_v12 = vrot.slane %v10958_v51, 2  ;;  %v10669_v45 = vadd.f32 %v17499_v13, %v10598_v11  ;;  %v11103_v61 = vmax.f32 %v17534_v8, %v10902_v42  ;;  %v10908_v17 = vmax.f32 %v10906_v25, %v10907_v53 }
 0xccd   :  { %v10926_v20 = vmax.f32 %v10924_v4, %v10925_v31  ;;  %v10931_v58 = vrot.slane %v10930_v10, 1  ;;  %v10952_v48 = vmax.f32 %v10667_v32, %v10951_v21  ;;  %v10920_v22 = vmax.f32 %v10918_v46, %v10919_v3 }
 0xcce   :  { %v11105_v62 = vmax.f32 %v11103_v61, %v10914_v29  ;;  %v10938_v19 = vmax.f32 %v10936_v43, %v10937_v36  ;;  %v10943_v37 = vrot.slane %v10942_v14, 1  ;;  %v10960_v5 = vmax.f32 %v10958_v51, %v10959_v12 }
 0xccf   :  { %v10963_v35 = vrot.slane %v10669_v45, 4  ;;  %v10932_v27 = vmax.f32 %v10930_v10, %v10931_v58  ;;  %v10953_v34 = vrot.slane %v10952_v48, 2 }
 0xcd0   :  { %v11107_v8 = vmax.f32 %v11105_v62, %v10926_v20  ;;  %v17563_v7 = vmax.f32 %v10942_v14, %v10943_v37  ;;  %v10961_v59 = vrot.slane %v10960_v5, 1 }
 0xcd1   :  { %v10964_v32 = vmax.f32 %v10669_v45, %v10963_v35  ;;  %v10954_v51 = vmax.f32 %v10952_v48, %v10953_v34 }
 0xcd2   :  { %v17560_v56 = vmax.f32 %v11107_v8, %v10938_v19 }
 0xcd3   :  { %v10955_v45 = vrot.slane %v10954_v51, 1 }
 0xcdd   :  { %v13188_v52 = vpop.f32.mrf.mxu0 }
 0xcde   :  { %v10408_v41 = vadd.f32 %v17488_v60, %v13188_v52  ;;  %v10670_v52 = vadd.f32 %v17499_v13, %v10599_v40 }
 0xcdf   :  { %v10402_v6 = vpop.f32.mrf.mxu0 }
 0xce0   :  { %v10403_v23 = vadd.f32 %v17488_v60, %v10402_v6  ;;  %v10530_v24 = vmax.f32 %v10408_v41, 0.0  ;;  %v10949_v6 = vrot.slane %v10948_v1, 1  ;;  %v10969_v47 = vrot.slane %v10670_v52, 4 }
 0xce1   :  { %v11102_v41 = vmax.f32 %v17538_v28, %v10896_v39 }
 0xce2   :  { %v10529_v9 = vmax.f32 %v10403_v23, 0.0  ;;  %v10601_v33 = vmul.f32 %v17494_v50, %v10530_v24  ;;  %v17558_v16 = vmax.f32 %v10948_v1, %v10949_v6  ;;  %v10970_v0 = vmax.f32 %v10670_v52, %v10969_v47 }
 0xce3   :  { %v11104_v49 = vmax.f32 %v11102_v41, %v10908_v17  ;;  %v10962_v52 = vmax.f32 %v10960_v5, %v10961_v59 }
 0xce4   :  { %v10600_v15 = vmul.f32 %v17494_v50, %v10529_v9  ;;  %v10672_v55 = vadd.f32 %v17499_v13, %v10601_v33  ;;  %v11111_v54 = vmax.f32 %v17560_v56, %v17558_v16  ;;  %v10971_v11 = vrot.slane %v10970_v0, 2 }
 0xce5   :  { %v11106_v28 = vmax.f32 %v11104_v49, %v10920_v22 }
 0xce6   :  { %v10671_v57 = vadd.f32 %v17499_v13, %v10600_v15  ;;  %v10981_v2 = vrot.slane %v10672_v55, 4  ;;  %v10965_v15 = vrot.slane %v10964_v32, 2 }
 0xce7   :  { %v17565_v44 = vmax.f32 %v11106_v28, %v10932_v27 }
 0xce8   :  { %v10975_v38 = vrot.slane %v10671_v57, 4  ;;  %v10982_v40 = vmax.f32 %v10672_v55, %v10981_v2  ;;  %v10972_v55 = vmax.f32 %v10970_v0, %v10971_v11 }
 0xce9   :  { %v11110_v21 = vmax.f32 %v17565_v44, %v17563_v7 }
 0xcea   :  { %v10976_v33 = vmax.f32 %v10671_v57, %v10975_v38  ;;  %v10983_v39 = vrot.slane %v10982_v40, 2  ;;  %v10966_v57 = vmax.f32 %v10964_v32, %v10965_v15  ;;  %v10956_v32 = vmax.f32 %v10954_v51, %v10955_v45 }
 0xcec   :  { %v10977_v61 = vrot.slane %v10976_v33, 2  ;;  %v10984_v41 = vmax.f32 %v10982_v40, %v10983_v39  ;;  %v10967_v40 = vrot.slane %v10966_v57, 1 }
 0xcee   :  { %v10978_v34 = vmax.f32 %v10976_v33, %v10977_v61 }
 0xcf5   :  { %v13191_v23 = vpop.f32.mrf.mxu0 }
 0xcf6   :  { %v10418_v18 = vadd.f32 %v17488_v60, %v13191_v23  ;;  %v10973_v23 = vrot.slane %v10972_v55, 1 }
 0xcf7   :  { %v10412_v24 = vpop.f32.mrf.mxu0 }
 0xcf8   :  { %v10532_v25 = vmax.f32 %v10418_v18, 0.0  ;;  %v10413_v4 = vadd.f32 %v17488_v60, %v10412_v24 }
 0xcf9   :  { %v13194_v9 = vpop.f32.mrf.mxu0 }
 0xcfa   :  { %v10603_v26 = vmul.f32 %v17494_v50, %v10532_v25  ;;  %v10531_v46 = vmax.f32 %v10413_v4, 0.0  ;;  %v10428_v43 = vadd.f32 %v17488_v60, %v13194_v9  ;;  %v10985_v9 = vrot.slane %v10984_v41, 1 }
 0xcfb   :  { %v10422_v42 = vpop.f32.mrf.mxu0 }
 0xcfc   :  { %v10674_v53 = vadd.f32 %v17499_v13, %v10603_v26  ;;  %v10602_v31 = vmul.f32 %v17494_v50, %v10531_v46  ;;  %v10534_v10 = vmax.f32 %v10428_v43, 0.0  ;;  %v10423_v1 = vadd.f32 %v17488_v60, %v10422_v42 }
 0xcfd   :  { %v13197_v29 = vpop.f32.mrf.mxu0  ;;  %v10974_v42 = vmax.f32 %v10972_v55, %v10973_v23 }
 0xcfe   :  { %v10993_v3 = vrot.slane %v10674_v53, 4  ;;  %v10673_v36 = vadd.f32 %v17499_v13, %v10602_v31  ;;  %v10605_v14 = vmul.f32 %v17494_v50, %v10534_v10  ;;  %v10533_v12 = vmax.f32 %v10423_v1, 0.0 }
 0xcff   :  { %v10438_v17 = vadd.f32 %v17488_v60, %v13197_v29  ;;  %v10432_v20 = vpop.f32.mrf.mxu0 }
 0xd00   :  { %v10994_v58 = vmax.f32 %v10674_v53, %v10993_v3  ;;  %v10987_v6 = vrot.slane %v10673_v36, 4  ;;  %v10676_v48 = vadd.f32 %v17499_v13, %v10605_v14  ;;  %v10604_v47 = vmul.f32 %v17494_v50, %v10533_v12 }
 0xd01   :  { %v10536_v62 = vmax.f32 %v10438_v17, 0.0  ;;  %v10433_v22 = vadd.f32 %v17488_v60, %v10432_v20  ;;  %v13200_v19 = vpop.f32.mrf.mxu0  ;;  %v10979_v53 = vrot.slane %v10978_v34, 1  ;;  %v11113_v3 = vmax.f32 %v11111_v54, %v10962_v52 }
 0xd02   :  { %v10995_v37 = vrot.slane %v10994_v58, 2  ;;  %v10988_v5 = vmax.f32 %v10673_v36, %v10987_v6  ;;  %v11005_v35 = vrot.slane %v10676_v48, 4  ;;  %v10675_v2 = vadd.f32 %v17499_v13, %v10604_v47 }
 0xd03   :  { %v10607_v49 = vmul.f32 %v17494_v50, %v10536_v62  ;;  %v10535_v8 = vmax.f32 %v10433_v22, 0.0  ;;  %v10448_v27 = vadd.f32 %v17488_v60, %v13200_v19  ;;  %v10442_v18 = vpop.f32.mrf.mxu0  ;;  %v11112_v36 = vmax.f32 %v11110_v21, %v10956_v32 }
 0xd04   :  { %v10996_v0 = vmax.f32 %v10994_v58, %v10995_v37  ;;  %v11006_v38 = vmax.f32 %v10676_v48, %v11005_v35  ;;  %v10999_v24 = vrot.slane %v10675_v2, 4  ;;  %v10443_v7 = vadd.f32 %v17488_v60, %v10442_v18 }
 0xd05   :  { %v10678_v28 = vadd.f32 %v17499_v13, %v10607_v49  ;;  %v10606_v25 = vmul.f32 %v17494_v50, %v10535_v8  ;;  %v10538_v4 = vmax.f32 %v10448_v27, 0.0  ;;  %v13203_v59 = vpop.f32.mrf.mxu0  ;;  %v10989_v44 = vrot.slane %v10988_v5, 2 }
 0xd06   :  { %v11007_v26 = vrot.slane %v11006_v38, 2  ;;  %v10537_v11 = vmax.f32 %v10443_v7, 0.0  ;;  %v10997_v31 = vrot.slane %v10996_v0, 1  ;;  %v11000_v10 = vmax.f32 %v10675_v2, %v10999_v24 }
 0xd07   :  { %v10677_v46 = vadd.f32 %v17499_v13, %v10606_v25  ;;  %v10609_v43 = vmul.f32 %v17494_v50, %v10538_v4  ;;  %v10452_v33 = vpop.f32.mrf.mxu0  ;;  %v11017_v1 = vrot.slane %v10678_v28, 4  ;;  %v10968_v14 = vmax.f32 %v10966_v57, %v10967_v40 }
 0xd08   :  { %v10608_v51 = vmul.f32 %v17494_v50, %v10537_v11  ;;  %v10986_v12 = vmax.f32 %v10984_v41, %v10985_v9  ;;  %v10990_v45 = vmax.f32 %v10988_v5, %v10989_v44  ;;  %v11008_v61 = vmax.f32 %v11006_v38, %v11007_v26 }
 0xd09   :  { %v11011_v15 = vrot.slane %v10677_v46, 4  ;;  %v10680_v39 = vadd.f32 %v17499_v13, %v10609_v43  ;;  %v13206_v29 = vpop.f32.mrf.mxu0  ;;  %v11115_v20 = vmax.f32 %v11113_v3, %v10974_v42  ;;  %v10980_v58 = vmax.f32 %v10978_v34, %v10979_v53 }
 0xd0a   :  { %v10679_v17 = vadd.f32 %v17499_v13, %v10608_v51  ;;  %v17596_v6 = vmax.f32 %v10996_v0, %v10997_v31  ;;  %v10458_v48 = vadd.f32 %v17488_v60, %v13203_v59  ;;  %v11001_v62 = vrot.slane %v11000_v10, 2 }
 0xd0b   :  { %v11029_v55 = vrot.slane %v10680_v39, 4  ;;  %v10462_v47 = vpop.f32.mrf.mxu0  ;;  %v11018_v22 = vmax.f32 %v10678_v28, %v11017_v1  ;;  %v11012_v19 = vmax.f32 %v10677_v46, %v11011_v15  ;;  %v11114_v56 = vmax.f32 %v11112_v36, %v10968_v14 }
 0xd0c   :  { %v11023_v16 = vrot.slane %v10679_v17, 4  ;;  %v17599_v54 = vmax.f32 %v11115_v20, %v10986_v12  ;;  %v10540_v21 = vmax.f32 %v10458_v48, 0.0  ;;  %v10453_v52 = vadd.f32 %v17488_v60, %v10452_v33 }
 0xd0d   :  { %v10991_v57 = vrot.slane %v10990_v45, 1  ;;  %v11009_v41 = vrot.slane %v11008_v61, 1  ;;  %v11030_v37 = vmax.f32 %v10680_v39, %v11029_v55  ;;  %v17602_v35 = vmax.f32 %v11114_v56, %v10980_v58  ;;  %v13209_v8 = vpop.f32.mrf.mxu0 }
 0xd0e   :  { %v11024_v5 = vmax.f32 %v10679_v17, %v11023_v16  ;;  %v10611_v2 = vmul.f32 %v17494_v50, %v10540_v21  ;;  %v10539_v23 = vmax.f32 %v10453_v52, 0.0  ;;  %v10468_v49 = vadd.f32 %v17488_v60, %v13206_v29 }
 0xd0f   :  { %v11119_v27 = vmax.f32 %v17599_v54, %v17596_v6  ;;  %v11002_v18 = vmax.f32 %v11000_v10, %v11001_v62  ;;  %v11019_v34 = vrot.slane %v11018_v22, 2  ;;  %v11013_v0 = vrot.slane %v11012_v19, 2  ;;  %v10472_v46 = vpop.f32.mrf.mxu0 }
 0xd10   :  { %v10682_v38 = vadd.f32 %v17499_v13, %v10611_v2  ;;  %v10610_v24 = vmul.f32 %v17494_v50, %v10539_v23  ;;  %v10542_v28 = vmax.f32 %v10468_v49, 0.0  ;;  %v10463_v25 = vadd.f32 %v17488_v60, %v10462_v47 }
 0xd11   :  { %v10992_v4 = vmax.f32 %v10990_v45, %v10991_v57  ;;  %v11010_v7 = vmax.f32 %v11008_v61, %v11009_v41  ;;  %v11031_v59 = vrot.slane %v11030_v37, 2  ;;  %v11025_v32 = vrot.slane %v11024_v5, 2 }
 0xd12   :  { %v11041_v40 = vrot.slane %v10682_v38, 4  ;;  %v10681_v9 = vadd.f32 %v17499_v13, %v10610_v24  ;;  %v10613_v44 = vmul.f32 %v17494_v50, %v10542_v28  ;;  %v10541_v26 = vmax.f32 %v10463_v25, 0.0 }
 0xd13   :  { %v11003_v43 = vrot.slane %v11002_v18, 1  ;;  %v11020_v11 = vmax.f32 %v11018_v22, %v11019_v34  ;;  %v11014_v33 = vmax.f32 %v11012_v19, %v11013_v0  ;;  %v10478_v42 = vadd.f32 %v17488_v60, %v13209_v8 }
 0xd14   :  { %v11042_v53 = vmax.f32 %v10682_v38, %v11041_v40  ;;  %v11035_v31 = vrot.slane %v10681_v9, 4  ;;  %v10684_v10 = vadd.f32 %v17499_v13, %v10613_v44  ;;  %v10612_v1 = vmul.f32 %v17494_v50, %v10541_v26 }
 0xd15   :  { %v11032_v15 = vmax.f32 %v11030_v37, %v11031_v59  ;;  %v11026_v39 = vmax.f32 %v11024_v5, %v11025_v32  ;;  %v10544_v51 = vmax.f32 %v10478_v42, 0.0  ;;  %v10473_v29 = vadd.f32 %v17488_v60, %v10472_v46 }
 0xd16   :  { %v11043_v3 = vrot.slane %v11042_v53, 2  ;;  %v11036_v36 = vmax.f32 %v10681_v9, %v11035_v31  ;;  %v11053_v14 = vrot.slane %v10684_v10, 4  ;;  %v10683_v12 = vadd.f32 %v17499_v13, %v10612_v1 }
 0xd17   :  { %v11004_v45 = vmax.f32 %v11002_v18, %v11003_v43  ;;  %v11021_v61 = vrot.slane %v11020_v11, 1  ;;  %v10615_v55 = vmul.f32 %v17494_v50, %v10544_v51  ;;  %v10543_v17 = vmax.f32 %v10473_v29, 0.0 }
 0xd18   :  { %v11015_v20 = vrot.slane %v11014_v33, 1  ;;  %v11037_v58 = vrot.slane %v11036_v36, 2  ;;  %v11054_v6 = vmax.f32 %v10684_v10, %v11053_v14  ;;  %v11047_v48 = vrot.slane %v10683_v12, 4  ;;  %v11965_v14 = vld [vmem:[%s18078_s23] ss:$0 sm:$0xff] }
 0xd19   :  { %v11033_v47 = vrot.slane %v11032_v15, 1  ;;  %v11044_v62 = vmax.f32 %v11042_v53, %v11043_v3  ;;  %v10686_v22 = vadd.f32 %v17499_v13, %v10615_v55  ;;  %v10614_v60 = vmul.f32 %v17494_v50, %v10543_v17  ;;  %v11322_v17 = vld [vmem:[%s13583_s27 + $0x10] sm:$0xff] }
 0xd1a   :  { %v11027_v19 = vrot.slane %v11026_v39, 1  ;;  %v11038_v16 = vmax.f32 %v11036_v36, %v11037_v58  ;;  %v11055_v56 = vrot.slane %v11054_v6, 2  ;;  %v11048_v54 = vmax.f32 %v10683_v12, %v11047_v48  ;;  %v11323_v36 = vld [vmem:[%s13583_s27 + $0x18] sm:$0xff]  ;;  %v11966_v58 = vld [vmem:[%s13578_s20] ss:$0 sm:$0xff]  ;;  %s13414_s20 = smov [#allocation2]  }
 0xd1b   :  { %v11118_v21 = vmax.f32 %v17602_v35, %v10992_v4  ;;  %v11121_v52 = vmax.f32 %v11119_v27, %v11010_v7  ;;  %v11065_v57 = vrot.slane %v10686_v22, 4  ;;  %v10685_v41 = vadd.f32 %v17499_v13, %v10614_v60 }
 0xd1c   :  { %v11022_v37 = vmax.f32 %v11020_v11, %v11021_v61  ;;  %v11016_v5 = vmax.f32 %v11014_v33, %v11015_v20  ;;  %v11056_v2 = vmax.f32 %v11054_v6, %v11055_v56  ;;  %v11049_v23 = vrot.slane %v11048_v54, 2  ;;  %v11320_v20 = vld [vmem:[%s13583_s27] sm:$0xff] }
 0xd1d   :  { %v11045_v49 = vrot.slane %v11044_v62, 1  ;;  %v11039_v8 = vrot.slane %v11038_v16, 1  ;;  %v11066_v18 = vmax.f32 %v10686_v22, %v11065_v57  ;;  %v11059_v34 = vrot.slane %v10685_v41, 4  ;;  %v11968_v22 = vld [vmem:[%s13588_s4] ss:$0 sm:$0xff] }
 0xd1e   :  { %v11120_v0 = vmax.f32 %v11118_v21, %v11004_v45  ;;  %v11034_v50 = vmax.f32 %v11032_v15, %v11033_v47  ;;  %v11028_v38 = vmax.f32 %v11026_v39, %v11027_v19  ;;  %v11050_v24 = vmax.f32 %v11048_v54, %v11049_v23 }
 0xd1f   :  { %v11057_v28 = vrot.slane %v11056_v2, 1  ;;  %v11067_v25 = vrot.slane %v11066_v18, 2  ;;  %v11060_v59 = vmax.f32 %v10685_v41, %v11059_v34  ;;  %v11123_v35 = vmax.f32 %v11121_v52, %v11022_v37 }
 0xd20   :  { %v11122_v27 = vmax.f32 %v11120_v0, %v11016_v5  ;;  %v11051_v4 = vrot.slane %v11050_v24, 1  ;;  %v11046_v7 = vmax.f32 %v11044_v62, %v11045_v49  ;;  %v11040_v13 = vmax.f32 %v11038_v16, %v11039_v8 }
 0xd21   :  { %v11068_v32 = vmax.f32 %v11066_v18, %v11067_v25  ;;  %v11061_v40 = vrot.slane %v11060_v59, 2  ;;  %v11125_v9 = vmax.f32 %v11123_v35, %v11034_v50  ;;  %v11058_v26 = vmax.f32 %v11056_v2, %v11057_v28 }
 0xd22   :  { %v11124_v44 = vmax.f32 %v11122_v27, %v11028_v38  ;;  %v11052_v46 = vmax.f32 %v11050_v24, %v11051_v4 }
 0xd23   :  { %v11069_v43 = vrot.slane %v11068_v32, 1  ;;  %v11062_v11 = vmax.f32 %v11060_v59, %v11061_v40  ;;  %v11127_v33 = vmax.f32 %v11125_v9, %v11046_v7 }
 0xd24   :  { %v11126_v42 = vmax.f32 %v11124_v44, %v11040_v13 }
 0xd25   :  { %v11070_v53 = vmax.f32 %v11068_v32, %v11069_v43  ;;  %v11063_v31 = vrot.slane %v11062_v11, 1  ;;  %v11129_v10 = vmax.f32 %v11127_v33, %v11058_v26 }
 0xd26   :  { %v11128_v1 = vmax.f32 %v11126_v42, %v11052_v46 }
 0xd27   :  { %v11064_v15 = vmax.f32 %v11062_v11, %v11063_v31  ;;  %v11131_v39 = vmax.f32 %v11129_v10, %v11070_v53 }
 0xd29   :  { %v11130_v51 = vmax.f32 %v11128_v1, %v11064_v15 }
 0xd2b   :  { %v11132_v29 = vmax.f32 %v11130_v51, %v11131_v39 }
 0xd2d   :  { %v11158_v3 = vsel %vm4382_vm5, %v11132_v29, %v17453_v63  ;;  %v11321_v63 = vld [vmem:[%s13583_s27 + $0x8] sm:$0xff]  ;;  %s11424_s27 = sshll.u32 %s13414_s20, 4  ;;  %s11425_s27 = int_to_ptr.vmem [resolvable:$true] %s11424_s27 }
 0xd2e   :  { %13243 = vmatmul.mubr.f32.vlgmr.msra.gmra.mxu1 %v11158_v3  ;;  %s13351_s4 = scalar_lea.vmem %s11425_s27, 32  ;;  %p13356_p1 = scmp.lt.s32.totalorder %s11425_s27, %s11425_s27 }
 0xd2f   :  { %13272 = vmatprep.mubr.msk.f32.mxu1 %vm13413_vm1, %v17965_v30  ;;  %13265 = vmatpush3.msra.mxu1 %v11323_v36  ;;  %p13352_p0 = scmp.ne.s32.totalorder %s11425_s27, %s13351_s4  ;;  %p13357_p2 = scmp.lt.s32.totalorder %s13351_s4, %s13351_s4 }
 0xd30   :  { %13266 = vmatprep.subr.mxu1 %v17965_v30 }
 0xd31   :  { %13267 = vmatpush3.msra.mxu1 %v11322_v17  ;;  %p13358_p3 = por %p13357_p2, %p13356_p1 }
 0xd32   :  { %13268 = vmatprep.subr.mxu1 %v17965_v30 }
 0xd33   :  { %13269 = vmatpush3.msra.mxu1 %v11321_v63  ;;  %p13359_p4 = pnand %p13358_p3, %p13352_p0 }
 0xd34   :  { %13270 = vmatprep.subr.mxu1 %v17965_v30 }
 0xd35   :  { %13271 = vmatpush3.msra.mxu1 %v11320_v20 }
 0xdee   :  { %v11226_v12 = vpop.f32.mrf.mxu1 }
 0xdef   :  { %v11227_v45 = vadd.f32 %v11965_v14, %v11226_v12 }
 0xdf0   :  { %v13244_v61 = vpop.f32.mrf.mxu1 }
 0xdf1   :  { %v11230_v55 = vmax.f32 %v11227_v45, 0.0 }
 0xdf3   :  { %13262 = vmatmul.mubr.msk.f32.vlgmr.msra.gmra.mxu0 %vm755_vm4, %v11230_v55  ;;  %vm11404_vm4 = vcmask 1041408  }
 0xeb3   :  { %v11315_v6 = vpop.f32.mrf.mxu0 }
 0xeb4   :  { %v11316_v48 = vadd.f32 %v11966_v58, %v11315_v6 }
 0xeb5   :  { %v13263_v47 = vpop.f32.mrf.mxu0 }
 0xeb6   :  { %v11319_v62 = vmax.f32 %v11316_v48, 0.0 }
 0xeb8   :  { %13273 = vmatmul.mubr.msk.f32.vlgmr.msra.gmra.mxu1 %vm2434_vm15, %v11319_v62 }
 0xf78   :  { %v11400_v60 = vpop.f32.mrf.mxu1 }
 0xf79   :  { %v11401_v19 = vadd.f32 %v11968_v22, %v11400_v60 }
 0xf7a   :  { %v13274_v16 = vpop.f32.mrf.mxu1 }
 0xf7b   :  { %v11405_v56 = vsel %vm11404_vm4, %v11401_v19, -inf }
 0xf7c   :  { %11406 = vmax.xlane.f32.xlu0 %v11405_v56 }
0x1005   :  { %v11407_v54 = vpop.xlane.xlu0 %11406 }
0x1006   :  { %v11408_v21 = vsub.f32 %v11401_v19, %v11407_v54 }
0x1008   :  { %v11409_v52 = vmul.f32 1.442695, %v11408_v21 }
0x100a   :  { %13320 = vpow2.f32 %v11409_v52 }
0x1017   :  { %v13321_v30 = vpop.eup %13320 }
0x1018   :  { %v11411_v57 = vsel %vm11404_vm4, %v13321_v30, 0.0 }
0x1019   :  { %11412 = vadd.xlane.f32.xlu1 %v11411_v57 }
0x10a2   :  { %v11413_v41 = vpop.xlane.xlu1 %11412 }
0x10a3   :  { %13322 = vlog2.f32 %v11413_v41 }
0x10b0   :  { %v13323_v37 = vpop.eup %13322 }
0x10b1   :  { %v11415_v5 = vmul.f32 0.6931472, %v13323_v37 }
0x10b3   :  { %v11416_v2 = vsub.f32 %v11408_v21, %v11415_v5 }
0x10b5   :  { %11417 = vst [vmem:[#allocation2] sm:$0x3] %v11416_v2 }
0x10b6   :  { %13362 = shalt.err (!%p13359_p4)
}
0x10b7   :  { %11427 = dma.vmem_to_hbm [thread:$0]  %s11425_s27, 32, %s13593_s12, [#allocation3]  }
0x10b8   :  { %13371 = dma.done.wait [#allocation3], 32  }
0x10b9   :  { %13372 = vsyncadd [#allocation3], 4294967264 }
0x10ba   :  { %11431 = vsyncpa [#allocation3], 1 }

</bundles_post_ra>
